<compile_context>
chip_gen: v5e
topology: v5e:2x2
jax: 0.10.0
libtpu: 0.0.40
codegen_flags: <defaults>
</compile_context>

<pallas_src>
import jax
import jax.numpy as jnp
from jax.experimental import pallas as pl
from jax.experimental.pallas import tpu as pltpu


# ----------------------------- model dims ------------------------------------
IN_FEATURES = 100 * 100          # 10000
HIDDEN = 500
CLASSES = 6

# padded dims for TPU lane/sublane tiling
K_PAD = 10112                    # 10000 -> next multiple of 128 (lane-dense x,
                                 # 16-sublane-packed bf16 W1; 1.1% pad vs 2.4%)
H_PAD = 512                      # 500   -> multiple of 128 (zero padded)
H_HALF = H_PAD // 2              # 256: one TensorCore's hidden-dim slice (v7x)
C_PAD = 128                      # 6 -> lane-dense logits / output


def _rup(x, m):
    return (x + m - 1) // m * m


# ------------------------------ kernels ---------------------------------------
def bobnet_hidden_kernel(x_ref, w1_ref, b1_ref, h_ref):
    """One hidden-dim half: h_half = relu(x @ W1_half + b1_half).

    Single full-K matmul per grid step (bf16 x / W1 on the MXU, f32 acc);
    grid axis 0 is the hidden-dim half and is 'parallel' -> sharded across the
    two TensorCores on v7x.
    """
    acc = jnp.dot(x_ref[...], w1_ref[...], preferred_element_type=jnp.float32)
    h_ref[...] = jnp.maximum(acc + b1_ref[...], 0.0)


def bobnet_head_kernel(h_ref, w2_ref, b2_ref, o_ref):
    """logits = h @ W2 + b2; out = log_softmax(logits).

    W2 is bf16 (h cast to bf16, f32 accumulation); b2 and the log-softmax stay
    f32 so the -1e30 padded-class bias underflows exactly to exp(...) == 0.
    """
    logits = jnp.dot(h_ref[...].astype(jnp.bfloat16), w2_ref[...],
                     preferred_element_type=jnp.float32) + b2_ref[...]
    m = jnp.max(logits, axis=-1, keepdims=True)
    lse = jnp.log(jnp.sum(jnp.exp(logits - m), axis=-1, keepdims=True)) + m
    o_ref[...] = (logits - lse).astype(o_ref.dtype)


# --------------------------- one-time param prep ------------------------------
def prepare_bobnet_params(w1, b1, w2, b2):
    """Pad + cast parameters ONCE at model init (not per forward call).

    w1: (10000, 500), b1: (500,), w2: (500, 6), b2: (6,) -- all f32.
    Zero padding is mathematically inert: zero W1 rows/cols -> acc 0 -> bias 0
    -> ReLU 0 -> zero W2 rows. Padded classes get bias -1e30 so their exp
    underflows to 0 in the (f32) log-softmax.
    """
    w1_p = (jnp.zeros((K_PAD, H_PAD), jnp.bfloat16)
            .at[:IN_FEATURES, :HIDDEN].set(w1.astype(jnp.bfloat16)))
    b1_p = jnp.zeros((1, H_PAD), jnp.float32).at[0, :HIDDEN].set(b1)
    w2_p = (jnp.zeros((H_PAD, C_PAD), jnp.bfloat16)
            .at[:HIDDEN, :CLASSES].set(w2.astype(jnp.bfloat16)))
    b2_p = jnp.full((1, C_PAD), -1e30, jnp.float32).at[0, :CLASSES].set(b2)
    return w1_p, b1_p, w2_p, b2_p


# ------------------------------ wrapper ---------------------------------------
@jax.jit
def bobnet_forward(x, w1_p, b1_p, w2_p, b2_p):
    """x: (B, 10000) f32; padded params from prepare_bobnet_params.
    Returns (B, 6) f32 log-probs."""
    B = x.shape[0]

    # per-call: only x is padded/cast (tiny at small B: B x 10112 bf16)
    x_p = (jnp.zeros((B, K_PAD), jnp.bfloat16)
           .at[:, :IN_FEATURES].set(x.astype(jnp.bfloat16)))

    # honest VMEM accounting for the hidden kernel (double-buffered inputs +
    # output + headroom); ~18 MiB, safe under v5e/v6e/v7x scoped limits.
    bsub = _rup(max(B, 16), 16)                       # bf16 sublane padding of x
    vmem_limit = (
        2 * K_PAD * H_HALF * 2                        # W1 half tiles (bf16) ~9.9 MiB
        + 2 * bsub * K_PAD * 2                        # x tiles (bf16)
        + 2 * 8 * H_HALF * 4                          # b1 halves
        + 2 * bsub * H_HALF * 4                       # h output halves
        + (8 << 20)                                   # headroom
    )

    # ---- hidden layer: grid over the two hidden-dim halves (parallel on v7x)
    h = pl.pallas_call(
        bobnet_hidden_kernel,
        out_shape=jax.ShapeDtypeStruct((B, H_PAD), jnp.float32),
        grid_spec=pltpu.PrefetchScalarGridSpec(
            num_scalar_prefetch=0,
            grid=(H_PAD // H_HALF,),                               # = 2
            in_specs=[
                pl.BlockSpec((B, K_PAD), lambda j: (0, 0)),        # x (full K)
                pl.BlockSpec((K_PAD, H_HALF), lambda j: (0, j)),   # W1 half
                pl.BlockSpec((1, H_HALF), lambda j: (0, j)),       # b1 half
            ],
            out_specs=pl.BlockSpec((B, H_HALF), lambda j: (0, j)),  # h half
        ),
        compiler_params=pltpu.CompilerParams(
            dimension_semantics=("parallel",),    # both TCs stream W1 on v7x
            vmem_limit_bytes=vmem_limit,
        ),
    )(x_p, w1_p, b1_p)

    # ---- tiny head: logits + log-softmax (single step, lane-dense output)
    out = pl.pallas_call(
        bobnet_head_kernel,
        out_shape=jax.ShapeDtypeStruct((B, C_PAD), jnp.float32),
        grid_spec=pltpu.PrefetchScalarGridSpec(
            num_scalar_prefetch=0,
            grid=(1,),
            in_specs=[
                pl.BlockSpec((B, H_PAD), lambda i: (0, 0)),
                pl.BlockSpec((H_PAD, C_PAD), lambda i: (0, 0)),
                pl.BlockSpec((1, C_PAD), lambda i: (0, 0)),
            ],
            out_specs=pl.BlockSpec((B, C_PAD), lambda i: (0, 0)),
        ),
        compiler_params=pltpu.CompilerParams(
            dimension_semantics=("arbitrary",),
        ),
    )(h, w2_p, b2_p)

    return out[:, :CLASSES]


# --------------------------- pure-JAX reference --------------------------------
def bobnet_ref(x, w1, b1, w2, b2):
    h = jnp.maximum(x @ w1 + b1, 0.0)
    logits = h @ w2 + b2
    return jax.nn.log_softmax(logits, axis=1)


# ------------------------------ main ------------------------------------------
if __name__ == "__main__":
    key = jax.random.PRNGKey(0)
    kx, k1, k2, k3, k4 = jax.random.split(key, 5)

    B = 2
    x = jax.random.normal(kx, (B, IN_FEATURES), jnp.float32)

    # deterministic parameter init (PyTorch-Linear-style uniform +/- 1/sqrt(fan_in))
    bound1 = 1.0 / (IN_FEATURES ** 0.5)
    w1 = jax.random.uniform(k1, (IN_FEATURES, HIDDEN), jnp.float32, -bound1, bound1)
    b1 = jax.random.uniform(k2, (HIDDEN,), jnp.float32, -bound1, bound1)
    bound2 = 1.0 / (HIDDEN ** 0.5)
    w2 = jax.random.uniform(k3, (IN_FEATURES // IN_FEATURES * HIDDEN, CLASSES),
                            jnp.float32, -bound2, bound2)
    b2 = jax.random.uniform(k4, (CLASSES,), jnp.float32, -bound2, bound2)

    # one-time padding / bf16 cast (hoisted out of the per-call path)
    params = prepare_bobnet_params(w1, b1, w2, b2)

    out = bobnet_forward(x, *params)
    out = jax.block_until_ready(out)

    ref = bobnet_ref(x, w1, b1, w2, b2)
    assert out.shape == (B, CLASSES)
    # bf16 streaming of x/W1 (and bf16 h/W2 in the tiny head) -> relaxed tol
    assert jnp.allclose(out, ref, atol=2e-2, rtol=2e-2), "mismatch vs reference"

    print("KERNEL_OK")
</pallas_src>

<mosaic_0001>
module attributes {stable_mosaic.version = 11 : i64} {
  func.func @bobnet_hidden_kernel(%arg0: i32, %arg1: memref<2x10112xbf16, #tpu.memory_space<vmem>>, %arg2: memref<10112x256xbf16, #tpu.memory_space<vmem>>, %arg3: memref<1x256xf32, #tpu.memory_space<vmem>>, %arg4: memref<2x256xf32, #tpu.memory_space<vmem>>) attributes {dimension_semantics = [#tpu.dimension_semantics<parallel>], iteration_bounds = array<i64: 2>, scalar_prefetch = 0 : i64, scratch_operands = 0 : i64, tpu.core_type = #tpu.core_type<tc>, window_params = [{pipeline_mode = #tpu.pipeline_mode<synchronous>, transform_indices = @transform_0, window_bounds = array<i64: 2, 10112>}, {transform_indices = @transform_1, window_bounds = array<i64: 10112, 256>}, {transform_indices = @transform_2, window_bounds = array<i64: 1, 256>}, {transform_indices = @transform_3, window_bounds = array<i64: 2, 256>}]} {
    %c0 = arith.constant 0 : index
    %c0_0 = arith.constant 0 : index
    %0 = vector.load %arg1[%c0, %c0_0] : memref<2x10112xbf16, #tpu.memory_space<vmem>>, vector<2x10112xbf16>
    %c0_1 = arith.constant 0 : index
    %c0_2 = arith.constant 0 : index
    %1 = vector.load %arg2[%c0_1, %c0_2] : memref<10112x256xbf16, #tpu.memory_space<vmem>>, vector<10112x256xbf16>
    %cst = arith.constant dense<0.000000e+00> : vector<2x256xf32>
    %2 = tpu.matmul %0, %1, %cst {dimension_numbers = #tpu.dot_dimension_numbers<[1], [0], [0], [1], [0, 0, 1, 1], [], []>} : vector<2x10112xbf16>, vector<10112x256xbf16>, vector<2x256xf32> -> vector<2x256xf32>
    %c0_3 = arith.constant 0 : index
    %c0_4 = arith.constant 0 : index
    %3 = vector.load %arg3[%c0_3, %c0_4] : memref<1x256xf32, #tpu.memory_space<vmem>>, vector<1x256xf32>
    %4 = vector.broadcast %3 : vector<1x256xf32> to vector<2x256xf32>
    %5 = arith.addf %2, %4 : vector<2x256xf32>
    %cst_5 = arith.constant 0.000000e+00 : f32
    %6 = vector.broadcast %cst_5 : f32 to vector<2x256xf32>
    %7 = arith.maximumf %5, %6 : vector<2x256xf32>
    %c0_6 = arith.constant 0 : index
    %c0_7 = arith.constant 0 : index
    %8 = vector.load %arg4[%c0_6, %c0_7] : memref<2x256xf32, #tpu.memory_space<vmem>>, vector<2x256xf32>
    tpu.vector_store %arg4[%c0_6, %c0_7], %7 {strides = array<i32>} : memref<2x256xf32, #tpu.memory_space<vmem>>, vector<2x256xf32>,
    return
  }
  func.func @transform_0(%arg0: i32) -> (i32, i32) {
    %c0_i32 = arith.constant 0 : i32
    %c0_i32_0 = arith.constant 0 : i32
    %c0_i32_1 = arith.constant 0 : i32
    return %c0_i32, %c0_i32_0 : i32, i32
  }
  func.func @transform_1(%arg0: i32) -> (i32, i32) {
    %c0_i32 = arith.constant 0 : i32
    %c0_i32_0 = arith.constant 0 : i32
    return %c0_i32, %arg0 : i32, i32
  }
  func.func @transform_2(%arg0: i32) -> (i32, i32) {
    %c0_i32 = arith.constant 0 : i32
    %c0_i32_0 = arith.constant 0 : i32
    return %c0_i32, %arg0 : i32, i32
  }
  func.func @transform_3(%arg0: i32) -> (i32, i32) {
    %c0_i32 = arith.constant 0 : i32
    %c0_i32_0 = arith.constant 0 : i32
    return %c0_i32, %arg0 : i32, i32
  }
}

module attributes {stable_mosaic.version = 11 : i64} {
  func.func @bobnet_head_kernel(%arg0: i32, %arg1: memref<2x512xf32, #tpu.memory_space<vmem>>, %arg2: memref<512x128xbf16, #tpu.memory_space<vmem>>, %arg3: memref<1x128xf32, #tpu.memory_space<vmem>>, %arg4: memref<2x128xf32, #tpu.memory_space<vmem>>) attributes {dimension_semantics = [#tpu.dimension_semantics<arbitrary>], iteration_bounds = array<i64: 1>, scalar_prefetch = 0 : i64, scratch_operands = 0 : i64, tpu.core_type = #tpu.core_type<tc>, window_params = [{pipeline_mode = #tpu.pipeline_mode<synchronous>, transform_indices = @transform_0, window_bounds = array<i64: 2, 512>}, {pipeline_mode = #tpu.pipeline_mode<synchronous>, transform_indices = @transform_1, window_bounds = array<i64: 512, 128>}, {pipeline_mode = #tpu.pipeline_mode<synchronous>, transform_indices = @transform_2, window_bounds = array<i64: 1, 128>}, {pipeline_mode = #tpu.pipeline_mode<synchronous>, transform_indices = @transform_3, window_bounds = array<i64: 2, 128>}]} {
    %c0 = arith.constant 0 : index
    %c0_0 = arith.constant 0 : index
    %0 = vector.load %arg1[%c0, %c0_0] : memref<2x512xf32, #tpu.memory_space<vmem>>, vector<2x512xf32>
    %1 = arith.truncf %0 : vector<2x512xf32> to vector<2x512xbf16>
    %c0_1 = arith.constant 0 : index
    %c0_2 = arith.constant 0 : index
    %2 = vector.load %arg2[%c0_1, %c0_2] : memref<512x128xbf16, #tpu.memory_space<vmem>>, vector<512x128xbf16>
    %cst = arith.constant dense<0.000000e+00> : vector<2x128xf32>
    %3 = tpu.matmul %1, %2, %cst {dimension_numbers = #tpu.dot_dimension_numbers<[1], [0], [0], [1], [0, 0, 1, 1], [], []>} : vector<2x512xbf16>, vector<512x128xbf16>, vector<2x128xf32> -> vector<2x128xf32>
    %c0_3 = arith.constant 0 : index
    %c0_4 = arith.constant 0 : index
    %4 = vector.load %arg3[%c0_3, %c0_4] : memref<1x128xf32, #tpu.memory_space<vmem>>, vector<1x128xf32>
    %5 = vector.broadcast %4 : vector<1x128xf32> to vector<2x128xf32>
    %6 = arith.addf %3, %5 : vector<2x128xf32>
    %cst_5 = arith.constant dense<0xFF800000> : vector<2xf32>
    %7 = vector.multi_reduction <maximumf>, %6, %cst_5 [1] : vector<2x128xf32> to vector<2xf32>
    %8 = vector.shape_cast %7 : vector<2xf32> to vector<2x1xf32>
    %9 = vector.broadcast %8 : vector<2x1xf32> to vector<2x128xf32>
    %10 = arith.subf %6, %9 : vector<2x128xf32>
    %11 = math.exp %10 : vector<2x128xf32>
    %cst_6 = arith.constant dense<0.000000e+00> : vector<2xf32>
    %12 = vector.multi_reduction <add>, %11, %cst_6 [1] : vector<2x128xf32> to vector<2xf32>
    %13 = vector.shape_cast %12 : vector<2xf32> to vector<2x1xf32>
    %14 = math.log %13 : vector<2x1xf32>
    %15 = arith.addf %14, %8 : vector<2x1xf32>
    %16 = vector.broadcast %15 : vector<2x1xf32> to vector<2x128xf32>
    %17 = arith.subf %6, %16 : vector<2x128xf32>
    %c0_7 = arith.constant 0 : index
    %c0_8 = arith.constant 0 : index
    %18 = vector.load %arg4[%c0_7, %c0_8] : memref<2x128xf32, #tpu.memory_space<vmem>>, vector<2x128xf32>
    tpu.vector_store %arg4[%c0_7, %c0_8], %17 {strides = array<i32>} : memref<2x128xf32, #tpu.memory_space<vmem>>, vector<2x128xf32>,
    return
  }
  func.func @transform_0(%arg0: i32) -> (i32, i32) {
    %c0_i32 = arith.constant 0 : i32
    %c0_i32_0 = arith.constant 0 : i32
    %c0_i32_1 = arith.constant 0 : i32
    return %c0_i32, %c0_i32_0 : i32, i32
  }
  func.func @transform_1(%arg0: i32) -> (i32, i32) {
    %c0_i32 = arith.constant 0 : i32
    %c0_i32_0 = arith.constant 0 : i32
    %c0_i32_1 = arith.constant 0 : i32
    return %c0_i32, %c0_i32_0 : i32, i32
  }
  func.func @transform_2(%arg0: i32) -> (i32, i32) {
    %c0_i32 = arith.constant 0 : i32
    %c0_i32_0 = arith.constant 0 : i32
    %c0_i32_1 = arith.constant 0 : i32
    return %c0_i32, %c0_i32_0 : i32, i32
  }
  func.func @transform_3(%arg0: i32) -> (i32, i32) {
    %c0_i32 = arith.constant 0 : i32
    %c0_i32_0 = arith.constant 0 : i32
    %c0_i32_1 = arith.constant 0 : i32
    return %c0_i32, %c0_i32_0 : i32, i32
  }
}

</mosaic_0001>

<bundles_post_ra>
// kernel: bobnet_forward.3
= control target key start
LH: loop header
LB: loop body
LE: loop exit
PB: predicated region body
PF: predicated region fallthrough
CT: control target
= control target key end

     0   :  { %8 = vsyncpa [#allocation3], 0  ;;  %s690_s0 = inlined_call_operand.vmem [shape: f32[2,512], index: 0, kind: input, shape index: {}]   ;;  %s691_s1 = inlined_call_operand.hbm [shape: bf16[512,128], index: 1, kind: input, shape index: {}]   ;;  %s692_s2 = inlined_call_operand.hbm [shape: f32[1,128], index: 2, kind: input, shape index: {}]   ;;  %s693_s3 = inlined_call_operand.hbm [shape: f32[2,128], index: 3, kind: output, shape index: {}]  }
   0x1   :  { %9 = vsyncpa [#allocation6], 0 }
   0x2   :  { %10 = vsyncpa [#allocation4], 0  ;;  %s17_s14 = sshll.u32 %s691_s1, 4  ;;  %s653_s15 = smov [#allocation2]   ;;  %s18_s14 = int_to_ptr.hbm [resolvable:$true] %s17_s14 }
   0x3   :  { %s19_s16 = sshll.u32 %s653_s15, 4  ;;  %s31_s19 = sshll.u32 %s692_s2, 4  ;;  %s20_s16 = int_to_ptr.vmem [resolvable:$true] %s19_s16  ;;  %s32_s19 = int_to_ptr.hbm [resolvable:$true] %s31_s19 }
   0x4   :  { %s654_s20 = smov 64   ;;  %s655_s21 = smov 4  }
   0x5   :  { %25 = dma.hbm_to_vmem [thread:$0]  %s18_s14, 4096, %s20_s16, [#allocation3], %s654_s20, %s654_s20, %s655_s21  }
   0x6   :  { %s656_s22 = smov [#allocation5]  }
   0x7   :  { %s33_s23 = sshll.u32 %s656_s22, 4  ;;  %s34_s23 = int_to_ptr.vmem [resolvable:$true] %s33_s23 }
   0x8   :  { %36 = dma.hbm_to_vmem [thread:$0]  %s32_s19, 16, %s34_s23, [#allocation6]  }
   0x9   :  { %647 = dma.done.wait [#allocation3], 4096  }
   0xa   :  { %648 = vsyncadd [#allocation3], 4294963200 }
   0xb   :  { %649 = dma.done.wait [#allocation6], 16  }
   0xc   :  { %650 = vsyncadd [#allocation6], 4294967280  ;;  %v540_v0 = vld [vmem:[#allocation2 + $0x38] sm:$0xff]  ;;  %v539_v4 = vld [vmem:[#allocation2 + $0x30] sm:$0xff]  ;;  %vm372_vm0 = vcmask 1041408   ;;  %s394_s27 = sshll.u32 %s693_s3, 4  ;;  %s395_s27 = int_to_ptr.hbm [resolvable:$true] %s394_s27 }
   0xd   :  { %v548_v1 = vld [vmem:[#allocation2 + $0x78] sm:$0xff]  ;;  %320 = vmatpush.bf16.msra.mxu0 %v540_v0  ;;  %v547_v5 = vld [vmem:[#allocation2 + $0x70] sm:$0xff]  ;;  %v538_v8 = vld [vmem:[#allocation2 + $0x28] sm:$0xff] }
   0xe   :  { %v556_v2 = vld [vmem:[#allocation2 + $0xb8] sm:$0xff]  ;;  %333 = vmatpush.bf16.msra.mxu1 %v548_v1  ;;  %v555_v6 = vld [vmem:[#allocation2 + $0xb0] sm:$0xff]  ;;  %v546_v9 = vld [vmem:[#allocation2 + $0x68] sm:$0xff] }
   0xf   :  { %v564_v3 = vld [vmem:[#allocation2 + $0xf8] sm:$0xff]  ;;  %346 = vmatpush.bf16.msra.mxu2 %v556_v2  ;;  %v563_v7 = vld [vmem:[#allocation2 + $0xf0] sm:$0xff]  ;;  %v554_v10 = vld [vmem:[#allocation2 + $0xa8] sm:$0xff] }
  0x10   :  { %359 = vmatpush.bf16.msra.mxu3 %v564_v3  ;;  %v562_v11 = vld [vmem:[#allocation2 + $0xe8] sm:$0xff]  ;;  %v537_v12 = vld [vmem:[#allocation2 + $0x20] sm:$0xff]  ;;  %v45_v14 = vld [vmem:[%s690_s0] sm:$0xff]  ;;  %s657_s0 = smov [#allocation7]  }
  0x11   :  { %321 = vmatpush.bf16.msra.mxu0 %v539_v4  ;;  %v545_v13 = vld [vmem:[#allocation2 + $0x60] sm:$0xff]  ;;  %47 = vst [vmem:[#allocation1] ss:$4 sm:$0xff] %v45_v14  ;;  %v536_v17 = vld [vmem:[#allocation2 + $0x18] sm:$0xff]  ;;  %v535_v21 = vld [vmem:[#allocation2 + $0x10] sm:$0xff]  ;;  %s392_s24 = sshll.u32 %s657_s0, 4  ;;  %s393_s24 = int_to_ptr.vmem [resolvable:$true] %s392_s24 }
  0x12   :  { %334 = vmatpush.bf16.msra.mxu1 %v547_v5  ;;  %v553_v15 = vld [vmem:[#allocation2 + $0xa0] sm:$0xff]  ;;  %v544_v18 = vld [vmem:[#allocation2 + $0x58] sm:$0xff]  ;;  %v543_v22 = vld [vmem:[#allocation2 + $0x50] sm:$0xff] }
  0x13   :  { %347 = vmatpush.bf16.msra.mxu2 %v555_v6  ;;  %v561_v16 = vld [vmem:[#allocation2 + $0xe0] sm:$0xff]  ;;  %v552_v19 = vld [vmem:[#allocation2 + $0x98] sm:$0xff]  ;;  %v551_v23 = vld [vmem:[#allocation2 + $0x90] sm:$0xff] }
  0x14   :  { %360 = vmatpush.bf16.msra.mxu3 %v563_v7  ;;  %v560_v20 = vld [vmem:[#allocation2 + $0xd8] sm:$0xff]  ;;  %v559_v24 = vld [vmem:[#allocation2 + $0xd0] sm:$0xff]  ;;  %v534_v25 = vld [vmem:[#allocation2 + $0x8] sm:$0xff] }
  0x15   :  { %322 = vmatpush.bf16.msra.mxu0 %v538_v8  ;;  %v542_v26 = vld [vmem:[#allocation2 + $0x48] sm:$0xff]  ;;  %v533_v29 = vld [vmem:[#allocation2] sm:$0xff] }
  0x16   :  { %335 = vmatpush.bf16.msra.mxu1 %v546_v9  ;;  %v550_v27 = vld [vmem:[#allocation2 + $0x88] sm:$0xff]  ;;  %v541_v30 = vld [vmem:[#allocation2 + $0x40] sm:$0xff] }
  0x17   :  { %348 = vmatpush.bf16.msra.mxu2 %v554_v10  ;;  %v558_v28 = vld [vmem:[#allocation2 + $0xc8] sm:$0xff]  ;;  %v549_v31 = vld [vmem:[#allocation2 + $0x80] sm:$0xff] }
  0x18   :  { %361 = vmatpush.bf16.msra.mxu3 %v562_v11  ;;  %v557_v32 = vld [vmem:[#allocation2 + $0xc0] sm:$0xff]  ;;  %v48_v33 = vld.sshfl [vmem:[#allocation1] sm:$0xff pattern:$0x73625140] }
  0x19   :  { %323 = vmatpush.bf16.msra.mxu0 %v537_v12  ;;  %v49_v34 = vld.sshfl [vmem:[#allocation1 + $0x8] sm:$0xff pattern:$0x73625140]  ;;  %v50_v35 = vld.sshfl [vmem:[#allocation1 + $0x10] sm:$0xff pattern:$0x73625140]  ;;  %v56_v37 = vpack.c.bf16 %v48_v33, %v48_v33 }
  0x1a   :  { %336 = vmatpush.bf16.msra.mxu1 %v545_v13  ;;  %v51_v36 = vld.sshfl [vmem:[#allocation1 + $0x18] sm:$0xff pattern:$0x73625140]  ;;  %v57_v38 = vpack.c.bf16 %v49_v34, %v49_v34  ;;  %v58_v39 = vpack.c.bf16 %v50_v35, %v50_v35  ;;  %v570_v41 = vld [vmem:[#allocation5] ss:$0 sm:$0xff] }
  0x1b   :  { %349 = vmatpush.bf16.msra.mxu2 %v553_v15  ;;  %v59_v40 = vpack.c.bf16 %v51_v36, %v51_v36 }
  0x1c   :  { %362 = vmatpush.bf16.msra.mxu3 %v561_v16 }
  0x1d   :  { %324 = vmatpush.bf16.msra.mxu0 %v536_v17 }
  0x1e   :  { %337 = vmatpush.bf16.msra.mxu1 %v544_v18 }
  0x1f   :  { %350 = vmatpush.bf16.msra.mxu2 %v552_v19 }
  0x20   :  { %363 = vmatpush.bf16.msra.mxu3 %v560_v20 }
  0x21   :  { %325 = vmatpush.bf16.msra.mxu0 %v535_v21 }
  0x22   :  { %338 = vmatpush.bf16.msra.mxu1 %v543_v22 }
  0x23   :  { %351 = vmatpush.bf16.msra.mxu2 %v551_v23 }
  0x24   :  { %364 = vmatpush.bf16.msra.mxu3 %v559_v24 }
  0x25   :  { %326 = vmatpush.bf16.msra.mxu0 %v534_v25 }
  0x26   :  { %339 = vmatpush.bf16.msra.mxu1 %v542_v26 }
  0x27   :  { %352 = vmatpush.bf16.msra.mxu2 %v550_v27 }
  0x28   :  { %365 = vmatpush.bf16.msra.mxu3 %v558_v28 }
  0x29   :  { %327 = vmatpush.bf16.msra.mxu0 %v533_v29 }
  0x2a   :  { %340 = vmatpush.bf16.msra.mxu1 %v541_v30 }
  0x2b   :  { %353 = vmatpush.bf16.msra.mxu2 %v549_v31 }
  0x2c   :  { %366 = vmatpush.bf16.msra.mxu3 %v557_v32  ;;  %328 = vmatmul.bf16.vlgmr.msra.gmra.mxu0 %v56_v37 }
  0x2d   :  { %341 = vmatmul.bf16.vlgmr.msra.gmra.mxu1 %v57_v38 }
  0x2e   :  { %354 = vmatmul.bf16.vlgmr.msra.gmra.mxu2 %v58_v39 }
  0x2f   :  { %367 = vmatmul.bf16.vlgmr.msra.gmra.mxu3 %v59_v40 }
  0xa9   :  { %v329_v42 = vpop.f32.mrf.mxu0 }
  0xaa   :  { %v342_v43 = vpop.f32.mrf.mxu1  ;;  %v330_v44 = vadd.f32 %v570_v41, %v329_v42 }
  0xac   :  { %v343_v45 = vadd.f32 %v342_v43, %v330_v44 }
  0xb1   :  { %v355_v46 = vpop.f32.mrf.mxu2  ;;  %v331_v49 = vpop.f32.mrf.mxu0 }
  0xb2   :  { %v368_v47 = vpop.f32.mrf.mxu3  ;;  %v356_v48 = vadd.f32 %v355_v46, %v343_v45  ;;  %v344_v50 = vpop.f32.mrf.mxu1 }
  0xb4   :  { %v369_v51 = vadd.f32 %v368_v47, %v356_v48 }
  0xb6   :  { %v373_v52 = vsel %vm372_vm0, %v369_v51, -inf }
  0xb7   :  { %374 = vmax.xlane.f32.xlu0 %v373_v52 }
  0xb9   :  { %v357_v53 = vpop.f32.mrf.mxu2 }
  0xba   :  { %v370_v54 = vpop.f32.mrf.mxu3 }
 0x12a   :  { %v375_v55 = vpop.xlane.xlu0 %374 }
 0x12b   :  { %v376_v56 = vsub.f32 %v369_v51, %v375_v55 }
 0x12d   :  { %v377_v57 = vmul.f32 1.442695, %v376_v56 }
 0x12f   :  { %571 = vpow2.f32 %v377_v57 }
 0x135   :  { %v572_v58 = vpop.eup %571 }
 0x136   :  { %v379_v59 = vsel %vm372_vm0, %v572_v58, 0.0 }
 0x137   :  { %380 = vadd.xlane.f32.xlu0 %v379_v59 }
 0x1aa   :  { %v381_v60 = vpop.xlane.xlu0 %380 }
 0x1ab   :  { %573 = vlog2.f32 %v381_v60 }
 0x1b1   :  { %v574_v61 = vpop.eup %573 }
 0x1b2   :  { %v383_v62 = vmul.f32 0.6931472, %v574_v61 }
 0x1b4   :  { %v384_v63 = vadd.f32 %v383_v62, %v375_v55 }
 0x1b6   :  { %v385_v0 = vsub.f32 %v369_v51, %v384_v63 }
 0x1b8   :  { %386 = vst [vmem:[#allocation7] sm:$0x3] %v385_v0 }
 0x1b9   :  { %397 = dma.vmem_to_hbm [thread:$0]  %s393_s24, 32, %s395_s27, [#allocation4]  }
 0x1ba   :  { %651 = dma.done.wait [#allocation4], 32  }
 0x1bb   :  { %652 = vsyncadd [#allocation4], 4294967264 }
 0x1bc   :  { %402 = vsyncpa [#allocation3], 1 }
 0x1bd   :  { %403 = vsyncpa [#allocation6], 1 }
 0x1be   :  { %404 = vsyncpa [#allocation4], 1 }

// kernel: bobnet_forward.2
= control target key start
LH: loop header
LB: loop body
LE: loop exit
PB: predicated region body
PF: predicated region fallthrough
CT: control target
= control target key end

     0   :  { %8 = vsyncpa [#allocation3], 0  ;;  %s19755_s0 = inlined_call_operand.vmem [shape: bf16[2,10112], index: 0, kind: input, shape index: {}]   ;;  %s19756_s1 = inlined_call_operand.hbm [shape: bf16[10112,512], index: 1, kind: input, shape index: {}]   ;;  %s19757_s2 = inlined_call_operand.hbm [shape: f32[1,512], index: 2, kind: input, shape index: {}]   ;;  %s19758_s3 = inlined_call_operand.vmem [shape: f32[2,512], index: 3, kind: output, shape index: {}]  }
   0x1   :  { %10 = vsyncpa [#allocation3 + $0x1], 0 }
   0x2   :  { %11 = vsyncpa [#allocation5], 0 }
   0x3   :  { %13 = vsyncpa [#allocation5 + $0x1], 0  ;;  %s16681_s12 = smov 0   ;;  %s16683_s13 = smov 0  }
   0x4   :  { %s16685_s14 = smov 0   ;;  %s16687_s15 = smov 0  }
   0x5 LB: > { %s10166_s16 = sadd.s32 4294967295, %s16656_s15   ;;  %s16701_s17 = sadd.s32 1, %s16656_s15   ;;  %s16656_s15 = sphi %s16687_s15, %s19879_s15   ;;  %s16652_s14 = sphi %s16685_s14, %s19878_s14   ;;  %s16648_s13 = sphi %s16683_s13, %s19877_s13   ;;  %s16644_s12 = sphi %s16681_s12, %s19876_s12  }
   0x6   : > { %s44_s18 = ssub.s32 %s16656_s15, %s16701_s17  ;;  %s47_s19 = sadd.s32 1, %s16652_s14 }
   0x7   : > { %p45_p0 = scmp.eq.s32.totalorder %s44_s18, 0  ;;  %p54_p1 = scmp.ne.s32.totalorder %s16652_s14, %s16648_s13 }
   0x8   : > { %p55_p2 = scmp.eq.s32.totalorder %s16656_s15, 0  ;;  %p60_p3 = scmp.ne.s32.totalorder %s16648_s13, %s16644_s12 }
   0x9   : > { %s16711_s20 = scalar_select %p45_p0, %s16652_s14, %s47_s19  }
   0xa   : > { %p56_p4 = por %p55_p2, %p54_p1  ;;  %p61_p5 = scmp.eq.s32.totalorder %s10166_s16, 0 }
   0xb   : > { %p16514_p6 = scmp.lt.s32.totalorder %s16656_s15, 2  ;;  %s16721_s22 = sand.u32 1, %s16652_s14  }
   0xc   : > { %p16716_p7 = por %p61_p5, %p60_p3  ;;  %s16501_s23 = smul.u32 10112, %s16721_s22 }
   0xd   : > { %s15236_s24 = sshll.u32 %s16656_s15, 3  ;;  %p16725_p8 = pnand %p16514_p6, %p56_p4 }
   0xe   : > { %s148_s28 = scalar_lea.hbm %s19756_s1, %s15236_s24  ;;  %s143_s30 = scalar_lea.vmem [#allocation2], %s16501_s23 }
   0xf   : > { %s149_s29 = sshll.u32 %s148_s28, 4  ;;  %s151_s4 = sshll.u32 %s143_s30, 4  ;;  %s150_s29 = int_to_ptr.hbm [resolvable:$true] %s149_s29  ;;  %s152_s4 = int_to_ptr.vmem [resolvable:$true] %s151_s4 }
  0x10   : > { %s140_s5 = scalar_lea.sflag [#allocation3], %s16721_s22  ;;  %s16558_s6 = sshra.s32 %s150_s29, 4  ;;  %s16559_s6 = int_to_ptr.hbm [resolvable:$true] %s16558_s6 }
  0x11   : > { %s16560_s7 = scalar_lea.hbm %s16559_s6, 10112  ;;  %p16562_p10 = pneg %p16725_p8 }
  0x12   : > { %p16561_p9 = scmp.ne.s32.totalorder %s16559_s6, %s16560_s7  ;;  %s16565_s10 = scalar_lea.hbm %s19756_s1, 20224 }
  0x13   : > { %p16566_p13 = scmp.lt.s32.totalorder %s16559_s6, %s19756_s1  ;;  %p16567_p0 = scmp.lt.s32.totalorder %s16565_s10, %s16560_s7 }
  0x14   : > { %p16563_p11 = pnand %p16562_p10, %p16561_p9 }
  0x15   : > { %p16568_p1 = por %p16567_p0, %p16566_p13 }
  0x16   : > { %p16564_p12 = pneg %p16563_p11 }
  0x18   : > { %p16569_p2 = pnand %p16568_p1, %p16564_p12 }
  0x1a   : > { %16572 = shalt.err (!%p16569_p2)
}
  0x1b   : > { %s16658_s18 = smov 256   ;;  %s16659_s19 = smov 128  }
  0x1c   : > { %s16660_s23 = smov 8   ;;  %p10174_p3 = scmp.ge.s32.totalorder %s16656_s15, 1 }
  0x1d   : > { %16510 = dma.hbm_to_vmem [thread:$0]  (!%p16725_p8), %s150_s29, 161792, %s152_s4, %s140_s5, %s16658_s18, %s16659_s19, %s16660_s23  }
  0x1e   : > { %p178_p4 = scmp.lt.s32.totalorder %s16656_s15, 3  ;;  %s10172_s24 = sshll.u32 %s16721_s22, 1 }
  0x1f   : > { %s10173_s27 = sshll.u32 %s16656_s15, 1  ;;  %s165_s28 = scalar_lea.vmem [#allocation4], %s10172_s24 }
  0x20   : > { %p16749_p5 = pnand %p10174_p3, %p178_p4  ;;  %s173_s30 = sshll.u32 %s165_s28, 4  ;;  %s174_s30 = int_to_ptr.vmem [resolvable:$true] %s173_s30 }
  0x21   : > { %s169_s8 = scalar_lea.hbm %s19757_s2, %s10173_s27  ;;  %s162_s10 = scalar_lea.sflag [#allocation5], %s16721_s22 }
  0x22   : > { %s171_s9 = sshll.u32 %s169_s8, 4  ;;  %s16595_s12 = scalar_lea.hbm %s19757_s2, 4  ;;  %s172_s9 = int_to_ptr.hbm [resolvable:$true] %s171_s9 }
  0x23   : > { %s16588_s29 = sshra.s32 %s172_s9, 4  ;;  %s16589_s29 = int_to_ptr.hbm [resolvable:$true] %s16588_s29 }
  0x24   : > { %s16590_s4 = scalar_lea.hbm %s16589_s29, 2  ;;  %p16596_p12 = scmp.lt.s32.totalorder %s16589_s29, %s19757_s2 }
  0x25   : > { %p16591_p6 = scmp.ne.s32.totalorder %s16589_s29, %s16590_s4  ;;  %p16597_p13 = scmp.lt.s32.totalorder %s16595_s12, %s16590_s4 }
  0x27   : > { %p16593_p9 = pnand %p16591_p6, %p16562_p10  ;;  %p16598_p0 = por %p16597_p13, %p16596_p12 }
  0x29   : > { %p16594_p11 = pneg %p16593_p9 }
  0x2b   : > { %p16599_p1 = pnand %p16598_p0, %p16594_p11 }
  0x2d   : > { %16602 = shalt.err (!%p16599_p1)
}
  0x2e   : > { %16513 = dma.hbm_to_vmem [thread:$0]  (!%p16725_p8), %s172_s9, 32, %s174_s30, %s162_s10  }
  0x2f   : > { %182 = sbr.rel (%p16749_p5) target bundleno = 1478 (0x5c6), region = 32 }
  0x34   : > { %s184_s22 = sand.u32 1, %s16648_s13  }
  0x35   : > { %s16502_s23 = smul.u32 10112, %s184_s22  ;;  %s185_s24 = scalar_lea.sflag [#allocation3], %s184_s22 }
  0x37   : > { %s16772_s27 = scalar_lea.vmem [#allocation2], %s16502_s23 }
  0x38   : > { %16635 = dma.done.wait (%p16716_p7), %s185_s24, 161792  }
  0x39   : > { %16637 = vsyncadd (%p16716_p7), %s185_s24, 4294805504  ;;  %s10175_s28 = sshll.u32 %s184_s22, 1  ;;  %s195_s6 = scalar_lea.sflag [#allocation5], %s184_s22 }
  0x3a   : > { %s16778_s25 = scalar_lea.vmem [#allocation4], %s10175_s28 }
  0x3b   : > { %16639 = dma.done.wait (%p16716_p7), %s195_s6, 32  }
  0x3c   : > { %16641 = vsyncadd (%p16716_p7), %s195_s6, 4294967264  ;;  %v10236_v0 = vld [vmem:[%s16772_s27 + $0x70] sm:$0xf]  ;;  %v15252_v1 = vld [vmem:[%s16772_s27 + $0x74] sm:$0xf0]  ;;  %vm10072_vm0 = vcmask 1041408  }
  0x3d   : > { %v10300_v2 = vld [vmem:[%s16772_s27 + $0xf0] sm:$0xf]  ;;  %v10237_v3 = vor.u32 %v15252_v1, %v10236_v0  ;;  %v15268_v4 = vld [vmem:[%s16772_s27 + $0xf4] sm:$0xf0]  ;;  %v10228_v11 = vld [vmem:[%s16772_s27 + $0x60] sm:$0xf] }
  0x3e   : > { %v10364_v5 = vld [vmem:[%s16772_s27 + $0x170] sm:$0xf]  ;;  %v15284_v6 = vld [vmem:[%s16772_s27 + $0x174] sm:$0xf0]  ;;  %v10301_v7 = vor.u32 %v15268_v4, %v10300_v2  ;;  %v15250_v13 = vld [vmem:[%s16772_s27 + $0x64] sm:$0xf0] }
  0x3f   : > { %v10365_v8 = vor.u32 %v15284_v6, %v10364_v5  ;;  %v10428_v9 = vld [vmem:[%s16772_s27 + $0x1f0] sm:$0xf]  ;;  %v15300_v10 = vld [vmem:[%s16772_s27 + $0x1f4] sm:$0xf0]  ;;  %8013 = vmatpush.bf16.msra.mxu0 %v10237_v3  ;;  %v10292_v14 = vld [vmem:[%s16772_s27 + $0xe0] sm:$0xf]  ;;  %v10229_v16 = vor.u32 %v15250_v13, %v10228_v11 }
  0x40   : > { %v10429_v12 = vor.u32 %v15300_v10, %v10428_v9  ;;  %v15266_v15 = vld [vmem:[%s16772_s27 + $0xe4] sm:$0xf0]  ;;  %8026 = vmatpush.bf16.msra.mxu1 %v10301_v7  ;;  %v10356_v18 = vld [vmem:[%s16772_s27 + $0x160] sm:$0xf]  ;;  %v10220_v23 = vld [vmem:[%s16772_s27 + $0x50] sm:$0xf] }
  0x41   : > { %8039 = vmatpush.bf16.msra.mxu2 %v10365_v8  ;;  %v10293_v17 = vor.u32 %v15266_v15, %v10292_v14  ;;  %v15282_v19 = vld [vmem:[%s16772_s27 + $0x164] sm:$0xf0]  ;;  %v10420_v20 = vld [vmem:[%s16772_s27 + $0x1e0] sm:$0xf]  ;;  %v15248_v24 = vld [vmem:[%s16772_s27 + $0x54] sm:$0xf0] }
  0x42   : > { %8052 = vmatpush.bf16.msra.mxu3 %v10429_v12  ;;  %v10357_v21 = vor.u32 %v15282_v19, %v10356_v18  ;;  %v15298_v22 = vld [vmem:[%s16772_s27 + $0x1e4] sm:$0xf0]  ;;  %v10284_v26 = vld [vmem:[%s16772_s27 + $0xd0] sm:$0xf]  ;;  %v15264_v27 = vld [vmem:[%s16772_s27 + $0xd4] sm:$0xf0]  ;;  %v10221_v29 = vor.u32 %v15248_v24, %v10220_v23 }
  0x43   : > { %v10421_v25 = vor.u32 %v15298_v22, %v10420_v20  ;;  %v10348_v28 = vld [vmem:[%s16772_s27 + $0x150] sm:$0xf]  ;;  %8014 = vmatpush.bf16.msra.mxu0 %v10229_v16  ;;  %v15280_v30 = vld [vmem:[%s16772_s27 + $0x154] sm:$0xf0]  ;;  %v10285_v33 = vor.u32 %v15264_v27, %v10284_v26  ;;  %v10212_v35 = vld [vmem:[%s16772_s27 + $0x40] sm:$0xf] }
  0x44   : > { %v10412_v31 = vld [vmem:[%s16772_s27 + $0x1d0] sm:$0xf]  ;;  %v15296_v32 = vld [vmem:[%s16772_s27 + $0x1d4] sm:$0xf0]  ;;  %8027 = vmatpush.bf16.msra.mxu1 %v10293_v17  ;;  %v10349_v34 = vor.u32 %v15280_v30, %v10348_v28  ;;  %v15246_v36 = vld [vmem:[%s16772_s27 + $0x44] sm:$0xf0] }
  0x45   : > { %8040 = vmatpush.bf16.msra.mxu2 %v10357_v21  ;;  %v10276_v37 = vld [vmem:[%s16772_s27 + $0xc0] sm:$0xf]  ;;  %v10413_v38 = vor.u32 %v15296_v32, %v10412_v31  ;;  %v15262_v39 = vld [vmem:[%s16772_s27 + $0xc4] sm:$0xf0]  ;;  %v10213_v44 = vor.u32 %v15246_v36, %v10212_v35  ;;  %v10204_v47 = vld [vmem:[%s16772_s27 + $0x30] sm:$0xf] }
  0x46   : > { %8053 = vmatpush.bf16.msra.mxu3 %v10421_v25  ;;  %v10340_v40 = vld [vmem:[%s16772_s27 + $0x140] sm:$0xf]  ;;  %v15278_v41 = vld [vmem:[%s16772_s27 + $0x144] sm:$0xf0]  ;;  %v10277_v45 = vor.u32 %v15262_v39, %v10276_v37  ;;  %v15244_v48 = vld [vmem:[%s16772_s27 + $0x34] sm:$0xf0] }
  0x47   : > { %v10404_v42 = vld [vmem:[%s16772_s27 + $0x1c0] sm:$0xf]  ;;  %v15294_v43 = vld [vmem:[%s16772_s27 + $0x1c4] sm:$0xf0]  ;;  %8015 = vmatpush.bf16.msra.mxu0 %v10221_v29  ;;  %v10341_v46 = vor.u32 %v15278_v41, %v10340_v40  ;;  %v10268_v49 = vld [vmem:[%s16772_s27 + $0xb0] sm:$0xf]  ;;  %v10205_v56 = vor.u32 %v15244_v48, %v10204_v47 }
  0x48   : > { %8028 = vmatpush.bf16.msra.mxu1 %v10285_v33  ;;  %v10405_v50 = vor.u32 %v15294_v43, %v10404_v42  ;;  %v15260_v51 = vld [vmem:[%s16772_s27 + $0xb4] sm:$0xf0]  ;;  %v10332_v52 = vld [vmem:[%s16772_s27 + $0x130] sm:$0xf]  ;;  %v10196_v59 = vld [vmem:[%s16772_s27 + $0x20] sm:$0xf] }
  0x49   : > { %8041 = vmatpush.bf16.msra.mxu2 %v10349_v34  ;;  %v15276_v53 = vld [vmem:[%s16772_s27 + $0x134] sm:$0xf0]  ;;  %v10396_v54 = vld [vmem:[%s16772_s27 + $0x1b0] sm:$0xf]  ;;  %v10269_v57 = vor.u32 %v15260_v51, %v10268_v49  ;;  %v15242_v60 = vld [vmem:[%s16772_s27 + $0x24] sm:$0xf0] }
  0x4a   : > { %8054 = vmatpush.bf16.msra.mxu3 %v10413_v38  ;;  %v15292_v55 = vld [vmem:[%s16772_s27 + $0x1b4] sm:$0xf0]  ;;  %v10333_v58 = vor.u32 %v15276_v53, %v10332_v52  ;;  %v10260_v61 = vld [vmem:[%s16772_s27 + $0xa0] sm:$0xf]  ;;  %v15258_v63 = vld [vmem:[%s16772_s27 + $0xa4] sm:$0xf0]  ;;  %v10197_v4 = vor.u32 %v15242_v60, %v10196_v59 }
  0x4b   : > { %8016 = vmatpush.bf16.msra.mxu0 %v10213_v44  ;;  %v10397_v62 = vor.u32 %v15292_v55, %v10396_v54  ;;  %v10324_v0 = vld [vmem:[%s16772_s27 + $0x120] sm:$0xf]  ;;  %v15274_v1 = vld [vmem:[%s16772_s27 + $0x124] sm:$0xf0]  ;;  %v10261_v5 = vor.u32 %v15258_v63, %v10260_v61  ;;  %v10188_v7 = vld [vmem:[%s16772_s27 + $0x10] sm:$0xf] }
  0x4c   : > { %8029 = vmatpush.bf16.msra.mxu1 %v10277_v45  ;;  %v10388_v2 = vld [vmem:[%s16772_s27 + $0x1a0] sm:$0xf]  ;;  %v15290_v3 = vld [vmem:[%s16772_s27 + $0x1a4] sm:$0xf0]  ;;  %v10325_v6 = vor.u32 %v15274_v1, %v10324_v0  ;;  %v15240_v8 = vld [vmem:[%s16772_s27 + $0x14] sm:$0xf0] }
  0x4d   : > { %8042 = vmatpush.bf16.msra.mxu2 %v10341_v46  ;;  %v10252_v9 = vld [vmem:[%s16772_s27 + $0x90] sm:$0xf]  ;;  %v10389_v10 = vor.u32 %v15290_v3, %v10388_v2  ;;  %v15256_v11 = vld [vmem:[%s16772_s27 + $0x94] sm:$0xf0]  ;;  %v10189_v16 = vor.u32 %v15240_v8, %v10188_v7  ;;  %v10180_v17 = vld [vmem:[%s16772_s27] sm:$0xf] }
  0x4e   : > { %8055 = vmatpush.bf16.msra.mxu3 %v10405_v50  ;;  %v10316_v12 = vld [vmem:[%s16772_s27 + $0x110] sm:$0xf]  ;;  %v15272_v13 = vld [vmem:[%s16772_s27 + $0x114] sm:$0xf0]  ;;  %v15238_v18 = vld [vmem:[%s16772_s27 + $0x4] sm:$0xf0]  ;;  %v10253_v19 = vor.u32 %v15256_v11, %v10252_v9 }
  0x4f   : > { %8017 = vmatpush.bf16.msra.mxu0 %v10205_v56  ;;  %v10380_v14 = vld [vmem:[%s16772_s27 + $0x190] sm:$0xf]  ;;  %v15288_v15 = vld [vmem:[%s16772_s27 + $0x194] sm:$0xf0]  ;;  %v10317_v20 = vor.u32 %v15272_v13, %v10316_v12  ;;  %v10244_v21 = vld [vmem:[%s16772_s27 + $0x80] sm:$0xf]  ;;  %v10181_v31 = vor.u32 %v15238_v18, %v10180_v17 }
  0x50   : > { %8030 = vmatpush.bf16.msra.mxu1 %v10269_v57  ;;  %v15254_v22 = vld [vmem:[%s16772_s27 + $0x84] sm:$0xf0]  ;;  %v10308_v23 = vld [vmem:[%s16772_s27 + $0x100] sm:$0xf]  ;;  %v10381_v24 = vor.u32 %v15288_v15, %v10380_v14  ;;  %v10492_v26 = vld [vmem:[%s16772_s27 + $0x270] sm:$0xf] }
  0x51   : > { %8043 = vmatpush.bf16.msra.mxu2 %v10333_v58  ;;  %v15270_v25 = vld [vmem:[%s16772_s27 + $0x104] sm:$0xf0]  ;;  %v15316_v27 = vld [vmem:[%s16772_s27 + $0x274] sm:$0xf0]  ;;  %v10556_v28 = vld [vmem:[%s16772_s27 + $0x2f0] sm:$0xf]  ;;  %v10245_v35 = vor.u32 %v15254_v22, %v10244_v21 }
  0x52   : > { %8056 = vmatpush.bf16.msra.mxu3 %v10397_v62  ;;  %v15332_v29 = vld [vmem:[%s16772_s27 + $0x2f4] sm:$0xf0]  ;;  %v10620_v30 = vld [vmem:[%s16772_s27 + $0x370] sm:$0xf]  ;;  %v10372_v33 = vld [vmem:[%s16772_s27 + $0x180] sm:$0xf]  ;;  %v10309_v36 = vor.u32 %v15270_v25, %v10308_v23  ;;  %v10493_v39 = vor.u32 %v15316_v27, %v10492_v26 }
  0x53   : > { %8018 = vmatpush.bf16.msra.mxu0 %v10197_v4  ;;  %v15348_v32 = vld [vmem:[%s16772_s27 + $0x374] sm:$0xf0]  ;;  %v15286_v34 = vld [vmem:[%s16772_s27 + $0x184] sm:$0xf0]  ;;  %v10684_v37 = vld [vmem:[%s16772_s27 + $0x3f0] sm:$0xf]  ;;  %v10557_v40 = vor.u32 %v15332_v29, %v10556_v28 }
  0x54   : > { %8031 = vmatpush.bf16.msra.mxu1 %v10261_v5  ;;  %v15364_v38 = vld [vmem:[%s16772_s27 + $0x3f4] sm:$0xf0]  ;;  %v10484_v41 = vld [vmem:[%s16772_s27 + $0x260] sm:$0xf]  ;;  %v10621_v42 = vor.u32 %v15348_v32, %v10620_v30  ;;  %v10373_v43 = vor.u32 %v15286_v34, %v10372_v33  ;;  %v15314_v44 = vld [vmem:[%s16772_s27 + $0x264] sm:$0xf0] }
  0x55   : > { %8044 = vmatpush.bf16.msra.mxu2 %v10325_v6  ;;  %v10548_v45 = vld [vmem:[%s16772_s27 + $0x2e0] sm:$0xf]  ;;  %v15330_v46 = vld [vmem:[%s16772_s27 + $0x2e4] sm:$0xf0]  ;;  %v10685_v47 = vor.u32 %v15364_v38, %v10684_v37  ;;  %v10485_v52 = vor.u32 %v15314_v44, %v10484_v41  ;;  %v10476_v54 = vld [vmem:[%s16772_s27 + $0x250] sm:$0xf] }
  0x56   : > { %8057 = vmatpush.bf16.msra.mxu3 %v10389_v10  ;;  %v10612_v48 = vld [vmem:[%s16772_s27 + $0x360] sm:$0xf]  ;;  %v15346_v49 = vld [vmem:[%s16772_s27 + $0x364] sm:$0xf0]  ;;  %v10549_v53 = vor.u32 %v15330_v46, %v10548_v45  ;;  %v15312_v55 = vld [vmem:[%s16772_s27 + $0x254] sm:$0xf0] }
  0x57   : > { %8019 = vmatpush.bf16.msra.mxu0 %v10189_v16  ;;  %v10676_v50 = vld [vmem:[%s16772_s27 + $0x3e0] sm:$0xf]  ;;  %v15362_v51 = vld [vmem:[%s16772_s27 + $0x3e4] sm:$0xf0]  ;;  %v10613_v56 = vor.u32 %v15346_v49, %v10612_v48  ;;  %v10540_v57 = vld [vmem:[%s16772_s27 + $0x2d0] sm:$0xf]  ;;  %v10477_v1 = vor.u32 %v15312_v55, %v10476_v54 }
  0x58   : > { %8032 = vmatpush.bf16.msra.mxu1 %v10253_v19  ;;  %v15328_v58 = vld [vmem:[%s16772_s27 + $0x2d4] sm:$0xf0]  ;;  %v10677_v60 = vor.u32 %v15362_v51, %v10676_v50  ;;  %v10604_v61 = vld [vmem:[%s16772_s27 + $0x350] sm:$0xf]  ;;  %v10468_v3 = vld [vmem:[%s16772_s27 + $0x240] sm:$0xf] }
  0x59   : > { %8045 = vmatpush.bf16.msra.mxu2 %v10317_v20  ;;  %v235_v59 = vld [vmem:[%s19755_s0] sm:$0xff]  ;;  %v10668_v63 = vld [vmem:[%s16772_s27 + $0x3d0] sm:$0xf]  ;;  %v10541_v2 = vor.u32 %v15328_v58, %v10540_v57  ;;  %v15310_v5 = vld [vmem:[%s16772_s27 + $0x244] sm:$0xf0] }
  0x5a   : > { %8058 = vmatpush.bf16.msra.mxu3 %v10381_v24  ;;  %v15344_v62 = vld [vmem:[%s16772_s27 + $0x354] sm:$0xf0]  ;;  %1516 = vst [vmem:[#allocation1] ss:$9 sm:$0xff] %v235_v59  ;;  %v10532_v6 = vld [vmem:[%s16772_s27 + $0x2c0] sm:$0xf]  ;;  %v10469_v14 = vor.u32 %v15310_v5, %v10468_v3 }
  0x5b   : > { %8020 = vmatpush.bf16.msra.mxu0 %v10181_v31  ;;  %v15360_v0 = vld [vmem:[%s16772_s27 + $0x3d4] sm:$0xf0]  ;;  %v10605_v4 = vor.u32 %v15344_v62, %v10604_v61  ;;  %v15326_v7 = vld [vmem:[%s16772_s27 + $0x2c4] sm:$0xf0]  ;;  %v10596_v9 = vld [vmem:[%s16772_s27 + $0x340] sm:$0xf] }
  0x5c   : > { %8033 = vmatpush.bf16.msra.mxu1 %v10245_v35  ;;  %v10669_v8 = vor.u32 %v15360_v0, %v10668_v63  ;;  %v15342_v10 = vld [vmem:[%s16772_s27 + $0x344] sm:$0xf0]  ;;  %v10660_v11 = vld [vmem:[%s16772_s27 + $0x3c0] sm:$0xf]  ;;  %v10460_v13 = vld [vmem:[%s16772_s27 + $0x230] sm:$0xf]  ;;  %v10533_v15 = vor.u32 %v15326_v7, %v10532_v6 }
  0x5d   : > { %8046 = vmatpush.bf16.msra.mxu2 %v10309_v36  ;;  %v15358_v12 = vld [vmem:[%s16772_s27 + $0x3c4] sm:$0xf0]  ;;  %v15308_v16 = vld [vmem:[%s16772_s27 + $0x234] sm:$0xf0]  ;;  %v10524_v17 = vld [vmem:[%s16772_s27 + $0x2b0] sm:$0xf]  ;;  %v10597_v19 = vor.u32 %v15342_v10, %v10596_v9 }
  0x5e   : > { %8059 = vmatpush.bf16.msra.mxu3 %v10373_v43  ;;  %v15324_v18 = vld [vmem:[%s16772_s27 + $0x2b4] sm:$0xf0]  ;;  %v10661_v23 = vor.u32 %v15358_v12, %v10660_v11  ;;  %v10588_v24 = vld [vmem:[%s16772_s27 + $0x330] sm:$0xf]  ;;  %v10461_v29 = vor.u32 %v15308_v16, %v10460_v13  ;;  %v10452_v31 = vld [vmem:[%s16772_s27 + $0x220] sm:$0xf] }
  0x5f   : > { %8065 = vmatpush.bf16.msrb.mxu0 %v10493_v39  ;;  %v15340_v25 = vld [vmem:[%s16772_s27 + $0x334] sm:$0xf0]  ;;  %v10652_v27 = vld [vmem:[%s16772_s27 + $0x3b0] sm:$0xf]  ;;  %v10525_v30 = vor.u32 %v15324_v18, %v10524_v17  ;;  %v15306_v33 = vld [vmem:[%s16772_s27 + $0x224] sm:$0xf0] }
  0x60   : > { %8078 = vmatpush.bf16.msrb.mxu1 %v10557_v40  ;;  %v15356_v28 = vld [vmem:[%s16772_s27 + $0x3b4] sm:$0xf0]  ;;  %v10589_v32 = vor.u32 %v15340_v25, %v10588_v24  ;;  %v10516_v34 = vld [vmem:[%s16772_s27 + $0x2a0] sm:$0xf]  ;;  %v15322_v35 = vld [vmem:[%s16772_s27 + $0x2a4] sm:$0xf0]  ;;  %v10453_v41 = vor.u32 %v15306_v33, %v10452_v31 }
  0x61   : > { %8091 = vmatpush.bf16.msrb.mxu2 %v10621_v42  ;;  %v16887_v20 = vld [vmem:[#allocation1 + $0x12] sm:$0xff]  ;;  %v16889_v21 = vld [vmem:[#allocation1] sm:$0xff]  ;;  %v16896_v26 = vld [vmem:[#allocation1 + $0x9] sm:$0xff]  ;;  %v10653_v36 = vor.u32 %v15356_v28, %v10652_v27  ;;  %v10517_v42 = vor.u32 %v15322_v35, %v10516_v34 }
  0x62   : > { %8104 = vmatpush.bf16.msrb.mxu3 %v10685_v47  ;;  %v16891_v22 = vld [vmem:[#allocation1 + $0x1b] sm:$0xff]  ;;  %8047 = vmatmul.bf16.vlgmr.msra.gmra.mxu2 %v16887_v20  ;;  %v10580_v37 = vld [vmem:[%s16772_s27 + $0x320] sm:$0xf]  ;;  %v15338_v38 = vld [vmem:[%s16772_s27 + $0x324] sm:$0xf0] }
  0x63   : > { %8066 = vmatpush.bf16.msrb.mxu0 %v10485_v52  ;;  %8060 = vmatmul.bf16.vlgmr.msra.gmra.mxu3 %v16891_v22  ;;  %v10644_v39 = vld [vmem:[%s16772_s27 + $0x3a0] sm:$0xf]  ;;  %v15354_v40 = vld [vmem:[%s16772_s27 + $0x3a4] sm:$0xf0]  ;;  %v10444_v43 = vld [vmem:[%s16772_s27 + $0x210] sm:$0xf]  ;;  %v10581_v44 = vor.u32 %v15338_v38, %v10580_v37 }
  0x64   : > { %8079 = vmatpush.bf16.msrb.mxu1 %v10549_v53  ;;  %8021 = vmatmul.bf16.vlgmr.msra.gmra.mxu0 %v16889_v21  ;;  %v15304_v45 = vld [vmem:[%s16772_s27 + $0x214] sm:$0xf0]  ;;  %v10508_v46 = vld [vmem:[%s16772_s27 + $0x290] sm:$0xf]  ;;  %v10645_v48 = vor.u32 %v15354_v40, %v10644_v39  ;;  %v10436_v55 = vld [vmem:[%s16772_s27 + $0x200] sm:$0xf] }
  0x65   : > { %8092 = vmatpush.bf16.msrb.mxu2 %v10613_v56  ;;  %8034 = vmatmul.bf16.vlgmr.msra.gmra.mxu1 %v16896_v26  ;;  %v15320_v47 = vld [vmem:[%s16772_s27 + $0x294] sm:$0xf0]  ;;  %v10572_v49 = vld [vmem:[%s16772_s27 + $0x310] sm:$0xf]  ;;  %v10445_v53 = vor.u32 %v15304_v45, %v10444_v43  ;;  %v15302_v56 = vld [vmem:[%s16772_s27 + $0x204] sm:$0xf0] }
  0x66   : > { %8105 = vmatpush.bf16.msrb.mxu3 %v10677_v60  ;;  %v15336_v50 = vld [vmem:[%s16772_s27 + $0x314] sm:$0xf0]  ;;  %v10636_v51 = vld [vmem:[%s16772_s27 + $0x390] sm:$0xf]  ;;  %v10509_v54 = vor.u32 %v15320_v47, %v10508_v46  ;;  %v10500_v57 = vld [vmem:[%s16772_s27 + $0x280] sm:$0xf]  ;;  %v10437_v5 = vor.u32 %v15302_v56, %v10436_v55 }
  0x67   : > { %8067 = vmatpush.bf16.msrb.mxu0 %v10477_v1  ;;  %v15352_v52 = vld [vmem:[%s16772_s27 + $0x394] sm:$0xf0]  ;;  %v10573_v58 = vor.u32 %v15336_v50, %v10572_v49  ;;  %v15318_v59 = vld [vmem:[%s16772_s27 + $0x284] sm:$0xf0]  ;;  %v10564_v60 = vld [vmem:[%s16772_s27 + $0x300] sm:$0xf] }
  0x68   : > { %8080 = vmatpush.bf16.msrb.mxu1 %v10541_v2  ;;  %v15334_v61 = vld [vmem:[%s16772_s27 + $0x304] sm:$0xf0]  ;;  %v10637_v62 = vor.u32 %v15352_v52, %v10636_v51  ;;  %v10748_v63 = vld [vmem:[%s16772_s27 + $0x470] sm:$0xf]  ;;  %v15380_v0 = vld [vmem:[%s16772_s27 + $0x474] sm:$0xf0]  ;;  %v10501_v6 = vor.u32 %v15318_v59, %v10500_v57 }
  0x69   : > { %8093 = vmatpush.bf16.msrb.mxu2 %v10605_v4  ;;  %v10812_v1 = vld [vmem:[%s16772_s27 + $0x4f0] sm:$0xf]  ;;  %v15396_v2 = vld [vmem:[%s16772_s27 + $0x4f4] sm:$0xf0]  ;;  %v10628_v7 = vld [vmem:[%s16772_s27 + $0x380] sm:$0xf]  ;;  %v10565_v9 = vor.u32 %v15334_v61, %v10564_v60  ;;  %v10749_v10 = vor.u32 %v15380_v0, %v10748_v63 }
  0x6a   : > { %8106 = vmatpush.bf16.msrb.mxu3 %v10669_v8  ;;  %v10876_v3 = vld [vmem:[%s16772_s27 + $0x570] sm:$0xf]  ;;  %v15412_v4 = vld [vmem:[%s16772_s27 + $0x574] sm:$0xf0]  ;;  %v15350_v8 = vld [vmem:[%s16772_s27 + $0x384] sm:$0xf0]  ;;  %v10813_v13 = vor.u32 %v15396_v2, %v10812_v1 }
  0x6b   : > { %8068 = vmatpush.bf16.msrb.mxu0 %v10469_v14  ;;  %v10940_v11 = vld [vmem:[%s16772_s27 + $0x5f0] sm:$0xf]  ;;  %v15428_v12 = vld [vmem:[%s16772_s27 + $0x5f4] sm:$0xf0]  ;;  %v10877_v14 = vor.u32 %v15412_v4, %v10876_v3  ;;  %v15378_v16 = vld [vmem:[%s16772_s27 + $0x464] sm:$0xf0]  ;;  %v10629_v18 = vor.u32 %v15350_v8, %v10628_v7 }
  0x6c   : > { %8081 = vmatpush.bf16.msrb.mxu1 %v10533_v15  ;;  %v10740_v15 = vld [vmem:[%s16772_s27 + $0x460] sm:$0xf]  ;;  %v15410_v24 = vld [vmem:[%s16772_s27 + $0x564] sm:$0xf0]  ;;  %v10941_v25 = vor.u32 %v15428_v12, %v10940_v11  ;;  %v16941_v27 = vld [vmem:[#allocation1 + $0x36] sm:$0xff] }
  0x6d   : > { %8094 = vmatpush.bf16.msrb.mxu2 %v10597_v19  ;;  %v10804_v17 = vld [vmem:[%s16772_s27 + $0x4e0] sm:$0xf]  ;;  %v15394_v19 = vld [vmem:[%s16772_s27 + $0x4e4] sm:$0xf0]  ;;  %v15376_v35 = vld [vmem:[%s16772_s27 + $0x454] sm:$0xf0] }
  0x6e   : > { %8107 = vmatpush.bf16.msrb.mxu3 %v10661_v23  ;;  %v10868_v23 = vld [vmem:[%s16772_s27 + $0x560] sm:$0xf]  ;;  %v15426_v31 = vld [vmem:[%s16772_s27 + $0x5e4] sm:$0xf0]  ;;  %v10805_v33 = vor.u32 %v15394_v19, %v10804_v17  ;;  %v15392_v38 = vld [vmem:[%s16772_s27 + $0x4d4] sm:$0xf0] }
  0x6f   : > { %8069 = vmatpush.bf16.msrb.mxu0 %v10461_v29  ;;  %v16943_v28 = vld [vmem:[#allocation1 + $0x24] sm:$0xff]  ;;  %v10741_v29 = vor.u32 %v15378_v16, %v10740_v15  ;;  %v10869_v34 = vor.u32 %v15410_v24, %v10868_v23  ;;  %v16950_v37 = vld [vmem:[#allocation1 + $0x2d] sm:$0xff]  ;;  %v10860_v39 = vld [vmem:[%s16772_s27 + $0x550] sm:$0xf] }
  0x70   : > { %8082 = vmatpush.bf16.msrb.mxu1 %v10525_v30  ;;  %v10932_v30 = vld [vmem:[%s16772_s27 + $0x5e0] sm:$0xf]  ;;  %v15408_v40 = vld [vmem:[%s16772_s27 + $0x554] sm:$0xf0]  ;;  %v15374_v49 = vld [vmem:[%s16772_s27 + $0x444] sm:$0xf0] }
  0x71   : > { %8095 = vmatpush.bf16.msrb.mxu2 %v10589_v32  ;;  %v10732_v32 = vld [vmem:[%s16772_s27 + $0x450] sm:$0xf]  ;;  %v15424_v45 = vld [vmem:[%s16772_s27 + $0x5d4] sm:$0xf0]  ;;  %v10861_v47 = vor.u32 %v15408_v40, %v10860_v39  ;;  %v10788_v50 = vld [vmem:[%s16772_s27 + $0x4c0] sm:$0xf] }
  0x72   : > { %8108 = vmatpush.bf16.msrb.mxu3 %v10653_v36  ;;  %v10796_v36 = vld [vmem:[%s16772_s27 + $0x4d0] sm:$0xf]  ;;  %v10733_v43 = vor.u32 %v15376_v35, %v10732_v32  ;;  %v15390_v51 = vld [vmem:[%s16772_s27 + $0x4c4] sm:$0xf0]  ;;  %v10852_v52 = vld [vmem:[%s16772_s27 + $0x540] sm:$0xf] }
  0x73   : > { %8070 = vmatpush.bf16.msrb.mxu0 %v10453_v41  ;;  %v10933_v41 = vor.u32 %v15426_v31, %v10932_v30  ;;  %v10797_v46 = vor.u32 %v15392_v38, %v10796_v36  ;;  %v236_v55 = vld [vmem:[%s19755_s0 + $0x8] sm:$0xff]  ;;  %v10789_v59 = vor.u32 %v15390_v51, %v10788_v50  ;;  %v10716_v61 = vld [vmem:[%s16772_s27 + $0x430] sm:$0xf]  ;;  %v15388_v0 = vld [vmem:[%s16772_s27 + $0x4b4] sm:$0xf0] }
  0x74   : > { %8083 = vmatpush.bf16.msrb.mxu1 %v10517_v42  ;;  %v16957_v42 = vld [vmem:[#allocation1 + $0x3f] sm:$0xff]  ;;  %v10916_v57 = vld [vmem:[%s16772_s27 + $0x5c0] sm:$0xf]  ;;  %v10780_v63 = vld [vmem:[%s16772_s27 + $0x4b0] sm:$0xf] }
  0x75   : > { %8096 = vmatpush.bf16.msrb.mxu2 %v10581_v44  ;;  %v10924_v44 = vld [vmem:[%s16772_s27 + $0x5d0] sm:$0xf]  ;;  %1526 = vst [vmem:[#allocation1] ss:$9 sm:$0xff] %v236_v55  ;;  %v15404_v2 = vld [vmem:[%s16772_s27 + $0x534] sm:$0xf0]  ;;  %v10781_v7 = vor.u32 %v15388_v0, %v10780_v63 }
  0x76   : > { %8109 = vmatpush.bf16.msrb.mxu3 %v10645_v48  ;;  %v10724_v48 = vld [vmem:[%s16772_s27 + $0x440] sm:$0xf]  ;;  %v10844_v1 = vld [vmem:[%s16772_s27 + $0x530] sm:$0xf]  ;;  %v15386_v12 = vld [vmem:[%s16772_s27 + $0x4a4] sm:$0xf0] }
  0x77   : > { %8071 = vmatpush.bf16.msrb.mxu0 %v10445_v53  ;;  %v15406_v53 = vld [vmem:[%s16772_s27 + $0x544] sm:$0xf0]  ;;  %v10725_v56 = vor.u32 %v15374_v49, %v10724_v48  ;;  %v10845_v8 = vor.u32 %v15404_v2, %v10844_v1  ;;  %v10772_v11 = vld [vmem:[%s16772_s27 + $0x4a0] sm:$0xf]  ;;  %v10700_v24 = vld [vmem:[%s16772_s27 + $0x410] sm:$0xf] }
  0x78   : > { %8084 = vmatpush.bf16.msrb.mxu1 %v10509_v54  ;;  %v10925_v54 = vor.u32 %v15424_v45, %v10924_v44  ;;  %v10853_v60 = vor.u32 %v15406_v53, %v10852_v52  ;;  %v10900_v17 = vld [vmem:[%s16772_s27 + $0x5a0] sm:$0xf]  ;;  %v10773_v19 = vor.u32 %v15386_v12, %v10772_v11  ;;  %v15384_v30 = vld [vmem:[%s16772_s27 + $0x494] sm:$0xf0]  ;;  %v10828_v31 = vld [vmem:[%s16772_s27 + $0x510] sm:$0xf] }
  0x79   : > { %8097 = vmatpush.bf16.msrb.mxu2 %v10573_v58  ;;  %v15422_v58 = vld [vmem:[%s16772_s27 + $0x5c4] sm:$0xf0]  ;;  %v15400_v32 = vld [vmem:[%s16772_s27 + $0x514] sm:$0xf0]  ;;  %v10692_v38 = vld [vmem:[%s16772_s27 + $0x400] sm:$0xf] }
  0x7a   : > { %8110 = vmatpush.bf16.msrb.mxu3 %v10637_v62  ;;  %v15372_v62 = vld [vmem:[%s16772_s27 + $0x434] sm:$0xf0]  ;;  %v10917_v3 = vor.u32 %v15422_v58, %v10916_v57  ;;  %v15366_v39 = vld [vmem:[%s16772_s27 + $0x404] sm:$0xf0]  ;;  %v10820_v45 = vld [vmem:[%s16772_s27 + $0x500] sm:$0xf] }
  0x7b   : > { %8072 = vmatpush.bf16.msrb.mxu0 %v10437_v5  ;;  %v10717_v4 = vor.u32 %v15372_v62, %v10716_v61  ;;  %v10908_v5 = vld [vmem:[%s16772_s27 + $0x5b0] sm:$0xf]  ;;  %v15416_v36 = vld [vmem:[%s16772_s27 + $0x594] sm:$0xf0]  ;;  %v15382_v44 = vld [vmem:[%s16772_s27 + $0x484] sm:$0xf0]  ;;  %v10693_v53 = vor.u32 %v15366_v39, %v10692_v38 }
  0x7c   : > { %8085 = vmatpush.bf16.msrb.mxu1 %v10501_v6  ;;  %v15420_v6 = vld [vmem:[%s16772_s27 + $0x5b4] sm:$0xf0]  ;;  %v11068_v50 = vld [vmem:[%s16772_s27 + $0x6f0] sm:$0xf]  ;;  %v10884_v55 = vld [vmem:[%s16772_s27 + $0x580] sm:$0xf] }
  0x7d   : > { %8098 = vmatpush.bf16.msrb.mxu2 %v10565_v9  ;;  %v10708_v9 = vld [vmem:[%s16772_s27 + $0x420] sm:$0xf]  ;;  %v10909_v15 = vor.u32 %v15420_v6, %v10908_v5  ;;  %v15444_v48 = vld [vmem:[%s16772_s27 + $0x674] sm:$0xf0]  ;;  %v11132_v52 = vld [vmem:[%s16772_s27 + $0x770] sm:$0xf] }
  0x7e   : > { %8111 = vmatpush.bf16.msrb.mxu3 %v10629_v18  ;;  %8073 = vmatmul.bf16.vlgmr.msrb.gmra.mxu0 %v16943_v28  ;;  %v15418_v18 = vld [vmem:[%s16772_s27 + $0x5a4] sm:$0xf0]  ;;  %v15460_v51 = vld [vmem:[%s16772_s27 + $0x6f4] sm:$0xf0]  ;;  %v11196_v61 = vld [vmem:[%s16772_s27 + $0x7f0] sm:$0xf] }
  0x7f   : > { %8117 = vmatpush.bf16.msra.mxu0 %v10749_v10  ;;  %8086 = vmatmul.bf16.vlgmr.msrb.gmra.mxu1 %v16950_v37  ;;  %v15370_v10 = vld [vmem:[%s16772_s27 + $0x424] sm:$0xf0]  ;;  %v15492_v62 = vld [vmem:[%s16772_s27 + $0x7f4] sm:$0xf0]  ;;  %v10996_v1 = vld [vmem:[%s16772_s27 + $0x660] sm:$0xf] }
  0x80   : > { %8130 = vmatpush.bf16.msra.mxu1 %v10813_v13  ;;  %8099 = vmatmul.bf16.vlgmr.msrb.gmra.mxu2 %v16941_v27  ;;  %v10836_v13 = vld [vmem:[%s16772_s27 + $0x520] sm:$0xf]  ;;  %v10709_v16 = vor.u32 %v15370_v10, %v10708_v9  ;;  %v15442_v2 = vld [vmem:[%s16772_s27 + $0x664] sm:$0xf0]  ;;  %v11197_v9 = vor.u32 %v15492_v62, %v11196_v61 }
  0x81   : > { %8143 = vmatpush.bf16.msra.mxu2 %v10877_v14  ;;  %8112 = vmatmul.bf16.vlgmr.msrb.gmra.mxu3 %v16957_v42  ;;  %v15402_v14 = vld [vmem:[%s16772_s27 + $0x524] sm:$0xf0]  ;;  %v11124_v5 = vld [vmem:[%s16772_s27 + $0x760] sm:$0xf]  ;;  %v10997_v12 = vor.u32 %v15442_v2, %v10996_v1 }
  0x82   : > { %8156 = vmatpush.bf16.msra.mxu3 %v10941_v25  ;;  %v10837_v23 = vor.u32 %v15402_v14, %v10836_v13  ;;  %v15368_v25 = vld [vmem:[%s16772_s27 + $0x414] sm:$0xf0]  ;;  %v15474_v6 = vld [vmem:[%s16772_s27 + $0x764] sm:$0xf0]  ;;  %v11188_v10 = vld [vmem:[%s16772_s27 + $0x7e0] sm:$0xf] }
  0x83   : > { %8118 = vmatpush.bf16.msra.mxu0 %v10741_v29  ;;  %v10764_v29 = vld [vmem:[%s16772_s27 + $0x490] sm:$0xf]  ;;  %v10701_v35 = vor.u32 %v15368_v25, %v10700_v24  ;;  %v17025_v11 = vld [vmem:[#allocation1 + $0x9] sm:$0xff]  ;;  %v15472_v25 = vld [vmem:[%s16772_s27 + $0x754] sm:$0xf0] }
  0x84   : > { %8131 = vmatpush.bf16.msra.mxu1 %v10805_v33  ;;  %v10901_v33 = vor.u32 %v15418_v18, %v10900_v17  ;;  %v10765_v40 = vor.u32 %v15384_v30, %v10764_v29  ;;  %v15490_v13 = vld [vmem:[%s16772_s27 + $0x7e4] sm:$0xf0]  ;;  %v10988_v14 = vld [vmem:[%s16772_s27 + $0x650] sm:$0xf]  ;;  %v11125_v17 = vor.u32 %v15474_v6, %v11124_v5  ;;  %v15440_v18 = vld [vmem:[%s16772_s27 + $0x654] sm:$0xf0] }
  0x85   : > { %8144 = vmatpush.bf16.msra.mxu2 %v10869_v34  ;;  %v10892_v34 = vld [vmem:[%s16772_s27 + $0x590] sm:$0xf]  ;;  %v11189_v29 = vor.u32 %v15490_v13, %v11188_v10  ;;  %v10989_v30 = vor.u32 %v15440_v18, %v10988_v14  ;;  %v11044_v38 = vld [vmem:[%s16772_s27 + $0x6c0] sm:$0xf]  ;;  %v15454_v39 = vld [vmem:[%s16772_s27 + $0x6c4] sm:$0xf0] }
  0x86   : > { %8157 = vmatpush.bf16.msra.mxu3 %v10933_v41  ;;  %v10829_v41 = vor.u32 %v15400_v32, %v10828_v31  ;;  %v10893_v49 = vor.u32 %v15416_v36, %v10892_v34  ;;  %v11116_v24 = vld [vmem:[%s16772_s27 + $0x750] sm:$0xf]  ;;  %v15488_v32 = vld [vmem:[%s16772_s27 + $0x7d4] sm:$0xf0]  ;;  %v15438_v36 = vld [vmem:[%s16772_s27 + $0x644] sm:$0xf0] }
  0x87   : > { %8119 = vmatpush.bf16.msra.mxu0 %v10733_v43  ;;  %v10756_v43 = vld [vmem:[%s16772_s27 + $0x480] sm:$0xf]  ;;  %v11180_v31 = vld [vmem:[%s16772_s27 + $0x7d0] sm:$0xf]  ;;  %v11117_v34 = vor.u32 %v15472_v25, %v11116_v24  ;;  %v15434_v62 = vld [vmem:[%s16772_s27 + $0x624] sm:$0xf0] }
  0x88   : > { %8132 = vmatpush.bf16.msra.mxu1 %v10797_v46  ;;  %v15398_v46 = vld [vmem:[%s16772_s27 + $0x504] sm:$0xf0]  ;;  %v10757_v57 = vor.u32 %v15382_v44, %v10756_v43  ;;  %v11181_v43 = vor.u32 %v15488_v32, %v11180_v31  ;;  %v10964_v61 = vld [vmem:[%s16772_s27 + $0x620] sm:$0xf]  ;;  %v15432_v13 = vld [vmem:[%s16772_s27 + $0x614] sm:$0xf0] }
  0x89   : > { %8145 = vmatpush.bf16.msra.mxu2 %v10861_v47  ;;  %v11004_v47 = vld [vmem:[%s16772_s27 + $0x670] sm:$0xf]  ;;  %v10821_v58 = vor.u32 %v15398_v46, %v10820_v45  ;;  %v11172_v45 = vld [vmem:[%s16772_s27 + $0x7c0] sm:$0xf]  ;;  %v15486_v46 = vld [vmem:[%s16772_s27 + $0x7c4] sm:$0xf0] }
  0x8a   : > { %8158 = vmatpush.bf16.msra.mxu3 %v10925_v54  ;;  %v15476_v54 = vld [vmem:[%s16772_s27 + $0x774] sm:$0xf0]  ;;  %v11092_v1 = vld [vmem:[%s16772_s27 + $0x720] sm:$0xf]  ;;  %v15466_v2 = vld [vmem:[%s16772_s27 + $0x724] sm:$0xf0] }
  0x8b   : > { %8120 = vmatpush.bf16.msra.mxu0 %v10725_v56  ;;  %v15414_v56 = vld [vmem:[%s16772_s27 + $0x584] sm:$0xf0]  ;;  %v11133_v63 = vor.u32 %v15476_v54, %v11132_v52  ;;  %v15452_v52 = vld [vmem:[%s16772_s27 + $0x6b4] sm:$0xf0]  ;;  %v11156_v5 = vld [vmem:[%s16772_s27 + $0x7a0] sm:$0xf] }
  0x8c   : > { %8133 = vmatpush.bf16.msra.mxu1 %v10789_v59  ;;  %v11005_v59 = vor.u32 %v15444_v48, %v11004_v47  ;;  %v10885_v0 = vor.u32 %v15414_v56, %v10884_v55  ;;  %v11045_v47 = vor.u32 %v15454_v39, %v11044_v38  ;;  %v15468_v54 = vld [vmem:[%s16772_s27 + $0x734] sm:$0xf0]  ;;  %v11173_v55 = vor.u32 %v15486_v46, %v11172_v45  ;;  %v15482_v6 = vld [vmem:[%s16772_s27 + $0x7a4] sm:$0xf0]  ;;  %v11020_v14 = vld [vmem:[%s16772_s27 + $0x690] sm:$0xf] }
  0x8d   : > { %8146 = vmatpush.bf16.msra.mxu2 %v10853_v60  ;;  %v11069_v60 = vor.u32 %v15460_v51, %v11068_v50  ;;  %v15436_v50 = vld [vmem:[%s16772_s27 + $0x634] sm:$0xf0]  ;;  %v11036_v51 = vld [vmem:[%s16772_s27 + $0x6b0] sm:$0xf]  ;;  %v10948_v25 = vld [vmem:[%s16772_s27 + $0x600] sm:$0xf] }
  0x8e   : > { %8159 = vmatpush.bf16.msra.mxu3 %v10917_v3  ;;  %v11060_v3 = vld [vmem:[%s16772_s27 + $0x6e0] sm:$0xf]  ;;  %v15464_v18 = vld [vmem:[%s16772_s27 + $0x714] sm:$0xf0]  ;;  %v15446_v32 = vld [vmem:[%s16772_s27 + $0x684] sm:$0xf0] }
  0x8f   : > { %8121 = vmatpush.bf16.msra.mxu0 %v10717_v4  ;;  %v15458_v4 = vld [vmem:[%s16772_s27 + $0x6e4] sm:$0xf0]  ;;  %v15480_v24 = vld [vmem:[%s16772_s27 + $0x794] sm:$0xf0]  ;;  %v11012_v31 = vld [vmem:[%s16772_s27 + $0x680] sm:$0xf] }
  0x90   : > { %8134 = vmatpush.bf16.msra.mxu1 %v10781_v7  ;;  %v17020_v7 = vld [vmem:[#allocation1] sm:$0xff]  ;;  %v11260_v38 = vld [vmem:[%s16772_s27 + $0x870] sm:$0xf]  ;;  %v237_v46 = vld [vmem:[%s19755_s0 + $0x10] sm:$0xff] }
  0x91   : > { %8147 = vmatpush.bf16.msra.mxu2 %v10845_v8  ;;  %v17022_v8 = vld [vmem:[#allocation1 + $0x12] sm:$0xff]  ;;  %v15508_v39 = vld [vmem:[%s16772_s27 + $0x874] sm:$0xf0] }
  0x92   : > { %8160 = vmatpush.bf16.msra.mxu3 %v10909_v15  ;;  %v17029_v15 = vld [vmem:[#allocation1 + $0x1b] sm:$0xff] }
  0x93   : > { %8122 = vmatpush.bf16.msra.mxu0 %v10709_v16  ;;  %v11061_v16 = vor.u32 %v15458_v4, %v11060_v3  ;;  %v10965_v4 = vor.u32 %v15434_v62, %v10964_v61  ;;  %v17089_v45 = vld [vmem:[#allocation1 + $0x3f] sm:$0xff]  ;;  %v11252_v62 = vld [vmem:[%s16772_s27 + $0x860] sm:$0xf] }
  0x94   : > { %8135 = vmatpush.bf16.msra.mxu1 %v10773_v19  ;;  %v11052_v19 = vld [vmem:[%s16772_s27 + $0x6d0] sm:$0xf] }
  0x95   : > { %8148 = vmatpush.bf16.msra.mxu2 %v10837_v23  ;;  %v15456_v23 = vld [vmem:[%s16772_s27 + $0x6d4] sm:$0xf0] }
  0x96   : > { %8161 = vmatpush.bf16.msra.mxu3 %v10901_v33  ;;  %v11053_v33 = vor.u32 %v15456_v23, %v11052_v19  ;;  %v11148_v19 = vld [vmem:[%s16772_s27 + $0x790] sm:$0xf]  ;;  %v11157_v23 = vor.u32 %v15482_v6, %v11156_v5  ;;  %v11444_v6 = vld [vmem:[%s16772_s27 + $0x9e0] sm:$0xf] }
  0x97   : > { %8123 = vmatpush.bf16.msra.mxu0 %v10701_v35  ;;  %v10980_v35 = vld [vmem:[%s16772_s27 + $0x640] sm:$0xf] }
  0x98   : > { %8136 = vmatpush.bf16.msra.mxu1 %v10765_v40  ;;  %v11108_v40 = vld [vmem:[%s16772_s27 + $0x740] sm:$0xf]  ;;  %v10981_v44 = vor.u32 %v15438_v36, %v10980_v35 }
  0x99   : > { %8149 = vmatpush.bf16.msra.mxu2 %v10829_v41  ;;  %v15470_v41 = vld [vmem:[%s16772_s27 + $0x744] sm:$0xf0] }
  0x9a   : > { %8162 = vmatpush.bf16.msra.mxu3 %v10893_v49  ;;  %v11109_v48 = vor.u32 %v15470_v41, %v11108_v40  ;;  %v10972_v49 = vld [vmem:[%s16772_s27 + $0x630] sm:$0xf]  ;;  %v17083_v41 = vld [vmem:[#allocation1 + $0x24] sm:$0xff] }
  0x9b   : > { %8124 = vmatpush.bf16.msra.mxu0 %v10693_v53  ;;  %v11100_v53 = vld [vmem:[%s16772_s27 + $0x730] sm:$0xf]  ;;  %v10973_v56 = vor.u32 %v15436_v50, %v10972_v49 }
  0x9c   : > { %8137 = vmatpush.bf16.msra.mxu1 %v10757_v57  ;;  %v11164_v57 = vld [vmem:[%s16772_s27 + $0x7b0] sm:$0xf] }
  0x9d   : > { %8150 = vmatpush.bf16.msra.mxu2 %v10821_v58  ;;  %v15484_v58 = vld [vmem:[%s16772_s27 + $0x7b4] sm:$0xf0]  ;;  %v11324_v40 = vld [vmem:[%s16772_s27 + $0x8f0] sm:$0xf] }
  0x9e   : > { %8163 = vmatpush.bf16.msra.mxu3 %v10885_v0  ;;  %8125 = vmatmul.bf16.vlgmr.msra.gmra.mxu0 %v17020_v7  ;;  %v15450_v0 = vld [vmem:[%s16772_s27 + $0x6a4] sm:$0xf0]  ;;  %v11165_v3 = vor.u32 %v15484_v58, %v11164_v57  ;;  %v11388_v49 = vld [vmem:[%s16772_s27 + $0x970] sm:$0xf] }
  0x9f   : > { %8169 = vmatpush.bf16.msrb.mxu0 %v11005_v59  ;;  %8138 = vmatmul.bf16.vlgmr.msra.gmra.mxu1 %v17025_v11  ;;  %v11037_v59 = vor.u32 %v15452_v52, %v11036_v51  ;;  %v15540_v51 = vld [vmem:[%s16772_s27 + $0x974] sm:$0xf0]  ;;  %v11140_v52 = vld [vmem:[%s16772_s27 + $0x780] sm:$0xf]  ;;  %v11452_v58 = vld [vmem:[%s16772_s27 + $0x9f0] sm:$0xf] }
  0xa0   : > { %8182 = vmatpush.bf16.msrb.mxu1 %v11069_v60  ;;  %8151 = vmatmul.bf16.vlgmr.msra.gmra.mxu2 %v17022_v8  ;;  %v11101_v60 = vor.u32 %v15468_v54, %v11100_v53  ;;  %v15478_v53 = vld [vmem:[%s16772_s27 + $0x784] sm:$0xf0]  ;;  %v11013_v54 = vor.u32 %v15446_v32, %v11012_v31  ;;  %v11236_v32 = vld [vmem:[%s16772_s27 + $0x840] sm:$0xf] }
  0xa1   : > { %8195 = vmatpush.bf16.msrb.mxu2 %v11133_v63  ;;  %8164 = vmatmul.bf16.vlgmr.msra.gmra.mxu3 %v17029_v15  ;;  %v11028_v63 = vld [vmem:[%s16772_s27 + $0x6a0] sm:$0xf]  ;;  %v11141_v61 = vor.u32 %v15478_v53, %v11140_v52  ;;  %v11292_v52 = vld [vmem:[%s16772_s27 + $0x8b0] sm:$0xf]  ;;  %v15516_v53 = vld [vmem:[%s16772_s27 + $0x8b4] sm:$0xf0] }
  0xa2   : > { %8208 = vmatpush.bf16.msrb.mxu3 %v11197_v9  ;;  %v10956_v9 = vld [vmem:[%s16772_s27 + $0x610] sm:$0xf]  ;;  %v11029_v10 = vor.u32 %v15450_v0, %v11028_v63  ;;  %v15506_v63 = vld [vmem:[%s16772_s27 + $0x864] sm:$0xf0]  ;;  %v11316_v0 = vld [vmem:[%s16772_s27 + $0x8e0] sm:$0xf] }
  0xa3   : > { %8170 = vmatpush.bf16.msrb.mxu0 %v10997_v12  ;;  %v11093_v12 = vor.u32 %v15466_v2, %v11092_v1  ;;  %v15522_v1 = vld [vmem:[%s16772_s27 + $0x8e4] sm:$0xf0]  ;;  %v11380_v2 = vld [vmem:[%s16772_s27 + $0x960] sm:$0xf]  ;;  %v11253_v5 = vor.u32 %v15506_v63, %v11252_v62 }
  0xa4   : > { %8183 = vmatpush.bf16.msrb.mxu1 %v11061_v16  ;;  %v15448_v16 = vld [vmem:[%s16772_s27 + $0x694] sm:$0xf0]  ;;  %v11220_v62 = vld [vmem:[%s16772_s27 + $0x820] sm:$0xf]  ;;  %v15498_v63 = vld [vmem:[%s16772_s27 + $0x824] sm:$0xf0] }
  0xa5   : > { %8196 = vmatpush.bf16.msrb.mxu2 %v11125_v17  ;;  %v11084_v17 = vld [vmem:[%s16772_s27 + $0x710] sm:$0xf]  ;;  %v11021_v35 = vor.u32 %v15448_v16, %v11020_v14  ;;  %v15504_v14 = vld [vmem:[%s16772_s27 + $0x854] sm:$0xf0] }
  0xa6   : > { %8209 = vmatpush.bf16.msrb.mxu3 %v11189_v29  ;;  %v15430_v29 = vld [vmem:[%s16772_s27 + $0x604] sm:$0xf0]  ;;  %v11085_v36 = vor.u32 %v15464_v18, %v11084_v17  ;;  %v11308_v16 = vld [vmem:[%s16772_s27 + $0x8d0] sm:$0xf]  ;;  %v15520_v17 = vld [vmem:[%s16772_s27 + $0x8d4] sm:$0xf0] }
  0xa7   : > { %8171 = vmatpush.bf16.msrb.mxu0 %v10989_v30  ;;  %v10957_v30 = vor.u32 %v15432_v13, %v10956_v9  ;;  %v10949_v50 = vor.u32 %v15430_v29, %v10948_v25  ;;  %v15554_v9 = vld [vmem:[%s16772_s27 + $0x9e4] sm:$0xf0]  ;;  %v11244_v13 = vld [vmem:[%s16772_s27 + $0x850] sm:$0xf]  ;;  %v15552_v29 = vld [vmem:[%s16772_s27 + $0x9d4] sm:$0xf0] }
  0xa8   : > { %8184 = vmatpush.bf16.msrb.mxu1 %v11053_v33  ;;  %v11076_v33 = vld [vmem:[%s16772_s27 + $0x700] sm:$0xf]  ;;  %v11372_v18 = vld [vmem:[%s16772_s27 + $0x950] sm:$0xf] }
  0xa9   : > { %8197 = vmatpush.bf16.msrb.mxu2 %v11117_v34  ;;  %v15462_v34 = vld [vmem:[%s16772_s27 + $0x704] sm:$0xf0]  ;;  %v11436_v25 = vld [vmem:[%s16772_s27 + $0x9d0] sm:$0xf] }
  0xaa   : > { %8210 = vmatpush.bf16.msrb.mxu3 %v11181_v43  ;;  %v17085_v43 = vld [vmem:[#allocation1 + $0x36] sm:$0xff] }
  0xab   : > { %8172 = vmatpush.bf16.msrb.mxu0 %v10981_v44  ;;  %v17087_v44 = vld [vmem:[#allocation1 + $0x2d] sm:$0xff] }
  0xac   : > { %8185 = vmatpush.bf16.msrb.mxu1 %v11045_v47  ;;  %v11149_v47 = vor.u32 %v15480_v24, %v11148_v19  ;;  %1536 = vst [vmem:[#allocation1] ss:$9 sm:$0xff] %v237_v46  ;;  %v15536_v19 = vld [vmem:[%s16772_s27 + $0x954] sm:$0xf0]  ;;  %v11245_v24 = vor.u32 %v15504_v14, %v11244_v13  ;;  %v11428_v46 = vld [vmem:[%s16772_s27 + $0x9c0] sm:$0xf] }
  0xad   : > { %8198 = vmatpush.bf16.msrb.mxu2 %v11109_v48  ;;  %v15524_v48 = vld [vmem:[%s16772_s27 + $0x8f4] sm:$0xf0]  ;;  %v11373_v31 = vor.u32 %v15536_v19, %v11372_v18  ;;  %v11212_v13 = vld [vmem:[%s16772_s27 + $0x810] sm:$0xf] }
  0xae   : > { %8211 = vmatpush.bf16.msrb.mxu3 %v11173_v55  ;;  %v11077_v55 = vor.u32 %v15462_v34, %v11076_v33  ;;  %v11325_v57 = vor.u32 %v15524_v48, %v11324_v40  ;;  %v15502_v33 = vld [vmem:[%s16772_s27 + $0x844] sm:$0xf0]  ;;  %v11300_v34 = vld [vmem:[%s16772_s27 + $0x8c0] sm:$0xf]  ;;  %v15496_v14 = vld [vmem:[%s16772_s27 + $0x814] sm:$0xf0] }
  0xaf   : > { %8173 = vmatpush.bf16.msrb.mxu0 %v10973_v56  ;;  %v11261_v56 = vor.u32 %v15508_v39, %v11260_v38  ;;  %v15534_v38 = vld [vmem:[%s16772_s27 + $0x944] sm:$0xf0]  ;;  %v11437_v39 = vor.u32 %v15552_v29, %v11436_v25  ;;  %v11237_v40 = vor.u32 %v15502_v33, %v11236_v32  ;;  %v11340_v18 = vld [vmem:[%s16772_s27 + $0x910] sm:$0xf]  ;;  %v15528_v19 = vld [vmem:[%s16772_s27 + $0x914] sm:$0xf0]  ;;  %v11213_v25 = vor.u32 %v15496_v14, %v11212_v13 }
  0xb0   : > { %8186 = vmatpush.bf16.msrb.mxu1 %v11037_v59  ;;  %v15556_v59 = vld [vmem:[%s16772_s27 + $0x9f4] sm:$0xf0]  ;;  %v11341_v33 = vor.u32 %v15528_v19, %v11340_v18  ;;  %v11700_v13 = vld [vmem:[%s16772_s27 + $0xbe0] sm:$0xf]  ;;  %v15618_v14 = vld [vmem:[%s16772_s27 + $0xbe4] sm:$0xf0] }
  0xb1   : > { %8199 = vmatpush.bf16.msrb.mxu2 %v11101_v60  ;;  %v11389_v60 = vor.u32 %v15540_v51, %v11388_v49  ;;  %v15500_v51 = vld [vmem:[%s16772_s27 + $0x834] sm:$0xf0]  ;;  %v11500_v18 = vld [vmem:[%s16772_s27 + $0xa50] sm:$0xf] }
  0xb2   : > { %8212 = vmatpush.bf16.msrb.mxu3 %v11165_v3  ;;  %v15538_v3 = vld [vmem:[%s16772_s27 + $0x964] sm:$0xf0]  ;;  %v15544_v29 = vld [vmem:[%s16772_s27 + $0x994] sm:$0xf0] }
  0xb3   : > { %8174 = vmatpush.bf16.msrb.mxu0 %v10965_v4  ;;  %v11453_v4 = vor.u32 %v15556_v59, %v11452_v58  ;;  %v11420_v58 = vld [vmem:[%s16772_s27 + $0x9b0] sm:$0xf]  ;;  %v15548_v59 = vld [vmem:[%s16772_s27 + $0x9b4] sm:$0xf0] }
  0xb4   : > { %8187 = vmatpush.bf16.msrb.mxu1 %v11029_v10  ;;  %v11317_v10 = vor.u32 %v15522_v1, %v11316_v0  ;;  %v11284_v0 = vld [vmem:[%s16772_s27 + $0x8a0] sm:$0xf]  ;;  %v15514_v1 = vld [vmem:[%s16772_s27 + $0x8a4] sm:$0xf0]  ;;  %v15568_v19 = vld [vmem:[%s16772_s27 + $0xa54] sm:$0xf0] }
  0xb5   : > { %8200 = vmatpush.bf16.msrb.mxu2 %v11093_v12  ;;  %v11381_v12 = vor.u32 %v15538_v3, %v11380_v2  ;;  %v11348_v2 = vld [vmem:[%s16772_s27 + $0x920] sm:$0xf]  ;;  %v15530_v3 = vld [vmem:[%s16772_s27 + $0x924] sm:$0xf0] }
  0xb6   : > { %8213 = vmatpush.bf16.msrb.mxu3 %v11157_v23  ;;  %v11445_v23 = vor.u32 %v15554_v9, %v11444_v6  ;;  %v11412_v6 = vld [vmem:[%s16772_s27 + $0x9a0] sm:$0xf]  ;;  %v15546_v9 = vld [vmem:[%s16772_s27 + $0x9a4] sm:$0xf0] }
  0xb7   : > { %8175 = vmatpush.bf16.msrb.mxu0 %v10957_v30  ;;  %v11309_v30 = vor.u32 %v15520_v17, %v11308_v16  ;;  %v11276_v16 = vld [vmem:[%s16772_s27 + $0x890] sm:$0xf]  ;;  %v15512_v17 = vld [vmem:[%s16772_s27 + $0x894] sm:$0xf0] }
  0xb8   : > { %8188 = vmatpush.bf16.msrb.mxu1 %v11021_v35  ;;  %v15518_v35 = vld [vmem:[%s16772_s27 + $0x8c4] sm:$0xf0]  ;;  %v11277_v32 = vor.u32 %v15512_v17, %v11276_v16 }
  0xb9   : > { %8201 = vmatpush.bf16.msrb.mxu2 %v11085_v36  ;;  %v11364_v36 = vld [vmem:[%s16772_s27 + $0x940] sm:$0xf]  ;;  %v11301_v48 = vor.u32 %v15518_v35, %v11300_v34  ;;  %v15510_v35 = vld [vmem:[%s16772_s27 + $0x884] sm:$0xf0] }
  0xba   : > { %8214 = vmatpush.bf16.msrb.mxu3 %v11149_v47  ;;  %v15550_v47 = vld [vmem:[%s16772_s27 + $0x9c4] sm:$0xf0]  ;;  %v11365_v49 = vor.u32 %v15534_v38, %v11364_v36  ;;  %v11268_v34 = vld [vmem:[%s16772_s27 + $0x880] sm:$0xf] }
  0xbb   : > { %8176 = vmatpush.bf16.msrb.mxu0 %v10949_v50  ;;  %v11228_v50 = vld [vmem:[%s16772_s27 + $0x830] sm:$0xf]  ;;  %v11332_v36 = vld [vmem:[%s16772_s27 + $0x900] sm:$0xf]  ;;  %v15526_v38 = vld [vmem:[%s16772_s27 + $0x904] sm:$0xf0] }
  0xbc   : > { %8189 = vmatpush.bf16.msrb.mxu1 %v11013_v54  ;;  %v11356_v54 = vld [vmem:[%s16772_s27 + $0x930] sm:$0xf] }
  0xbd   : > { %8202 = vmatpush.bf16.msrb.mxu2 %v11077_v55  ;;  %v15532_v55 = vld [vmem:[%s16772_s27 + $0x934] sm:$0xf0] }
  0xbe   : > { %8215 = vmatpush.bf16.msrb.mxu3 %v11141_v61  ;;  %8177 = vmatmul.bf16.vlgmr.msrb.gmra.mxu0 %v17083_v41  ;;  %v11357_v61 = vor.u32 %v15532_v55, %v11356_v54  ;;  %v11269_v54 = vor.u32 %v15510_v35, %v11268_v34  ;;  %v11333_v55 = vor.u32 %v15526_v38, %v11332_v36  ;;  %v11492_v36 = vld [vmem:[%s16772_s27 + $0xa40] sm:$0xf]  ;;  %v15566_v38 = vld [vmem:[%s16772_s27 + $0xa44] sm:$0xf0] }
  0xbf   : > { %8221 = vmatpush.bf16.msra.mxu0 %v11261_v56  ;;  %8190 = vmatmul.bf16.vlgmr.msrb.gmra.mxu1 %v17087_v44  ;;  %v11429_v56 = vor.u32 %v15550_v47, %v11428_v46  ;;  %v11580_v47 = vld [vmem:[%s16772_s27 + $0xaf0] sm:$0xf] }
  0xc0   : > { %8234 = vmatpush.bf16.msra.mxu1 %v11325_v57  ;;  %8203 = vmatmul.bf16.vlgmr.msrb.gmra.mxu2 %v17085_v43  ;;  %v11229_v57 = vor.u32 %v15500_v51, %v11228_v50  ;;  %v15604_v51 = vld [vmem:[%s16772_s27 + $0xb74] sm:$0xf0] }
  0xc1   : > { %8247 = vmatpush.bf16.msra.mxu2 %v11389_v60  ;;  %8216 = vmatmul.bf16.vlgmr.msrb.gmra.mxu3 %v17089_v45  ;;  %v11293_v60 = vor.u32 %v15516_v53, %v11292_v52  ;;  %v11396_v52 = vld [vmem:[%s16772_s27 + $0x980] sm:$0xf]  ;;  %v15542_v53 = vld [vmem:[%s16772_s27 + $0x984] sm:$0xf0] }
  0xc2   : > { %8260 = vmatpush.bf16.msra.mxu3 %v11453_v4  ;;  %v11421_v4 = vor.u32 %v15548_v59, %v11420_v58  ;;  %v11708_v58 = vld [vmem:[%s16772_s27 + $0xbf0] sm:$0xf]  ;;  %v15620_v59 = vld [vmem:[%s16772_s27 + $0xbf4] sm:$0xf0] }
  0xc3   : > { %8222 = vmatpush.bf16.msra.mxu0 %v11253_v5  ;;  %v11221_v5 = vor.u32 %v15498_v63, %v11220_v62  ;;  %v11508_v62 = vld [vmem:[%s16772_s27 + $0xa60] sm:$0xf]  ;;  %v15570_v63 = vld [vmem:[%s16772_s27 + $0xa64] sm:$0xf0] }
  0xc4   : > { %8235 = vmatpush.bf16.msra.mxu1 %v11317_v10  ;;  %v11285_v10 = vor.u32 %v15514_v1, %v11284_v0  ;;  %v11572_v0 = vld [vmem:[%s16772_s27 + $0xae0] sm:$0xf]  ;;  %v15586_v1 = vld [vmem:[%s16772_s27 + $0xae4] sm:$0xf0] }
  0xc5   : > { %8248 = vmatpush.bf16.msra.mxu2 %v11381_v12  ;;  %v11349_v12 = vor.u32 %v15530_v3, %v11348_v2  ;;  %v11636_v2 = vld [vmem:[%s16772_s27 + $0xb60] sm:$0xf]  ;;  %v15602_v3 = vld [vmem:[%s16772_s27 + $0xb64] sm:$0xf0]  ;;  %v11573_v16 = vor.u32 %v15586_v1, %v11572_v0  ;;  %v15612_v0 = vld [vmem:[%s16772_s27 + $0xbb4] sm:$0xf0] }
  0xc6   : > { %8261 = vmatpush.bf16.msra.mxu3 %v11445_v23  ;;  %v11413_v23 = vor.u32 %v15546_v9, %v11412_v6  ;;  %v11709_v6 = vor.u32 %v15620_v59, %v11708_v58  ;;  %v17179_v9 = vld [vmem:[#allocation1 + $0x9] sm:$0xff]  ;;  %v11637_v17 = vor.u32 %v15602_v3, %v11636_v2  ;;  %v11612_v58 = vld [vmem:[%s16772_s27 + $0xb30] sm:$0xf]  ;;  %v15596_v59 = vld [vmem:[%s16772_s27 + $0xb34] sm:$0xf0] }
  0xc7   : > { %8223 = vmatpush.bf16.msra.mxu0 %v11245_v24  ;;  %v11404_v24 = vld [vmem:[%s16772_s27 + $0x990] sm:$0xf]  ;;  %v11476_v1 = vld [vmem:[%s16772_s27 + $0xa20] sm:$0xf]  ;;  %v11613_v3 = vor.u32 %v15596_v59, %v11612_v58  ;;  %v15636_v59 = vld [vmem:[%s16772_s27 + $0xc74] sm:$0xf0] }
  0xc8   : > { %8236 = vmatpush.bf16.msra.mxu1 %v11309_v30  ;;  %v11204_v30 = vld [vmem:[%s16772_s27 + $0x800] sm:$0xf]  ;;  %v11405_v46 = vor.u32 %v15544_v29, %v11404_v24  ;;  %v15584_v24 = vld [vmem:[%s16772_s27 + $0xad4] sm:$0xf0]  ;;  %v11772_v58 = vld [vmem:[%s16772_s27 + $0xc70] sm:$0xf] }
  0xc9   : > { %8249 = vmatpush.bf16.msra.mxu2 %v11373_v31  ;;  %v15494_v31 = vld [vmem:[%s16772_s27 + $0x804] sm:$0xf0]  ;;  %v15600_v29 = vld [vmem:[%s16772_s27 + $0xb54] sm:$0xf0] }
  0xca   : > { %8262 = vmatpush.bf16.msra.mxu3 %v11437_v39  ;;  %v11516_v39 = vld [vmem:[%s16772_s27 + $0xa70] sm:$0xf]  ;;  %v11205_v50 = vor.u32 %v15494_v31, %v11204_v30  ;;  %v11701_v30 = vor.u32 %v15618_v14, %v11700_v13  ;;  %v11501_v31 = vor.u32 %v15568_v19, %v11500_v18  ;;  %v15578_v13 = vld [vmem:[%s16772_s27 + $0xaa4] sm:$0xf0]  ;;  %v11604_v14 = vld [vmem:[%s16772_s27 + $0xb20] sm:$0xf] }
  0xcb   : > { %8224 = vmatpush.bf16.msra.mxu0 %v11237_v40  ;;  %v15572_v40 = vld [vmem:[%s16772_s27 + $0xa74] sm:$0xf0] }
  0xcc   : > { %8237 = vmatpush.bf16.msra.mxu1 %v11301_v48  ;;  %v15588_v48 = vld [vmem:[%s16772_s27 + $0xaf4] sm:$0xf0] }
  0xcd   : > { %8250 = vmatpush.bf16.msra.mxu2 %v11365_v49  ;;  %v11644_v49 = vld [vmem:[%s16772_s27 + $0xb70] sm:$0xf] }
  0xce   : > { %8263 = vmatpush.bf16.msra.mxu3 %v11429_v56  ;;  %v11517_v56 = vor.u32 %v15572_v40, %v11516_v39  ;;  %v11556_v39 = vld [vmem:[%s16772_s27 + $0xac0] sm:$0xf]  ;;  %v15582_v40 = vld [vmem:[%s16772_s27 + $0xac4] sm:$0xf0] }
  0xcf   : > { %8225 = vmatpush.bf16.msra.mxu0 %v11229_v57  ;;  %v11581_v57 = vor.u32 %v15588_v48, %v11580_v47  ;;  %v15598_v47 = vld [vmem:[%s16772_s27 + $0xb44] sm:$0xf0] }
  0xd0   : > { %8238 = vmatpush.bf16.msra.mxu1 %v11293_v60  ;;  %v11645_v60 = vor.u32 %v15604_v51, %v11644_v49  ;;  %v11493_v49 = vor.u32 %v15566_v38, %v11492_v36  ;;  %v15614_v51 = vld [vmem:[%s16772_s27 + $0xbc4] sm:$0xf0]  ;;  %v15592_v36 = vld [vmem:[%s16772_s27 + $0xb14] sm:$0xf0]  ;;  %v11660_v38 = vld [vmem:[%s16772_s27 + $0xb90] sm:$0xf] }
  0xd1   : > { %8251 = vmatpush.bf16.msra.mxu2 %v11357_v61  ;;  %v11397_v61 = vor.u32 %v15542_v53, %v11396_v52  ;;  %v11557_v52 = vor.u32 %v15582_v40, %v11556_v39 }
  0xd2   : > { %8264 = vmatpush.bf16.msra.mxu3 %v11421_v4  ;;  %v17175_v4 = vld [vmem:[#allocation1] sm:$0xff] }
  0xd3   : > { %8226 = vmatpush.bf16.msra.mxu0 %v11221_v5  ;;  %v17177_v5 = vld [vmem:[#allocation1 + $0x12] sm:$0xff] }
  0xd4   : > { %8239 = vmatpush.bf16.msra.mxu1 %v11285_v10  ;;  %v17181_v10 = vld [vmem:[#allocation1 + $0x1b] sm:$0xff] }
  0xd5   : > { %8252 = vmatpush.bf16.msra.mxu2 %v11349_v12  ;;  %v11509_v12 = vor.u32 %v15570_v63, %v11508_v62  ;;  %v11676_v63 = vld [vmem:[%s16772_s27 + $0xbb0] sm:$0xf] }
  0xd6   : > { %8265 = vmatpush.bf16.msra.mxu3 %v11413_v23  ;;  %v11564_v23 = vld [vmem:[%s16772_s27 + $0xad0] sm:$0xf]  ;;  %v11677_v18 = vor.u32 %v15612_v0, %v11676_v63  ;;  %v17243_v63 = vld [vmem:[#allocation1 + $0x2d] sm:$0xff]  ;;  %v17245_v0 = vld [vmem:[#allocation1 + $0x3f] sm:$0xff] }
  0xd7   : > { %8227 = vmatpush.bf16.msra.mxu0 %v11213_v25  ;;  %v11628_v25 = vld [vmem:[%s16772_s27 + $0xb50] sm:$0xf]  ;;  %v11565_v34 = vor.u32 %v15584_v24, %v11564_v23  ;;  %v11668_v23 = vld [vmem:[%s16772_s27 + $0xba0] sm:$0xf]  ;;  %v15610_v24 = vld [vmem:[%s16772_s27 + $0xba4] sm:$0xf0] }
  0xd8   : > { %8240 = vmatpush.bf16.msra.mxu1 %v11277_v32  ;;  %v11692_v32 = vld [vmem:[%s16772_s27 + $0xbd0] sm:$0xf]  ;;  %v11629_v35 = vor.u32 %v15600_v29, %v11628_v25  ;;  %v11669_v40 = vor.u32 %v15610_v24, %v11668_v23 }
  0xd9   : > { %8253 = vmatpush.bf16.msra.mxu2 %v11341_v33  ;;  %v15616_v33 = vld [vmem:[%s16772_s27 + $0xbd4] sm:$0xf0]  ;;  %v11468_v25 = vld [vmem:[%s16772_s27 + $0xa10] sm:$0xf] }
  0xda   : > { %8266 = vmatpush.bf16.msra.mxu3 %v11405_v46  ;;  %v11620_v46 = vld [vmem:[%s16772_s27 + $0xb40] sm:$0xf]  ;;  %v11693_v48 = vor.u32 %v15616_v33, %v11692_v32  ;;  %v11532_v32 = vld [vmem:[%s16772_s27 + $0xa90] sm:$0xf]  ;;  %v15576_v33 = vld [vmem:[%s16772_s27 + $0xa94] sm:$0xf0] }
  0xdb   : > { %8228 = vmatpush.bf16.msra.mxu0 %v11205_v50  ;;  %v11684_v50 = vld [vmem:[%s16772_s27 + $0xbc0] sm:$0xf]  ;;  %v11621_v53 = vor.u32 %v15598_v47, %v11620_v46  ;;  %v15608_v46 = vld [vmem:[%s16772_s27 + $0xb94] sm:$0xf0] }
  0xdc   : > { %8241 = vmatpush.bf16.msra.mxu1 %v11269_v54  ;;  %v11484_v54 = vld [vmem:[%s16772_s27 + $0xa30] sm:$0xf]  ;;  %v11460_v47 = vld [vmem:[%s16772_s27 + $0xa00] sm:$0xf] }
  0xdd   : > { %8254 = vmatpush.bf16.msra.mxu2 %v11333_v55  ;;  %v15564_v55 = vld [vmem:[%s16772_s27 + $0xa34] sm:$0xf0] }
  0xde   : > { %8267 = vmatpush.bf16.msra.mxu3 %v11397_v61  ;;  %8229 = vmatmul.bf16.vlgmr.msra.gmra.mxu0 %v17175_v4  ;;  %v1509_v61 = vld [vmem:[%s16778_s25] sm:$0x3]  ;;  %v11485_v62 = vor.u32 %v15564_v55, %v11484_v54  ;;  %v15590_v54 = vld [vmem:[%s16772_s27 + $0xb04] sm:$0xf0] }
  0xdf   : > { %8273 = vmatpush.bf16.msrb.mxu0 %v11517_v56  ;;  %8242 = vmatmul.bf16.vlgmr.msra.gmra.mxu1 %v17179_v9  ;;  %v11548_v56 = vld [vmem:[%s16772_s27 + $0xab0] sm:$0xf] }
  0xe0   : > { %8286 = vmatpush.bf16.msrb.mxu1 %v11581_v57  ;;  %8255 = vmatmul.bf16.vlgmr.msra.gmra.mxu2 %v17177_v5  ;;  %v15580_v57 = vld [vmem:[%s16772_s27 + $0xab4] sm:$0xf0] }
  0xe1   : > { %8299 = vmatpush.bf16.msrb.mxu2 %v11645_v60  ;;  %8268 = vmatmul.bf16.vlgmr.msra.gmra.mxu3 %v17181_v10  ;;  %v11685_v60 = vor.u32 %v15614_v51, %v11684_v50  ;;  %v11549_v2 = vor.u32 %v15580_v57, %v11548_v56  ;;  %v11524_v51 = vld [vmem:[%s16772_s27 + $0xa80] sm:$0xf]  ;;  %v11533_v56 = vor.u32 %v15576_v33, %v11532_v32  ;;  %v11964_v32 = vld [vmem:[%s16772_s27 + $0xdf0] sm:$0xf]  ;;  %v15684_v33 = vld [vmem:[%s16772_s27 + $0xdf4] sm:$0xf0] }
  0xe2   : > { %8312 = vmatpush.bf16.msrb.mxu3 %v11709_v6  ;;  %v15562_v6 = vld [vmem:[%s16772_s27 + $0xa24] sm:$0xf0] }
  0xe3   : > { %8274 = vmatpush.bf16.msrb.mxu0 %v11509_v12  ;;  %v11540_v12 = vld [vmem:[%s16772_s27 + $0xaa0] sm:$0xf]  ;;  %v11477_v19 = vor.u32 %v15562_v6, %v11476_v1  ;;  %v15652_v6 = vld [vmem:[%s16772_s27 + $0xcf4] sm:$0xf0] }
  0xe4   : > { %8287 = vmatpush.bf16.msrb.mxu1 %v11573_v16  ;;  %v15594_v16 = vld [vmem:[%s16772_s27 + $0xb24] sm:$0xf0]  ;;  %v11541_v29 = vor.u32 %v15578_v13, %v11540_v12  ;;  %v11900_v12 = vld [vmem:[%s16772_s27 + $0xd70] sm:$0xf] }
  0xe5   : > { %8300 = vmatpush.bf16.msrb.mxu2 %v11637_v17  ;;  %v1511_v17 = vperm.slane %v1509_v61, 0  ;;  %v17239_v61 = vld [vmem:[#allocation1 + $0x24] sm:$0xff]  ;;  %v8048_v1 = vpop.f32.mrf.mxu2 }
  0xe6   : > { %8313 = vmatpush.bf16.msrb.mxu3 %v11701_v30  ;;  %v11605_v30 = vor.u32 %v15594_v16, %v11604_v14  ;;  %v8061_v14 = vpop.f32.mrf.mxu3 }
  0xe7   : > { %8275 = vmatpush.bf16.msrb.mxu0 %v11501_v31  ;;  %v15560_v31 = vld [vmem:[%s16772_s27 + $0xa14] sm:$0xf0] }
  0xe8   : > { %8288 = vmatpush.bf16.msrb.mxu1 %v11565_v34  ;;  %v8022_v34 = vpop.f32.mrf.mxu0  ;;  %v11469_v50 = vor.u32 %v15560_v31, %v11468_v25 }
  0xe9   : > { %8301 = vmatpush.bf16.msrb.mxu2 %v11629_v35  ;;  %v11596_v35 = vld [vmem:[%s16772_s27 + $0xb10] sm:$0xf]  ;;  %v8023_v39 = vadd.f32 %v8022_v34, %v1511_v17  ;;  %v15668_v17 = vld [vmem:[%s16772_s27 + $0xd74] sm:$0xf0] }
  0xea   : > { %8314 = vmatpush.bf16.msrb.mxu3 %v11693_v48  ;;  %v15558_v48 = vld [vmem:[%s16772_s27 + $0xa04] sm:$0xf0]  ;;  %v11597_v57 = vor.u32 %v15592_v36, %v11596_v35  ;;  %v11901_v34 = vor.u32 %v15668_v17, %v11900_v12  ;;  %v11764_v36 = vld [vmem:[%s16772_s27 + $0xc60] sm:$0xf]  ;;  %v11948_v12 = vld [vmem:[%s16772_s27 + $0xdd0] sm:$0xf] }
  0xeb   : > { %8276 = vmatpush.bf16.msrb.mxu0 %v11493_v49  ;;  %v8035_v49 = vpop.f32.mrf.mxu1  ;;  %v11461_v16 = vor.u32 %v15558_v48, %v11460_v47  ;;  %v11892_v47 = vld [vmem:[%s16772_s27 + $0xd60] sm:$0xf]  ;;  %v15666_v48 = vld [vmem:[%s16772_s27 + $0xd64] sm:$0xf0] }
  0xec   : > { %8289 = vmatpush.bf16.msrb.mxu1 %v11557_v52  ;;  %v15574_v52 = vld [vmem:[%s16772_s27 + $0xa84] sm:$0xf0]  ;;  %v8036_v55 = vadd.f32 %v8035_v49, %v8023_v39  ;;  %v11828_v39 = vld [vmem:[%s16772_s27 + $0xce0] sm:$0xf]  ;;  %v11965_v49 = vor.u32 %v15684_v33, %v11964_v32 }
  0xed   : > { %8302 = vmatpush.bf16.msrb.mxu2 %v11621_v53  ;;  %v11588_v53 = vld [vmem:[%s16772_s27 + $0xb00] sm:$0xf]  ;;  %v11525_v23 = vor.u32 %v15574_v52, %v11524_v51  ;;  %v15682_v52 = vld [vmem:[%s16772_s27 + $0xde4] sm:$0xf0] }
  0xee   : > { %8315 = vmatpush.bf16.msrb.mxu3 %v11685_v60  ;;  %v11836_v60 = vld [vmem:[%s16772_s27 + $0xcf0] sm:$0xf]  ;;  %v8049_v13 = vadd.f32 %v8048_v1, %v8036_v55  ;;  %v11589_v24 = vor.u32 %v15590_v54, %v11588_v53  ;;  %v11956_v51 = vld [vmem:[%s16772_s27 + $0xde0] sm:$0xf]  ;;  %v8050_v53 = vpop.f32.mrf.mxu2  ;;  %v11893_v55 = vor.u32 %v15666_v48, %v11892_v47  ;;  %v15644_v48 = vld [vmem:[%s16772_s27 + $0xcb4] sm:$0xf0] }
  0xef   : > { %8277 = vmatpush.bf16.msrb.mxu0 %v11485_v62  ;;  %v17241_v62 = vld [vmem:[#allocation1 + $0x36] sm:$0xff]  ;;  %v11837_v31 = vor.u32 %v15652_v6, %v11836_v60  ;;  %v15648_v60 = vld [vmem:[%s16772_s27 + $0xcd4] sm:$0xf0]  ;;  %v11748_v17 = vld [vmem:[%s16772_s27 + $0xc40] sm:$0xf] }
  0xf0   : > { %8290 = vmatpush.bf16.msrb.mxu1 %v11549_v2  ;;  %v238_v2 = vld [vmem:[%s19755_s0 + $0x18] sm:$0xff]  ;;  %v17255_v25 = vadd.f32 %v8061_v14, %v8049_v13  ;;  %v15680_v13 = vld [vmem:[%s16772_s27 + $0xdd4] sm:$0xf0]  ;;  %v11940_v33 = vld [vmem:[%s16772_s27 + $0xdc0] sm:$0xf] }
  0xf1   : > { %8303 = vmatpush.bf16.msrb.mxu2 %v11613_v3  ;;  %v11661_v3 = vor.u32 %v15608_v46, %v11660_v38  ;;  %1546 = vst [vmem:[#allocation1] ss:$9 sm:$0xff] %v238_v2  ;;  %v15634_v38 = vld [vmem:[%s16772_s27 + $0xc64] sm:$0xf0]  ;;  %v11884_v1 = vld [vmem:[%s16772_s27 + $0xd50] sm:$0xf] }
  0xf2   : > { %8316 = vmatpush.bf16.msrb.mxu3 %v11677_v18  ;;  %v11652_v18 = vld [vmem:[%s16772_s27 + $0xb80] sm:$0xf]  ;;  %v15650_v46 = vld [vmem:[%s16772_s27 + $0xce4] sm:$0xf0]  ;;  %v15664_v2 = vld [vmem:[%s16772_s27 + $0xd54] sm:$0xf0] }
  0xf3   : > { %8278 = vmatpush.bf16.msrb.mxu0 %v11477_v19  ;;  %v15606_v19 = vld [vmem:[%s16772_s27 + $0xb84] sm:$0xf0]  ;;  %v11829_v54 = vor.u32 %v15650_v46, %v11828_v39  ;;  %v11740_v39 = vld [vmem:[%s16772_s27 + $0xc30] sm:$0xf] }
  0xf4   : > { %8291 = vmatpush.bf16.msrb.mxu1 %v11541_v29  ;;  %v8024_v29 = vpop.f32.mrf.mxu0  ;;  %v11653_v35 = vor.u32 %v15606_v19, %v11652_v18  ;;  %v15630_v18 = vld [vmem:[%s16772_s27 + $0xc44] sm:$0xf0]  ;;  %v11812_v19 = vld [vmem:[%s16772_s27 + $0xcc0] sm:$0xf]  ;;  %v11804_v46 = vld [vmem:[%s16772_s27 + $0xcb0] sm:$0xf] }
  0xf5   : > { %8304 = vmatpush.bf16.msrb.mxu2 %v11605_v30  ;;  %v11773_v30 = vor.u32 %v15636_v59, %v11772_v58  ;;  %v11820_v58 = vld [vmem:[%s16772_s27 + $0xcd0] sm:$0xf]  ;;  %v8063_v59 = vpop.f32.mrf.mxu3  ;;  %v15662_v29 = vld [vmem:[%s16772_s27 + $0xd44] sm:$0xf0]  ;;  %v11749_v32 = vor.u32 %v15630_v18, %v11748_v17 }
  0xf6   : > { %8317 = vmatpush.bf16.msrb.mxu3 %v11669_v40  ;;  %v8037_v40 = vpop.f32.mrf.mxu1  ;;  %v11821_v14 = vor.u32 %v15648_v60, %v11820_v58  ;;  %v11932_v53 = vld [vmem:[%s16772_s27 + $0xdb0] sm:$0xf]  ;;  %v15626_v58 = vld [vmem:[%s16772_s27 + $0xc24] sm:$0xf0]  ;;  %v11796_v59 = vld [vmem:[%s16772_s27 + $0xca0] sm:$0xf] }
  0xf7   : > { %8279 = vmatpush.bf16.msrb.mxu0 %v11469_v50  ;;  %v11765_v50 = vor.u32 %v15634_v38, %v11764_v36  ;;  %v15628_v40 = vld [vmem:[%s16772_s27 + $0xc34] sm:$0xf0]  ;;  %v15642_v60 = vld [vmem:[%s16772_s27 + $0xca4] sm:$0xf0] }
  0xf8   : > { %8292 = vmatpush.bf16.msrb.mxu1 %v11533_v56  ;;  %v11756_v56 = vld [vmem:[%s16772_s27 + $0xc50] sm:$0xf]  ;;  %v15674_v17 = vld [vmem:[%s16772_s27 + $0xda4] sm:$0xf0]  ;;  %v11797_v18 = vor.u32 %v15642_v60, %v11796_v59 }
  0xf9   : > { %8305 = vmatpush.bf16.msrb.mxu2 %v11597_v57  ;;  %v15632_v57 = vld [vmem:[%s16772_s27 + $0xc54] sm:$0xf0]  ;;  %v12156_v59 = vld [vmem:[%s16772_s27 + $0xf70] sm:$0xf] }
  0xfa   : > { %8318 = vmatpush.bf16.msrb.mxu3 %v11661_v3  ;;  %v11957_v3 = vor.u32 %v15682_v52, %v11956_v51  ;;  %v11757_v6 = vor.u32 %v15632_v57, %v11756_v56  ;;  %v11741_v52 = vor.u32 %v15628_v40, %v11740_v39  ;;  %v11732_v57 = vld [vmem:[%s16772_s27 + $0xc20] sm:$0xf]  ;;  %v15672_v40 = vld [vmem:[%s16772_s27 + $0xd94] sm:$0xf0] }
  0xfb   : > { %8280 = vmatpush.bf16.msrb.mxu0 %v11461_v16  ;;  %v11885_v16 = vor.u32 %v15664_v2, %v11884_v1  ;;  %v11860_v1 = vld [vmem:[%s16772_s27 + $0xd20] sm:$0xf]  ;;  %v15658_v2 = vld [vmem:[%s16772_s27 + $0xd24] sm:$0xf0] }
  0xfc   : > { %8293 = vmatpush.bf16.msrb.mxu1 %v11525_v23  ;;  %v15646_v23 = vld [vmem:[%s16772_s27 + $0xcc4] sm:$0xf0] }
  0xfd   : > { %8306 = vmatpush.bf16.msrb.mxu2 %v11589_v24  ;;  %v11876_v24 = vld [vmem:[%s16772_s27 + $0xd40] sm:$0xf]  ;;  %v11813_v36 = vor.u32 %v15646_v23, %v11812_v19  ;;  %v11861_v19 = vor.u32 %v15658_v2, %v11860_v1  ;;  %v15732_v1 = vld [vmem:[%s16772_s27 + $0xf74] sm:$0xf0] }
  0xfe   : > { %8319 = vmatpush.bf16.msrb.mxu3 %v11653_v35  ;;  %8281 = vmatmul.bf16.vlgmr.msrb.gmra.mxu0 %v17239_v61  ;;  %v11877_v38 = vor.u32 %v15662_v29, %v11876_v24  ;;  %v8087_v47 = vpop.f32.mrf.mxu1  ;;  %v11724_v24 = vld [vmem:[%s16772_s27 + $0xc10] sm:$0xf]  ;;  %v15624_v29 = vld [vmem:[%s16772_s27 + $0xc14] sm:$0xf0]  ;;  %v11908_v2 = vld [vmem:[%s16772_s27 + $0xd80] sm:$0xf] }
  0xff   : > { %8325 = vmatpush.bf16.msra.mxu0 %v11773_v30  ;;  %8294 = vmatmul.bf16.vlgmr.msrb.gmra.mxu1 %v17243_v63  ;;  %v11949_v30 = vor.u32 %v15680_v13, %v11948_v12  ;;  %v11725_v39 = vor.u32 %v15624_v29, %v11724_v24  ;;  %v12020_v24 = vld [vmem:[%s16772_s27 + $0xe60] sm:$0xf]  ;;  %v15698_v29 = vld [vmem:[%s16772_s27 + $0xe64] sm:$0xf0] }
 0x100   : > { %8338 = vmatpush.bf16.msra.mxu1 %v11837_v31  ;;  %8307 = vmatmul.bf16.vlgmr.msrb.gmra.mxu2 %v17241_v62  ;;  %v8074_v31 = vpop.f32.mrf.mxu0 }
 0x101   : > { %8351 = vmatpush.bf16.msra.mxu2 %v11901_v34  ;;  %8320 = vmatmul.bf16.vlgmr.msrb.gmra.mxu3 %v17245_v0  ;;  %v15678_v34 = vld [vmem:[%s16772_s27 + $0xdc4] sm:$0xf0]  ;;  %v8075_v35 = vadd.f32 %v8074_v31, %v17255_v25 }
 0x102   : > { %8364 = vmatpush.bf16.msra.mxu3 %v11965_v49  ;;  %v11868_v49 = vld [vmem:[%s16772_s27 + $0xd30] sm:$0xf]  ;;  %v11941_v25 = vor.u32 %v15678_v34, %v11940_v33  ;;  %v15640_v33 = vld [vmem:[%s16772_s27 + $0xc94] sm:$0xf0] }
 0x103   : > { %8326 = vmatpush.bf16.msra.mxu0 %v11765_v50  ;;  %v15660_v50 = vld [vmem:[%s16772_s27 + $0xd34] sm:$0xf0]  ;;  %v8088_v51 = vadd.f32 %v8087_v47, %v8075_v35  ;;  %v11852_v34 = vld [vmem:[%s16772_s27 + $0xd10] sm:$0xf]  ;;  %v15622_v47 = vld [vmem:[%s16772_s27 + $0xc04] sm:$0xf0] }
 0x104   : > { %8339 = vmatpush.bf16.msra.mxu1 %v11829_v54  ;;  %v15676_v54 = vld [vmem:[%s16772_s27 + $0xdb4] sm:$0xf0]  ;;  %v11869_v56 = vor.u32 %v15660_v50, %v11868_v49  ;;  %v8113_v23 = vpop.f32.mrf.mxu3  ;;  %v11780_v50 = vld [vmem:[%s16772_s27 + $0xc80] sm:$0xf] }
 0x105   : > { %8352 = vmatpush.bf16.msra.mxu2 %v11893_v55  ;;  %v11805_v55 = vor.u32 %v15644_v48, %v11804_v46  ;;  %v15656_v35 = vld [vmem:[%s16772_s27 + $0xd14] sm:$0xf0]  ;;  %v11716_v46 = vld [vmem:[%s16772_s27 + $0xc00] sm:$0xf] }
 0x106   : > { %8365 = vmatpush.bf16.msra.mxu3 %v11957_v3  ;;  %v8100_v3 = vpop.f32.mrf.mxu2  ;;  %v8089_v31 = vpop.f32.mrf.mxu1  ;;  %v11853_v49 = vor.u32 %v15656_v35, %v11852_v34  ;;  %v11717_v60 = vor.u32 %v15622_v47, %v11716_v46  ;;  %v15730_v34 = vld [vmem:[%s16772_s27 + $0xf64] sm:$0xf0]  ;;  %v17336_v35 = vld [vmem:[#allocation1] sm:$0xff]  ;;  %v12021_v46 = vor.u32 %v15698_v29, %v12020_v24  ;;  %v12212_v47 = vld [vmem:[%s16772_s27 + $0xfe0] sm:$0xf] }
 0x107   : > { %8327 = vmatpush.bf16.msra.mxu0 %v11757_v6  ;;  %v11933_v6 = vor.u32 %v15676_v54, %v11932_v53  ;;  %v8101_v12 = vadd.f32 %v8100_v3, %v8088_v51  ;;  %v15638_v51 = vld [vmem:[%s16772_s27 + $0xc84] sm:$0xf0]  ;;  %v12028_v53 = vld [vmem:[%s16772_s27 + $0xe70] sm:$0xf]  ;;  %v15700_v54 = vld [vmem:[%s16772_s27 + $0xe74] sm:$0xf0] }
 0x108   : > { %8340 = vmatpush.bf16.msra.mxu1 %v11821_v14  ;;  %v8076_v13 = vpop.f32.mrf.mxu0  ;;  %v11733_v14 = vor.u32 %v15626_v58, %v11732_v57  ;;  %v12092_v57 = vld [vmem:[%s16772_s27 + $0xef0] sm:$0xf]  ;;  %v15716_v58 = vld [vmem:[%s16772_s27 + $0xef4] sm:$0xf0]  ;;  %v15670_v3 = vld [vmem:[%s16772_s27 + $0xd84] sm:$0xf0] }
 0x109   : > { %8353 = vmatpush.bf16.msra.mxu2 %v11885_v16  ;;  %v11924_v16 = vld [vmem:[%s16772_s27 + $0xda0] sm:$0xf]  ;;  %v15714_v31 = vld [vmem:[%s16772_s27 + $0xee4] sm:$0xf0] }
 0x10a   : > { %8366 = vmatpush.bf16.msra.mxu3 %v11949_v30  ;;  %v11788_v30 = vld [vmem:[%s16772_s27 + $0xc90] sm:$0xf]  ;;  %v12196_v24 = vld [vmem:[%s16772_s27 + $0xfc0] sm:$0xf]  ;;  %v15742_v29 = vld [vmem:[%s16772_s27 + $0xfc4] sm:$0xf0] }
 0x10b   : > { %8328 = vmatpush.bf16.msra.mxu0 %v11749_v32  ;;  %v17307_v32 = vadd.f32 %v8113_v23, %v8101_v12  ;;  %v11789_v48 = vor.u32 %v15640_v33, %v11788_v30  ;;  %v11909_v23 = vor.u32 %v15670_v3, %v11908_v2  ;;  %v12084_v30 = vld [vmem:[%s16772_s27 + $0xee0] sm:$0xf]  ;;  %v15694_v3 = vld [vmem:[%s16772_s27 + $0xe44] sm:$0xf0] }
 0x10c   : > { %8341 = vmatpush.bf16.msra.mxu1 %v11813_v36  ;;  %v11925_v36 = vor.u32 %v15674_v17, %v11924_v16  ;;  %v8115_v13 = vpop.f32.mrf.mxu3  ;;  %v12093_v16 = vor.u32 %v15716_v58, %v12092_v57  ;;  %v12220_v17 = vld [vmem:[%s16772_s27 + $0xff0] sm:$0xf]  ;;  %v12148_v33 = vld [vmem:[%s16772_s27 + $0xf60] sm:$0xf] }
 0x10d   : > { %8354 = vmatpush.bf16.msra.mxu2 %v11877_v38  ;;  %v11916_v38 = vld [vmem:[%s16772_s27 + $0xd90] sm:$0xf]  ;;  %v12004_v2 = vld [vmem:[%s16772_s27 + $0xe40] sm:$0xf] }
 0x10e   : > { %8367 = vmatpush.bf16.msra.mxu3 %v11941_v25  ;;  %v11844_v25 = vld [vmem:[%s16772_s27 + $0xd00] sm:$0xf]  ;;  %v12204_v58 = vld [vmem:[%s16772_s27 + $0xfd0] sm:$0xf] }
 0x10f   : > { %8329 = vmatpush.bf16.msra.mxu0 %v11741_v52  ;;  %v15654_v52 = vld [vmem:[%s16772_s27 + $0xd04] sm:$0xf0]  ;;  %v12132_v13 = vld [vmem:[%s16772_s27 + $0xf40] sm:$0xf] }
 0x110   : > { %8342 = vmatpush.bf16.msra.mxu1 %v11805_v55  ;;  %v8102_v55 = vpop.f32.mrf.mxu2  ;;  %v11845_v12 = vor.u32 %v15654_v52, %v11844_v25  ;;  %v15696_v25 = vld [vmem:[%s16772_s27 + $0xe54] sm:$0xf0]  ;;  %v12076_v52 = vld [vmem:[%s16772_s27 + $0xed0] sm:$0xf] }
 0x111   : > { %8355 = vmatpush.bf16.msra.mxu2 %v11869_v56  ;;  %v11917_v56 = vor.u32 %v15672_v40, %v11916_v38  ;;  %v17342_v40 = vld [vmem:[#allocation1 + $0x1b] sm:$0xff] }
 0x112   : > { %8368 = vmatpush.bf16.msra.mxu3 %v11933_v6  ;;  %v11781_v6 = vor.u32 %v15638_v51, %v11780_v50  ;;  %v12149_v50 = vor.u32 %v15730_v34, %v12148_v33  ;;  %v12012_v51 = vld [vmem:[%s16772_s27 + $0xe50] sm:$0xf]  ;;  %v15728_v55 = vld [vmem:[%s16772_s27 + $0xf54] sm:$0xf0] }
 0x113   : > { %8330 = vmatpush.bf16.msra.mxu0 %v11733_v14  ;;  %v12029_v14 = vor.u32 %v15700_v54, %v12028_v53  ;;  %v15712_v53 = vld [vmem:[%s16772_s27 + $0xed4] sm:$0xf0]  ;;  %v12140_v54 = vld [vmem:[%s16772_s27 + $0xf50] sm:$0xf]  ;;  %v12013_v57 = vor.u32 %v15696_v25, %v12012_v51 }
 0x114   : > { %8343 = vmatpush.bf16.msra.mxu1 %v11797_v18  ;;  %v15748_v18 = vld [vmem:[%s16772_s27 + $0xff4] sm:$0xf0]  ;;  %v11996_v33 = vld [vmem:[%s16772_s27 + $0xe30] sm:$0xf] }
 0x115   : > { %8356 = vmatpush.bf16.msra.mxu2 %v11861_v19  ;;  %v12157_v19 = vor.u32 %v15732_v1, %v12156_v59  ;;  %v12221_v38 = vor.u32 %v15748_v18, %v12220_v17  ;;  %v15744_v59 = vld [vmem:[%s16772_s27 + $0xfd4] sm:$0xf0]  ;;  %v12141_v1 = vor.u32 %v15728_v55, %v12140_v54  ;;  %v12188_v51 = vld [vmem:[%s16772_s27 + $0xfb0] sm:$0xf]  ;;  %v11988_v55 = vld [vmem:[%s16772_s27 + $0xe20] sm:$0xf] }
 0x116   : > { %8369 = vmatpush.bf16.msra.mxu3 %v11925_v36  ;;  %v17338_v36 = vld [vmem:[#allocation1 + $0x12] sm:$0xff]  ;;  %v15692_v34 = vld [vmem:[%s16772_s27 + $0xe34] sm:$0xf0] }
 0x117   : > { %8331 = vmatpush.bf16.msra.mxu0 %v11725_v39  ;;  %v17340_v39 = vld [vmem:[#allocation1 + $0x9] sm:$0xff]  ;;  %v15740_v25 = vld [vmem:[%s16772_s27 + $0xfb4] sm:$0xf0] }
 0x118   : > { %8344 = vmatpush.bf16.msra.mxu1 %v11789_v48  ;;  %v15746_v48 = vld [vmem:[%s16772_s27 + $0xfe4] sm:$0xf0] }
 0x119   : > { %8357 = vmatpush.bf16.msra.mxu2 %v11853_v49  ;;  %v12085_v49 = vor.u32 %v15714_v31, %v12084_v30 }
 0x11a   : > { %8370 = vmatpush.bf16.msra.mxu3 %v11917_v56  ;;  %v12213_v56 = vor.u32 %v15746_v48, %v12212_v47  ;;  %v15708_v47 = vld [vmem:[%s16772_s27 + $0xeb4] sm:$0xf0]  ;;  %v12124_v48 = vld [vmem:[%s16772_s27 + $0xf30] sm:$0xf] }
 0x11b   : > { %8332 = vmatpush.bf16.msra.mxu0 %v11717_v60  ;;  %v12077_v60 = vor.u32 %v15712_v53, %v12076_v52  ;;  %v8126_v17 = vpop.f32.mrf.mxu0 }
 0x11c   : > { %8345 = vmatpush.bf16.msra.mxu1 %v11781_v6  ;;  %v12068_v6 = vld [vmem:[%s16772_s27 + $0xec0] sm:$0xf]  ;;  %v8127_v18 = vadd.f32 %v8126_v17, %v17307_v32  ;;  %v15724_v32 = vld [vmem:[%s16772_s27 + $0xf34] sm:$0xf0]  ;;  %v11980_v17 = vld [vmem:[%s16772_s27 + $0xe10] sm:$0xf] }
 0x11d   : > { %8358 = vmatpush.bf16.msra.mxu2 %v11845_v12  ;;  %v15710_v12 = vld [vmem:[%s16772_s27 + $0xec4] sm:$0xf0]  ;;  %v12125_v53 = vor.u32 %v15724_v32, %v12124_v48 }
 0x11e   : > { %8371 = vmatpush.bf16.msra.mxu3 %v11909_v23  ;;  %8333 = vmatmul.bf16.vlgmr.msra.gmra.mxu0 %v17336_v35  ;;  %v8139_v23 = vpop.f32.mrf.mxu1  ;;  %v12069_v30 = vor.u32 %v15710_v12, %v12068_v6  ;;  %v15686_v48 = vld [vmem:[%s16772_s27 + $0xe04] sm:$0xf0] }
 0x11f   : > { %8377 = vmatpush.bf16.msrb.mxu0 %v12029_v14  ;;  %8346 = vmatmul.bf16.vlgmr.msra.gmra.mxu1 %v17340_v39  ;;  %v15726_v14 = vld [vmem:[%s16772_s27 + $0xf44] sm:$0xf0] }
 0x120   : > { %8390 = vmatpush.bf16.msrb.mxu1 %v12093_v16  ;;  %8359 = vmatmul.bf16.vlgmr.msra.gmra.mxu2 %v17338_v36  ;;  %v12205_v16 = vor.u32 %v15744_v59, %v12204_v58  ;;  %v12133_v31 = vor.u32 %v15726_v14, %v12132_v13  ;;  %v15706_v59 = vld [vmem:[%s16772_s27 + $0xea4] sm:$0xf0]  ;;  %v12180_v14 = vld [vmem:[%s16772_s27 + $0xfa0] sm:$0xf] }
 0x121   : > { %8403 = vmatpush.bf16.msrb.mxu2 %v12157_v19  ;;  %8372 = vmatmul.bf16.vlgmr.msra.gmra.mxu3 %v17342_v40  ;;  %v12005_v19 = vor.u32 %v15694_v3, %v12004_v2  ;;  %v12189_v2 = vor.u32 %v15740_v25, %v12188_v51  ;;  %v12100_v51 = vld [vmem:[%s16772_s27 + $0xf00] sm:$0xf]  ;;  %v15718_v25 = vld [vmem:[%s16772_s27 + $0xf04] sm:$0xf0] }
 0x122   : > { %8416 = vmatpush.bf16.msrb.mxu3 %v12221_v38  ;;  %v12060_v38 = vld [vmem:[%s16772_s27 + $0xeb0] sm:$0xf] }
 0x123   : > { %8378 = vmatpush.bf16.msrb.mxu0 %v12021_v46  ;;  %v8140_v46 = vadd.f32 %v8139_v23, %v8127_v18  ;;  %v12061_v52 = vor.u32 %v15708_v47, %v12060_v38  ;;  %v8152_v54 = vpop.f32.mrf.mxu2  ;;  %v8128_v6 = vpop.f32.mrf.mxu0  ;;  %v11972_v47 = vld [vmem:[%s16772_s27 + $0xe00] sm:$0xf] }
 0x124   : > { %8391 = vmatpush.bf16.msrb.mxu1 %v12085_v49  ;;  %v12197_v49 = vor.u32 %v15742_v29, %v12196_v24  ;;  %v8165_v3 = vpop.f32.mrf.mxu3  ;;  %v15688_v24 = vld [vmem:[%s16772_s27 + $0xe14] sm:$0xf0]  ;;  %v12044_v29 = vld [vmem:[%s16772_s27 + $0xe90] sm:$0xf] }
 0x125   : > { %8404 = vmatpush.bf16.msrb.mxu2 %v12149_v50  ;;  %v11997_v50 = vor.u32 %v15692_v34, %v11996_v33  ;;  %v8153_v58 = vadd.f32 %v8152_v54, %v8140_v46  ;;  %v15720_v33 = vld [vmem:[%s16772_s27 + $0xf14] sm:$0xf0]  ;;  %v12172_v34 = vld [vmem:[%s16772_s27 + $0xf90] sm:$0xf]  ;;  %v11981_v32 = vor.u32 %v15688_v24, %v11980_v17  ;;  %v12101_v24 = vor.u32 %v15718_v25, %v12100_v51  ;;  %v12468_v25 = vld [vmem:[%s16772_s27 + $0x11e0] sm:$0xf] }
 0x126   : > { %8417 = vmatpush.bf16.msrb.mxu3 %v12213_v56  ;;  %v15690_v56 = vld [vmem:[%s16772_s27 + $0xe24] sm:$0xf0]  ;;  %v8141_v18 = vpop.f32.mrf.mxu1  ;;  %v15736_v46 = vld [vmem:[%s16772_s27 + $0xf94] sm:$0xf0]  ;;  %v12284_v54 = vld [vmem:[%s16772_s27 + $0x1070] sm:$0xf] }
 0x127   : > { %8379 = vmatpush.bf16.msrb.mxu0 %v12013_v57  ;;  %v12052_v57 = vld [vmem:[%s16772_s27 + $0xea0] sm:$0xf]  ;;  %v17381_v12 = vadd.f32 %v8165_v3, %v8153_v58  ;;  %v11989_v13 = vor.u32 %v15690_v56, %v11988_v55  ;;  %v15764_v55 = vld [vmem:[%s16772_s27 + $0x1074] sm:$0xf0]  ;;  %v12348_v56 = vld [vmem:[%s16772_s27 + $0x10f0] sm:$0xf]  ;;  %v12173_v3 = vor.u32 %v15736_v46, %v12172_v34 }
 0x128   : > { %8392 = vmatpush.bf16.msrb.mxu1 %v12077_v60  ;;  %v12116_v60 = vld [vmem:[%s16772_s27 + $0xf20] sm:$0xf]  ;;  %v17404_v58 = vld [vmem:[#allocation1 + $0x36] sm:$0xff]  ;;  %v15780_v6 = vld [vmem:[%s16772_s27 + $0x10f4] sm:$0xf0] }
 0x129   : > { %8405 = vmatpush.bf16.msrb.mxu2 %v12141_v1  ;;  %v15722_v1 = vld [vmem:[%s16772_s27 + $0xf24] sm:$0xf0]  ;;  %v15796_v17 = vld [vmem:[%s16772_s27 + $0x1174] sm:$0xf0]  ;;  %v12164_v18 = vld [vmem:[%s16772_s27 + $0xf80] sm:$0xf] }
 0x12a   : > { %8418 = vmatpush.bf16.msrb.mxu3 %v12205_v16  ;;  %v15738_v16 = vld [vmem:[%s16772_s27 + $0xfa4] sm:$0xf0]  ;;  %v12117_v23 = vor.u32 %v15722_v1, %v12116_v60  ;;  %v17408_v1 = vld [vmem:[#allocation1 + $0x3f] sm:$0xff]  ;;  %v12276_v46 = vld [vmem:[%s16772_s27 + $0x1060] sm:$0xf] }
 0x12b   : > { %8380 = vmatpush.bf16.msrb.mxu0 %v12005_v19  ;;  %v12053_v19 = vor.u32 %v15706_v59, %v12052_v57  ;;  %v12181_v38 = vor.u32 %v15738_v16, %v12180_v14  ;;  %v17402_v57 = vld [vmem:[#allocation1 + $0x24] sm:$0xff]  ;;  %v8154_v59 = vpop.f32.mrf.mxu2  ;;  %v17406_v60 = vld [vmem:[#allocation1 + $0x2d] sm:$0xff]  ;;  %v11973_v16 = vor.u32 %v15686_v48, %v11972_v47 }
 0x12c   : > { %8393 = vmatpush.bf16.msrb.mxu1 %v12069_v30  ;;  %v15704_v30 = vld [vmem:[%s16772_s27 + $0xe94] sm:$0xf0]  ;;  %v8167_v14 = vpop.f32.mrf.mxu3  ;;  %v15762_v47 = vld [vmem:[%s16772_s27 + $0x1064] sm:$0xf0]  ;;  %v12340_v48 = vld [vmem:[%s16772_s27 + $0x10e0] sm:$0xf] }
 0x12d   : > { %8406 = vmatpush.bf16.msrb.mxu2 %v12133_v31  ;;  %v12108_v31 = vld [vmem:[%s16772_s27 + $0xf10] sm:$0xf]  ;;  %v12277_v51 = vor.u32 %v15762_v47, %v12276_v46  ;;  %v15760_v59 = vld [vmem:[%s16772_s27 + $0x1054] sm:$0xf0] }
 0x12e   : > { %8419 = vmatpush.bf16.msrb.mxu3 %v12197_v49  ;;  %v12036_v49 = vld [vmem:[%s16772_s27 + $0xe80] sm:$0xf] }
 0x12f   : > { %8381 = vmatpush.bf16.msrb.mxu0 %v11997_v50  ;;  %v15702_v50 = vld [vmem:[%s16772_s27 + $0xe84] sm:$0xf0] }
 0x130   : > { %8394 = vmatpush.bf16.msrb.mxu1 %v12061_v52  ;;  %v12045_v52 = vor.u32 %v15704_v30, %v12044_v29  ;;  %v12285_v29 = vor.u32 %v15764_v55, %v12284_v54  ;;  %v12349_v30 = vor.u32 %v15780_v6, %v12348_v56  ;;  %v12268_v56 = vld [vmem:[%s16772_s27 + $0x1050] sm:$0xf] }
 0x131   : > { %8407 = vmatpush.bf16.msrb.mxu2 %v12125_v53  ;;  %v12109_v53 = vor.u32 %v15720_v33, %v12108_v31  ;;  %v12476_v31 = vld [vmem:[%s16772_s27 + $0x11f0] sm:$0xf]  ;;  %v15812_v33 = vld [vmem:[%s16772_s27 + $0x11f4] sm:$0xf0] }
 0x132   : > { %8420 = vmatpush.bf16.msrb.mxu3 %v12189_v2  ;;  %v239_v2 = vld [vmem:[%s19755_s0 + $0x20] sm:$0xff]  ;;  %v12396_v6 = vld [vmem:[%s16772_s27 + $0x1150] sm:$0xf] }
 0x133   : > { %8382 = vmatpush.bf16.msrb.mxu0 %v11989_v13  ;;  %v12412_v13 = vld [vmem:[%s16772_s27 + $0x1170] sm:$0xf]  ;;  %1556 = vst [vmem:[#allocation1] ss:$9 sm:$0xff] %v239_v2 }
 0x134   : > { %8395 = vmatpush.bf16.msrb.mxu1 %v12053_v19  ;;  %v15734_v19 = vld [vmem:[%s16772_s27 + $0xf84] sm:$0xf0]  ;;  %v12413_v34 = vor.u32 %v15796_v17, %v12412_v13  ;;  %v12332_v2 = vld [vmem:[%s16772_s27 + $0x10d0] sm:$0xf]  ;;  %v15792_v13 = vld [vmem:[%s16772_s27 + $0x1154] sm:$0xf0] }
 0x135   : > { %8408 = vmatpush.bf16.msrb.mxu2 %v12117_v23  ;;  %v12037_v23 = vor.u32 %v15702_v50, %v12036_v49  ;;  %v15794_v49 = vld [vmem:[%s16772_s27 + $0x1164] sm:$0xf0]  ;;  %v12477_v50 = vor.u32 %v15812_v33, %v12476_v31  ;;  %v12460_v17 = vld [vmem:[%s16772_s27 + $0x11d0] sm:$0xf]  ;;  %v12388_v33 = vld [vmem:[%s16772_s27 + $0x1140] sm:$0xf] }
 0x136   : > { %8421 = vmatpush.bf16.msrb.mxu3 %v12181_v38  ;;  %v12165_v38 = vor.u32 %v15734_v19, %v12164_v18  ;;  %v15808_v18 = vld [vmem:[%s16772_s27 + $0x11d4] sm:$0xf0]  ;;  %v15774_v31 = vld [vmem:[%s16772_s27 + $0x10c4] sm:$0xf0] }
 0x137   : > { %8383 = vmatpush.bf16.msrb.mxu0 %v11981_v32  ;;  %v15778_v32 = vld [vmem:[%s16772_s27 + $0x10e4] sm:$0xf0] }
 0x138   : > { %8396 = vmatpush.bf16.msrb.mxu1 %v12045_v52  ;;  %v12404_v52 = vld [vmem:[%s16772_s27 + $0x1160] sm:$0xf]  ;;  %v12341_v54 = vor.u32 %v15778_v32, %v12340_v48 }
 0x139   : > { %8409 = vmatpush.bf16.msrb.mxu2 %v12109_v53  ;;  %v15810_v53 = vld [vmem:[%s16772_s27 + $0x11e4] sm:$0xf0]  ;;  %v12405_v55 = vor.u32 %v15794_v49, %v12404_v52  ;;  %v12452_v52 = vld [vmem:[%s16772_s27 + $0x11c0] sm:$0xf] }
 0x13a   : > { %8422 = vmatpush.bf16.msrb.mxu3 %v12173_v3  ;;  %v15776_v3 = vld [vmem:[%s16772_s27 + $0x10d4] sm:$0xf0]  ;;  %v12469_v14 = vor.u32 %v15810_v53, %v12468_v25  ;;  %v15806_v49 = vld [vmem:[%s16772_s27 + $0x11c4] sm:$0xf0]  ;;  %v12252_v25 = vld [vmem:[%s16772_s27 + $0x1030] sm:$0xf] }
 0x13b   : > { %8384 = vmatpush.bf16.msrb.mxu0 %v11973_v16  ;;  %v12269_v16 = vor.u32 %v15760_v59, %v12268_v56  ;;  %v12333_v19 = vor.u32 %v15776_v3, %v12332_v2  ;;  %v8178_v46 = vpop.f32.mrf.mxu0  ;;  %v15756_v53 = vld [vmem:[%s16772_s27 + $0x1034] sm:$0xf0]  ;;  %v12380_v59 = vld [vmem:[%s16772_s27 + $0x1130] sm:$0xf]  ;;  %v12453_v2 = vor.u32 %v15806_v49, %v12452_v52 }
 0x13c   : > { %8397 = vmatpush.bf16.msrb.mxu1 %v12037_v23  ;;  %v12397_v23 = vor.u32 %v15792_v13, %v12396_v6  ;;  %v8179_v47 = vadd.f32 %v8178_v46, %v17381_v12  ;;  %v8191_v32 = vpop.f32.mrf.mxu1  ;;  %v15772_v56 = vld [vmem:[%s16772_s27 + $0x10b4] sm:$0xf0]  ;;  %v12253_v3 = vor.u32 %v15756_v53, %v12252_v25  ;;  %v12444_v6 = vld [vmem:[%s16772_s27 + $0x11b0] sm:$0xf] }
 0x13d   : > { %8410 = vmatpush.bf16.msrb.mxu2 %v12101_v24  ;;  %v12260_v24 = vld [vmem:[%s16772_s27 + $0x1040] sm:$0xf]  ;;  %v15788_v12 = vld [vmem:[%s16772_s27 + $0x1134] sm:$0xf0]  ;;  %v12300_v53 = vld [vmem:[%s16772_s27 + $0x1090] sm:$0xf] }
 0x13e   : > { %8423 = vmatpush.bf16.msrb.mxu3 %v12165_v38  ;;  %8385 = vmatmul.bf16.vlgmr.msrb.gmra.mxu0 %v17402_v57  ;;  %v12461_v38 = vor.u32 %v15808_v18, %v12460_v17  ;;  %v15804_v13 = vld [vmem:[%s16772_s27 + $0x11b4] sm:$0xf0]  ;;  %v12244_v18 = vld [vmem:[%s16772_s27 + $0x1020] sm:$0xf] }
 0x13f   : > { %8429 = vmatpush.bf16.msra.mxu0 %v12285_v29  ;;  %8398 = vmatmul.bf16.vlgmr.msrb.gmra.mxu1 %v17406_v60  ;;  %v15758_v29 = vld [vmem:[%s16772_s27 + $0x1044] sm:$0xf0]  ;;  %v15752_v25 = vld [vmem:[%s16772_s27 + $0x1014] sm:$0xf0] }
 0x140   : > { %8442 = vmatpush.bf16.msra.mxu1 %v12349_v30  ;;  %8411 = vmatmul.bf16.vlgmr.msrb.gmra.mxu2 %v17404_v58  ;;  %v12324_v30 = vld [vmem:[%s16772_s27 + $0x10c0] sm:$0xf]  ;;  %v12261_v48 = vor.u32 %v15758_v29, %v12260_v24  ;;  %v15770_v29 = vld [vmem:[%s16772_s27 + $0x10a4] sm:$0xf0] }
 0x141   : > { %8455 = vmatpush.bf16.msra.mxu2 %v12413_v34  ;;  %8424 = vmatmul.bf16.vlgmr.msrb.gmra.mxu3 %v17408_v1  ;;  %v15790_v34 = vld [vmem:[%s16772_s27 + $0x1144] sm:$0xf0] }
 0x142   : > { %8468 = vmatpush.bf16.msra.mxu3 %v12477_v50  ;;  %v12325_v50 = vor.u32 %v15774_v31, %v12324_v30  ;;  %v12372_v30 = vld [vmem:[%s16772_s27 + $0x1120] sm:$0xf]  ;;  %v15786_v31 = vld [vmem:[%s16772_s27 + $0x1124] sm:$0xf0] }
 0x143   : > { %8430 = vmatpush.bf16.msra.mxu0 %v12277_v51  ;;  %v12389_v51 = vor.u32 %v15790_v34, %v12388_v33  ;;  %v8204_v17 = vpop.f32.mrf.mxu2  ;;  %v12445_v33 = vor.u32 %v15804_v13, %v12444_v6  ;;  %v12228_v6 = vld [vmem:[%s16772_s27 + $0x1000] sm:$0xf]  ;;  %v15750_v13 = vld [vmem:[%s16772_s27 + $0x1004] sm:$0xf0] }
 0x144   : > { %8443 = vmatpush.bf16.msra.mxu1 %v12341_v54  ;;  %v12316_v54 = vld [vmem:[%s16772_s27 + $0x10b0] sm:$0xf]  ;;  %v8217_v34 = vpop.f32.mrf.mxu3  ;;  %v8193_v52 = vpop.f32.mrf.mxu1 }
 0x145   : > { %8456 = vmatpush.bf16.msra.mxu2 %v12405_v55  ;;  %v8192_v55 = vadd.f32 %v8191_v32, %v8179_v47  ;;  %v15802_v32 = vld [vmem:[%s16772_s27 + $0x11a4] sm:$0xf0]  ;;  %v12420_v52 = vld [vmem:[%s16772_s27 + $0x1180] sm:$0xf] }
 0x146   : > { %8469 = vmatpush.bf16.msra.mxu3 %v12469_v14  ;;  %v12317_v14 = vor.u32 %v15772_v56, %v12316_v54  ;;  %v15768_v54 = vld [vmem:[%s16772_s27 + $0x1094] sm:$0xf0] }
 0x147   : > { %8431 = vmatpush.bf16.msra.mxu0 %v12269_v16  ;;  %v12381_v16 = vor.u32 %v15788_v12, %v12380_v59  ;;  %v8205_v24 = vadd.f32 %v8204_v17, %v8192_v55  ;;  %v12364_v55 = vld [vmem:[%s16772_s27 + $0x1110] sm:$0xf]  ;;  %v15784_v56 = vld [vmem:[%s16772_s27 + $0x1114] sm:$0xf0]  ;;  %v12292_v17 = vld [vmem:[%s16772_s27 + $0x1080] sm:$0xf] }
 0x148   : > { %8444 = vmatpush.bf16.msra.mxu1 %v12333_v19  ;;  %v15754_v19 = vld [vmem:[%s16772_s27 + $0x1024] sm:$0xf0]  ;;  %v12428_v12 = vld [vmem:[%s16772_s27 + $0x1190] sm:$0xf] }
 0x149   : > { %8457 = vmatpush.bf16.msra.mxu2 %v12397_v23  ;;  %v12308_v23 = vld [vmem:[%s16772_s27 + $0x10a0] sm:$0xf]  ;;  %v17463_v46 = vadd.f32 %v8217_v34, %v8205_v24  ;;  %v12245_v47 = vor.u32 %v15754_v19, %v12244_v18  ;;  %v15766_v18 = vld [vmem:[%s16772_s27 + $0x1084] sm:$0xf0]  ;;  %v15844_v34 = vld [vmem:[%s16772_s27 + $0x12f4] sm:$0xf0] }
 0x14a   : > { %8470 = vmatpush.bf16.msra.mxu3 %v12461_v38  ;;  %v8180_v38 = vpop.f32.mrf.mxu0  ;;  %v12309_v49 = vor.u32 %v15770_v29, %v12308_v23  ;;  %v12356_v19 = vld [vmem:[%s16772_s27 + $0x1100] sm:$0xf]  ;;  %v15782_v24 = vld [vmem:[%s16772_s27 + $0x1104] sm:$0xf0]  ;;  %v12540_v29 = vld [vmem:[%s16772_s27 + $0x1270] sm:$0xf] }
 0x14b   : > { %8432 = vmatpush.bf16.msra.mxu0 %v12261_v48  ;;  %v12436_v48 = vld [vmem:[%s16772_s27 + $0x11a0] sm:$0xf]  ;;  %v8206_v23 = vpop.f32.mrf.mxu2  ;;  %v12668_v38 = vld [vmem:[%s16772_s27 + $0x1370] sm:$0xf] }
 0x14c   : > { %8445 = vmatpush.bf16.msra.mxu1 %v12325_v50  ;;  %v12373_v50 = vor.u32 %v15786_v31, %v12372_v30  ;;  %v12437_v59 = vor.u32 %v15802_v32, %v12436_v48  ;;  %v15828_v30 = vld [vmem:[%s16772_s27 + $0x1274] sm:$0xf0]  ;;  %v12229_v48 = vor.u32 %v15750_v13, %v12228_v6  ;;  %v15842_v6 = vld [vmem:[%s16772_s27 + $0x12e4] sm:$0xf0]  ;;  %v12660_v13 = vld [vmem:[%s16772_s27 + $0x1360] sm:$0xf] }
 0x14d   : > { %8458 = vmatpush.bf16.msra.mxu2 %v12389_v51  ;;  %v12236_v51 = vld [vmem:[%s16772_s27 + $0x1010] sm:$0xf]  ;;  %v15860_v32 = vld [vmem:[%s16772_s27 + $0x1374] sm:$0xf0] }
 0x14e   : > { %8471 = vmatpush.bf16.msra.mxu3 %v12453_v2  ;;  %v12237_v2 = vor.u32 %v15752_v25, %v12236_v51  ;;  %v12357_v51 = vor.u32 %v15782_v24, %v12356_v19  ;;  %v12541_v25 = vor.u32 %v15828_v30, %v12540_v29  ;;  %v17501_v19 = vld [vmem:[#allocation1 + $0x9] sm:$0xff]  ;;  %v17503_v23 = vld [vmem:[#allocation1 + $0x1b] sm:$0xff] }
 0x14f   : > { %8433 = vmatpush.bf16.msra.mxu0 %v12253_v3  ;;  %v15800_v3 = vld [vmem:[%s16772_s27 + $0x1194] sm:$0xf0]  ;;  %19802 = vst [vmem:[#allocation10_spill] sm:$0xff] %v17501_v19  ;;  %v12724_v29 = vld [vmem:[%s16772_s27 + $0x13e0] sm:$0xf] }
 0x150   : > { %8446 = vmatpush.bf16.msra.mxu1 %v12317_v14  ;;  %v12301_v14 = vor.u32 %v15768_v54, %v12300_v53  ;;  %v12429_v31 = vor.u32 %v15800_v3, %v12428_v12  ;;  %v12732_v54 = vld [vmem:[%s16772_s27 + $0x13f0] sm:$0xf]  ;;  %v12532_v12 = vld [vmem:[%s16772_s27 + $0x1260] sm:$0xf]  ;;  %19803 = vst [vmem:[#allocation11_spill] sm:$0xff] %v17503_v23 }
 0x151   : > { %8459 = vmatpush.bf16.msra.mxu2 %v12381_v16  ;;  %v12365_v16 = vor.u32 %v15784_v56, %v12364_v55  ;;  %v15876_v55 = vld [vmem:[%s16772_s27 + $0x13f4] sm:$0xf0]  ;;  %v12669_v56 = vor.u32 %v15860_v32, %v12668_v38  ;;  %v12596_v3 = vld [vmem:[%s16772_s27 + $0x12e0] sm:$0xf]  ;;  %v15874_v30 = vld [vmem:[%s16772_s27 + $0x13e4] sm:$0xf0] }
 0x152   : > { %8472 = vmatpush.bf16.msra.mxu3 %v12445_v33  ;;  %v12604_v33 = vld [vmem:[%s16772_s27 + $0x12f0] sm:$0xf]  ;;  %v15824_v38 = vld [vmem:[%s16772_s27 + $0x1254] sm:$0xf0] }
 0x153   : > { %8434 = vmatpush.bf16.msra.mxu0 %v12245_v47  ;;  %v8219_v47 = vpop.f32.mrf.mxu3  ;;  %v12605_v53 = vor.u32 %v15844_v34, %v12604_v33  ;;  %v12524_v34 = vld [vmem:[%s16772_s27 + $0x1250] sm:$0xf] }
 0x154   : > { %8447 = vmatpush.bf16.msra.mxu1 %v12309_v49  ;;  %v15798_v49 = vld [vmem:[%s16772_s27 + $0x1184] sm:$0xf0]  ;;  %v12588_v47 = vld [vmem:[%s16772_s27 + $0x12d0] sm:$0xf] }
 0x155   : > { %8460 = vmatpush.bf16.msra.mxu2 %v12373_v50  ;;  %v12293_v50 = vor.u32 %v15766_v18, %v12292_v17  ;;  %v17499_v17 = vld [vmem:[#allocation1 + $0x12] sm:$0xff]  ;;  %v12733_v18 = vor.u32 %v15876_v55, %v12732_v54  ;;  %v12516_v55 = vld [vmem:[%s16772_s27 + $0x1240] sm:$0xf] }
 0x156   : > { %8473 = vmatpush.bf16.msra.mxu3 %v12437_v59  ;;  %v12421_v59 = vor.u32 %v15798_v49, %v12420_v52  ;;  %19801 = vst [vmem:[#allocation9_spill] sm:$0xff] %v17499_v17  ;;  %v12652_v32 = vld [vmem:[%s16772_s27 + $0x1350] sm:$0xf]  ;;  %v15856_v52 = vld [vmem:[%s16772_s27 + $0x1354] sm:$0xf0]  ;;  %v12725_v49 = vor.u32 %v15874_v30, %v12724_v29 }
 0x157   : > { %8435 = vmatpush.bf16.msra.mxu0 %v12237_v2  ;;  %v15826_v2 = vld [vmem:[%s16772_s27 + $0x1264] sm:$0xf0]  ;;  %v12653_v54 = vor.u32 %v15856_v52, %v12652_v32  ;;  %v12708_v29 = vld [vmem:[%s16772_s27 + $0x13c0] sm:$0xf]  ;;  %v15836_v32 = vld [vmem:[%s16772_s27 + $0x12b4] sm:$0xf0] }
 0x158   : > { %8448 = vmatpush.bf16.msra.mxu1 %v12301_v14  ;;  %v15858_v14 = vld [vmem:[%s16772_s27 + $0x1364] sm:$0xf0]  ;;  %v12533_v24 = vor.u32 %v15826_v2, %v12532_v12  ;;  %v12644_v2 = vld [vmem:[%s16772_s27 + $0x1340] sm:$0xf]  ;;  %v12636_v52 = vld [vmem:[%s16772_s27 + $0x1330] sm:$0xf] }
 0x159   : > { %8461 = vmatpush.bf16.msra.mxu2 %v12365_v16  ;;  %v17497_v16 = vld [vmem:[#allocation1] sm:$0xff]  ;;  %v12661_v33 = vor.u32 %v15858_v14, %v12660_v13  ;;  %v15838_v12 = vld [vmem:[%s16772_s27 + $0x12c4] sm:$0xf0] }
 0x15a   : > { %8474 = vmatpush.bf16.msra.mxu3 %v12429_v31  ;;  %19800 = vst [vmem:[#allocation8_spill] sm:$0xff] %v17497_v16  ;;  %v12597_v31 = vor.u32 %v15842_v6, %v12596_v3  ;;  %v15854_v3 = vld [vmem:[%s16772_s27 + $0x1344] sm:$0xf0] }
 0x15b   : > { %8436 = vmatpush.bf16.msra.mxu0 %v12229_v48  ;;  %v15840_v48 = vld [vmem:[%s16772_s27 + $0x12d4] sm:$0xf0]  ;;  %v8230_v13 = vpop.f32.mrf.mxu0  ;;  %v15870_v30 = vld [vmem:[%s16772_s27 + $0x13c4] sm:$0xf0] }
 0x15c   : > { %8449 = vmatpush.bf16.msra.mxu1 %v12293_v50  ;;  %v12525_v50 = vor.u32 %v15824_v38, %v12524_v34  ;;  %v8231_v14 = vadd.f32 %v8230_v13, %v17463_v46  ;;  %v12508_v34 = vld [vmem:[%s16772_s27 + $0x1230] sm:$0xf]  ;;  %v15820_v38 = vld [vmem:[%s16772_s27 + $0x1234] sm:$0xf0]  ;;  %v15850_v13 = vld [vmem:[%s16772_s27 + $0x1324] sm:$0xf0] }
 0x15d   : > { %8462 = vmatpush.bf16.msra.mxu2 %v12357_v51  ;;  %v12716_v51 = vld [vmem:[%s16772_s27 + $0x13d0] sm:$0xf]  ;;  %v15852_v46 = vld [vmem:[%s16772_s27 + $0x1334] sm:$0xf0] }
 0x15e   : > { %8475 = vmatpush.bf16.msra.mxu3 %v12421_v59  ;;  %8437 = vmatmul.bf16.vlgmr.msra.gmra.mxu0 %v17497_v16  ;;  %v12580_v59 = vld [vmem:[%s16772_s27 + $0x12c0] sm:$0xf] }
 0x15f   : > { %8481 = vmatpush.bf16.msrb.mxu0 %v12541_v25  ;;  %8450 = vmatmul.bf16.vlgmr.msra.gmra.mxu1 %v17501_v19  ;;  %v15872_v25 = vld [vmem:[%s16772_s27 + $0x13d4] sm:$0xf0]  ;;  %v12988_v19 = vld [vmem:[%s16772_s27 + $0x15f0] sm:$0xf]  ;;  %v12852_v16 = vld [vmem:[%s16772_s27 + $0x14e0] sm:$0xf] }
 0x160   : > { %8494 = vmatpush.bf16.msrb.mxu1 %v12605_v53  ;;  %8463 = vmatmul.bf16.vlgmr.msra.gmra.mxu2 %v17499_v17  ;;  %v12589_v53 = vor.u32 %v15840_v48, %v12588_v47  ;;  %v12717_v6 = vor.u32 %v15872_v25, %v12716_v51  ;;  %v12572_v47 = vld [vmem:[%s16772_s27 + $0x12b0] sm:$0xf]  ;;  %v15868_v25 = vld [vmem:[%s16772_s27 + $0x13b4] sm:$0xf0]  ;;  %v15862_v17 = vld [vmem:[%s16772_s27 + $0x1384] sm:$0xf0] }
 0x161   : > { %8507 = vmatpush.bf16.msrb.mxu2 %v12669_v56  ;;  %8476 = vmatmul.bf16.vlgmr.msra.gmra.mxu3 %v17503_v23  ;;  %v15822_v56 = vld [vmem:[%s16772_s27 + $0x1244] sm:$0xf0]  ;;  %v12700_v51 = vld [vmem:[%s16772_s27 + $0x13b0] sm:$0xf] }
 0x162   : > { %8520 = vmatpush.bf16.msrb.mxu3 %v12733_v18  ;;  %v12517_v18 = vor.u32 %v15822_v56, %v12516_v55  ;;  %v12500_v56 = vld [vmem:[%s16772_s27 + $0x1220] sm:$0xf] }
 0x163   : > { %8482 = vmatpush.bf16.msrb.mxu0 %v12533_v24  ;;  %v8243_v24 = vpop.f32.mrf.mxu1  ;;  %v8256_v55 = vpop.f32.mrf.mxu2 }
 0x164   : > { %8495 = vmatpush.bf16.msrb.mxu1 %v12597_v31  ;;  %v12581_v31 = vor.u32 %v15838_v12, %v12580_v59  ;;  %v8244_v48 = vadd.f32 %v8243_v24, %v8231_v14  ;;  %v15818_v59 = vld [vmem:[%s16772_s27 + $0x1224] sm:$0xf0]  ;;  %v12564_v12 = vld [vmem:[%s16772_s27 + $0x12a0] sm:$0xf]  ;;  %v12701_v14 = vor.u32 %v15868_v25, %v12700_v51  ;;  %v8232_v24 = vpop.f32.mrf.mxu0  ;;  %v12684_v51 = vld [vmem:[%s16772_s27 + $0x1390] sm:$0xf] }
 0x165   : > { %8508 = vmatpush.bf16.msrb.mxu2 %v12661_v33  ;;  %v12645_v33 = vor.u32 %v15854_v3, %v12644_v2  ;;  %v15834_v3 = vld [vmem:[%s16772_s27 + $0x12a4] sm:$0xf0]  ;;  %v12860_v24 = vld [vmem:[%s16772_s27 + $0x14f0] sm:$0xf] }
 0x166   : > { %8521 = vmatpush.bf16.msrb.mxu3 %v12725_v49  ;;  %v12709_v49 = vor.u32 %v15870_v30, %v12708_v29  ;;  %v8257_v2 = vadd.f32 %v8256_v55, %v8244_v48  ;;  %v12501_v30 = vor.u32 %v15818_v59, %v12500_v56  ;;  %v15864_v55 = vld [vmem:[%s16772_s27 + $0x1394] sm:$0xf0]  ;;  %v12548_v59 = vld [vmem:[%s16772_s27 + $0x1280] sm:$0xf] }
 0x167   : > { %8483 = vmatpush.bf16.msrb.mxu0 %v12525_v50  ;;  %v12509_v50 = vor.u32 %v15820_v38, %v12508_v34  ;;  %v12492_v34 = vld [vmem:[%s16772_s27 + $0x1210] sm:$0xf] }
 0x168   : > { %8496 = vmatpush.bf16.msrb.mxu1 %v12589_v53  ;;  %v12573_v53 = vor.u32 %v15836_v32, %v12572_v47  ;;  %v12565_v47 = vor.u32 %v15834_v3, %v12564_v12  ;;  %v15816_v32 = vld [vmem:[%s16772_s27 + $0x1214] sm:$0xf0]  ;;  %v15830_v12 = vld [vmem:[%s16772_s27 + $0x1284] sm:$0xf0] }
 0x169   : > { %8509 = vmatpush.bf16.msrb.mxu2 %v12653_v54  ;;  %v12637_v54 = vor.u32 %v15852_v46, %v12636_v52  ;;  %v12556_v52 = vld [vmem:[%s16772_s27 + $0x1290] sm:$0xf]  ;;  %v15832_v46 = vld [vmem:[%s16772_s27 + $0x1294] sm:$0xf0]  ;;  %v12493_v56 = vor.u32 %v15816_v32, %v12492_v34  ;;  %v15846_v3 = vld [vmem:[%s16772_s27 + $0x1304] sm:$0xf0] }
 0x16a   : > { %8522 = vmatpush.bf16.msrb.mxu3 %v12717_v6  ;;  %v12628_v6 = vld [vmem:[%s16772_s27 + $0x1320] sm:$0xf]  ;;  %v17567_v34 = vld [vmem:[#allocation1 + $0x2d] sm:$0xff]  ;;  %v15908_v32 = vld [vmem:[%s16772_s27 + $0x14f4] sm:$0xf0] }
 0x16b   : > { %8484 = vmatpush.bf16.msrb.mxu0 %v12517_v18  ;;  %v8269_v18 = vpop.f32.mrf.mxu3  ;;  %v8245_v38 = vpop.f32.mrf.mxu1  ;;  %v12629_v48 = vor.u32 %v15850_v13, %v12628_v6  ;;  %v12557_v6 = vor.u32 %v15832_v46, %v12556_v52  ;;  %19806 = vst [vmem:[#allocation14_spill] sm:$0xff] %v17567_v34  ;;  %v12924_v52 = vld [vmem:[%s16772_s27 + $0x1570] sm:$0xf]  ;;  %v12861_v23 = vor.u32 %v15908_v32, %v12860_v24 }
 0x16c   : > { %8497 = vmatpush.bf16.msrb.mxu1 %v12581_v31  ;;  %v17542_v29 = vadd.f32 %v8269_v18, %v8257_v2  ;;  %v12692_v31 = vld [vmem:[%s16772_s27 + $0x13a0] sm:$0xf]  ;;  %v12796_v18 = vld [vmem:[%s16772_s27 + $0x1470] sm:$0xf]  ;;  %v17569_v38 = vld [vmem:[#allocation1 + $0x3f] sm:$0xff] }
 0x16d   : > { %8510 = vmatpush.bf16.msrb.mxu2 %v12645_v33  ;;  %v15866_v33 = vld [vmem:[%s16772_s27 + $0x13a4] sm:$0xf0]  ;;  %v12612_v2 = vld [vmem:[%s16772_s27 + $0x1300] sm:$0xf]  ;;  %19807 = vst [vmem:[#allocation15_spill] sm:$0xff] %v17569_v38 }
 0x16e   : > { %8523 = vmatpush.bf16.msrb.mxu3 %v12709_v49  ;;  %v12620_v49 = vld [vmem:[%s16772_s27 + $0x1310] sm:$0xf]  ;;  %v12693_v25 = vor.u32 %v15866_v33, %v12692_v31  ;;  %v17563_v31 = vld [vmem:[#allocation1 + $0x24] sm:$0xff]  ;;  %v8258_v33 = vpop.f32.mrf.mxu2 }
 0x16f   : > { %8485 = vmatpush.bf16.msrb.mxu0 %v12509_v50  ;;  %v15848_v50 = vld [vmem:[%s16772_s27 + $0x1314] sm:$0xf0]  ;;  %19804 = vst [vmem:[#allocation12_spill] sm:$0xff] %v17563_v31  ;;  %v12676_v33 = vld [vmem:[%s16772_s27 + $0x1380] sm:$0xf] }
 0x170   : > { %8498 = vmatpush.bf16.msrb.mxu1 %v12573_v53  ;;  %v12484_v53 = vld [vmem:[%s16772_s27 + $0x1200] sm:$0xf]  ;;  %v12621_v13 = vor.u32 %v15848_v50, %v12620_v49  ;;  %v15924_v50 = vld [vmem:[%s16772_s27 + $0x1574] sm:$0xf0]  ;;  %v12780_v24 = vld [vmem:[%s16772_s27 + $0x1450] sm:$0xf] }
 0x171   : > { %8511 = vmatpush.bf16.msrb.mxu2 %v12637_v54  ;;  %v15814_v54 = vld [vmem:[%s16772_s27 + $0x1204] sm:$0xf0]  ;;  %v12844_v32 = vld [vmem:[%s16772_s27 + $0x14d0] sm:$0xf] }
 0x172   : > { %8524 = vmatpush.bf16.msrb.mxu3 %v12701_v14  ;;  %v15892_v14 = vld [vmem:[%s16772_s27 + $0x1474] sm:$0xf0]  ;;  %v12485_v49 = vor.u32 %v15814_v54, %v12484_v53  ;;  %v12677_v53 = vor.u32 %v15862_v17, %v12676_v33  ;;  %v12788_v54 = vld [vmem:[%s16772_s27 + $0x1460] sm:$0xf] }
 0x173   : > { %8486 = vmatpush.bf16.msrb.mxu0 %v12501_v30  ;;  %v17565_v30 = vld [vmem:[#allocation1 + $0x36] sm:$0xff]  ;;  %v8271_v46 = vpop.f32.mrf.mxu3  ;;  %v12980_v17 = vld [vmem:[%s16772_s27 + $0x15e0] sm:$0xf]  ;;  %v15936_v33 = vld [vmem:[%s16772_s27 + $0x15d4] sm:$0xf0] }
 0x174   : > { %8499 = vmatpush.bf16.msrb.mxu1 %v12565_v47  ;;  %19805 = vst [vmem:[#allocation13_spill] sm:$0xff] %v17565_v30  ;;  %v240_v47 = vld [vmem:[%s19755_s0 + $0x28] sm:$0xff]  ;;  %v15940_v46 = vld [vmem:[%s16772_s27 + $0x15f4] sm:$0xf0] }
 0x175   : > { %8512 = vmatpush.bf16.msrb.mxu2 %v12629_v48  ;;  %v12685_v48 = vor.u32 %v15864_v55, %v12684_v51  ;;  %1566 = vst [vmem:[#allocation1] ss:$9 sm:$0xff] %v240_v47  ;;  %v12549_v51 = vor.u32 %v15830_v12, %v12548_v59  ;;  %v12797_v55 = vor.u32 %v15892_v14, %v12796_v18  ;;  %v15890_v47 = vld [vmem:[%s16772_s27 + $0x1464] sm:$0xf0] }
 0x176   : > { %8525 = vmatpush.bf16.msrb.mxu3 %v12693_v25  ;;  %v12613_v25 = vor.u32 %v15846_v3, %v12612_v2  ;;  %v15922_v59 = vld [vmem:[%s16772_s27 + $0x1564] sm:$0xf0]  ;;  %v12989_v12 = vor.u32 %v15940_v46, %v12988_v19  ;;  %v12789_v2 = vor.u32 %v15890_v47, %v12788_v54  ;;  %v15904_v19 = vld [vmem:[%s16772_s27 + $0x14d4] sm:$0xf0]  ;;  %v12900_v54 = vld [vmem:[%s16772_s27 + $0x1540] sm:$0xf] }
 0x177   : > { %8487 = vmatpush.bf16.msrb.mxu0 %v12493_v56  ;;  %v12925_v56 = vor.u32 %v15924_v50, %v12924_v52  ;;  %v15938_v3 = vld [vmem:[%s16772_s27 + $0x15e4] sm:$0xf0]  ;;  %v15920_v52 = vld [vmem:[%s16772_s27 + $0x1554] sm:$0xf0]  ;;  %v12972_v50 = vld [vmem:[%s16772_s27 + $0x15d0] sm:$0xf] }
 0x178   : > { %8500 = vmatpush.bf16.msrb.mxu1 %v12557_v6  ;;  %v15906_v6 = vld [vmem:[%s16772_s27 + $0x14e4] sm:$0xf0] }
 0x179   : > { %8513 = vmatpush.bf16.msrb.mxu2 %v12621_v13  ;;  %v12916_v13 = vld [vmem:[%s16772_s27 + $0x1560] sm:$0xf]  ;;  %v12853_v18 = vor.u32 %v15906_v6, %v12852_v16  ;;  %v12981_v16 = vor.u32 %v15938_v3, %v12980_v17  ;;  %v15886_v46 = vld [vmem:[%s16772_s27 + $0x1444] sm:$0xf0]  ;;  %v12973_v6 = vor.u32 %v15936_v33, %v12972_v50  ;;  %v12956_v50 = vld [vmem:[%s16772_s27 + $0x15b0] sm:$0xf] }
 0x17a   : > { %8526 = vmatpush.bf16.msrb.mxu3 %v12685_v48  ;;  %v12917_v14 = vor.u32 %v15922_v59, %v12916_v13  ;;  %v15888_v48 = vld [vmem:[%s16772_s27 + $0x1454] sm:$0xf0]  ;;  %v15918_v47 = vld [vmem:[%s16772_s27 + $0x1544] sm:$0xf0]  ;;  %v12964_v17 = vld [vmem:[%s16772_s27 + $0x15c0] sm:$0xf] }
 0x17b   : > { %8488 = vmatpush.bf16.msrb.mxu0 %v12485_v49  ;;  %v12781_v49 = vor.u32 %v15888_v48, %v12780_v24  ;;  %v8282_v13 = vpop.f32.mrf.mxu0  ;;  %v15934_v3 = vld [vmem:[%s16772_s27 + $0x15c4] sm:$0xf0]  ;;  %v12764_v24 = vld [vmem:[%s16772_s27 + $0x1430] sm:$0xf]  ;;  %v15884_v48 = vld [vmem:[%s16772_s27 + $0x1434] sm:$0xf0] }
 0x17c   : > { %8501 = vmatpush.bf16.msrb.mxu1 %v12549_v51  ;;  %v12845_v51 = vor.u32 %v15904_v19, %v12844_v32  ;;  %v8283_v59 = vadd.f32 %v8282_v13, %v17542_v29  ;;  %v12828_v32 = vld [vmem:[%s16772_s27 + $0x14b0] sm:$0xf]  ;;  %v15916_v29 = vld [vmem:[%s16772_s27 + $0x1534] sm:$0xf0]  ;;  %v15914_v13 = vld [vmem:[%s16772_s27 + $0x1524] sm:$0xf0] }
 0x17d   : > { %8514 = vmatpush.bf16.msrb.mxu2 %v12613_v25  ;;  %v15932_v33 = vld [vmem:[%s16772_s27 + $0x15b4] sm:$0xf0] }
 0x17e   : > { %8527 = vmatpush.bf16.msrb.mxu3 %v12677_v53  ;;  %8489 = vmatmul.bf16.vlgmr.msrb.gmra.mxu0 %v17563_v31  ;;  %v15902_v53 = vld [vmem:[%s16772_s27 + $0x14c4] sm:$0xf0]  ;;  %v13364_v31 = vld [vmem:[%s16772_s27 + $0x18e0] sm:$0xf] }
 0x17f   : > { %8533 = vmatpush.bf16.msra.mxu0 %v12797_v55  ;;  %8502 = vmatmul.bf16.vlgmr.msrb.gmra.mxu1 %v17567_v34  ;;  %v12772_v55 = vld [vmem:[%s16772_s27 + $0x1440] sm:$0xf]  ;;  %v13500_v34 = vld [vmem:[%s16772_s27 + $0x19f0] sm:$0xf] }
 0x180   : > { %8546 = vmatpush.bf16.msra.mxu1 %v12861_v23  ;;  %8515 = vmatmul.bf16.vlgmr.msrb.gmra.mxu2 %v17565_v30  ;;  %v12908_v23 = vld [vmem:[%s16772_s27 + $0x1550] sm:$0xf]  ;;  %v15970_v30 = vld [vmem:[%s16772_s27 + $0x16e4] sm:$0xf0] }
 0x181   : > { %8559 = vmatpush.bf16.msra.mxu2 %v12925_v56  ;;  %8528 = vmatmul.bf16.vlgmr.msrb.gmra.mxu3 %v17569_v38  ;;  %v12909_v25 = vor.u32 %v15920_v52, %v12908_v23  ;;  %v12836_v56 = vld [vmem:[%s16772_s27 + $0x14c0] sm:$0xf]  ;;  %v15900_v23 = vld [vmem:[%s16772_s27 + $0x14b4] sm:$0xf0]  ;;  %v12892_v52 = vld [vmem:[%s16772_s27 + $0x1530] sm:$0xf] }
 0x182   : > { %8572 = vmatpush.bf16.msra.mxu3 %v12989_v12  ;;  %v12773_v12 = vor.u32 %v15886_v46, %v12772_v55  ;;  %v12756_v46 = vld [vmem:[%s16772_s27 + $0x1420] sm:$0xf]  ;;  %v15986_v38 = vld [vmem:[%s16772_s27 + $0x1764] sm:$0xf0] }
 0x183   : > { %8534 = vmatpush.bf16.msra.mxu0 %v12789_v2  ;;  %v8295_v2 = vpop.f32.mrf.mxu1  ;;  %v8308_v55 = vpop.f32.mrf.mxu2 }
 0x184   : > { %8547 = vmatpush.bf16.msra.mxu1 %v12853_v18  ;;  %v12837_v18 = vor.u32 %v15902_v53, %v12836_v56  ;;  %v8296_v19 = vadd.f32 %v8295_v2, %v8283_v59  ;;  %v15882_v56 = vld [vmem:[%s16772_s27 + $0x1424] sm:$0xf0]  ;;  %v12820_v53 = vld [vmem:[%s16772_s27 + $0x14a0] sm:$0xf]  ;;  %v12957_v59 = vor.u32 %v15932_v33, %v12956_v50  ;;  %v8284_v2 = vpop.f32.mrf.mxu0  ;;  %v12940_v33 = vld [vmem:[%s16772_s27 + $0x1590] sm:$0xf] }
 0x185   : > { %8560 = vmatpush.bf16.msra.mxu2 %v12917_v14  ;;  %v12901_v14 = vor.u32 %v15918_v47, %v12900_v54  ;;  %v15898_v47 = vld [vmem:[%s16772_s27 + $0x14a4] sm:$0xf0]  ;;  %v15956_v2 = vld [vmem:[%s16772_s27 + $0x1674] sm:$0xf0] }
 0x186   : > { %8573 = vmatpush.bf16.msra.mxu3 %v12981_v16  ;;  %v12965_v16 = vor.u32 %v15934_v3, %v12964_v17  ;;  %v8309_v54 = vadd.f32 %v8308_v55, %v8296_v19  ;;  %v12757_v3 = vor.u32 %v15882_v56, %v12756_v46  ;;  %v12748_v19 = vld [vmem:[%s16772_s27 + $0x1410] sm:$0xf]  ;;  %v12740_v55 = vld [vmem:[%s16772_s27 + $0x1400] sm:$0xf]  ;;  %v15878_v46 = vld [vmem:[%s16772_s27 + $0x1404] sm:$0xf0] }
 0x187   : > { %8535 = vmatpush.bf16.msra.mxu0 %v12781_v49  ;;  %v12765_v49 = vor.u32 %v15884_v48, %v12764_v24  ;;  %v12821_v48 = vor.u32 %v15898_v47, %v12820_v53  ;;  %v15894_v47 = vld [vmem:[%s16772_s27 + $0x1484] sm:$0xf0] }
 0x188   : > { %8548 = vmatpush.bf16.msra.mxu1 %v12845_v51  ;;  %v12829_v51 = vor.u32 %v15900_v23, %v12828_v32  ;;  %v15880_v23 = vld [vmem:[%s16772_s27 + $0x1414] sm:$0xf0] }
 0x189   : > { %8561 = vmatpush.bf16.msra.mxu2 %v12909_v25  ;;  %v12893_v25 = vor.u32 %v15916_v29, %v12892_v52  ;;  %v12812_v52 = vld [vmem:[%s16772_s27 + $0x1490] sm:$0xf]  ;;  %v15896_v29 = vld [vmem:[%s16772_s27 + $0x1494] sm:$0xf0] }
 0x18a   : > { %8574 = vmatpush.bf16.msra.mxu3 %v12973_v6  ;;  %v12884_v6 = vld [vmem:[%s16772_s27 + $0x1520] sm:$0xf]  ;;  %v12813_v56 = vor.u32 %v15896_v29, %v12812_v52  ;;  %v15926_v52 = vld [vmem:[%s16772_s27 + $0x1584] sm:$0xf0] }
 0x18b   : > { %8536 = vmatpush.bf16.msra.mxu0 %v12773_v12  ;;  %v8321_v12 = vpop.f32.mrf.mxu3  ;;  %v8297_v24 = vpop.f32.mrf.mxu1  ;;  %v12885_v32 = vor.u32 %v15914_v13, %v12884_v6  ;;  %v12868_v6 = vld [vmem:[%s16772_s27 + $0x1500] sm:$0xf] }
 0x18c   : > { %8549 = vmatpush.bf16.msra.mxu1 %v12837_v18  ;;  %v17624_v17 = vadd.f32 %v8321_v12, %v8309_v54  ;;  %v12948_v18 = vld [vmem:[%s16772_s27 + $0x15a0] sm:$0xf]  ;;  %v8310_v13 = vpop.f32.mrf.mxu2  ;;  %v13052_v12 = vld [vmem:[%s16772_s27 + $0x1670] sm:$0xf] }
 0x18d   : > { %8562 = vmatpush.bf16.msra.mxu2 %v12901_v14  ;;  %v15930_v14 = vld [vmem:[%s16772_s27 + $0x15a4] sm:$0xf0]  ;;  %v12804_v54 = vld [vmem:[%s16772_s27 + $0x1480] sm:$0xf]  ;;  %v13180_v24 = vld [vmem:[%s16772_s27 + $0x1770] sm:$0xf] }
 0x18e   : > { %8575 = vmatpush.bf16.msra.mxu3 %v12965_v16  ;;  %v12876_v16 = vld [vmem:[%s16772_s27 + $0x1510] sm:$0xf]  ;;  %v12949_v50 = vor.u32 %v15930_v14, %v12948_v18  ;;  %v15972_v14 = vld [vmem:[%s16772_s27 + $0x16f4] sm:$0xf0]  ;;  %v12805_v29 = vor.u32 %v15894_v47, %v12804_v54 }
 0x18f   : > { %8537 = vmatpush.bf16.msra.mxu0 %v12765_v49  ;;  %v15912_v49 = vld [vmem:[%s16772_s27 + $0x1514] sm:$0xf0]  ;;  %v13116_v18 = vld [vmem:[%s16772_s27 + $0x16f0] sm:$0xf] }
 0x190   : > { %8550 = vmatpush.bf16.msra.mxu1 %v12829_v51  ;;  %v12749_v51 = vor.u32 %v15880_v23, %v12748_v19  ;;  %v12877_v53 = vor.u32 %v15912_v49, %v12876_v16  ;;  %v15988_v19 = vld [vmem:[%s16772_s27 + $0x1774] sm:$0xf0]  ;;  %v12932_v23 = vld [vmem:[%s16772_s27 + $0x1580] sm:$0xf]  ;;  %v13053_v49 = vor.u32 %v15956_v2, %v13052_v12  ;;  %v17660_v54 = vld [vmem:[#allocation1 + $0x12] sm:$0xff] }
 0x191   : > { %8563 = vmatpush.bf16.msra.mxu2 %v12893_v25  ;;  %v15928_v25 = vld [vmem:[%s16772_s27 + $0x1594] sm:$0xf0]  ;;  %v12933_v13 = vor.u32 %v15926_v52, %v12932_v23  ;;  %19809 = vst [vmem:[#allocation17_spill] sm:$0xff] %v17660_v54  ;;  %v13236_v2 = vld [vmem:[%s16772_s27 + $0x17e0] sm:$0xf] }
 0x192   : > { %8576 = vmatpush.bf16.msra.mxu3 %v12957_v59  ;;  %v15910_v59 = vld [vmem:[%s16772_s27 + $0x1504] sm:$0xf0]  ;;  %v15968_v23 = vld [vmem:[%s16772_s27 + $0x16d4] sm:$0xf0]  ;;  %v13164_v52 = vld [vmem:[%s16772_s27 + $0x1750] sm:$0xf] }
 0x193   : > { %8538 = vmatpush.bf16.msra.mxu0 %v12757_v3  ;;  %v12941_v3 = vor.u32 %v15928_v25, %v12940_v33  ;;  %v12869_v16 = vor.u32 %v15910_v59, %v12868_v6  ;;  %v13244_v33 = vld [vmem:[%s16772_s27 + $0x17f0] sm:$0xf]  ;;  %v16004_v25 = vld [vmem:[%s16772_s27 + $0x17f4] sm:$0xf0]  ;;  %v17662_v6 = vld [vmem:[#allocation1 + $0x9] sm:$0xff] }
 0x194   : > { %8551 = vmatpush.bf16.msra.mxu1 %v12821_v48  ;;  %v8323_v48 = vpop.f32.mrf.mxu3  ;;  %v13245_v47 = vor.u32 %v16004_v25, %v13244_v33  ;;  %19810 = vst [vmem:[#allocation18_spill] sm:$0xff] %v17662_v6  ;;  %v17664_v59 = vld [vmem:[#allocation1 + $0x1b] sm:$0xff]  ;;  %v13028_v25 = vld [vmem:[%s16772_s27 + $0x1640] sm:$0xf] }
 0x195   : > { %8564 = vmatpush.bf16.msra.mxu2 %v12885_v32  ;;  %v12741_v32 = vor.u32 %v15878_v46, %v12740_v55  ;;  %v13044_v55 = vld [vmem:[%s16772_s27 + $0x1660] sm:$0xf]  ;;  %v15954_v46 = vld [vmem:[%s16772_s27 + $0x1664] sm:$0xf0]  ;;  %19811 = vst [vmem:[#allocation19_spill] sm:$0xff] %v17664_v59 }
 0x196   : > { %8577 = vmatpush.bf16.msra.mxu3 %v12949_v50  ;;  %v13117_v50 = vor.u32 %v15972_v14, %v13116_v18  ;;  %v13108_v48 = vld [vmem:[%s16772_s27 + $0x16e0] sm:$0xf]  ;;  %v13045_v12 = vor.u32 %v15954_v46, %v13044_v55  ;;  %v15966_v55 = vld [vmem:[%s16772_s27 + $0x16c4] sm:$0xf0] }
 0x197   : > { %8539 = vmatpush.bf16.msra.mxu0 %v12749_v51  ;;  %v13181_v51 = vor.u32 %v15988_v19, %v13180_v24  ;;  %v13109_v18 = vor.u32 %v15970_v30, %v13108_v48  ;;  %v13036_v24 = vld [vmem:[%s16772_s27 + $0x1650] sm:$0xf]  ;;  %v13156_v46 = vld [vmem:[%s16772_s27 + $0x1740] sm:$0xf]  ;;  %v15982_v48 = vld [vmem:[%s16772_s27 + $0x1744] sm:$0xf0] }
 0x198   : > { %8552 = vmatpush.bf16.msra.mxu1 %v12813_v56  ;;  %v13172_v56 = vld [vmem:[%s16772_s27 + $0x1760] sm:$0xf]  ;;  %v13100_v19 = vld [vmem:[%s16772_s27 + $0x16d0] sm:$0xf] }
 0x199   : > { %8565 = vmatpush.bf16.msra.mxu2 %v12877_v53  ;;  %v17658_v53 = vld [vmem:[#allocation1] sm:$0xff]  ;;  %v13173_v14 = vor.u32 %v15986_v38, %v13172_v56 }
 0x19a   : > { %8578 = vmatpush.bf16.msra.mxu3 %v12941_v3  ;;  %19808 = vst [vmem:[#allocation16_spill] sm:$0xff] %v17658_v53  ;;  %v16002_v3 = vld [vmem:[%s16772_s27 + $0x17e4] sm:$0xf0] }
 0x19b   : > { %8540 = vmatpush.bf16.msra.mxu0 %v12741_v32  ;;  %v15952_v32 = vld [vmem:[%s16772_s27 + $0x1654] sm:$0xf0]  ;;  %v13237_v30 = vor.u32 %v16002_v3, %v13236_v2 }
 0x19c   : > { %8553 = vmatpush.bf16.msra.mxu1 %v12805_v29  ;;  %v15984_v29 = vld [vmem:[%s16772_s27 + $0x1754] sm:$0xf0]  ;;  %v13037_v38 = vor.u32 %v15952_v32, %v13036_v24  ;;  %v8347_v3 = vpop.f32.mrf.mxu1  ;;  %v13157_v32 = vor.u32 %v15982_v48, %v13156_v46  ;;  %v15946_v46 = vld [vmem:[%s16772_s27 + $0x1624] sm:$0xf0]  ;;  %v13076_v48 = vld [vmem:[%s16772_s27 + $0x16a0] sm:$0xf] }
 0x19d   : > { %8566 = vmatpush.bf16.msra.mxu2 %v12869_v16  ;;  %v13228_v16 = vld [vmem:[%s16772_s27 + $0x17d0] sm:$0xf]  ;;  %v13165_v33 = vor.u32 %v15984_v29, %v13164_v52 }
 0x19e   : > { %8579 = vmatpush.bf16.msra.mxu3 %v12933_v13  ;;  %8541 = vmatmul.bf16.vlgmr.msra.gmra.mxu0 %v17658_v53  ;;  %v13092_v13 = vld [vmem:[%s16772_s27 + $0x16c0] sm:$0xf]  ;;  %v13084_v52 = vld [vmem:[%s16772_s27 + $0x16b0] sm:$0xf] }
 0x19f   : > { %8585 = vmatpush.bf16.msrb.mxu0 %v13053_v49  ;;  %8554 = vmatmul.bf16.vlgmr.msra.gmra.mxu1 %v17662_v6  ;;  %v16000_v49 = vld [vmem:[%s16772_s27 + $0x17d4] sm:$0xf0]  ;;  %v13093_v24 = vor.u32 %v15966_v55, %v13092_v13  ;;  %v13012_v55 = vld [vmem:[%s16772_s27 + $0x1620] sm:$0xf]  ;;  %v15990_v6 = vld [vmem:[%s16772_s27 + $0x1784] sm:$0xf0] }
 0x1a0   : > { %8598 = vmatpush.bf16.msrb.mxu1 %v13117_v50  ;;  %8567 = vmatmul.bf16.vlgmr.msra.gmra.mxu2 %v17660_v54  ;;  %v13101_v50 = vor.u32 %v15968_v23, %v13100_v19  ;;  %v13229_v56 = vor.u32 %v16000_v49, %v13228_v16  ;;  %v13020_v19 = vld [vmem:[%s16772_s27 + $0x1630] sm:$0xf]  ;;  %v15948_v23 = vld [vmem:[%s16772_s27 + $0x1634] sm:$0xf0] }
 0x1a1   : > { %8611 = vmatpush.bf16.msrb.mxu2 %v13181_v51  ;;  %8580 = vmatmul.bf16.vlgmr.msra.gmra.mxu3 %v17664_v59  ;;  %v15950_v51 = vld [vmem:[%s16772_s27 + $0x1644] sm:$0xf0]  ;;  %v13021_v49 = vor.u32 %v15948_v23, %v13020_v19  ;;  %v13204_v19 = vld [vmem:[%s16772_s27 + $0x17a0] sm:$0xf]  ;;  %v17730_v54 = vld [vmem:[#allocation1 + $0x3f] sm:$0xff] }
 0x1a2   : > { %8624 = vmatpush.bf16.msrb.mxu3 %v13245_v47  ;;  %v8334_v47 = vpop.f32.mrf.mxu0  ;;  %v13029_v2 = vor.u32 %v15950_v51, %v13028_v25  ;;  %v15994_v23 = vld [vmem:[%s16772_s27 + $0x17a4] sm:$0xf0]  ;;  %19815 = vst [vmem:[#allocation23_spill] sm:$0xff] %v17730_v54  ;;  %v13188_v59 = vld [vmem:[%s16772_s27 + $0x1780] sm:$0xf] }
 0x1a3   : > { %8586 = vmatpush.bf16.msrb.mxu0 %v13045_v12  ;;  %v8335_v12 = vadd.f32 %v8334_v47, %v17624_v17  ;;  %v15980_v17 = vld [vmem:[%s16772_s27 + $0x1734] sm:$0xf0]  ;;  %v8360_v13 = vpop.f32.mrf.mxu2 }
 0x1a4   : > { %8599 = vmatpush.bf16.msrb.mxu1 %v13109_v18  ;;  %v13220_v18 = vld [vmem:[%s16772_s27 + $0x17c0] sm:$0xf] }
 0x1a5   : > { %8612 = vmatpush.bf16.msrb.mxu2 %v13173_v14  ;;  %v15998_v14 = vld [vmem:[%s16772_s27 + $0x17c4] sm:$0xf0]  ;;  %v8348_v29 = vadd.f32 %v8347_v3, %v8335_v12  ;;  %v13140_v12 = vld [vmem:[%s16772_s27 + $0x1720] sm:$0xf] }
 0x1a6   : > { %8625 = vmatpush.bf16.msrb.mxu3 %v13237_v30  ;;  %v15964_v30 = vld [vmem:[%s16772_s27 + $0x16b4] sm:$0xf0]  ;;  %v13221_v16 = vor.u32 %v15998_v14, %v13220_v18  ;;  %v15978_v3 = vld [vmem:[%s16772_s27 + $0x1724] sm:$0xf0]  ;;  %v8373_v18 = vpop.f32.mrf.mxu3 }
 0x1a7   : > { %8587 = vmatpush.bf16.msrb.mxu0 %v13037_v38  ;;  %v13148_v38 = vld [vmem:[%s16772_s27 + $0x1730] sm:$0xf]  ;;  %v13085_v25 = vor.u32 %v15964_v30, %v13084_v52  ;;  %v8361_v47 = vadd.f32 %v8360_v13, %v8348_v29  ;;  %v8349_v29 = vpop.f32.mrf.mxu1 }
 0x1a8   : > { %8600 = vmatpush.bf16.msrb.mxu1 %v13101_v50  ;;  %v13212_v50 = vld [vmem:[%s16772_s27 + $0x17b0] sm:$0xf]  ;;  %v13149_v51 = vor.u32 %v15980_v17, %v13148_v38  ;;  %v13141_v38 = vor.u32 %v15978_v3, %v13140_v12  ;;  %v15944_v17 = vld [vmem:[%s16772_s27 + $0x1614] sm:$0xf0]  ;;  %v13124_v12 = vld [vmem:[%s16772_s27 + $0x1700] sm:$0xf] }
 0x1a9   : > { %8613 = vmatpush.bf16.msrb.mxu2 %v13165_v33  ;;  %v15996_v33 = vld [vmem:[%s16772_s27 + $0x17b4] sm:$0xf0]  ;;  %v13004_v52 = vld [vmem:[%s16772_s27 + $0x1610] sm:$0xf]  ;;  %v15974_v3 = vld [vmem:[%s16772_s27 + $0x1704] sm:$0xf0] }
 0x1aa   : > { %8626 = vmatpush.bf16.msrb.mxu3 %v13229_v56  ;;  %v15962_v56 = vld [vmem:[%s16772_s27 + $0x16a4] sm:$0xf0]  ;;  %v8336_v14 = vpop.f32.mrf.mxu0  ;;  %v13196_v13 = vld [vmem:[%s16772_s27 + $0x1790] sm:$0xf] }
 0x1ab   : > { %8588 = vmatpush.bf16.msrb.mxu0 %v13029_v2  ;;  %v13213_v2 = vor.u32 %v15996_v33, %v13212_v50  ;;  %v13077_v30 = vor.u32 %v15962_v56, %v13076_v48  ;;  %v13132_v50 = vld [vmem:[%s16772_s27 + $0x1710] sm:$0xf]  ;;  %v15976_v33 = vld [vmem:[%s16772_s27 + $0x1714] sm:$0xf0]  ;;  %v13005_v48 = vor.u32 %v15944_v17, %v13004_v52  ;;  %v15958_v56 = vld [vmem:[%s16772_s27 + $0x1684] sm:$0xf0]  ;;  %v8362_v52 = vpop.f32.mrf.mxu2 }
 0x1ac   : > { %8601 = vmatpush.bf16.msrb.mxu1 %v13093_v24  ;;  %v17703_v24 = vadd.f32 %v8373_v18, %v8361_v47  ;;  %v13060_v47 = vld [vmem:[%s16772_s27 + $0x1680] sm:$0xf]  ;;  %v13133_v14 = vor.u32 %v15976_v33, %v13132_v50  ;;  %v13308_v29 = vld [vmem:[%s16772_s27 + $0x1870] sm:$0xf]  ;;  %v17728_v17 = vld [vmem:[#allocation1 + $0x2d] sm:$0xff] }
 0x1ad   : > { %8614 = vmatpush.bf16.msrb.mxu2 %v13157_v32  ;;  %v13013_v32 = vor.u32 %v15946_v46, %v13012_v55  ;;  %v13205_v55 = vor.u32 %v15994_v23, %v13204_v19  ;;  %v15992_v46 = vld [vmem:[%s16772_s27 + $0x1794] sm:$0xf0]  ;;  %v13372_v19 = vld [vmem:[%s16772_s27 + $0x18f0] sm:$0xf]  ;;  %v17724_v23 = vld [vmem:[#allocation1 + $0x24] sm:$0xff]  ;;  %19814 = vst [vmem:[#allocation22_spill] sm:$0xff] %v17728_v17 }
 0x1ae   : > { %8627 = vmatpush.bf16.msrb.mxu3 %v13221_v16  ;;  %v13068_v16 = vld [vmem:[%s16772_s27 + $0x1690] sm:$0xf]  ;;  %19812 = vst [vmem:[#allocation20_spill] sm:$0xff] %v17724_v23  ;;  %v8375_v50 = vpop.f32.mrf.mxu3  ;;  %v16052_v52 = vld [vmem:[%s16772_s27 + $0x1974] sm:$0xf0] }
 0x1af   : > { %8589 = vmatpush.bf16.msrb.mxu0 %v13021_v49  ;;  %v15960_v49 = vld [vmem:[%s16772_s27 + $0x1694] sm:$0xf0] }
 0x1b0   : > { %8602 = vmatpush.bf16.msrb.mxu1 %v13085_v25  ;;  %v12996_v25 = vld [vmem:[%s16772_s27 + $0x1600] sm:$0xf]  ;;  %v13069_v18 = vor.u32 %v15960_v49, %v13068_v16  ;;  %v16036_v16 = vld [vmem:[%s16772_s27 + $0x18f4] sm:$0xf0]  ;;  %v13436_v49 = vld [vmem:[%s16772_s27 + $0x1970] sm:$0xf] }
 0x1b1   : > { %8615 = vmatpush.bf16.msrb.mxu2 %v13149_v51  ;;  %v15942_v51 = vld [vmem:[%s16772_s27 + $0x1604] sm:$0xf0]  ;;  %v13373_v53 = vor.u32 %v16036_v16, %v13372_v19  ;;  %v16068_v50 = vld [vmem:[%s16772_s27 + $0x19f4] sm:$0xf0] }
 0x1b2   : > { %8628 = vmatpush.bf16.msrb.mxu3 %v13213_v2  ;;  %v16020_v2 = vld [vmem:[%s16772_s27 + $0x1874] sm:$0xf0]  ;;  %v12997_v33 = vor.u32 %v15942_v51, %v12996_v25  ;;  %v13189_v25 = vor.u32 %v15990_v6, %v13188_v59  ;;  %v13300_v51 = vld [vmem:[%s16772_s27 + $0x1860] sm:$0xf]  ;;  %v16066_v59 = vld [vmem:[%s16772_s27 + $0x19e4] sm:$0xf0] }
 0x1b3   : > { %8590 = vmatpush.bf16.msrb.mxu0 %v13013_v32  ;;  %v17726_v32 = vld [vmem:[#allocation1 + $0x36] sm:$0xff]  ;;  %v13492_v6 = vld [vmem:[%s16772_s27 + $0x19e0] sm:$0xf]  ;;  %v16016_v19 = vld [vmem:[%s16772_s27 + $0x1854] sm:$0xf0] }
 0x1b4   : > { %8603 = vmatpush.bf16.msrb.mxu1 %v13077_v30  ;;  %19813 = vst [vmem:[#allocation21_spill] sm:$0xff] %v17726_v32  ;;  %v241_v30 = vld [vmem:[%s19755_s0 + $0x30] sm:$0xff]  ;;  %v16048_v16 = vld [vmem:[%s16772_s27 + $0x1954] sm:$0xf0] }
 0x1b5   : > { %8616 = vmatpush.bf16.msrb.mxu2 %v13141_v38  ;;  %v13197_v38 = vor.u32 %v15992_v46, %v13196_v13  ;;  %1576 = vst [vmem:[#allocation1] ss:$9 sm:$0xff] %v241_v30  ;;  %v13061_v13 = vor.u32 %v15958_v56, %v13060_v47  ;;  %v13309_v46 = vor.u32 %v16020_v2, %v13308_v29  ;;  %v16018_v30 = vld [vmem:[%s16772_s27 + $0x1864] sm:$0xf0]  ;;  %v13292_v2 = vld [vmem:[%s16772_s27 + $0x1850] sm:$0xf] }
 0x1b6   : > { %8629 = vmatpush.bf16.msrb.mxu3 %v13205_v55  ;;  %v13125_v55 = vor.u32 %v15974_v3, %v13124_v12  ;;  %v16050_v47 = vld [vmem:[%s16772_s27 + $0x1964] sm:$0xf0]  ;;  %v13501_v56 = vor.u32 %v16068_v50, %v13500_v34  ;;  %v13301_v12 = vor.u32 %v16018_v30, %v13300_v51  ;;  %v16032_v34 = vld [vmem:[%s16772_s27 + $0x18d4] sm:$0xf0]  ;;  %v13412_v51 = vld [vmem:[%s16772_s27 + $0x1940] sm:$0xf] }
 0x1b7   : > { %8591 = vmatpush.bf16.msrb.mxu0 %v13005_v48  ;;  %v13437_v48 = vor.u32 %v16052_v52, %v13436_v49  ;;  %v13293_v49 = vor.u32 %v16016_v19, %v13292_v2  ;;  %v16064_v52 = vld [vmem:[%s16772_s27 + $0x19d4] sm:$0xf0]  ;;  %v16014_v50 = vld [vmem:[%s16772_s27 + $0x1844] sm:$0xf0]  ;;  %v13276_v2 = vld [vmem:[%s16772_s27 + $0x1830] sm:$0xf] }
 0x1b8   : > { %8604 = vmatpush.bf16.msrb.mxu1 %v13069_v18  ;;  %v16034_v18 = vld [vmem:[%s16772_s27 + $0x18e4] sm:$0xf0]  ;;  %v16012_v19 = vld [vmem:[%s16772_s27 + $0x1834] sm:$0xf0] }
 0x1b9   : > { %8617 = vmatpush.bf16.msrb.mxu2 %v13133_v14  ;;  %v13428_v14 = vld [vmem:[%s16772_s27 + $0x1960] sm:$0xf]  ;;  %v13365_v3 = vor.u32 %v16034_v18, %v13364_v31  ;;  %v13493_v31 = vor.u32 %v16066_v59, %v13492_v6  ;;  %v16046_v30 = vld [vmem:[%s16772_s27 + $0x1944] sm:$0xf0] }
 0x1ba   : > { %8630 = vmatpush.bf16.msrb.mxu3 %v13197_v38  ;;  %v13429_v29 = vor.u32 %v16050_v47, %v13428_v14  ;;  %v13356_v38 = vld [vmem:[%s16772_s27 + $0x18d0] sm:$0xf]  ;;  %v13476_v6 = vld [vmem:[%s16772_s27 + $0x19c0] sm:$0xf]  ;;  %v16062_v59 = vld [vmem:[%s16772_s27 + $0x19c4] sm:$0xf0] }
 0x1bb   : > { %8592 = vmatpush.bf16.msrb.mxu0 %v12997_v33  ;;  %v13484_v33 = vld [vmem:[%s16772_s27 + $0x19d0] sm:$0xf]  ;;  %v8386_v14 = vpop.f32.mrf.mxu0 }
 0x1bc   : > { %8605 = vmatpush.bf16.msrb.mxu1 %v13061_v13  ;;  %v13357_v13 = vor.u32 %v16032_v34, %v13356_v38  ;;  %v13485_v18 = vor.u32 %v16064_v52, %v13484_v33  ;;  %v8387_v47 = vadd.f32 %v8386_v14, %v17703_v24  ;;  %v13340_v38 = vld [vmem:[%s16772_s27 + $0x18b0] sm:$0xf]  ;;  %v16044_v24 = vld [vmem:[%s16772_s27 + $0x1934] sm:$0xf0]  ;;  %v16042_v14 = vld [vmem:[%s16772_s27 + $0x1924] sm:$0xf0] }
 0x1bd   : > { %8618 = vmatpush.bf16.msrb.mxu2 %v13125_v55  ;;  %v13468_v33 = vld [vmem:[%s16772_s27 + $0x19b0] sm:$0xf]  ;;  %v16060_v52 = vld [vmem:[%s16772_s27 + $0x19b4] sm:$0xf0] }
 0x1be   : > { %8631 = vmatpush.bf16.msrb.mxu3 %v13189_v25  ;;  %8593 = vmatmul.bf16.vlgmr.msrb.gmra.mxu0 %v17724_v23  ;;  %v16030_v25 = vld [vmem:[%s16772_s27 + $0x18c4] sm:$0xf0]  ;;  %v13876_v23 = vld [vmem:[%s16772_s27 + $0x1ce0] sm:$0xf] }
 0x1bf   : > { %8637 = vmatpush.bf16.msra.mxu0 %v13309_v46  ;;  %8606 = vmatmul.bf16.vlgmr.msrb.gmra.mxu1 %v17728_v17  ;;  %v13284_v46 = vld [vmem:[%s16772_s27 + $0x1840] sm:$0xf]  ;;  %v14012_v17 = vld [vmem:[%s16772_s27 + $0x1df0] sm:$0xf] }
 0x1c0   : > { %8650 = vmatpush.bf16.msra.mxu1 %v13373_v53  ;;  %8619 = vmatmul.bf16.vlgmr.msrb.gmra.mxu2 %v17726_v32  ;;  %v13420_v53 = vld [vmem:[%s16772_s27 + $0x1950] sm:$0xf]  ;;  %v16098_v32 = vld [vmem:[%s16772_s27 + $0x1ae4] sm:$0xf0] }
 0x1c1   : > { %8663 = vmatpush.bf16.msra.mxu2 %v13437_v48  ;;  %8632 = vmatmul.bf16.vlgmr.msrb.gmra.mxu3 %v17730_v54  ;;  %v13421_v55 = vor.u32 %v16048_v16, %v13420_v53  ;;  %v13348_v48 = vld [vmem:[%s16772_s27 + $0x18c0] sm:$0xf]  ;;  %v16028_v53 = vld [vmem:[%s16772_s27 + $0x18b4] sm:$0xf0]  ;;  %v13404_v16 = vld [vmem:[%s16772_s27 + $0x1930] sm:$0xf] }
 0x1c2   : > { %8676 = vmatpush.bf16.msra.mxu3 %v13501_v56  ;;  %v13285_v56 = vor.u32 %v16014_v50, %v13284_v46  ;;  %v13268_v50 = vld [vmem:[%s16772_s27 + $0x1820] sm:$0xf]  ;;  %v16114_v54 = vld [vmem:[%s16772_s27 + $0x1b64] sm:$0xf0] }
 0x1c3   : > { %8638 = vmatpush.bf16.msra.mxu0 %v13301_v12  ;;  %v8399_v12 = vpop.f32.mrf.mxu1  ;;  %v8412_v46 = vpop.f32.mrf.mxu2 }
 0x1c4   : > { %8651 = vmatpush.bf16.msra.mxu1 %v13365_v3  ;;  %v13349_v3 = vor.u32 %v16030_v25, %v13348_v48  ;;  %v8400_v34 = vadd.f32 %v8399_v12, %v8387_v47  ;;  %v16010_v48 = vld [vmem:[%s16772_s27 + $0x1824] sm:$0xf0]  ;;  %v13332_v25 = vld [vmem:[%s16772_s27 + $0x18a0] sm:$0xf]  ;;  %v13469_v47 = vor.u32 %v16060_v52, %v13468_v33  ;;  %v8388_v12 = vpop.f32.mrf.mxu0  ;;  %v13452_v52 = vld [vmem:[%s16772_s27 + $0x1990] sm:$0xf] }
 0x1c5   : > { %8664 = vmatpush.bf16.msra.mxu2 %v13429_v29  ;;  %v13413_v29 = vor.u32 %v16046_v30, %v13412_v51  ;;  %v16026_v30 = vld [vmem:[%s16772_s27 + $0x18a4] sm:$0xf0]  ;;  %v16084_v12 = vld [vmem:[%s16772_s27 + $0x1a74] sm:$0xf0] }
 0x1c6   : > { %8677 = vmatpush.bf16.msra.mxu3 %v13493_v31  ;;  %v13477_v31 = vor.u32 %v16062_v59, %v13476_v6  ;;  %v8413_v51 = vadd.f32 %v8412_v46, %v8400_v34  ;;  %v13269_v59 = vor.u32 %v16010_v48, %v13268_v50  ;;  %v13260_v34 = vld [vmem:[%s16772_s27 + $0x1810] sm:$0xf]  ;;  %v13252_v46 = vld [vmem:[%s16772_s27 + $0x1800] sm:$0xf]  ;;  %v16006_v50 = vld [vmem:[%s16772_s27 + $0x1804] sm:$0xf0] }
 0x1c7   : > { %8639 = vmatpush.bf16.msra.mxu0 %v13293_v49  ;;  %v13277_v49 = vor.u32 %v16012_v19, %v13276_v2  ;;  %v13333_v19 = vor.u32 %v16026_v30, %v13332_v25  ;;  %v16022_v30 = vld [vmem:[%s16772_s27 + $0x1884] sm:$0xf0] }
 0x1c8   : > { %8652 = vmatpush.bf16.msra.mxu1 %v13357_v13  ;;  %v13341_v13 = vor.u32 %v16028_v53, %v13340_v38  ;;  %v16008_v53 = vld [vmem:[%s16772_s27 + $0x1814] sm:$0xf0] }
 0x1c9   : > { %8665 = vmatpush.bf16.msra.mxu2 %v13421_v55  ;;  %v13405_v55 = vor.u32 %v16044_v24, %v13404_v16  ;;  %v13324_v16 = vld [vmem:[%s16772_s27 + $0x1890] sm:$0xf]  ;;  %v16024_v24 = vld [vmem:[%s16772_s27 + $0x1894] sm:$0xf0] }
 0x1ca   : > { %8678 = vmatpush.bf16.msra.mxu3 %v13485_v18  ;;  %v13396_v18 = vld [vmem:[%s16772_s27 + $0x1920] sm:$0xf]  ;;  %v13325_v48 = vor.u32 %v16024_v24, %v13324_v16  ;;  %v16054_v16 = vld [vmem:[%s16772_s27 + $0x1984] sm:$0xf0] }
 0x1cb   : > { %8640 = vmatpush.bf16.msra.mxu0 %v13285_v56  ;;  %v8425_v56 = vpop.f32.mrf.mxu3  ;;  %v8401_v2 = vpop.f32.mrf.mxu1  ;;  %v13397_v38 = vor.u32 %v16042_v14, %v13396_v18  ;;  %v13380_v18 = vld [vmem:[%s16772_s27 + $0x1900] sm:$0xf] }
 0x1cc   : > { %8653 = vmatpush.bf16.msra.mxu1 %v13349_v3  ;;  %v17785_v6 = vadd.f32 %v8425_v56, %v8413_v51  ;;  %v13460_v3 = vld [vmem:[%s16772_s27 + $0x19a0] sm:$0xf]  ;;  %v8414_v14 = vpop.f32.mrf.mxu2  ;;  %v13564_v56 = vld [vmem:[%s16772_s27 + $0x1a70] sm:$0xf] }
 0x1cd   : > { %8666 = vmatpush.bf16.msra.mxu2 %v13413_v29  ;;  %v16058_v29 = vld [vmem:[%s16772_s27 + $0x19a4] sm:$0xf0]  ;;  %v13316_v51 = vld [vmem:[%s16772_s27 + $0x1880] sm:$0xf]  ;;  %v13692_v2 = vld [vmem:[%s16772_s27 + $0x1b70] sm:$0xf] }
 0x1ce   : > { %8679 = vmatpush.bf16.msra.mxu3 %v13477_v31  ;;  %v13388_v31 = vld [vmem:[%s16772_s27 + $0x1910] sm:$0xf]  ;;  %v13461_v33 = vor.u32 %v16058_v29, %v13460_v3  ;;  %v16100_v29 = vld [vmem:[%s16772_s27 + $0x1af4] sm:$0xf0]  ;;  %v13317_v24 = vor.u32 %v16022_v30, %v13316_v51 }
 0x1cf   : > { %8641 = vmatpush.bf16.msra.mxu0 %v13277_v49  ;;  %v16040_v49 = vld [vmem:[%s16772_s27 + $0x1914] sm:$0xf0]  ;;  %v13628_v3 = vld [vmem:[%s16772_s27 + $0x1af0] sm:$0xf] }
 0x1d0   : > { %8654 = vmatpush.bf16.msra.mxu1 %v13341_v13  ;;  %v13261_v13 = vor.u32 %v16008_v53, %v13260_v34  ;;  %v13389_v25 = vor.u32 %v16040_v49, %v13388_v31  ;;  %v16116_v34 = vld [vmem:[%s16772_s27 + $0x1b74] sm:$0xf0]  ;;  %v13444_v53 = vld [vmem:[%s16772_s27 + $0x1980] sm:$0xf]  ;;  %v13565_v49 = vor.u32 %v16084_v12, %v13564_v56  ;;  %v17821_v51 = vld [vmem:[#allocation1 + $0x12] sm:$0xff] }
 0x1d1   : > { %8667 = vmatpush.bf16.msra.mxu2 %v13405_v55  ;;  %v16056_v55 = vld [vmem:[%s16772_s27 + $0x1994] sm:$0xf0]  ;;  %v13445_v14 = vor.u32 %v16054_v16, %v13444_v53  ;;  %19817 = vst [vmem:[#allocation25_spill] sm:$0xff] %v17821_v51  ;;  %v13748_v12 = vld [vmem:[%s16772_s27 + $0x1be0] sm:$0xf] }
 0x1d2   : > { %8680 = vmatpush.bf16.msra.mxu3 %v13469_v47  ;;  %v16038_v47 = vld [vmem:[%s16772_s27 + $0x1904] sm:$0xf0]  ;;  %v16096_v53 = vld [vmem:[%s16772_s27 + $0x1ad4] sm:$0xf0]  ;;  %v13676_v16 = vld [vmem:[%s16772_s27 + $0x1b50] sm:$0xf] }
 0x1d3   : > { %8642 = vmatpush.bf16.msra.mxu0 %v13269_v59  ;;  %v13453_v59 = vor.u32 %v16056_v55, %v13452_v52  ;;  %v13381_v31 = vor.u32 %v16038_v47, %v13380_v18  ;;  %v13756_v52 = vld [vmem:[%s16772_s27 + $0x1bf0] sm:$0xf]  ;;  %v16132_v55 = vld [vmem:[%s16772_s27 + $0x1bf4] sm:$0xf0]  ;;  %v17823_v18 = vld [vmem:[#allocation1 + $0x9] sm:$0xff] }
 0x1d4   : > { %8655 = vmatpush.bf16.msra.mxu1 %v13333_v19  ;;  %v8427_v19 = vpop.f32.mrf.mxu3  ;;  %v13757_v30 = vor.u32 %v16132_v55, %v13756_v52  ;;  %19818 = vst [vmem:[#allocation26_spill] sm:$0xff] %v17823_v18  ;;  %v17825_v47 = vld [vmem:[#allocation1 + $0x1b] sm:$0xff]  ;;  %v13540_v55 = vld [vmem:[%s16772_s27 + $0x1a40] sm:$0xf] }
 0x1d5   : > { %8668 = vmatpush.bf16.msra.mxu2 %v13397_v38  ;;  %v13253_v38 = vor.u32 %v16006_v50, %v13252_v46  ;;  %v13556_v46 = vld [vmem:[%s16772_s27 + $0x1a60] sm:$0xf]  ;;  %v16082_v50 = vld [vmem:[%s16772_s27 + $0x1a64] sm:$0xf0]  ;;  %19819 = vst [vmem:[#allocation27_spill] sm:$0xff] %v17825_v47 }
 0x1d6   : > { %8681 = vmatpush.bf16.msra.mxu3 %v13461_v33  ;;  %v13629_v33 = vor.u32 %v16100_v29, %v13628_v3  ;;  %v13620_v19 = vld [vmem:[%s16772_s27 + $0x1ae0] sm:$0xf]  ;;  %v13557_v56 = vor.u32 %v16082_v50, %v13556_v46  ;;  %v16094_v46 = vld [vmem:[%s16772_s27 + $0x1ac4] sm:$0xf0] }
 0x1d7   : > { %8643 = vmatpush.bf16.msra.mxu0 %v13261_v13  ;;  %v13693_v13 = vor.u32 %v16116_v34, %v13692_v2  ;;  %v13621_v3 = vor.u32 %v16098_v32, %v13620_v19  ;;  %v13548_v2 = vld [vmem:[%s16772_s27 + $0x1a50] sm:$0xf]  ;;  %v13668_v50 = vld [vmem:[%s16772_s27 + $0x1b40] sm:$0xf]  ;;  %v16110_v19 = vld [vmem:[%s16772_s27 + $0x1b44] sm:$0xf0] }
 0x1d8   : > { %8656 = vmatpush.bf16.msra.mxu1 %v13325_v48  ;;  %v13684_v48 = vld [vmem:[%s16772_s27 + $0x1b60] sm:$0xf]  ;;  %v13612_v34 = vld [vmem:[%s16772_s27 + $0x1ad0] sm:$0xf] }
 0x1d9   : > { %8669 = vmatpush.bf16.msra.mxu2 %v13389_v25  ;;  %v17819_v25 = vld [vmem:[#allocation1] sm:$0xff]  ;;  %v13685_v29 = vor.u32 %v16114_v54, %v13684_v48 }
 0x1da   : > { %8682 = vmatpush.bf16.msra.mxu3 %v13453_v59  ;;  %19816 = vst [vmem:[#allocation24_spill] sm:$0xff] %v17819_v25  ;;  %v16130_v59 = vld [vmem:[%s16772_s27 + $0x1be4] sm:$0xf0] }
 0x1db   : > { %8644 = vmatpush.bf16.msra.mxu0 %v13253_v38  ;;  %v16080_v38 = vld [vmem:[%s16772_s27 + $0x1a54] sm:$0xf0]  ;;  %v13749_v54 = vor.u32 %v16130_v59, %v13748_v12 }
 0x1dc   : > { %8657 = vmatpush.bf16.msra.mxu1 %v13317_v24  ;;  %v16112_v24 = vld [vmem:[%s16772_s27 + $0x1b54] sm:$0xf0]  ;;  %v13549_v32 = vor.u32 %v16080_v38, %v13548_v2  ;;  %v8451_v59 = vpop.f32.mrf.mxu1  ;;  %v13669_v38 = vor.u32 %v16110_v19, %v13668_v50  ;;  %v16074_v50 = vld [vmem:[%s16772_s27 + $0x1a24] sm:$0xf0]  ;;  %v13588_v19 = vld [vmem:[%s16772_s27 + $0x1aa0] sm:$0xf] }
 0x1dd   : > { %8670 = vmatpush.bf16.msra.mxu2 %v13381_v31  ;;  %v13740_v31 = vld [vmem:[%s16772_s27 + $0x1bd0] sm:$0xf]  ;;  %v13677_v52 = vor.u32 %v16112_v24, %v13676_v16 }
 0x1de   : > { %8683 = vmatpush.bf16.msra.mxu3 %v13445_v14  ;;  %8645 = vmatmul.bf16.vlgmr.msra.gmra.mxu0 %v17819_v25  ;;  %v13604_v14 = vld [vmem:[%s16772_s27 + $0x1ac0] sm:$0xf]  ;;  %v13596_v16 = vld [vmem:[%s16772_s27 + $0x1ab0] sm:$0xf] }
 0x1df   : > { %8689 = vmatpush.bf16.msrb.mxu0 %v13565_v49  ;;  %8658 = vmatmul.bf16.vlgmr.msra.gmra.mxu1 %v17823_v18  ;;  %v16128_v49 = vld [vmem:[%s16772_s27 + $0x1bd4] sm:$0xf0]  ;;  %v13605_v2 = vor.u32 %v16094_v46, %v13604_v14  ;;  %v13524_v46 = vld [vmem:[%s16772_s27 + $0x1a20] sm:$0xf]  ;;  %v16118_v18 = vld [vmem:[%s16772_s27 + $0x1b84] sm:$0xf0] }
 0x1e0   : > { %8702 = vmatpush.bf16.msrb.mxu1 %v13629_v33  ;;  %8671 = vmatmul.bf16.vlgmr.msra.gmra.mxu2 %v17821_v51  ;;  %v13613_v33 = vor.u32 %v16096_v53, %v13612_v34  ;;  %v13741_v48 = vor.u32 %v16128_v49, %v13740_v31  ;;  %v13532_v34 = vld [vmem:[%s16772_s27 + $0x1a30] sm:$0xf]  ;;  %v16076_v53 = vld [vmem:[%s16772_s27 + $0x1a34] sm:$0xf0] }
 0x1e1   : > { %8715 = vmatpush.bf16.msrb.mxu2 %v13693_v13  ;;  %8684 = vmatmul.bf16.vlgmr.msra.gmra.mxu3 %v17825_v47  ;;  %v16078_v13 = vld [vmem:[%s16772_s27 + $0x1a44] sm:$0xf0]  ;;  %v13533_v49 = vor.u32 %v16076_v53, %v13532_v34  ;;  %v13716_v34 = vld [vmem:[%s16772_s27 + $0x1ba0] sm:$0xf]  ;;  %v17891_v51 = vld [vmem:[#allocation1 + $0x3f] sm:$0xff] }
 0x1e2   : > { %8728 = vmatpush.bf16.msrb.mxu3 %v13757_v30  ;;  %v8438_v30 = vpop.f32.mrf.mxu0  ;;  %v13541_v12 = vor.u32 %v16078_v13, %v13540_v55  ;;  %v16122_v53 = vld [vmem:[%s16772_s27 + $0x1ba4] sm:$0xf0]  ;;  %19823 = vst [vmem:[#allocation31_spill] sm:$0xff] %v17891_v51  ;;  %v13700_v47 = vld [vmem:[%s16772_s27 + $0x1b80] sm:$0xf] }
 0x1e3   : > { %8690 = vmatpush.bf16.msrb.mxu0 %v13557_v56  ;;  %v8439_v56 = vadd.f32 %v8438_v30, %v17785_v6  ;;  %v16108_v6 = vld [vmem:[%s16772_s27 + $0x1b34] sm:$0xf0]  ;;  %v8464_v14 = vpop.f32.mrf.mxu2 }
 0x1e4   : > { %8703 = vmatpush.bf16.msrb.mxu1 %v13621_v3  ;;  %v13732_v3 = vld [vmem:[%s16772_s27 + $0x1bc0] sm:$0xf] }
 0x1e5   : > { %8716 = vmatpush.bf16.msrb.mxu2 %v13685_v29  ;;  %v16126_v29 = vld [vmem:[%s16772_s27 + $0x1bc4] sm:$0xf0]  ;;  %v8452_v24 = vadd.f32 %v8451_v59, %v8439_v56  ;;  %v13652_v56 = vld [vmem:[%s16772_s27 + $0x1b20] sm:$0xf] }
 0x1e6   : > { %8729 = vmatpush.bf16.msrb.mxu3 %v13749_v54  ;;  %v16092_v54 = vld [vmem:[%s16772_s27 + $0x1ab4] sm:$0xf0]  ;;  %v13733_v31 = vor.u32 %v16126_v29, %v13732_v3  ;;  %v16106_v59 = vld [vmem:[%s16772_s27 + $0x1b24] sm:$0xf0]  ;;  %v8477_v3 = vpop.f32.mrf.mxu3 }
 0x1e7   : > { %8691 = vmatpush.bf16.msrb.mxu0 %v13549_v32  ;;  %v13660_v32 = vld [vmem:[%s16772_s27 + $0x1b30] sm:$0xf]  ;;  %v13597_v55 = vor.u32 %v16092_v54, %v13596_v16  ;;  %v8465_v30 = vadd.f32 %v8464_v14, %v8452_v24  ;;  %v8453_v24 = vpop.f32.mrf.mxu1 }
 0x1e8   : > { %8704 = vmatpush.bf16.msrb.mxu1 %v13613_v33  ;;  %v13724_v33 = vld [vmem:[%s16772_s27 + $0x1bb0] sm:$0xf]  ;;  %v13661_v13 = vor.u32 %v16108_v6, %v13660_v32  ;;  %v13653_v32 = vor.u32 %v16106_v59, %v13652_v56  ;;  %v16072_v6 = vld [vmem:[%s16772_s27 + $0x1a14] sm:$0xf0]  ;;  %v13636_v56 = vld [vmem:[%s16772_s27 + $0x1b00] sm:$0xf] }
 0x1e9   : > { %8717 = vmatpush.bf16.msrb.mxu2 %v13677_v52  ;;  %v16124_v52 = vld [vmem:[%s16772_s27 + $0x1bb4] sm:$0xf0]  ;;  %v13516_v16 = vld [vmem:[%s16772_s27 + $0x1a10] sm:$0xf]  ;;  %v16102_v59 = vld [vmem:[%s16772_s27 + $0x1b04] sm:$0xf0] }
 0x1ea   : > { %8730 = vmatpush.bf16.msrb.mxu3 %v13741_v48  ;;  %v16090_v48 = vld [vmem:[%s16772_s27 + $0x1aa4] sm:$0xf0]  ;;  %v8440_v29 = vpop.f32.mrf.mxu0  ;;  %v13708_v14 = vld [vmem:[%s16772_s27 + $0x1b90] sm:$0xf] }
 0x1eb   : > { %8692 = vmatpush.bf16.msrb.mxu0 %v13541_v12  ;;  %v13725_v12 = vor.u32 %v16124_v52, %v13724_v33  ;;  %v13589_v54 = vor.u32 %v16090_v48, %v13588_v19  ;;  %v13644_v33 = vld [vmem:[%s16772_s27 + $0x1b10] sm:$0xf]  ;;  %v16104_v52 = vld [vmem:[%s16772_s27 + $0x1b14] sm:$0xf0]  ;;  %v13517_v19 = vor.u32 %v16072_v6, %v13516_v16  ;;  %v16086_v48 = vld [vmem:[%s16772_s27 + $0x1a84] sm:$0xf0]  ;;  %v8466_v16 = vpop.f32.mrf.mxu2 }
 0x1ec   : > { %8705 = vmatpush.bf16.msrb.mxu1 %v13605_v2  ;;  %v17864_v2 = vadd.f32 %v8477_v3, %v8465_v30  ;;  %v13572_v30 = vld [vmem:[%s16772_s27 + $0x1a80] sm:$0xf]  ;;  %v13645_v29 = vor.u32 %v16104_v52, %v13644_v33  ;;  %v13820_v24 = vld [vmem:[%s16772_s27 + $0x1c70] sm:$0xf]  ;;  %v17889_v6 = vld [vmem:[#allocation1 + $0x2d] sm:$0xff] }
 0x1ed   : > { %8718 = vmatpush.bf16.msrb.mxu2 %v13669_v38  ;;  %v13525_v38 = vor.u32 %v16074_v50, %v13524_v46  ;;  %v13717_v46 = vor.u32 %v16122_v53, %v13716_v34  ;;  %v16120_v50 = vld [vmem:[%s16772_s27 + $0x1b94] sm:$0xf0]  ;;  %v13884_v34 = vld [vmem:[%s16772_s27 + $0x1cf0] sm:$0xf]  ;;  %v17885_v53 = vld [vmem:[#allocation1 + $0x24] sm:$0xff]  ;;  %19822 = vst [vmem:[#allocation30_spill] sm:$0xff] %v17889_v6 }
 0x1ee   : > { %8731 = vmatpush.bf16.msrb.mxu3 %v13733_v31  ;;  %v13580_v31 = vld [vmem:[%s16772_s27 + $0x1a90] sm:$0xf]  ;;  %19820 = vst [vmem:[#allocation28_spill] sm:$0xff] %v17885_v53  ;;  %v8479_v33 = vpop.f32.mrf.mxu3  ;;  %v16180_v16 = vld [vmem:[%s16772_s27 + $0x1d74] sm:$0xf0] }
 0x1ef   : > { %8693 = vmatpush.bf16.msrb.mxu0 %v13533_v49  ;;  %v16088_v49 = vld [vmem:[%s16772_s27 + $0x1a94] sm:$0xf0] }
 0x1f0   : > { %8706 = vmatpush.bf16.msrb.mxu1 %v13597_v55  ;;  %v13508_v55 = vld [vmem:[%s16772_s27 + $0x1a00] sm:$0xf]  ;;  %v13581_v3 = vor.u32 %v16088_v49, %v13580_v31  ;;  %v16164_v31 = vld [vmem:[%s16772_s27 + $0x1cf4] sm:$0xf0]  ;;  %v13948_v49 = vld [vmem:[%s16772_s27 + $0x1d70] sm:$0xf] }
 0x1f1   : > { %8719 = vmatpush.bf16.msrb.mxu2 %v13661_v13  ;;  %v16070_v13 = vld [vmem:[%s16772_s27 + $0x1a04] sm:$0xf0]  ;;  %v13885_v25 = vor.u32 %v16164_v31, %v13884_v34  ;;  %v16196_v33 = vld [vmem:[%s16772_s27 + $0x1df4] sm:$0xf0] }
 0x1f2   : > { %8732 = vmatpush.bf16.msrb.mxu3 %v13725_v12  ;;  %v16148_v12 = vld [vmem:[%s16772_s27 + $0x1c74] sm:$0xf0]  ;;  %v13509_v52 = vor.u32 %v16070_v13, %v13508_v55  ;;  %v13701_v55 = vor.u32 %v16118_v18, %v13700_v47  ;;  %v13812_v13 = vld [vmem:[%s16772_s27 + $0x1c60] sm:$0xf]  ;;  %v16194_v47 = vld [vmem:[%s16772_s27 + $0x1de4] sm:$0xf0] }
 0x1f3   : > { %8694 = vmatpush.bf16.msrb.mxu0 %v13525_v38  ;;  %v17887_v38 = vld [vmem:[#allocation1 + $0x36] sm:$0xff]  ;;  %v14004_v18 = vld [vmem:[%s16772_s27 + $0x1de0] sm:$0xf]  ;;  %v16144_v34 = vld [vmem:[%s16772_s27 + $0x1c54] sm:$0xf0] }
 0x1f4   : > { %8707 = vmatpush.bf16.msrb.mxu1 %v13589_v54  ;;  %19821 = vst [vmem:[#allocation29_spill] sm:$0xff] %v17887_v38  ;;  %v242_v54 = vld [vmem:[%s19755_s0 + $0x38] sm:$0xff]  ;;  %v16176_v31 = vld [vmem:[%s16772_s27 + $0x1d54] sm:$0xf0] }
 0x1f5   : > { %8720 = vmatpush.bf16.msrb.mxu2 %v13653_v32  ;;  %v13709_v32 = vor.u32 %v16120_v50, %v13708_v14  ;;  %1586 = vst [vmem:[#allocation1] ss:$9 sm:$0xff] %v242_v54  ;;  %v13573_v14 = vor.u32 %v16086_v48, %v13572_v30  ;;  %v13821_v50 = vor.u32 %v16148_v12, %v13820_v24  ;;  %v16146_v54 = vld [vmem:[%s16772_s27 + $0x1c64] sm:$0xf0]  ;;  %v13804_v12 = vld [vmem:[%s16772_s27 + $0x1c50] sm:$0xf] }
 0x1f6   : > { %8733 = vmatpush.bf16.msrb.mxu3 %v13717_v46  ;;  %v13637_v46 = vor.u32 %v16102_v59, %v13636_v56  ;;  %v16178_v30 = vld [vmem:[%s16772_s27 + $0x1d64] sm:$0xf0]  ;;  %v14013_v48 = vor.u32 %v16196_v33, %v14012_v17  ;;  %v13813_v56 = vor.u32 %v16146_v54, %v13812_v13  ;;  %v16160_v17 = vld [vmem:[%s16772_s27 + $0x1cd4] sm:$0xf0]  ;;  %v13924_v13 = vld [vmem:[%s16772_s27 + $0x1d40] sm:$0xf] }
 0x1f7   : > { %8695 = vmatpush.bf16.msrb.mxu0 %v13517_v19  ;;  %v13949_v19 = vor.u32 %v16180_v16, %v13948_v49  ;;  %v13805_v49 = vor.u32 %v16144_v34, %v13804_v12  ;;  %v16192_v16 = vld [vmem:[%s16772_s27 + $0x1dd4] sm:$0xf0]  ;;  %v16142_v33 = vld [vmem:[%s16772_s27 + $0x1c44] sm:$0xf0]  ;;  %v13788_v12 = vld [vmem:[%s16772_s27 + $0x1c30] sm:$0xf] }
 0x1f8   : > { %8708 = vmatpush.bf16.msrb.mxu1 %v13581_v3  ;;  %v16162_v3 = vld [vmem:[%s16772_s27 + $0x1ce4] sm:$0xf0]  ;;  %v16140_v34 = vld [vmem:[%s16772_s27 + $0x1c34] sm:$0xf0] }
 0x1f9   : > { %8721 = vmatpush.bf16.msrb.mxu2 %v13645_v29  ;;  %v13940_v29 = vld [vmem:[%s16772_s27 + $0x1d60] sm:$0xf]  ;;  %v13877_v59 = vor.u32 %v16162_v3, %v13876_v23  ;;  %v14005_v23 = vor.u32 %v16194_v47, %v14004_v18  ;;  %v16174_v54 = vld [vmem:[%s16772_s27 + $0x1d44] sm:$0xf0] }
 0x1fa   : > { %8734 = vmatpush.bf16.msrb.mxu3 %v13709_v32  ;;  %v13941_v24 = vor.u32 %v16178_v30, %v13940_v29  ;;  %v13868_v32 = vld [vmem:[%s16772_s27 + $0x1cd0] sm:$0xf]  ;;  %v13988_v18 = vld [vmem:[%s16772_s27 + $0x1dc0] sm:$0xf]  ;;  %v16190_v47 = vld [vmem:[%s16772_s27 + $0x1dc4] sm:$0xf0] }
 0x1fb   : > { %8696 = vmatpush.bf16.msrb.mxu0 %v13509_v52  ;;  %v13996_v52 = vld [vmem:[%s16772_s27 + $0x1dd0] sm:$0xf]  ;;  %v8490_v29 = vpop.f32.mrf.mxu0 }
 0x1fc   : > { %8709 = vmatpush.bf16.msrb.mxu1 %v13573_v14  ;;  %v13869_v14 = vor.u32 %v16160_v17, %v13868_v32  ;;  %v13997_v3 = vor.u32 %v16192_v16, %v13996_v52  ;;  %v8491_v30 = vadd.f32 %v8490_v29, %v17864_v2  ;;  %v13852_v32 = vld [vmem:[%s16772_s27 + $0x1cb0] sm:$0xf]  ;;  %v16172_v2 = vld [vmem:[%s16772_s27 + $0x1d34] sm:$0xf0]  ;;  %v16170_v29 = vld [vmem:[%s16772_s27 + $0x1d24] sm:$0xf0] }
 0x1fd   : > { %8722 = vmatpush.bf16.msrb.mxu2 %v13637_v46  ;;  %v13980_v52 = vld [vmem:[%s16772_s27 + $0x1db0] sm:$0xf]  ;;  %v16188_v16 = vld [vmem:[%s16772_s27 + $0x1db4] sm:$0xf0] }
 0x1fe   : > { %8735 = vmatpush.bf16.msrb.mxu3 %v13701_v55  ;;  %8697 = vmatmul.bf16.vlgmr.msrb.gmra.mxu0 %v17885_v53  ;;  %v16158_v55 = vld [vmem:[%s16772_s27 + $0x1cc4] sm:$0xf0]  ;;  %v14388_v53 = vld [vmem:[%s16772_s27 + $0x20e0] sm:$0xf] }
 0x1ff   : > { %8741 = vmatpush.bf16.msra.mxu0 %v13821_v50  ;;  %8710 = vmatmul.bf16.vlgmr.msrb.gmra.mxu1 %v17889_v6  ;;  %v13796_v50 = vld [vmem:[%s16772_s27 + $0x1c40] sm:$0xf]  ;;  %v14524_v6 = vld [vmem:[%s16772_s27 + $0x21f0] sm:$0xf] }
 0x200   : > { %8754 = vmatpush.bf16.msra.mxu1 %v13885_v25  ;;  %8723 = vmatmul.bf16.vlgmr.msrb.gmra.mxu2 %v17887_v38  ;;  %v13932_v25 = vld [vmem:[%s16772_s27 + $0x1d50] sm:$0xf]  ;;  %v16226_v38 = vld [vmem:[%s16772_s27 + $0x1ee4] sm:$0xf0] }
 0x201   : > { %8767 = vmatpush.bf16.msra.mxu2 %v13949_v19  ;;  %8736 = vmatmul.bf16.vlgmr.msrb.gmra.mxu3 %v17891_v51  ;;  %v13933_v46 = vor.u32 %v16176_v31, %v13932_v25  ;;  %v13860_v19 = vld [vmem:[%s16772_s27 + $0x1cc0] sm:$0xf]  ;;  %v16156_v25 = vld [vmem:[%s16772_s27 + $0x1cb4] sm:$0xf0]  ;;  %v13916_v31 = vld [vmem:[%s16772_s27 + $0x1d30] sm:$0xf] }
 0x202   : > { %8780 = vmatpush.bf16.msra.mxu3 %v14013_v48  ;;  %v13797_v48 = vor.u32 %v16142_v33, %v13796_v50  ;;  %v13780_v33 = vld [vmem:[%s16772_s27 + $0x1c20] sm:$0xf]  ;;  %v16242_v51 = vld [vmem:[%s16772_s27 + $0x1f64] sm:$0xf0] }
 0x203   : > { %8742 = vmatpush.bf16.msra.mxu0 %v13813_v56  ;;  %v8503_v56 = vpop.f32.mrf.mxu1  ;;  %v8516_v50 = vpop.f32.mrf.mxu2 }
 0x204   : > { %8755 = vmatpush.bf16.msra.mxu1 %v13877_v59  ;;  %v13861_v59 = vor.u32 %v16158_v55, %v13860_v19  ;;  %v8504_v17 = vadd.f32 %v8503_v56, %v8491_v30  ;;  %v16138_v19 = vld [vmem:[%s16772_s27 + $0x1c24] sm:$0xf0]  ;;  %v13844_v55 = vld [vmem:[%s16772_s27 + $0x1ca0] sm:$0xf]  ;;  %v13981_v30 = vor.u32 %v16188_v16, %v13980_v52  ;;  %v8492_v56 = vpop.f32.mrf.mxu0  ;;  %v13964_v16 = vld [vmem:[%s16772_s27 + $0x1d90] sm:$0xf] }
 0x205   : > { %8768 = vmatpush.bf16.msra.mxu2 %v13941_v24  ;;  %v13925_v24 = vor.u32 %v16174_v54, %v13924_v13  ;;  %v16154_v54 = vld [vmem:[%s16772_s27 + $0x1ca4] sm:$0xf0]  ;;  %v16212_v56 = vld [vmem:[%s16772_s27 + $0x1e74] sm:$0xf0] }
 0x206   : > { %8781 = vmatpush.bf16.msra.mxu3 %v14005_v23  ;;  %v13989_v23 = vor.u32 %v16190_v47, %v13988_v18  ;;  %v8517_v13 = vadd.f32 %v8516_v50, %v8504_v17  ;;  %v13781_v47 = vor.u32 %v16138_v19, %v13780_v33  ;;  %v13772_v17 = vld [vmem:[%s16772_s27 + $0x1c10] sm:$0xf]  ;;  %v13764_v50 = vld [vmem:[%s16772_s27 + $0x1c00] sm:$0xf]  ;;  %v16134_v33 = vld [vmem:[%s16772_s27 + $0x1c04] sm:$0xf0] }
 0x207   : > { %8743 = vmatpush.bf16.msra.mxu0 %v13805_v49  ;;  %v13789_v49 = vor.u32 %v16140_v34, %v13788_v12  ;;  %v13845_v34 = vor.u32 %v16154_v54, %v13844_v55  ;;  %v16150_v54 = vld [vmem:[%s16772_s27 + $0x1c84] sm:$0xf0] }
 0x208   : > { %8756 = vmatpush.bf16.msra.mxu1 %v13869_v14  ;;  %v13853_v14 = vor.u32 %v16156_v25, %v13852_v32  ;;  %v16136_v25 = vld [vmem:[%s16772_s27 + $0x1c14] sm:$0xf0] }
 0x209   : > { %8769 = vmatpush.bf16.msra.mxu2 %v13933_v46  ;;  %v13917_v46 = vor.u32 %v16172_v2, %v13916_v31  ;;  %v13836_v31 = vld [vmem:[%s16772_s27 + $0x1c90] sm:$0xf]  ;;  %v16152_v2 = vld [vmem:[%s16772_s27 + $0x1c94] sm:$0xf0] }
 0x20a   : > { %8782 = vmatpush.bf16.msra.mxu3 %v13997_v3  ;;  %v13908_v3 = vld [vmem:[%s16772_s27 + $0x1d20] sm:$0xf]  ;;  %v13837_v19 = vor.u32 %v16152_v2, %v13836_v31  ;;  %v16182_v31 = vld [vmem:[%s16772_s27 + $0x1d84] sm:$0xf0] }
 0x20b   : > { %8744 = vmatpush.bf16.msra.mxu0 %v13797_v48  ;;  %v8529_v48 = vpop.f32.mrf.mxu3  ;;  %v8505_v12 = vpop.f32.mrf.mxu1  ;;  %v13909_v32 = vor.u32 %v16170_v29, %v13908_v3  ;;  %v13892_v3 = vld [vmem:[%s16772_s27 + $0x1d00] sm:$0xf] }
 0x20c   : > { %8757 = vmatpush.bf16.msra.mxu1 %v13861_v59  ;;  %v17946_v18 = vadd.f32 %v8529_v48, %v8517_v13  ;;  %v13972_v59 = vld [vmem:[%s16772_s27 + $0x1da0] sm:$0xf]  ;;  %v8518_v29 = vpop.f32.mrf.mxu2  ;;  %v14076_v48 = vld [vmem:[%s16772_s27 + $0x1e70] sm:$0xf] }
 0x20d   : > { %8770 = vmatpush.bf16.msra.mxu2 %v13925_v24  ;;  %v16186_v24 = vld [vmem:[%s16772_s27 + $0x1da4] sm:$0xf0]  ;;  %v13828_v13 = vld [vmem:[%s16772_s27 + $0x1c80] sm:$0xf]  ;;  %v14204_v12 = vld [vmem:[%s16772_s27 + $0x1f70] sm:$0xf] }
 0x20e   : > { %8783 = vmatpush.bf16.msra.mxu3 %v13989_v23  ;;  %v13900_v23 = vld [vmem:[%s16772_s27 + $0x1d10] sm:$0xf]  ;;  %v13973_v52 = vor.u32 %v16186_v24, %v13972_v59  ;;  %v16228_v24 = vld [vmem:[%s16772_s27 + $0x1ef4] sm:$0xf0]  ;;  %v13829_v2 = vor.u32 %v16150_v54, %v13828_v13 }
 0x20f   : > { %8745 = vmatpush.bf16.msra.mxu0 %v13789_v49  ;;  %v16168_v49 = vld [vmem:[%s16772_s27 + $0x1d14] sm:$0xf0]  ;;  %v14140_v59 = vld [vmem:[%s16772_s27 + $0x1ef0] sm:$0xf] }
 0x210   : > { %8758 = vmatpush.bf16.msra.mxu1 %v13853_v14  ;;  %v13773_v14 = vor.u32 %v16136_v25, %v13772_v17  ;;  %v13901_v55 = vor.u32 %v16168_v49, %v13900_v23  ;;  %v16244_v17 = vld [vmem:[%s16772_s27 + $0x1f74] sm:$0xf0]  ;;  %v13956_v25 = vld [vmem:[%s16772_s27 + $0x1d80] sm:$0xf]  ;;  %v14077_v49 = vor.u32 %v16212_v56, %v14076_v48  ;;  %v17982_v13 = vld [vmem:[#allocation1 + $0x12] sm:$0xff] }
 0x211   : > { %8771 = vmatpush.bf16.msra.mxu2 %v13917_v46  ;;  %v16184_v46 = vld [vmem:[%s16772_s27 + $0x1d94] sm:$0xf0]  ;;  %v13957_v29 = vor.u32 %v16182_v31, %v13956_v25  ;;  %19825 = vst [vmem:[#allocation33_spill] sm:$0xff] %v17982_v13  ;;  %v14260_v56 = vld [vmem:[%s16772_s27 + $0x1fe0] sm:$0xf] }
 0x212   : > { %8784 = vmatpush.bf16.msra.mxu3 %v13981_v30  ;;  %v16166_v30 = vld [vmem:[%s16772_s27 + $0x1d04] sm:$0xf0]  ;;  %v16224_v25 = vld [vmem:[%s16772_s27 + $0x1ed4] sm:$0xf0]  ;;  %v14188_v31 = vld [vmem:[%s16772_s27 + $0x1f50] sm:$0xf] }
 0x213   : > { %8746 = vmatpush.bf16.msra.mxu0 %v13781_v47  ;;  %v13965_v47 = vor.u32 %v16184_v46, %v13964_v16  ;;  %v13893_v23 = vor.u32 %v16166_v30, %v13892_v3  ;;  %v14268_v16 = vld [vmem:[%s16772_s27 + $0x1ff0] sm:$0xf]  ;;  %v16260_v46 = vld [vmem:[%s16772_s27 + $0x1ff4] sm:$0xf0]  ;;  %v17984_v3 = vld [vmem:[#allocation1 + $0x9] sm:$0xff] }
 0x214   : > { %8759 = vmatpush.bf16.msra.mxu1 %v13845_v34  ;;  %v8531_v34 = vpop.f32.mrf.mxu3  ;;  %v14269_v54 = vor.u32 %v16260_v46, %v14268_v16  ;;  %19826 = vst [vmem:[#allocation34_spill] sm:$0xff] %v17984_v3  ;;  %v17986_v30 = vld [vmem:[#allocation1 + $0x1b] sm:$0xff]  ;;  %v14052_v46 = vld [vmem:[%s16772_s27 + $0x1e40] sm:$0xf] }
 0x215   : > { %8772 = vmatpush.bf16.msra.mxu2 %v13909_v32  ;;  %v13765_v32 = vor.u32 %v16134_v33, %v13764_v50  ;;  %v14068_v50 = vld [vmem:[%s16772_s27 + $0x1e60] sm:$0xf]  ;;  %v16210_v33 = vld [vmem:[%s16772_s27 + $0x1e64] sm:$0xf0]  ;;  %19827 = vst [vmem:[#allocation35_spill] sm:$0xff] %v17986_v30 }
 0x216   : > { %8785 = vmatpush.bf16.msra.mxu3 %v13973_v52  ;;  %v14141_v52 = vor.u32 %v16228_v24, %v14140_v59  ;;  %v14132_v34 = vld [vmem:[%s16772_s27 + $0x1ee0] sm:$0xf]  ;;  %v14069_v48 = vor.u32 %v16210_v33, %v14068_v50  ;;  %v16222_v50 = vld [vmem:[%s16772_s27 + $0x1ec4] sm:$0xf0] }
 0x217   : > { %8747 = vmatpush.bf16.msra.mxu0 %v13773_v14  ;;  %v14205_v14 = vor.u32 %v16244_v17, %v14204_v12  ;;  %v14133_v59 = vor.u32 %v16226_v38, %v14132_v34  ;;  %v14060_v12 = vld [vmem:[%s16772_s27 + $0x1e50] sm:$0xf]  ;;  %v14180_v33 = vld [vmem:[%s16772_s27 + $0x1f40] sm:$0xf]  ;;  %v16238_v34 = vld [vmem:[%s16772_s27 + $0x1f44] sm:$0xf0] }
 0x218   : > { %8760 = vmatpush.bf16.msra.mxu1 %v13837_v19  ;;  %v14196_v19 = vld [vmem:[%s16772_s27 + $0x1f60] sm:$0xf]  ;;  %v14124_v17 = vld [vmem:[%s16772_s27 + $0x1ed0] sm:$0xf] }
 0x219   : > { %8773 = vmatpush.bf16.msra.mxu2 %v13901_v55  ;;  %v17980_v55 = vld [vmem:[#allocation1] sm:$0xff]  ;;  %v14197_v24 = vor.u32 %v16242_v51, %v14196_v19 }
 0x21a   : > { %8786 = vmatpush.bf16.msra.mxu3 %v13965_v47  ;;  %19824 = vst [vmem:[#allocation32_spill] sm:$0xff] %v17980_v55  ;;  %v16258_v47 = vld [vmem:[%s16772_s27 + $0x1fe4] sm:$0xf0] }
 0x21b   : > { %8748 = vmatpush.bf16.msra.mxu0 %v13765_v32  ;;  %v16208_v32 = vld [vmem:[%s16772_s27 + $0x1e54] sm:$0xf0]  ;;  %v14261_v51 = vor.u32 %v16258_v47, %v14260_v56 }
 0x21c   : > { %8761 = vmatpush.bf16.msra.mxu1 %v13829_v2  ;;  %v16240_v2 = vld [vmem:[%s16772_s27 + $0x1f54] sm:$0xf0]  ;;  %v14061_v38 = vor.u32 %v16208_v32, %v14060_v12  ;;  %v8555_v47 = vpop.f32.mrf.mxu1  ;;  %v14181_v32 = vor.u32 %v16238_v34, %v14180_v33  ;;  %v16202_v33 = vld [vmem:[%s16772_s27 + $0x1e24] sm:$0xf0]  ;;  %v14100_v34 = vld [vmem:[%s16772_s27 + $0x1ea0] sm:$0xf] }
 0x21d   : > { %8774 = vmatpush.bf16.msra.mxu2 %v13893_v23  ;;  %v14252_v23 = vld [vmem:[%s16772_s27 + $0x1fd0] sm:$0xf]  ;;  %v14189_v16 = vor.u32 %v16240_v2, %v14188_v31 }
 0x21e   : > { %8787 = vmatpush.bf16.msra.mxu3 %v13957_v29  ;;  %8749 = vmatmul.bf16.vlgmr.msra.gmra.mxu0 %v17980_v55  ;;  %v14116_v29 = vld [vmem:[%s16772_s27 + $0x1ec0] sm:$0xf]  ;;  %v14108_v31 = vld [vmem:[%s16772_s27 + $0x1eb0] sm:$0xf] }
 0x21f   : > { %8793 = vmatpush.bf16.msrb.mxu0 %v14077_v49  ;;  %8762 = vmatmul.bf16.vlgmr.msra.gmra.mxu1 %v17984_v3  ;;  %v16256_v49 = vld [vmem:[%s16772_s27 + $0x1fd4] sm:$0xf0]  ;;  %v14117_v12 = vor.u32 %v16222_v50, %v14116_v29  ;;  %v14036_v50 = vld [vmem:[%s16772_s27 + $0x1e20] sm:$0xf]  ;;  %v16246_v3 = vld [vmem:[%s16772_s27 + $0x1f84] sm:$0xf0] }
 0x220   : > { %8806 = vmatpush.bf16.msrb.mxu1 %v14141_v52  ;;  %8775 = vmatmul.bf16.vlgmr.msra.gmra.mxu2 %v17982_v13  ;;  %v14125_v52 = vor.u32 %v16224_v25, %v14124_v17  ;;  %v14253_v19 = vor.u32 %v16256_v49, %v14252_v23  ;;  %v14044_v17 = vld [vmem:[%s16772_s27 + $0x1e30] sm:$0xf]  ;;  %v16204_v25 = vld [vmem:[%s16772_s27 + $0x1e34] sm:$0xf0] }
 0x221   : > { %8819 = vmatpush.bf16.msrb.mxu2 %v14205_v14  ;;  %8788 = vmatmul.bf16.vlgmr.msra.gmra.mxu3 %v17986_v30  ;;  %v16206_v14 = vld [vmem:[%s16772_s27 + $0x1e44] sm:$0xf0]  ;;  %v14045_v49 = vor.u32 %v16204_v25, %v14044_v17  ;;  %v14228_v17 = vld [vmem:[%s16772_s27 + $0x1fa0] sm:$0xf]  ;;  %v18052_v13 = vld [vmem:[#allocation1 + $0x3f] sm:$0xff] }
 0x222   : > { %8832 = vmatpush.bf16.msrb.mxu3 %v14269_v54  ;;  %v8542_v54 = vpop.f32.mrf.mxu0  ;;  %v14053_v56 = vor.u32 %v16206_v14, %v14052_v46  ;;  %v16250_v25 = vld [vmem:[%s16772_s27 + $0x1fa4] sm:$0xf0]  ;;  %19831 = vst [vmem:[#allocation39_spill] sm:$0xff] %v18052_v13  ;;  %v14212_v30 = vld [vmem:[%s16772_s27 + $0x1f80] sm:$0xf] }
 0x223   : > { %8794 = vmatpush.bf16.msrb.mxu0 %v14069_v48  ;;  %v8543_v48 = vadd.f32 %v8542_v54, %v17946_v18  ;;  %v16236_v18 = vld [vmem:[%s16772_s27 + $0x1f34] sm:$0xf0]  ;;  %v8568_v29 = vpop.f32.mrf.mxu2 }
 0x224   : > { %8807 = vmatpush.bf16.msrb.mxu1 %v14133_v59  ;;  %v14244_v59 = vld [vmem:[%s16772_s27 + $0x1fc0] sm:$0xf] }
 0x225   : > { %8820 = vmatpush.bf16.msrb.mxu2 %v14197_v24  ;;  %v16254_v24 = vld [vmem:[%s16772_s27 + $0x1fc4] sm:$0xf0]  ;;  %v8556_v2 = vadd.f32 %v8555_v47, %v8543_v48  ;;  %v14164_v48 = vld [vmem:[%s16772_s27 + $0x1f20] sm:$0xf] }
 0x226   : > { %8833 = vmatpush.bf16.msrb.mxu3 %v14261_v51  ;;  %v16220_v51 = vld [vmem:[%s16772_s27 + $0x1eb4] sm:$0xf0]  ;;  %v14245_v23 = vor.u32 %v16254_v24, %v14244_v59  ;;  %v16234_v47 = vld [vmem:[%s16772_s27 + $0x1f24] sm:$0xf0]  ;;  %v8581_v59 = vpop.f32.mrf.mxu3 }
 0x227   : > { %8795 = vmatpush.bf16.msrb.mxu0 %v14061_v38  ;;  %v14172_v38 = vld [vmem:[%s16772_s27 + $0x1f30] sm:$0xf]  ;;  %v14109_v46 = vor.u32 %v16220_v51, %v14108_v31  ;;  %v8569_v54 = vadd.f32 %v8568_v29, %v8556_v2  ;;  %v8557_v2 = vpop.f32.mrf.mxu1 }
 0x228   : > { %8808 = vmatpush.bf16.msrb.mxu1 %v14125_v52  ;;  %v14236_v52 = vld [vmem:[%s16772_s27 + $0x1fb0] sm:$0xf]  ;;  %v14173_v14 = vor.u32 %v16236_v18, %v14172_v38  ;;  %v14165_v38 = vor.u32 %v16234_v47, %v14164_v48  ;;  %v16200_v18 = vld [vmem:[%s16772_s27 + $0x1e14] sm:$0xf0]  ;;  %v14148_v48 = vld [vmem:[%s16772_s27 + $0x1f00] sm:$0xf] }
 0x229   : > { %8821 = vmatpush.bf16.msrb.mxu2 %v14189_v16  ;;  %v16252_v16 = vld [vmem:[%s16772_s27 + $0x1fb4] sm:$0xf0]  ;;  %v14028_v31 = vld [vmem:[%s16772_s27 + $0x1e10] sm:$0xf]  ;;  %v16230_v47 = vld [vmem:[%s16772_s27 + $0x1f04] sm:$0xf0] }
 0x22a   : > { %8834 = vmatpush.bf16.msrb.mxu3 %v14253_v19  ;;  %v16218_v19 = vld [vmem:[%s16772_s27 + $0x1ea4] sm:$0xf0]  ;;  %v8544_v24 = vpop.f32.mrf.mxu0  ;;  %v14220_v29 = vld [vmem:[%s16772_s27 + $0x1f90] sm:$0xf] }
 0x22b   : > { %8796 = vmatpush.bf16.msrb.mxu0 %v14053_v56  ;;  %v14237_v56 = vor.u32 %v16252_v16, %v14236_v52  ;;  %v14101_v51 = vor.u32 %v16218_v19, %v14100_v34  ;;  %v14156_v52 = vld [vmem:[%s16772_s27 + $0x1f10] sm:$0xf]  ;;  %v16232_v16 = vld [vmem:[%s16772_s27 + $0x1f14] sm:$0xf0]  ;;  %v14029_v34 = vor.u32 %v16200_v18, %v14028_v31  ;;  %v16214_v19 = vld [vmem:[%s16772_s27 + $0x1e84] sm:$0xf0]  ;;  %v8570_v31 = vpop.f32.mrf.mxu2 }
 0x22c   : > { %8809 = vmatpush.bf16.msrb.mxu1 %v14117_v12  ;;  %v18025_v12 = vadd.f32 %v8581_v59, %v8569_v54  ;;  %v14084_v54 = vld [vmem:[%s16772_s27 + $0x1e80] sm:$0xf]  ;;  %v14157_v24 = vor.u32 %v16232_v16, %v14156_v52  ;;  %v14332_v2 = vld [vmem:[%s16772_s27 + $0x2070] sm:$0xf]  ;;  %v18050_v18 = vld [vmem:[#allocation1 + $0x2d] sm:$0xff] }
 0x22d   : > { %8822 = vmatpush.bf16.msrb.mxu2 %v14181_v32  ;;  %v14037_v32 = vor.u32 %v16202_v33, %v14036_v50  ;;  %v14229_v50 = vor.u32 %v16250_v25, %v14228_v17  ;;  %v16248_v33 = vld [vmem:[%s16772_s27 + $0x1f94] sm:$0xf0]  ;;  %v14396_v17 = vld [vmem:[%s16772_s27 + $0x20f0] sm:$0xf]  ;;  %v18046_v25 = vld [vmem:[#allocation1 + $0x24] sm:$0xff]  ;;  %19830 = vst [vmem:[#allocation38_spill] sm:$0xff] %v18050_v18 }
 0x22e   : > { %8835 = vmatpush.bf16.msrb.mxu3 %v14245_v23  ;;  %v14092_v23 = vld [vmem:[%s16772_s27 + $0x1e90] sm:$0xf]  ;;  %19828 = vst [vmem:[#allocation36_spill] sm:$0xff] %v18046_v25  ;;  %v8583_v52 = vpop.f32.mrf.mxu3  ;;  %v16308_v31 = vld [vmem:[%s16772_s27 + $0x2174] sm:$0xf0] }
 0x22f   : > { %8797 = vmatpush.bf16.msrb.mxu0 %v14045_v49  ;;  %v16216_v49 = vld [vmem:[%s16772_s27 + $0x1e94] sm:$0xf0] }
 0x230   : > { %8810 = vmatpush.bf16.msrb.mxu1 %v14109_v46  ;;  %v14020_v46 = vld [vmem:[%s16772_s27 + $0x1e00] sm:$0xf]  ;;  %v14093_v59 = vor.u32 %v16216_v49, %v14092_v23  ;;  %v16292_v23 = vld [vmem:[%s16772_s27 + $0x20f4] sm:$0xf0]  ;;  %v14460_v49 = vld [vmem:[%s16772_s27 + $0x2170] sm:$0xf] }
 0x231   : > { %8823 = vmatpush.bf16.msrb.mxu2 %v14173_v14  ;;  %v16198_v14 = vld [vmem:[%s16772_s27 + $0x1e04] sm:$0xf0]  ;;  %v14397_v55 = vor.u32 %v16292_v23, %v14396_v17  ;;  %v16324_v52 = vld [vmem:[%s16772_s27 + $0x21f4] sm:$0xf0] }
 0x232   : > { %8836 = vmatpush.bf16.msrb.mxu3 %v14237_v56  ;;  %v16276_v56 = vld [vmem:[%s16772_s27 + $0x2074] sm:$0xf0]  ;;  %v14021_v16 = vor.u32 %v16198_v14, %v14020_v46  ;;  %v14213_v46 = vor.u32 %v16246_v3, %v14212_v30  ;;  %v14324_v14 = vld [vmem:[%s16772_s27 + $0x2060] sm:$0xf]  ;;  %v16322_v30 = vld [vmem:[%s16772_s27 + $0x21e4] sm:$0xf0] }
 0x233   : > { %8798 = vmatpush.bf16.msrb.mxu0 %v14037_v32  ;;  %v18048_v32 = vld [vmem:[#allocation1 + $0x36] sm:$0xff]  ;;  %v14516_v3 = vld [vmem:[%s16772_s27 + $0x21e0] sm:$0xf]  ;;  %v16272_v17 = vld [vmem:[%s16772_s27 + $0x2054] sm:$0xf0] }
 0x234   : > { %8811 = vmatpush.bf16.msrb.mxu1 %v14101_v51  ;;  %19829 = vst [vmem:[#allocation37_spill] sm:$0xff] %v18048_v32  ;;  %v243_v51 = vld [vmem:[%s19755_s0 + $0x40] sm:$0xff] }
 0x235   : > { %8824 = vmatpush.bf16.msrb.mxu2 %v14165_v38  ;;  %v14221_v38 = vor.u32 %v16248_v33, %v14220_v29  ;;  %1596 = vst [vmem:[#allocation1] ss:$9 sm:$0xff] %v243_v51  ;;  %v14085_v29 = vor.u32 %v16214_v19, %v14084_v54  ;;  %v14333_v33 = vor.u32 %v16276_v56, %v14332_v2  ;;  %v16274_v51 = vld [vmem:[%s16772_s27 + $0x2064] sm:$0xf0]  ;;  %v14316_v56 = vld [vmem:[%s16772_s27 + $0x2050] sm:$0xf] }
 0x236   : > { %8837 = vmatpush.bf16.msrb.mxu3 %v14229_v50  ;;  %v14149_v50 = vor.u32 %v16230_v47, %v14148_v48  ;;  %v16306_v54 = vld [vmem:[%s16772_s27 + $0x2164] sm:$0xf0]  ;;  %v14525_v19 = vor.u32 %v16324_v52, %v14524_v6  ;;  %v14325_v48 = vor.u32 %v16274_v51, %v14324_v14  ;;  %v16288_v6 = vld [vmem:[%s16772_s27 + $0x20d4] sm:$0xf0]  ;;  %v14436_v14 = vld [vmem:[%s16772_s27 + $0x2140] sm:$0xf] }
 0x237   : > { %8799 = vmatpush.bf16.msrb.mxu0 %v14029_v34  ;;  %v14461_v34 = vor.u32 %v16308_v31, %v14460_v49  ;;  %v16304_v23 = vld [vmem:[%s16772_s27 + $0x2154] sm:$0xf0]  ;;  %v14317_v49 = vor.u32 %v16272_v17, %v14316_v56  ;;  %v16270_v52 = vld [vmem:[%s16772_s27 + $0x2044] sm:$0xf0]  ;;  %v14300_v56 = vld [vmem:[%s16772_s27 + $0x2030] sm:$0xf] }
 0x238   : > { %8812 = vmatpush.bf16.msrb.mxu1 %v14093_v59  ;;  %v16290_v59 = vld [vmem:[%s16772_s27 + $0x20e4] sm:$0xf0]  ;;  %v16320_v31 = vld [vmem:[%s16772_s27 + $0x21d4] sm:$0xf0] }
 0x239   : > { %8825 = vmatpush.bf16.msrb.mxu2 %v14157_v24  ;;  %v14452_v24 = vld [vmem:[%s16772_s27 + $0x2160] sm:$0xf]  ;;  %v14389_v47 = vor.u32 %v16290_v59, %v14388_v53  ;;  %v14517_v53 = vor.u32 %v16322_v30, %v14516_v3  ;;  %v16302_v51 = vld [vmem:[%s16772_s27 + $0x2144] sm:$0xf0]  ;;  %v16268_v17 = vld [vmem:[%s16772_s27 + $0x2034] sm:$0xf0] }
 0x23a   : > { %8838 = vmatpush.bf16.msrb.mxu3 %v14221_v38  ;;  %v14453_v2 = vor.u32 %v16306_v54, %v14452_v24  ;;  %v14380_v38 = vld [vmem:[%s16772_s27 + $0x20d0] sm:$0xf]  ;;  %v14500_v3 = vld [vmem:[%s16772_s27 + $0x21c0] sm:$0xf]  ;;  %v16318_v30 = vld [vmem:[%s16772_s27 + $0x21c4] sm:$0xf0] }
 0x23b   : > { %8800 = vmatpush.bf16.msrb.mxu0 %v14021_v16  ;;  %v14508_v16 = vld [vmem:[%s16772_s27 + $0x21d0] sm:$0xf]  ;;  %v8594_v24 = vpop.f32.mrf.mxu0 }
 0x23c   : > { %8813 = vmatpush.bf16.msrb.mxu1 %v14085_v29  ;;  %v14381_v29 = vor.u32 %v16288_v6, %v14380_v38  ;;  %v14509_v59 = vor.u32 %v16320_v31, %v14508_v16  ;;  %v8595_v54 = vadd.f32 %v8594_v24, %v18025_v12  ;;  %v14364_v38 = vld [vmem:[%s16772_s27 + $0x20b0] sm:$0xf]  ;;  %v16300_v12 = vld [vmem:[%s16772_s27 + $0x2134] sm:$0xf0]  ;;  %v16298_v24 = vld [vmem:[%s16772_s27 + $0x2124] sm:$0xf0] }
 0x23d   : > { %8826 = vmatpush.bf16.msrb.mxu2 %v14149_v50  ;;  %v14492_v16 = vld [vmem:[%s16772_s27 + $0x21b0] sm:$0xf]  ;;  %v16316_v31 = vld [vmem:[%s16772_s27 + $0x21b4] sm:$0xf0] }
 0x23e   : > { %8839 = vmatpush.bf16.msrb.mxu3 %v14213_v46  ;;  %8801 = vmatmul.bf16.vlgmr.msrb.gmra.mxu0 %v18046_v25  ;;  %v16286_v46 = vld [vmem:[%s16772_s27 + $0x20c4] sm:$0xf0]  ;;  %v14900_v25 = vld [vmem:[%s16772_s27 + $0x24e0] sm:$0xf] }
 0x23f   : > { %8845 = vmatpush.bf16.msra.mxu0 %v14333_v33  ;;  %8814 = vmatmul.bf16.vlgmr.msrb.gmra.mxu1 %v18050_v18  ;;  %v14308_v33 = vld [vmem:[%s16772_s27 + $0x2040] sm:$0xf]  ;;  %v15036_v18 = vld [vmem:[%s16772_s27 + $0x25f0] sm:$0xf] }
 0x240   : > { %8858 = vmatpush.bf16.msra.mxu1 %v14397_v55  ;;  %8827 = vmatmul.bf16.vlgmr.msrb.gmra.mxu2 %v18048_v32  ;;  %v14444_v55 = vld [vmem:[%s16772_s27 + $0x2150] sm:$0xf]  ;;  %v16354_v32 = vld [vmem:[%s16772_s27 + $0x22e4] sm:$0xf0] }
 0x241   : > { %8871 = vmatpush.bf16.msra.mxu2 %v14461_v34  ;;  %8840 = vmatmul.bf16.vlgmr.msrb.gmra.mxu3 %v18052_v13  ;;  %v14445_v50 = vor.u32 %v16304_v23, %v14444_v55  ;;  %v14372_v34 = vld [vmem:[%s16772_s27 + $0x20c0] sm:$0xf]  ;;  %v16284_v55 = vld [vmem:[%s16772_s27 + $0x20b4] sm:$0xf0]  ;;  %v14428_v23 = vld [vmem:[%s16772_s27 + $0x2130] sm:$0xf] }
 0x242   : > { %8884 = vmatpush.bf16.msra.mxu3 %v14525_v19  ;;  %v14309_v19 = vor.u32 %v16270_v52, %v14308_v33  ;;  %v14292_v52 = vld [vmem:[%s16772_s27 + $0x2020] sm:$0xf]  ;;  %v16370_v13 = vld [vmem:[%s16772_s27 + $0x2364] sm:$0xf0] }
 0x243   : > { %8846 = vmatpush.bf16.msra.mxu0 %v14325_v48  ;;  %v8607_v48 = vpop.f32.mrf.mxu1  ;;  %v8620_v33 = vpop.f32.mrf.mxu2 }
 0x244   : > { %8859 = vmatpush.bf16.msra.mxu1 %v14389_v47  ;;  %v14373_v47 = vor.u32 %v16286_v46, %v14372_v34  ;;  %v8608_v6 = vadd.f32 %v8607_v48, %v8595_v54  ;;  %v16266_v34 = vld [vmem:[%s16772_s27 + $0x2024] sm:$0xf0]  ;;  %v14356_v46 = vld [vmem:[%s16772_s27 + $0x20a0] sm:$0xf]  ;;  %v14493_v54 = vor.u32 %v16316_v31, %v14492_v16  ;;  %v8596_v48 = vpop.f32.mrf.mxu0  ;;  %v14476_v31 = vld [vmem:[%s16772_s27 + $0x2190] sm:$0xf] }
 0x245   : > { %8872 = vmatpush.bf16.msra.mxu2 %v14453_v2  ;;  %v14437_v2 = vor.u32 %v16302_v51, %v14436_v14  ;;  %v16282_v51 = vld [vmem:[%s16772_s27 + $0x20a4] sm:$0xf0]  ;;  %v16340_v48 = vld [vmem:[%s16772_s27 + $0x2274] sm:$0xf0] }
 0x246   : > { %8885 = vmatpush.bf16.msra.mxu3 %v14517_v53  ;;  %v14501_v53 = vor.u32 %v16318_v30, %v14500_v3  ;;  %v8621_v14 = vadd.f32 %v8620_v33, %v8608_v6  ;;  %v14293_v30 = vor.u32 %v16266_v34, %v14292_v52  ;;  %v14284_v6 = vld [vmem:[%s16772_s27 + $0x2010] sm:$0xf]  ;;  %v14276_v33 = vld [vmem:[%s16772_s27 + $0x2000] sm:$0xf]  ;;  %v16262_v52 = vld [vmem:[%s16772_s27 + $0x2004] sm:$0xf0] }
 0x247   : > { %8847 = vmatpush.bf16.msra.mxu0 %v14317_v49  ;;  %v14301_v49 = vor.u32 %v16268_v17, %v14300_v56  ;;  %v14357_v17 = vor.u32 %v16282_v51, %v14356_v46  ;;  %v16278_v51 = vld [vmem:[%s16772_s27 + $0x2084] sm:$0xf0] }
 0x248   : > { %8860 = vmatpush.bf16.msra.mxu1 %v14381_v29  ;;  %v14365_v29 = vor.u32 %v16284_v55, %v14364_v38  ;;  %v16264_v55 = vld [vmem:[%s16772_s27 + $0x2014] sm:$0xf0] }
 0x249   : > { %8873 = vmatpush.bf16.msra.mxu2 %v14445_v50  ;;  %v14429_v50 = vor.u32 %v16300_v12, %v14428_v23  ;;  %v14348_v23 = vld [vmem:[%s16772_s27 + $0x2090] sm:$0xf]  ;;  %v16280_v12 = vld [vmem:[%s16772_s27 + $0x2094] sm:$0xf0] }
 0x24a   : > { %8886 = vmatpush.bf16.msra.mxu3 %v14509_v59  ;;  %v14420_v59 = vld [vmem:[%s16772_s27 + $0x2120] sm:$0xf]  ;;  %v14349_v34 = vor.u32 %v16280_v12, %v14348_v23  ;;  %v16310_v23 = vld [vmem:[%s16772_s27 + $0x2184] sm:$0xf0] }
 0x24b   : > { %8848 = vmatpush.bf16.msra.mxu0 %v14309_v19  ;;  %v8633_v19 = vpop.f32.mrf.mxu3  ;;  %v8609_v56 = vpop.f32.mrf.mxu1  ;;  %v14421_v38 = vor.u32 %v16298_v24, %v14420_v59  ;;  %v14404_v59 = vld [vmem:[%s16772_s27 + $0x2100] sm:$0xf] }
 0x24c   : > { %8861 = vmatpush.bf16.msra.mxu1 %v14373_v47  ;;  %v18107_v3 = vadd.f32 %v8633_v19, %v8621_v14  ;;  %v14484_v47 = vld [vmem:[%s16772_s27 + $0x21a0] sm:$0xf]  ;;  %v8622_v24 = vpop.f32.mrf.mxu2  ;;  %v14588_v19 = vld [vmem:[%s16772_s27 + $0x2270] sm:$0xf] }
 0x24d   : > { %8874 = vmatpush.bf16.msra.mxu2 %v14437_v2  ;;  %v16314_v2 = vld [vmem:[%s16772_s27 + $0x21a4] sm:$0xf0]  ;;  %v14340_v14 = vld [vmem:[%s16772_s27 + $0x2080] sm:$0xf]  ;;  %v14716_v56 = vld [vmem:[%s16772_s27 + $0x2370] sm:$0xf] }
 0x24e   : > { %8887 = vmatpush.bf16.msra.mxu3 %v14501_v53  ;;  %v14412_v53 = vld [vmem:[%s16772_s27 + $0x2110] sm:$0xf]  ;;  %v14485_v16 = vor.u32 %v16314_v2, %v14484_v47  ;;  %v16356_v2 = vld [vmem:[%s16772_s27 + $0x22f4] sm:$0xf0]  ;;  %v14341_v12 = vor.u32 %v16278_v51, %v14340_v14 }
 0x24f   : > { %8849 = vmatpush.bf16.msra.mxu0 %v14301_v49  ;;  %v16296_v49 = vld [vmem:[%s16772_s27 + $0x2114] sm:$0xf0]  ;;  %v14652_v47 = vld [vmem:[%s16772_s27 + $0x22f0] sm:$0xf] }
 0x250   : > { %8862 = vmatpush.bf16.msra.mxu1 %v14365_v29  ;;  %v14285_v29 = vor.u32 %v16264_v55, %v14284_v6  ;;  %v14413_v46 = vor.u32 %v16296_v49, %v14412_v53  ;;  %v16372_v6 = vld [vmem:[%s16772_s27 + $0x2374] sm:$0xf0]  ;;  %v14468_v55 = vld [vmem:[%s16772_s27 + $0x2180] sm:$0xf]  ;;  %v14589_v49 = vor.u32 %v16340_v48, %v14588_v19  ;;  %v18143_v14 = vld [vmem:[#allocation1 + $0x12] sm:$0xff] }
 0x251   : > { %8875 = vmatpush.bf16.msra.mxu2 %v14429_v50  ;;  %v16312_v50 = vld [vmem:[%s16772_s27 + $0x2194] sm:$0xf0]  ;;  %v14469_v24 = vor.u32 %v16310_v23, %v14468_v55  ;;  %19833 = vst [vmem:[#allocation41_spill] sm:$0xff] %v18143_v14  ;;  %v14772_v48 = vld [vmem:[%s16772_s27 + $0x23e0] sm:$0xf] }
 0x252   : > { %8888 = vmatpush.bf16.msra.mxu3 %v14493_v54  ;;  %v16294_v54 = vld [vmem:[%s16772_s27 + $0x2104] sm:$0xf0]  ;;  %v16352_v55 = vld [vmem:[%s16772_s27 + $0x22d4] sm:$0xf0]  ;;  %v14700_v23 = vld [vmem:[%s16772_s27 + $0x2350] sm:$0xf] }
 0x253   : > { %8850 = vmatpush.bf16.msra.mxu0 %v14293_v30  ;;  %v14477_v30 = vor.u32 %v16312_v50, %v14476_v31  ;;  %v14405_v53 = vor.u32 %v16294_v54, %v14404_v59  ;;  %v14780_v31 = vld [vmem:[%s16772_s27 + $0x23f0] sm:$0xf]  ;;  %v16388_v50 = vld [vmem:[%s16772_s27 + $0x23f4] sm:$0xf0]  ;;  %v18145_v59 = vld [vmem:[#allocation1 + $0x9] sm:$0xff] }
 0x254   : > { %8863 = vmatpush.bf16.msra.mxu1 %v14357_v17  ;;  %v8635_v17 = vpop.f32.mrf.mxu3  ;;  %v14781_v51 = vor.u32 %v16388_v50, %v14780_v31  ;;  %19834 = vst [vmem:[#allocation42_spill] sm:$0xff] %v18145_v59  ;;  %v18147_v54 = vld [vmem:[#allocation1 + $0x1b] sm:$0xff]  ;;  %v14564_v50 = vld [vmem:[%s16772_s27 + $0x2240] sm:$0xf] }
 0x255   : > { %8876 = vmatpush.bf16.msra.mxu2 %v14421_v38  ;;  %v14277_v38 = vor.u32 %v16262_v52, %v14276_v33  ;;  %v14580_v33 = vld [vmem:[%s16772_s27 + $0x2260] sm:$0xf]  ;;  %v16338_v52 = vld [vmem:[%s16772_s27 + $0x2264] sm:$0xf0]  ;;  %19835 = vst [vmem:[#allocation43_spill] sm:$0xff] %v18147_v54 }
 0x256   : > { %8889 = vmatpush.bf16.msra.mxu3 %v14485_v16  ;;  %v14653_v16 = vor.u32 %v16356_v2, %v14652_v47  ;;  %v14644_v17 = vld [vmem:[%s16772_s27 + $0x22e0] sm:$0xf]  ;;  %v14581_v19 = vor.u32 %v16338_v52, %v14580_v33  ;;  %v16350_v33 = vld [vmem:[%s16772_s27 + $0x22c4] sm:$0xf0] }
 0x257   : > { %8851 = vmatpush.bf16.msra.mxu0 %v14285_v29  ;;  %v14717_v29 = vor.u32 %v16372_v6, %v14716_v56  ;;  %v14645_v47 = vor.u32 %v16354_v32, %v14644_v17  ;;  %v14572_v56 = vld [vmem:[%s16772_s27 + $0x2250] sm:$0xf]  ;;  %v14692_v52 = vld [vmem:[%s16772_s27 + $0x2340] sm:$0xf]  ;;  %v16366_v17 = vld [vmem:[%s16772_s27 + $0x2344] sm:$0xf0] }
 0x258   : > { %8864 = vmatpush.bf16.msra.mxu1 %v14349_v34  ;;  %v14708_v34 = vld [vmem:[%s16772_s27 + $0x2360] sm:$0xf]  ;;  %v14636_v6 = vld [vmem:[%s16772_s27 + $0x22d0] sm:$0xf] }
 0x259   : > { %8877 = vmatpush.bf16.msra.mxu2 %v14413_v46  ;;  %v18141_v46 = vld [vmem:[#allocation1] sm:$0xff]  ;;  %v14709_v2 = vor.u32 %v16370_v13, %v14708_v34 }
 0x25a   : > { %8890 = vmatpush.bf16.msra.mxu3 %v14477_v30  ;;  %19832 = vst [vmem:[#allocation40_spill] sm:$0xff] %v18141_v46  ;;  %v16386_v30 = vld [vmem:[%s16772_s27 + $0x23e4] sm:$0xf0] }
 0x25b   : > { %8852 = vmatpush.bf16.msra.mxu0 %v14277_v38  ;;  %v16336_v38 = vld [vmem:[%s16772_s27 + $0x2254] sm:$0xf0]  ;;  %v14773_v13 = vor.u32 %v16386_v30, %v14772_v48 }
 0x25c   : > { %8865 = vmatpush.bf16.msra.mxu1 %v14341_v12  ;;  %v16368_v12 = vld [vmem:[%s16772_s27 + $0x2354] sm:$0xf0]  ;;  %v14573_v32 = vor.u32 %v16336_v38, %v14572_v56  ;;  %v8659_v30 = vpop.f32.mrf.mxu1  ;;  %v14693_v38 = vor.u32 %v16366_v17, %v14692_v52  ;;  %v16330_v52 = vld [vmem:[%s16772_s27 + $0x2224] sm:$0xf0]  ;;  %v14612_v17 = vld [vmem:[%s16772_s27 + $0x22a0] sm:$0xf] }
 0x25d   : > { %8878 = vmatpush.bf16.msra.mxu2 %v14405_v53  ;;  %v14764_v53 = vld [vmem:[%s16772_s27 + $0x23d0] sm:$0xf]  ;;  %v14701_v31 = vor.u32 %v16368_v12, %v14700_v23 }
 0x25e   : > { %8891 = vmatpush.bf16.msra.mxu3 %v14469_v24  ;;  %8853 = vmatmul.bf16.vlgmr.msra.gmra.mxu0 %v18141_v46  ;;  %v14628_v24 = vld [vmem:[%s16772_s27 + $0x22c0] sm:$0xf]  ;;  %v14620_v23 = vld [vmem:[%s16772_s27 + $0x22b0] sm:$0xf] }
 0x25f   : > { %8897 = vmatpush.bf16.msrb.mxu0 %v14589_v49  ;;  %8866 = vmatmul.bf16.vlgmr.msra.gmra.mxu1 %v18145_v59  ;;  %v16384_v49 = vld [vmem:[%s16772_s27 + $0x23d4] sm:$0xf0]  ;;  %v14629_v56 = vor.u32 %v16350_v33, %v14628_v24  ;;  %v14548_v33 = vld [vmem:[%s16772_s27 + $0x2220] sm:$0xf]  ;;  %v16374_v59 = vld [vmem:[%s16772_s27 + $0x2384] sm:$0xf0] }
 0x260   : > { %8910 = vmatpush.bf16.msrb.mxu1 %v14653_v16  ;;  %8879 = vmatmul.bf16.vlgmr.msra.gmra.mxu2 %v18143_v14  ;;  %v14637_v16 = vor.u32 %v16352_v55, %v14636_v6  ;;  %v14765_v34 = vor.u32 %v16384_v49, %v14764_v53  ;;  %v14556_v6 = vld [vmem:[%s16772_s27 + $0x2230] sm:$0xf]  ;;  %v16332_v55 = vld [vmem:[%s16772_s27 + $0x2234] sm:$0xf0] }
 0x261   : > { %8923 = vmatpush.bf16.msrb.mxu2 %v14717_v29  ;;  %8892 = vmatmul.bf16.vlgmr.msra.gmra.mxu3 %v18147_v54  ;;  %v16334_v29 = vld [vmem:[%s16772_s27 + $0x2244] sm:$0xf0]  ;;  %v14557_v49 = vor.u32 %v16332_v55, %v14556_v6  ;;  %v14740_v6 = vld [vmem:[%s16772_s27 + $0x23a0] sm:$0xf]  ;;  %v18213_v14 = vld [vmem:[#allocation1 + $0x3f] sm:$0xff] }
 0x262   : > { %8936 = vmatpush.bf16.msrb.mxu3 %v14781_v51  ;;  %v8646_v51 = vpop.f32.mrf.mxu0  ;;  %v14565_v48 = vor.u32 %v16334_v29, %v14564_v50  ;;  %v16378_v55 = vld [vmem:[%s16772_s27 + $0x23a4] sm:$0xf0]  ;;  %19837 = vst [vmem:[#allocation45_spill] sm:$0xff] %v18213_v14  ;;  %v14724_v54 = vld [vmem:[%s16772_s27 + $0x2380] sm:$0xf] }
 0x263   : > { %8898 = vmatpush.bf16.msrb.mxu0 %v14581_v19  ;;  %v8647_v19 = vadd.f32 %v8646_v51, %v18107_v3  ;;  %v16364_v3 = vld [vmem:[%s16772_s27 + $0x2334] sm:$0xf0]  ;;  %v8672_v24 = vpop.f32.mrf.mxu2 }
 0x264   : > { %8911 = vmatpush.bf16.msrb.mxu1 %v14645_v47  ;;  %v14756_v47 = vld [vmem:[%s16772_s27 + $0x23c0] sm:$0xf] }
 0x265   : > { %8924 = vmatpush.bf16.msrb.mxu2 %v14709_v2  ;;  %v16382_v2 = vld [vmem:[%s16772_s27 + $0x23c4] sm:$0xf0]  ;;  %v8660_v12 = vadd.f32 %v8659_v30, %v8647_v19  ;;  %v14676_v19 = vld [vmem:[%s16772_s27 + $0x2320] sm:$0xf] }
 0x266   : > { %8937 = vmatpush.bf16.msrb.mxu3 %v14773_v13  ;;  %v16348_v13 = vld [vmem:[%s16772_s27 + $0x22b4] sm:$0xf0]  ;;  %v14757_v53 = vor.u32 %v16382_v2, %v14756_v47  ;;  %v16362_v30 = vld [vmem:[%s16772_s27 + $0x2324] sm:$0xf0]  ;;  %v8685_v47 = vpop.f32.mrf.mxu3 }
 0x267   : > { %8899 = vmatpush.bf16.msrb.mxu0 %v14573_v32  ;;  %v14684_v32 = vld [vmem:[%s16772_s27 + $0x2330] sm:$0xf]  ;;  %v14621_v50 = vor.u32 %v16348_v13, %v14620_v23  ;;  %v8673_v51 = vadd.f32 %v8672_v24, %v8660_v12  ;;  %v8661_v12 = vpop.f32.mrf.mxu1 }
 0x268   : > { %8912 = vmatpush.bf16.msrb.mxu1 %v14637_v16  ;;  %v14748_v16 = vld [vmem:[%s16772_s27 + $0x23b0] sm:$0xf]  ;;  %v14685_v29 = vor.u32 %v16364_v3, %v14684_v32  ;;  %v14677_v32 = vor.u32 %v16362_v30, %v14676_v19  ;;  %v16328_v3 = vld [vmem:[%s16772_s27 + $0x2214] sm:$0xf0]  ;;  %v14660_v19 = vld [vmem:[%s16772_s27 + $0x2300] sm:$0xf] }
 0x269   : > { %8925 = vmatpush.bf16.msrb.mxu2 %v14701_v31  ;;  %v16380_v31 = vld [vmem:[%s16772_s27 + $0x23b4] sm:$0xf0]  ;;  %v14540_v23 = vld [vmem:[%s16772_s27 + $0x2210] sm:$0xf]  ;;  %v16358_v30 = vld [vmem:[%s16772_s27 + $0x2304] sm:$0xf0] }
 0x26a   : > { %8938 = vmatpush.bf16.msrb.mxu3 %v14765_v34  ;;  %v16346_v34 = vld [vmem:[%s16772_s27 + $0x22a4] sm:$0xf0]  ;;  %v8648_v2 = vpop.f32.mrf.mxu0  ;;  %v14732_v24 = vld [vmem:[%s16772_s27 + $0x2390] sm:$0xf] }
 0x26b   : > { %8900 = vmatpush.bf16.msrb.mxu0 %v14565_v48  ;;  %v14749_v48 = vor.u32 %v16380_v31, %v14748_v16  ;;  %v14613_v13 = vor.u32 %v16346_v34, %v14612_v17  ;;  %v14668_v16 = vld [vmem:[%s16772_s27 + $0x2310] sm:$0xf]  ;;  %v16360_v31 = vld [vmem:[%s16772_s27 + $0x2314] sm:$0xf0]  ;;  %v14541_v17 = vor.u32 %v16328_v3, %v14540_v23  ;;  %v16342_v34 = vld [vmem:[%s16772_s27 + $0x2284] sm:$0xf0]  ;;  %v8674_v23 = vpop.f32.mrf.mxu2 }
 0x26c   : > { %8913 = vmatpush.bf16.msrb.mxu1 %v14629_v56  ;;  %v18186_v56 = vadd.f32 %v8685_v47, %v8673_v51  ;;  %v14596_v51 = vld [vmem:[%s16772_s27 + $0x2280] sm:$0xf]  ;;  %v14669_v2 = vor.u32 %v16360_v31, %v14668_v16  ;;  %v14844_v12 = vld [vmem:[%s16772_s27 + $0x2470] sm:$0xf]  ;;  %v18211_v3 = vld [vmem:[#allocation1 + $0x2d] sm:$0xff] }
 0x26d   : > { %8926 = vmatpush.bf16.msrb.mxu2 %v14693_v38  ;;  %v14549_v38 = vor.u32 %v16330_v52, %v14548_v33  ;;  %v14741_v33 = vor.u32 %v16378_v55, %v14740_v6  ;;  %v16376_v52 = vld [vmem:[%s16772_s27 + $0x2394] sm:$0xf0]  ;;  %v14908_v6 = vld [vmem:[%s16772_s27 + $0x24f0] sm:$0xf]  ;;  %v18207_v55 = vld [vmem:[#allocation1 + $0x24] sm:$0xff] }
 0x26e   : > { %8939 = vmatpush.bf16.msrb.mxu3 %v14757_v53  ;;  %v14604_v53 = vld [vmem:[%s16772_s27 + $0x2290] sm:$0xf]  ;;  %v8687_v16 = vpop.f32.mrf.mxu3  ;;  %v16436_v23 = vld [vmem:[%s16772_s27 + $0x2574] sm:$0xf0] }
 0x26f   : > { %8901 = vmatpush.bf16.msrb.mxu0 %v14557_v49  ;;  %v16344_v49 = vld [vmem:[%s16772_s27 + $0x2294] sm:$0xf0] }
 0x270   : > { %8914 = vmatpush.bf16.msrb.mxu1 %v14621_v50  ;;  %v14532_v50 = vld [vmem:[%s16772_s27 + $0x2200] sm:$0xf]  ;;  %v14605_v47 = vor.u32 %v16344_v49, %v14604_v53  ;;  %v16420_v53 = vld [vmem:[%s16772_s27 + $0x24f4] sm:$0xf0]  ;;  %v14972_v49 = vld [vmem:[%s16772_s27 + $0x2570] sm:$0xf] }
 0x271   : > { %8927 = vmatpush.bf16.msrb.mxu2 %v14685_v29  ;;  %v16326_v29 = vld [vmem:[%s16772_s27 + $0x2204] sm:$0xf0]  ;;  %v14909_v46 = vor.u32 %v16420_v53, %v14908_v6  ;;  %v16452_v16 = vld [vmem:[%s16772_s27 + $0x25f4] sm:$0xf0] }
 0x272   : > { %8940 = vmatpush.bf16.msrb.mxu3 %v14749_v48  ;;  %v16404_v48 = vld [vmem:[%s16772_s27 + $0x2474] sm:$0xf0]  ;;  %v14533_v31 = vor.u32 %v16326_v29, %v14532_v50  ;;  %v14725_v50 = vor.u32 %v16374_v59, %v14724_v54  ;;  %v14836_v29 = vld [vmem:[%s16772_s27 + $0x2460] sm:$0xf]  ;;  %v16450_v54 = vld [vmem:[%s16772_s27 + $0x25e4] sm:$0xf0] }
 0x273   : > { %8902 = vmatpush.bf16.msrb.mxu0 %v14549_v38  ;;  %v18209_v38 = vld [vmem:[#allocation1 + $0x36] sm:$0xff]  ;;  %v15028_v59 = vld [vmem:[%s16772_s27 + $0x25e0] sm:$0xf]  ;;  %v16400_v6 = vld [vmem:[%s16772_s27 + $0x2454] sm:$0xf0] }
 0x274   : > { %8915 = vmatpush.bf16.msrb.mxu1 %v14613_v13  ;;  %19836 = vst [vmem:[#allocation44_spill] sm:$0xff] %v18209_v38  ;;  %v244_v13 = vld [vmem:[%s19755_s0 + $0x48] sm:$0x7f]  ;;  %v16432_v53 = vld [vmem:[%s16772_s27 + $0x2554] sm:$0xf0] }
 0x275   : > { %8928 = vmatpush.bf16.msrb.mxu2 %v14677_v32  ;;  %v14733_v32 = vor.u32 %v16376_v52, %v14732_v24  ;;  %1606 = vst [vmem:[#allocation1] ss:$9 sm:$0xff] %v244_v13  ;;  %v14597_v24 = vor.u32 %v16342_v34, %v14596_v51  ;;  %v14845_v52 = vor.u32 %v16404_v48, %v14844_v12  ;;  %v16402_v13 = vld [vmem:[%s16772_s27 + $0x2464] sm:$0xf0]  ;;  %v14828_v48 = vld [vmem:[%s16772_s27 + $0x2450] sm:$0xf] }
 0x276   : > { %8941 = vmatpush.bf16.msrb.mxu3 %v14741_v33  ;;  %v14661_v33 = vor.u32 %v16358_v30, %v14660_v19  ;;  %v16434_v51 = vld [vmem:[%s16772_s27 + $0x2564] sm:$0xf0]  ;;  %v15037_v34 = vor.u32 %v16452_v16, %v15036_v18  ;;  %v14837_v19 = vor.u32 %v16402_v13, %v14836_v29  ;;  %v16416_v18 = vld [vmem:[%s16772_s27 + $0x24d4] sm:$0xf0]  ;;  %v14948_v29 = vld [vmem:[%s16772_s27 + $0x2540] sm:$0xf] }
 0x277   : > { %8903 = vmatpush.bf16.msrb.mxu0 %v14541_v17  ;;  %v14973_v17 = vor.u32 %v16436_v23, %v14972_v49  ;;  %v14829_v49 = vor.u32 %v16400_v6, %v14828_v48  ;;  %v16448_v23 = vld [vmem:[%s16772_s27 + $0x25d4] sm:$0xf0]  ;;  %v16398_v16 = vld [vmem:[%s16772_s27 + $0x2444] sm:$0xf0]  ;;  %v14812_v48 = vld [vmem:[%s16772_s27 + $0x2430] sm:$0xf] }
 0x278   : > { %8916 = vmatpush.bf16.msrb.mxu1 %v14605_v47  ;;  %v16418_v47 = vld [vmem:[%s16772_s27 + $0x24e4] sm:$0xf0]  ;;  %v16396_v6 = vld [vmem:[%s16772_s27 + $0x2434] sm:$0xf0] }
 0x279   : > { %8929 = vmatpush.bf16.msrb.mxu2 %v14669_v2  ;;  %v14964_v2 = vld [vmem:[%s16772_s27 + $0x2560] sm:$0xf]  ;;  %v14901_v30 = vor.u32 %v16418_v47, %v14900_v25  ;;  %v15029_v25 = vor.u32 %v16450_v54, %v15028_v59  ;;  %v16430_v13 = vld [vmem:[%s16772_s27 + $0x2544] sm:$0xf0] }
 0x27a   : > { %8942 = vmatpush.bf16.msrb.mxu3 %v14733_v32  ;;  %v14965_v12 = vor.u32 %v16434_v51, %v14964_v2  ;;  %v14892_v32 = vld [vmem:[%s16772_s27 + $0x24d0] sm:$0xf]  ;;  %v15012_v59 = vld [vmem:[%s16772_s27 + $0x25c0] sm:$0xf]  ;;  %v16446_v54 = vld [vmem:[%s16772_s27 + $0x25c4] sm:$0xf0] }
 0x27b   : > { %8904 = vmatpush.bf16.msrb.mxu0 %v14533_v31  ;;  %v15020_v31 = vld [vmem:[%s16772_s27 + $0x25d0] sm:$0xf]  ;;  %v8698_v2 = vpop.f32.mrf.mxu0 }
 0x27c   : > { %8917 = vmatpush.bf16.msrb.mxu1 %v14597_v24  ;;  %v14893_v24 = vor.u32 %v16416_v18, %v14892_v32  ;;  %v15021_v47 = vor.u32 %v16448_v23, %v15020_v31  ;;  %v8699_v51 = vadd.f32 %v8698_v2, %v18186_v56  ;;  %v14876_v32 = vld [vmem:[%s16772_s27 + $0x24b0] sm:$0xf]  ;;  %v16428_v56 = vld [vmem:[%s16772_s27 + $0x2534] sm:$0xf0]  ;;  %v16426_v2 = vld [vmem:[%s16772_s27 + $0x2524] sm:$0xf0] }
 0x27d   : > { %8930 = vmatpush.bf16.msrb.mxu2 %v14661_v33  ;;  %v15004_v31 = vld [vmem:[%s16772_s27 + $0x25b0] sm:$0xf]  ;;  %v16444_v23 = vld [vmem:[%s16772_s27 + $0x25b4] sm:$0xf0] }
 0x27e   : > { %8943 = vmatpush.bf16.msrb.mxu3 %v14725_v50  ;;  %8905 = vmatmul.bf16.vlgmr.msrb.gmra.mxu0 %v18207_v55  ;;  %v16414_v50 = vld [vmem:[%s16772_s27 + $0x24c4] sm:$0xf0] }
 0x27f   : > { %8949 = vmatpush.bf16.msra.mxu0 %v14845_v52  ;;  %8918 = vmatmul.bf16.vlgmr.msrb.gmra.mxu1 %v18211_v3  ;;  %v14820_v52 = vld [vmem:[%s16772_s27 + $0x2440] sm:$0xf] }
 0x280   : > { %8962 = vmatpush.bf16.msra.mxu1 %v14909_v46  ;;  %8931 = vmatmul.bf16.vlgmr.msrb.gmra.mxu2 %v18209_v38  ;;  %v14956_v46 = vld [vmem:[%s16772_s27 + $0x2550] sm:$0xf]  ;;  %v16482_v38 = vld [vmem:[%s16772_s27 + $0x26e4] sm:$0xf0] }
 0x281   : > { %8975 = vmatpush.bf16.msra.mxu2 %v14973_v17  ;;  %8944 = vmatmul.bf16.vlgmr.msrb.gmra.mxu3 %v18213_v14  ;;  %v14957_v33 = vor.u32 %v16432_v53, %v14956_v46  ;;  %v14884_v17 = vld [vmem:[%s16772_s27 + $0x24c0] sm:$0xf]  ;;  %v16412_v46 = vld [vmem:[%s16772_s27 + $0x24b4] sm:$0xf0]  ;;  %v14940_v53 = vld [vmem:[%s16772_s27 + $0x2530] sm:$0xf] }
 0x282   : > { %8988 = vmatpush.bf16.msra.mxu3 %v15037_v34  ;;  %v14821_v34 = vor.u32 %v16398_v16, %v14820_v52  ;;  %v14804_v16 = vld [vmem:[%s16772_s27 + $0x2420] sm:$0xf]  ;;  %v16498_v14 = vld [vmem:[%s16772_s27 + $0x2764] sm:$0xf0] }
 0x283   : > { %8950 = vmatpush.bf16.msra.mxu0 %v14837_v19  ;;  %v8711_v19 = vpop.f32.mrf.mxu1  ;;  %v8724_v52 = vpop.f32.mrf.mxu2 }
 0x284   : > { %8963 = vmatpush.bf16.msra.mxu1 %v14901_v30  ;;  %v14885_v30 = vor.u32 %v16414_v50, %v14884_v17  ;;  %v8712_v18 = vadd.f32 %v8711_v19, %v8699_v51  ;;  %v16394_v17 = vld [vmem:[%s16772_s27 + $0x2424] sm:$0xf0]  ;;  %v14868_v50 = vld [vmem:[%s16772_s27 + $0x24a0] sm:$0xf]  ;;  %v15005_v51 = vor.u32 %v16444_v23, %v15004_v31  ;;  %v8700_v19 = vpop.f32.mrf.mxu0  ;;  %v14988_v23 = vld [vmem:[%s16772_s27 + $0x2590] sm:$0xf] }
 0x285   : > { %8976 = vmatpush.bf16.msra.mxu2 %v14965_v12  ;;  %v14949_v12 = vor.u32 %v16430_v13, %v14948_v29  ;;  %v16410_v13 = vld [vmem:[%s16772_s27 + $0x24a4] sm:$0xf0]  ;;  %v16468_v19 = vld [vmem:[%s16772_s27 + $0x2674] sm:$0xf0] }
 0x286   : > { %8989 = vmatpush.bf16.msra.mxu3 %v15029_v25  ;;  %v15013_v25 = vor.u32 %v16446_v54, %v15012_v59  ;;  %v8725_v29 = vadd.f32 %v8724_v52, %v8712_v18  ;;  %v14805_v54 = vor.u32 %v16394_v17, %v14804_v16  ;;  %v14796_v18 = vld [vmem:[%s16772_s27 + $0x2410] sm:$0xf]  ;;  %v14788_v52 = vld [vmem:[%s16772_s27 + $0x2400] sm:$0xf]  ;;  %v16390_v16 = vld [vmem:[%s16772_s27 + $0x2404] sm:$0xf0] }
 0x287   : > { %8951 = vmatpush.bf16.msra.mxu0 %v14829_v49  ;;  %v14813_v49 = vor.u32 %v16396_v6, %v14812_v48  ;;  %v14869_v6 = vor.u32 %v16410_v13, %v14868_v50  ;;  %v16406_v13 = vld [vmem:[%s16772_s27 + $0x2484] sm:$0xf0] }
 0x288   : > { %8964 = vmatpush.bf16.msra.mxu1 %v14893_v24  ;;  %v14877_v24 = vor.u32 %v16412_v46, %v14876_v32  ;;  %v16392_v46 = vld [vmem:[%s16772_s27 + $0x2414] sm:$0xf0] }
 0x289   : > { %8977 = vmatpush.bf16.msra.mxu2 %v14957_v33  ;;  %v14941_v33 = vor.u32 %v16428_v56, %v14940_v53  ;;  %v14860_v53 = vld [vmem:[%s16772_s27 + $0x2490] sm:$0xf]  ;;  %v16408_v56 = vld [vmem:[%s16772_s27 + $0x2494] sm:$0xf0] }
 0x28a   : > { %8990 = vmatpush.bf16.msra.mxu3 %v15021_v47  ;;  %v14932_v47 = vld [vmem:[%s16772_s27 + $0x2520] sm:$0xf]  ;;  %v14861_v17 = vor.u32 %v16408_v56, %v14860_v53  ;;  %v16438_v53 = vld [vmem:[%s16772_s27 + $0x2584] sm:$0xf0] }
 0x28b   : > { %8952 = vmatpush.bf16.msra.mxu0 %v14821_v34  ;;  %v8737_v34 = vpop.f32.mrf.mxu3  ;;  %v8713_v48 = vpop.f32.mrf.mxu1  ;;  %v14933_v32 = vor.u32 %v16426_v2, %v14932_v47  ;;  %v14916_v47 = vld [vmem:[%s16772_s27 + $0x2500] sm:$0xf] }
 0x28c   : > { %8965 = vmatpush.bf16.msra.mxu1 %v14885_v30  ;;  %v18268_v59 = vadd.f32 %v8737_v34, %v8725_v29  ;;  %v14996_v30 = vld [vmem:[%s16772_s27 + $0x25a0] sm:$0xf]  ;;  %v8726_v2 = vpop.f32.mrf.mxu2  ;;  %v15100_v34 = vld [vmem:[%s16772_s27 + $0x2670] sm:$0xf] }
 0x28d   : > { %8978 = vmatpush.bf16.msra.mxu2 %v14949_v12  ;;  %v16442_v12 = vld [vmem:[%s16772_s27 + $0x25a4] sm:$0xf0]  ;;  %v14852_v29 = vld [vmem:[%s16772_s27 + $0x2480] sm:$0xf]  ;;  %v15228_v48 = vld [vmem:[%s16772_s27 + $0x2770] sm:$0xf] }
 0x28e   : > { %8991 = vmatpush.bf16.msra.mxu3 %v15013_v25  ;;  %v14924_v25 = vld [vmem:[%s16772_s27 + $0x2510] sm:$0xf]  ;;  %v14997_v31 = vor.u32 %v16442_v12, %v14996_v30  ;;  %v16484_v12 = vld [vmem:[%s16772_s27 + $0x26f4] sm:$0xf0]  ;;  %v14853_v56 = vor.u32 %v16406_v13, %v14852_v29 }
 0x28f   : > { %8953 = vmatpush.bf16.msra.mxu0 %v14813_v49  ;;  %v16424_v49 = vld [vmem:[%s16772_s27 + $0x2514] sm:$0xf0]  ;;  %v15164_v30 = vld [vmem:[%s16772_s27 + $0x26f0] sm:$0xf] }
 0x290   : > { %8966 = vmatpush.bf16.msra.mxu1 %v14877_v24  ;;  %v14797_v24 = vor.u32 %v16392_v46, %v14796_v18  ;;  %v14925_v50 = vor.u32 %v16424_v49, %v14924_v25  ;;  %v16500_v18 = vld [vmem:[%s16772_s27 + $0x2774] sm:$0xf0]  ;;  %v14980_v46 = vld [vmem:[%s16772_s27 + $0x2580] sm:$0xf]  ;;  %v15101_v49 = vor.u32 %v16468_v19, %v15100_v34  ;;  %v1609_v29 = vld [vmem:[#allocation1 + $0x12] sm:$0xff] }
 0x291   : > { %8979 = vmatpush.bf16.msra.mxu2 %v14941_v33  ;;  %v16440_v33 = vld [vmem:[%s16772_s27 + $0x2594] sm:$0xf0]  ;;  %v14981_v2 = vor.u32 %v16438_v53, %v14980_v46  ;;  %v15249_v19 = vld [vmem:[%s16772_s27 + $0x64] sm:$0xf]  ;;  %v15212_v53 = vld [vmem:[%s16772_s27 + $0x2750] sm:$0xf] }
 0x292   : > { %8992 = vmatpush.bf16.msra.mxu3 %v15005_v51  ;;  %v16422_v51 = vld [vmem:[%s16772_s27 + $0x2504] sm:$0xf0]  ;;  %v16480_v46 = vld [vmem:[%s16772_s27 + $0x26d4] sm:$0xf0] }
 0x293   : > { %8954 = vmatpush.bf16.msra.mxu0 %v14805_v54  ;;  %v14989_v54 = vor.u32 %v16440_v33, %v14988_v23  ;;  %v14917_v25 = vor.u32 %v16422_v51, %v14916_v47  ;;  %v15251_v23 = vld [vmem:[%s16772_s27 + $0x74] sm:$0xf]  ;;  %v10238_v33 = vld [vmem:[%s16772_s27 + $0x78] sm:$0xf0]  ;;  %v1608_v47 = vld [vmem:[#allocation1 + $0x9] sm:$0xff] }
 0x294   : > { %8967 = vmatpush.bf16.msra.mxu1 %v14869_v6  ;;  %v8739_v6 = vpop.f32.mrf.mxu3  ;;  %v10241_v13 = vor.u32 %v15251_v23, %v10238_v33  ;;  %v1610_v51 = vld [vmem:[#allocation1 + $0x1b] sm:$0xff]  ;;  %v15076_v33 = vld [vmem:[%s16772_s27 + $0x2640] sm:$0xf] }
 0x295   : > { %8980 = vmatpush.bf16.msra.mxu2 %v14933_v32  ;;  %v14789_v32 = vor.u32 %v16390_v16, %v14788_v52  ;;  %v15092_v52 = vld [vmem:[%s16772_s27 + $0x2660] sm:$0xf]  ;;  %v16466_v16 = vld [vmem:[%s16772_s27 + $0x2664] sm:$0xf0] }
 0x296   : > { %8993 = vmatpush.bf16.msra.mxu3 %v14997_v31  ;;  %v15165_v31 = vor.u32 %v16484_v12, %v15164_v30  ;;  %v15156_v6 = vld [vmem:[%s16772_s27 + $0x26e0] sm:$0xf]  ;;  %v15093_v34 = vor.u32 %v16466_v16, %v15092_v52  ;;  %v16478_v52 = vld [vmem:[%s16772_s27 + $0x26c4] sm:$0xf0] }
 0x297   : > { %8955 = vmatpush.bf16.msra.mxu0 %v14797_v24  ;;  %v15229_v24 = vor.u32 %v16500_v18, %v15228_v48  ;;  %v15157_v30 = vor.u32 %v16482_v38, %v15156_v6  ;;  %v15084_v48 = vld [vmem:[%s16772_s27 + $0x2650] sm:$0xf]  ;;  %v15204_v16 = vld [vmem:[%s16772_s27 + $0x2740] sm:$0xf]  ;;  %v16494_v6 = vld [vmem:[%s16772_s27 + $0x2744] sm:$0xf0] }
 0x298   : > { %8968 = vmatpush.bf16.msra.mxu1 %v14861_v17  ;;  %v15220_v17 = vld [vmem:[%s16772_s27 + $0x2760] sm:$0xf]  ;;  %v15148_v18 = vld [vmem:[%s16772_s27 + $0x26d0] sm:$0xf] }
 0x299   : > { %8981 = vmatpush.bf16.msra.mxu2 %v14925_v50  ;;  %v1607_v50 = vld [vmem:[#allocation1] sm:$0xff]  ;;  %v15221_v12 = vor.u32 %v16498_v14, %v15220_v17 }
 0x29a   : > { %8994 = vmatpush.bf16.msra.mxu3 %v14989_v54  ;;  %v10230_v54 = vld [vmem:[%s16772_s27 + $0x68] sm:$0xf0] }
 0x29b   : > { %8956 = vmatpush.bf16.msra.mxu0 %v14789_v32  ;;  %v16464_v32 = vld [vmem:[%s16772_s27 + $0x2654] sm:$0xf0]  ;;  %v10233_v38 = vor.u32 %v15249_v19, %v10230_v54  ;;  %v15205_v54 = vor.u32 %v16494_v6, %v15204_v16  ;;  %v15188_v16 = vld [vmem:[%s16772_s27 + $0x2720] sm:$0xf]  ;;  %v16490_v6 = vld [vmem:[%s16772_s27 + $0x2724] sm:$0xf0] }
 0x29c   : > { %8969 = vmatpush.bf16.msra.mxu1 %v14853_v56  ;;  %v16496_v56 = vld [vmem:[%s16772_s27 + $0x2754] sm:$0xf0]  ;;  %v15085_v14 = vor.u32 %v16464_v32, %v15084_v48  ;;  %v15132_v48 = vld [vmem:[%s16772_s27 + $0x26b0] sm:$0xf] }
 0x29d   : > { %8982 = vmatpush.bf16.msra.mxu2 %v14917_v25  ;;  %v15247_v25 = vld [vmem:[%s16772_s27 + $0x54] sm:$0xf]  ;;  %v15213_v23 = vor.u32 %v16496_v56, %v15212_v53 }
 0x29e   : > { %8995 = vmatpush.bf16.msra.mxu3 %v14981_v2  ;;  %8957 = vmatmul.bf16.vlgmr.msra.gmra.mxu0 %v1607_v50  ;;  %v15140_v2 = vld [vmem:[%s16772_s27 + $0x26c0] sm:$0xf]  ;;  %v8750_v50 = vpop.f32.mrf.mxu0 }
 0x29f   : > { %9001 = vmatpush.bf16.msrb.mxu0 %v15101_v49  ;;  %8970 = vmatmul.bf16.vlgmr.msra.gmra.mxu1 %v1608_v47  ;;  %v10222_v49 = vld [vmem:[%s16772_s27 + $0x58] sm:$0xf0]  ;;  %v8763_v47 = vpop.f32.mrf.mxu1  ;;  %v15141_v19 = vor.u32 %v16478_v52, %v15140_v2  ;;  %v16474_v52 = vld [vmem:[%s16772_s27 + $0x26a4] sm:$0xf0] }
 0x2a0   : > { %9014 = vmatpush.bf16.msrb.mxu1 %v15165_v31  ;;  %8983 = vmatmul.bf16.vlgmr.msra.gmra.mxu2 %v1609_v29  ;;  %v15149_v31 = vor.u32 %v16480_v46, %v15148_v18  ;;  %v10225_v17 = vor.u32 %v15247_v25, %v10222_v49  ;;  %v8751_v29 = vadd.f32 %v8750_v50, %v18268_v59  ;;  %v16476_v18 = vld [vmem:[%s16772_s27 + $0x26b4] sm:$0xf0]  ;;  %v15196_v46 = vld [vmem:[%s16772_s27 + $0x2730] sm:$0xf] }
 0x2a1   : > { %9027 = vmatpush.bf16.msrb.mxu2 %v15229_v24  ;;  %8996 = vmatmul.bf16.vlgmr.msra.gmra.mxu3 %v1610_v51  ;;  %v16462_v24 = vld [vmem:[%s16772_s27 + $0x2644] sm:$0xf0]  ;;  %v15245_v51 = vld [vmem:[%s16772_s27 + $0x44] sm:$0xf]  ;;  %v16492_v59 = vld [vmem:[%s16772_s27 + $0x2734] sm:$0xf0]  ;;  %v15133_v25 = vor.u32 %v16476_v18, %v15132_v48 }
 0x2a2   : > { %9040 = vmatpush.bf16.msrb.mxu3 %v10241_v13  ;;  %v15077_v13 = vor.u32 %v16462_v24, %v15076_v33  ;;  %v8764_v32 = vadd.f32 %v8763_v47, %v8751_v29  ;;  %v15197_v49 = vor.u32 %v16492_v59, %v15196_v46  ;;  %v16458_v33 = vld [vmem:[%s16772_s27 + $0x2624] sm:$0xf0]  ;;  %v15124_v24 = vld [vmem:[%s16772_s27 + $0x26a0] sm:$0xf]  ;;  %v16456_v48 = vld [vmem:[%s16772_s27 + $0x2614] sm:$0xf0] }
 0x2a3   : > { %9002 = vmatpush.bf16.msrb.mxu0 %v15093_v34  ;;  %v10214_v34 = vld [vmem:[%s16772_s27 + $0x48] sm:$0xf0]  ;;  %v16472_v18 = vld [vmem:[%s16772_s27 + $0x2694] sm:$0xf0]  ;;  %v15180_v46 = vld [vmem:[%s16772_s27 + $0x2710] sm:$0xf] }
 0x2a4   : > { %9015 = vmatpush.bf16.msrb.mxu1 %v15157_v30  ;;  %v15068_v30 = vld [vmem:[%s16772_s27 + $0x2630] sm:$0xf]  ;;  %v10217_v53 = vor.u32 %v15245_v51, %v10214_v34  ;;  %v8789_v50 = vpop.f32.mrf.mxu3  ;;  %v15241_v51 = vld [vmem:[%s16772_s27 + $0x24] sm:$0xf]  ;;  %v10198_v34 = vld [vmem:[%s16772_s27 + $0x28] sm:$0xf0] }
 0x2a5   : > { %9028 = vmatpush.bf16.msrb.mxu2 %v15221_v12  ;;  %v16460_v12 = vld [vmem:[%s16772_s27 + $0x2634] sm:$0xf0] }
 0x2a6   : > { %9041 = vmatpush.bf16.msrb.mxu3 %v10233_v38  ;;  %v15069_v56 = vor.u32 %v16460_v12, %v15068_v30  ;;  %v15243_v38 = vld [vmem:[%s16772_s27 + $0x34] sm:$0xf]  ;;  %v8752_v29 = vpop.f32.mrf.mxu0  ;;  %v15189_v30 = vor.u32 %v16490_v6, %v15188_v16  ;;  %v15052_v12 = vld [vmem:[%s16772_s27 + $0x2610] sm:$0xf]  ;;  %v16488_v59 = vld [vmem:[%s16772_s27 + $0x2714] sm:$0xf0] }
 0x2a7   : > { %9003 = vmatpush.bf16.msrb.mxu0 %v15085_v14  ;;  %v10206_v14 = vld [vmem:[%s16772_s27 + $0x38] sm:$0xf0]  ;;  %v16486_v16 = vld [vmem:[%s16772_s27 + $0x2704] sm:$0xf0]  ;;  %v15267_v6 = vld [vmem:[%s16772_s27 + $0xf4] sm:$0xf] }
 0x2a8   : > { %9016 = vmatpush.bf16.msrb.mxu1 %v15149_v31  ;;  %v8776_v31 = vpop.f32.mrf.mxu2  ;;  %v15283_v29 = vld [vmem:[%s16772_s27 + $0x174] sm:$0xf] }
 0x2a9   : > { %9029 = vmatpush.bf16.msrb.mxu2 %v15213_v23  ;;  %v15060_v23 = vld [vmem:[%s16772_s27 + $0x2620] sm:$0xf]  ;;  %v8777_v2 = vadd.f32 %v8776_v31, %v8764_v32  ;;  %v15116_v32 = vld [vmem:[%s16772_s27 + $0x2690] sm:$0xf] }
 0x2aa   : > { %9042 = vmatpush.bf16.msrb.mxu3 %v10225_v17  ;;  %v10209_v17 = vor.u32 %v15243_v38, %v10206_v14  ;;  %v15061_v47 = vor.u32 %v16458_v33, %v15060_v23  ;;  %v15053_v38 = vor.u32 %v16456_v48, %v15052_v12  ;;  %v10190_v14 = vld [vmem:[%s16772_s27 + $0x18] sm:$0xf0]  ;;  %v15117_v31 = vor.u32 %v16472_v18, %v15116_v32  ;;  %v15108_v33 = vld [vmem:[%s16772_s27 + $0x2680] sm:$0xf]  ;;  %v10182_v12 = vld [vmem:[%s16772_s27 + $0x8] sm:$0xf0] }
 0x2ab   : > { %9004 = vmatpush.bf16.msrb.mxu0 %v15077_v13  ;;  %v18335_v13 = vadd.f32 %v8789_v50, %v8777_v2  ;;  %v15181_v23 = vor.u32 %v16488_v59, %v15180_v46  ;;  %v15172_v2 = vld [vmem:[%s16772_s27 + $0x2700] sm:$0xf]  ;;  %v15315_v59 = vld [vmem:[%s16772_s27 + $0x274] sm:$0xf] }
 0x2ac   : > { %9017 = vmatpush.bf16.msrb.mxu1 %v15141_v19  ;;  %v8765_v19 = vpop.f32.mrf.mxu1  ;;  %v15173_v32 = vor.u32 %v16486_v16, %v15172_v2  ;;  %v1612_v16 = vld [vmem:[#allocation1 + $0x2d] sm:$0xff] }
 0x2ad   : > { %9030 = vmatpush.bf16.msrb.mxu2 %v15205_v54  ;;  %v15125_v54 = vor.u32 %v16474_v52, %v15124_v24  ;;  %v16470_v24 = vld [vmem:[%s16772_s27 + $0x2684] sm:$0xf0] }
 0x2ae   : > { %9043 = vmatpush.bf16.msrb.mxu3 %v10217_v53  ;;  %v10201_v53 = vor.u32 %v15241_v51, %v10198_v34  ;;  %v15299_v51 = vld [vmem:[%s16772_s27 + $0x1f4] sm:$0xf]  ;;  %v8791_v34 = vpop.f32.mrf.mxu3  ;;  %v15109_v48 = vor.u32 %v16470_v24, %v15108_v33  ;;  %v1611_v33 = vld [vmem:[#allocation1 + $0x24] sm:$0xff] }
 0x2af   : > { %9005 = vmatpush.bf16.msrb.mxu0 %v15069_v56  ;;  %v15239_v56 = vld [vmem:[%s16772_s27 + $0x14] sm:$0xf]  ;;  %v10286_v34 = vld [vmem:[%s16772_s27 + $0xd8] sm:$0xf0] }
 0x2b0   : > { %9018 = vmatpush.bf16.msrb.mxu1 %v15133_v25  ;;  %v15044_v25 = vld [vmem:[%s16772_s27 + $0x2600] sm:$0xf]  ;;  %v8778_v52 = vpop.f32.mrf.mxu2  ;;  %v10193_v50 = vor.u32 %v15239_v56, %v10190_v14  ;;  %v15265_v56 = vld [vmem:[%s16772_s27 + $0xe4] sm:$0xf]  ;;  %v1613_v24 = vld [vmem:[#allocation1 + $0x36] sm:$0xff] }
 0x2b1   : > { %9031 = vmatpush.bf16.msrb.mxu2 %v15197_v49  ;;  %v16454_v49 = vld [vmem:[%s16772_s27 + $0x2604] sm:$0xf0]  ;;  %v10358_v52 = vld [vmem:[%s16772_s27 + $0x168] sm:$0xf0] }
 0x2b2   : > { %9044 = vmatpush.bf16.msrb.mxu3 %v10209_v17  ;;  %v10302_v17 = vld [vmem:[%s16772_s27 + $0xf8] sm:$0xf0]  ;;  %v15045_v19 = vor.u32 %v16454_v49, %v15044_v25  ;;  %v10294_v25 = vld [vmem:[%s16772_s27 + $0xe8] sm:$0xf0]  ;;  %v15281_v49 = vld [vmem:[%s16772_s27 + $0x164] sm:$0xf] }
 0x2b3   : > { %9006 = vmatpush.bf16.msrb.mxu0 %v15061_v47  ;;  %v10366_v47 = vld [vmem:[%s16772_s27 + $0x178] sm:$0xf0]  ;;  %v10305_v18 = vor.u32 %v15267_v6, %v10302_v17  ;;  %v10297_v6 = vor.u32 %v15265_v56, %v10294_v25  ;;  %v10361_v17 = vor.u32 %v15281_v49, %v10358_v52  ;;  %v10342_v25 = vld [vmem:[%s16772_s27 + $0x148] sm:$0xf0]  ;;  %v15293_v49 = vld [vmem:[%s16772_s27 + $0x1c4] sm:$0xf] }
 0x2b4   : > { %9019 = vmatpush.bf16.msrb.mxu1 %v15125_v54  ;;  %v10430_v54 = vld [vmem:[%s16772_s27 + $0x1f8] sm:$0xf0]  ;;  %v10369_v46 = vor.u32 %v15283_v29, %v10366_v47  ;;  %v10486_v29 = vld [vmem:[%s16772_s27 + $0x268] sm:$0xf0]  ;;  %v15263_v47 = vld [vmem:[%s16772_s27 + $0xd4] sm:$0xf] }
 0x2b5   : > { %9032 = vmatpush.bf16.msrb.mxu2 %v15189_v30  ;;  %v15237_v30 = vld [vmem:[%s16772_s27 + $0x4] sm:$0xf]  ;;  %v10406_v52 = vld [vmem:[%s16772_s27 + $0x1c8] sm:$0xf0] }
 0x2b6   : > { %9045 = vmatpush.bf16.msrb.mxu3 %v10201_v53  ;;  %v10494_v53 = vld [vmem:[%s16772_s27 + $0x278] sm:$0xf0]  ;;  %v10185_v14 = vor.u32 %v15237_v30, %v10182_v12  ;;  %v15295_v30 = vld [vmem:[%s16772_s27 + $0x1d4] sm:$0xf] }
 0x2b7   : > { %9007 = vmatpush.bf16.msrb.mxu0 %v15053_v38  ;;  %v10433_v38 = vor.u32 %v15299_v51, %v10430_v54  ;;  %v10497_v2 = vor.u32 %v15315_v59, %v10494_v53  ;;  %v10350_v54 = vld [vmem:[%s16772_s27 + $0x158] sm:$0xf0]  ;;  %v15261_v53 = vld [vmem:[%s16772_s27 + $0xc4] sm:$0xf] }
 0x2b8   : > { %9020 = vmatpush.bf16.msrb.mxu1 %v15117_v31  ;;  %v15297_v31 = vld [vmem:[%s16772_s27 + $0x1e4] sm:$0xf]  ;;  %v10414_v12 = vld [vmem:[%s16772_s27 + $0x1d8] sm:$0xf0] }
 0x2b9   : > { %9033 = vmatpush.bf16.msrb.mxu2 %v15181_v23  ;;  %v10422_v23 = vld [vmem:[%s16772_s27 + $0x1e8] sm:$0xf0]  ;;  %v10478_v59 = vld [vmem:[%s16772_s27 + $0x258] sm:$0xf0]  ;;  %v10417_v56 = vor.u32 %v15295_v30, %v10414_v12 }
 0x2ba   : > { %9046 = vmatpush.bf16.msrb.mxu3 %v10193_v50  ;;  %v15313_v50 = vld [vmem:[%s16772_s27 + $0x264] sm:$0xf]  ;;  %v10425_v51 = vor.u32 %v15297_v31, %v10422_v23 }
 0x2bb   : > { %9008 = vmatpush.bf16.msrb.mxu0 %v15045_v19  ;;  %v15279_v19 = vld [vmem:[%s16772_s27 + $0x154] sm:$0xf]  ;;  %v8802_v23 = vpop.f32.mrf.mxu0 }
 0x2bc   : > { %9021 = vmatpush.bf16.msrb.mxu1 %v15109_v48  ;;  %v10489_v48 = vor.u32 %v15313_v50, %v10486_v29  ;;  %v10409_v50 = vor.u32 %v15293_v49, %v10406_v52  ;;  %v10270_v29 = vld [vmem:[%s16772_s27 + $0xb8] sm:$0xf0]  ;;  %v10390_v49 = vld [vmem:[%s16772_s27 + $0x1a8] sm:$0xf0] }
 0x2bd   : > { %9034 = vmatpush.bf16.msrb.mxu2 %v15173_v32  ;;  %v10289_v32 = vor.u32 %v15263_v47, %v10286_v34  ;;  %v15275_v47 = vld [vmem:[%s16772_s27 + $0x134] sm:$0xf] }
 0x2be   : > { %9047 = vmatpush.bf16.msrb.mxu3 %v10185_v14  ;;  %9009 = vmatmul.bf16.vlgmr.msrb.gmra.mxu0 %v1611_v33  ;;  %v15277_v14 = vld [vmem:[%s16772_s27 + $0x144] sm:$0xf]  ;;  %v8803_v33 = vadd.f32 %v8802_v23, %v18335_v13  ;;  %v10398_v13 = vld [vmem:[%s16772_s27 + $0x1b8] sm:$0xf0] }
 0x2bf   : > { %9053 = vmatpush.bf16.msra.mxu0 %v10305_v18  ;;  %9022 = vmatmul.bf16.vlgmr.msrb.gmra.mxu1 %v1612_v16  ;;  %v10353_v18 = vor.u32 %v15279_v19, %v10350_v54  ;;  %v8815_v16 = vpop.f32.mrf.mxu1  ;;  %v15291_v19 = vld [vmem:[%s16772_s27 + $0x1b4] sm:$0xf] }
 0x2c0   : > { %9066 = vmatpush.bf16.msra.mxu1 %v10369_v46  ;;  %9035 = vmatmul.bf16.vlgmr.msrb.gmra.mxu2 %v1613_v24  ;;  %v15311_v46 = vld [vmem:[%s16772_s27 + $0x254] sm:$0xf]  ;;  %v8816_v34 = vadd.f32 %v8815_v16, %v8803_v33  ;;  %v15305_v16 = vld [vmem:[%s16772_s27 + $0x224] sm:$0xf] }
 0x2c1   : > { %9079 = vmatpush.bf16.msra.mxu2 %v10433_v38  ;;  %v10278_v38 = vld [vmem:[%s16772_s27 + $0xc8] sm:$0xf0]  ;;  %9048 = vmatmul.bf16.vlgmr.msrb.gmra.mxu3 %v16889_v21  ;;  %v10481_v31 = vor.u32 %v15311_v46, %v10478_v59  ;;  %v15259_v21 = vld [vmem:[%s16772_s27 + $0xb4] sm:$0xf]  ;;  %v10401_v46 = vor.u32 %v15291_v19, %v10398_v13  ;;  %v10382_v19 = vld [vmem:[%s16772_s27 + $0x198] sm:$0xf0] }
 0x2c2   : > { %9092 = vmatpush.bf16.msra.mxu3 %v10497_v2  ;;  %v10281_v24 = vor.u32 %v15261_v53, %v10278_v38  ;;  %v10345_v2 = vor.u32 %v15277_v14, %v10342_v25  ;;  %v10273_v30 = vor.u32 %v15259_v21, %v10270_v29  ;;  %v10262_v53 = vld [vmem:[%s16772_s27 + $0xa8] sm:$0xf0]  ;;  %v15289_v25 = vld [vmem:[%s16772_s27 + $0x1a4] sm:$0xf]  ;;  %v10254_v29 = vld [vmem:[%s16772_s27 + $0x98] sm:$0xf0] }
 0x2c3   : > { %9054 = vmatpush.bf16.msra.mxu0 %v10297_v6  ;;  %v15309_v6 = vld [vmem:[%s16772_s27 + $0x244] sm:$0xf]  ;;  %v8828_v59 = vpop.f32.mrf.mxu2  ;;  %v10326_v38 = vld [vmem:[%s16772_s27 + $0x128] sm:$0xf0]  ;;  %v8804_v23 = vpop.f32.mrf.mxu0 }
 0x2c4   : > { %9067 = vmatpush.bf16.msra.mxu1 %v10361_v17  ;;  %v10470_v17 = vld [vmem:[%s16772_s27 + $0x248] sm:$0xf0]  ;;  %v8829_v14 = vadd.f32 %v8828_v59, %v8816_v34  ;;  %v15287_v34 = vld [vmem:[%s16772_s27 + $0x194] sm:$0xf]  ;;  %v10622_v23 = vld [vmem:[%s16772_s27 + $0x378] sm:$0xf0] }
 0x2c5   : > { %9080 = vmatpush.bf16.msra.mxu2 %v10425_v51  ;;  %v10334_v51 = vld [vmem:[%s16772_s27 + $0x138] sm:$0xf0]  ;;  %v10473_v54 = vor.u32 %v15309_v6, %v10470_v17  ;;  %v10454_v6 = vld [vmem:[%s16772_s27 + $0x228] sm:$0xf0]  ;;  %v15255_v17 = vld [vmem:[%s16772_s27 + $0x94] sm:$0xf]  ;;  %v10385_v59 = vor.u32 %v15287_v34, %v10382_v19 }
 0x2c6   : > { %9093 = vmatpush.bf16.msra.mxu3 %v10489_v48  ;;  %v10337_v12 = vor.u32 %v15275_v47, %v10334_v51  ;;  %v15307_v48 = vld [vmem:[%s16772_s27 + $0x234] sm:$0xf]  ;;  %v10318_v51 = vld [vmem:[%s16772_s27 + $0x118] sm:$0xf0]  ;;  %v10457_v13 = vor.u32 %v15305_v16, %v10454_v6 }
 0x2c7   : > { %9055 = vmatpush.bf16.msra.mxu0 %v10289_v32  ;;  %v10462_v32 = vld [vmem:[%s16772_s27 + $0x238] sm:$0xf0]  ;;  %v8817_v21 = vpop.f32.mrf.mxu1  ;;  %v15271_v47 = vld [vmem:[%s16772_s27 + $0x114] sm:$0xf] }
 0x2c8   : > { %9068 = vmatpush.bf16.msra.mxu1 %v10353_v18  ;;  %v15257_v18 = vld [vmem:[%s16772_s27 + $0xa4] sm:$0xf]  ;;  %v10465_v52 = vor.u32 %v15307_v48, %v10462_v32  ;;  %v10321_v48 = vor.u32 %v15271_v47, %v10318_v51  ;;  %v15379_v51 = vld [vmem:[%s16772_s27 + $0x474] sm:$0xf]  ;;  %v10750_v34 = vld [vmem:[%s16772_s27 + $0x478] sm:$0xf0] }
 0x2c9   : > { %9081 = vmatpush.bf16.msra.mxu2 %v10417_v56  ;;  %v15273_v56 = vld [vmem:[%s16772_s27 + $0x124] sm:$0xf] }
 0x2ca   : > { %9094 = vmatpush.bf16.msra.mxu3 %v10481_v31  ;;  %v8841_v31 = vpop.f32.mrf.mxu3  ;;  %v15253_v32 = vld [vmem:[%s16772_s27 + $0x84] sm:$0xf] }
 0x2cb   : > { %9056 = vmatpush.bf16.msra.mxu0 %v10281_v24  ;;  %v18403_v33 = vadd.f32 %v8841_v31, %v8829_v14  ;;  %v10265_v24 = vor.u32 %v15257_v18, %v10262_v53  ;;  %v10246_v18 = vld [vmem:[%s16772_s27 + $0x88] sm:$0xf0]  ;;  %v8830_v14 = vpop.f32.mrf.mxu2  ;;  %v15301_v21 = vld [vmem:[%s16772_s27 + $0x204] sm:$0xf] }
 0x2cc   : > { %9069 = vmatpush.bf16.msra.mxu1 %v10345_v2  ;;  %v10329_v2 = vor.u32 %v15273_v56, %v10326_v38  ;;  %v10310_v53 = vld [vmem:[%s16772_s27 + $0x108] sm:$0xf0]  ;;  %v15285_v56 = vld [vmem:[%s16772_s27 + $0x184] sm:$0xf]  ;;  %v10249_v6 = vor.u32 %v15253_v32, %v10246_v18 }
 0x2cd   : > { %9082 = vmatpush.bf16.msra.mxu2 %v10409_v50  ;;  %v10393_v50 = vor.u32 %v15289_v25, %v10390_v49  ;;  %v10374_v38 = vld [vmem:[%s16772_s27 + $0x188] sm:$0xf0]  ;;  %v15331_v25 = vld [vmem:[%s16772_s27 + $0x2f4] sm:$0xf]  ;;  %v10558_v49 = vld [vmem:[%s16772_s27 + $0x2f8] sm:$0xf0] }
 0x2ce   : > { %9095 = vmatpush.bf16.msra.mxu3 %v10473_v54  ;;  %v15303_v54 = vld [vmem:[%s16772_s27 + $0x214] sm:$0xf]  ;;  %v10561_v47 = vor.u32 %v15331_v25, %v10558_v49  ;;  %v10614_v32 = vld [vmem:[%s16772_s27 + $0x368] sm:$0xf0]  ;;  %v15361_v18 = vld [vmem:[%s16772_s27 + $0x3e4] sm:$0xf] }
 0x2cf   : > { %9057 = vmatpush.bf16.msra.mxu0 %v10273_v30  ;;  %v10446_v30 = vld [vmem:[%s16772_s27 + $0x218] sm:$0xf0]  ;;  %v15327_v49 = vld [vmem:[%s16772_s27 + $0x2d4] sm:$0xf] }
 0x2d0   : > { %9070 = vmatpush.bf16.msra.mxu1 %v10337_v12  ;;  %v10257_v12 = vor.u32 %v15255_v17, %v10254_v29  ;;  %v10449_v31 = vor.u32 %v15303_v54, %v10446_v30  ;;  %v10377_v29 = vor.u32 %v15285_v56, %v10374_v38  ;;  %v15329_v54 = vld [vmem:[%s16772_s27 + $0x2e4] sm:$0xf]  ;;  %v10550_v30 = vld [vmem:[%s16772_s27 + $0x2e8] sm:$0xf0] }
 0x2d1   : > { %9083 = vmatpush.bf16.msra.mxu2 %v10401_v46  ;;  %v15269_v46 = vld [vmem:[%s16772_s27 + $0x104] sm:$0xf]  ;;  %v10742_v38 = vld [vmem:[%s16772_s27 + $0x468] sm:$0xf0] }
 0x2d2   : > { %9096 = vmatpush.bf16.msra.mxu3 %v10465_v52  ;;  %v15347_v52 = vld [vmem:[%s16772_s27 + $0x374] sm:$0xf]  ;;  %v8843_v16 = vpop.f32.mrf.mxu3  ;;  %v10313_v17 = vor.u32 %v15269_v46, %v10310_v53  ;;  %v10678_v46 = vld [vmem:[%s16772_s27 + $0x3e8] sm:$0xf0]  ;;  %v10553_v53 = vor.u32 %v15329_v54, %v10550_v30  ;;  %v15377_v56 = vld [vmem:[%s16772_s27 + $0x464] sm:$0xf] }
 0x2d3   : > { %9058 = vmatpush.bf16.msra.mxu0 %v10265_v24  ;;  %v15363_v24 = vld [vmem:[%s16772_s27 + $0x3f4] sm:$0xf]  ;;  %v10625_v19 = vor.u32 %v15347_v52, %v10622_v23  ;;  %v10681_v25 = vor.u32 %v15361_v18, %v10678_v46  ;;  %v10542_v52 = vld [vmem:[%s16772_s27 + $0x2d8] sm:$0xf0]  ;;  %v10745_v16 = vor.u32 %v15377_v56, %v10742_v38  ;;  %v15373_v30 = vld [vmem:[%s16772_s27 + $0x444] sm:$0xf] }
 0x2d4   : > { %9071 = vmatpush.bf16.msra.mxu1 %v10329_v2  ;;  %v10686_v2 = vld [vmem:[%s16772_s27 + $0x3f8] sm:$0xf0]  ;;  %v15323_v46 = vld [vmem:[%s16772_s27 + $0x2b4] sm:$0xf] }
 0x2d5   : > { %9084 = vmatpush.bf16.msra.mxu2 %v10393_v50  ;;  %v10438_v50 = vld [vmem:[%s16772_s27 + $0x208] sm:$0xf0]  ;;  %v10606_v23 = vld [vmem:[%s16772_s27 + $0x358] sm:$0xf0]  ;;  %v15355_v38 = vld [vmem:[%s16772_s27 + $0x3b4] sm:$0xf] }
 0x2d6   : > { %9097 = vmatpush.bf16.msra.mxu3 %v10457_v13  ;;  %v10689_v13 = vor.u32 %v15363_v24, %v10686_v2  ;;  %v15359_v24 = vld [vmem:[%s16772_s27 + $0x3d4] sm:$0xf]  ;;  %v10670_v2 = vld [vmem:[%s16772_s27 + $0x3d8] sm:$0xf0] }
 0x2d7   : > { %9059 = vmatpush.bf16.msra.mxu0 %v10257_v12  ;;  %v15345_v12 = vld [vmem:[%s16772_s27 + $0x364] sm:$0xf]  ;;  %v10590_v56 = vld [vmem:[%s16772_s27 + $0x338] sm:$0xf0] }
 0x2d8   : > { %9072 = vmatpush.bf16.msra.mxu1 %v10321_v48  ;;  %v10441_v48 = vor.u32 %v15301_v21, %v10438_v50  ;;  %v10617_v14 = vor.u32 %v15345_v12, %v10614_v32  ;;  %v10734_v21 = vld [vmem:[%s16772_s27 + $0x458] sm:$0xf0]  ;;  %v10726_v12 = vld [vmem:[%s16772_s27 + $0x448] sm:$0xf0] }
 0x2d9   : > { %9085 = vmatpush.bf16.msra.mxu2 %v10385_v59  ;;  %v10753_v59 = vor.u32 %v15379_v51, %v10750_v34  ;;  %v15341_v51 = vld [vmem:[%s16772_s27 + $0x344] sm:$0xf]  ;;  %v10598_v34 = vld [vmem:[%s16772_s27 + $0x348] sm:$0xf0] }
 0x2da   : > { %9098 = vmatpush.bf16.msra.mxu3 %v10449_v31  ;;  %v15343_v31 = vld [vmem:[%s16772_s27 + $0x354] sm:$0xf]  ;;  %v10601_v32 = vor.u32 %v15341_v51, %v10598_v34 }
 0x2db   : > { %9060 = vmatpush.bf16.msra.mxu0 %v10249_v6  ;;  %v10545_v6 = vor.u32 %v15327_v49, %v10542_v52  ;;  %v10609_v50 = vor.u32 %v15343_v31, %v10606_v23  ;;  %v10729_v49 = vor.u32 %v15373_v30, %v10726_v12  ;;  %v15371_v52 = vld [vmem:[%s16772_s27 + $0x434] sm:$0xf]  ;;  %v10718_v31 = vld [vmem:[%s16772_s27 + $0x438] sm:$0xf0] }
 0x2dc   : > { %9073 = vmatpush.bf16.msra.mxu1 %v10313_v17  ;;  %v15375_v17 = vld [vmem:[%s16772_s27 + $0x454] sm:$0xf] }
 0x2dd   : > { %9086 = vmatpush.bf16.msra.mxu2 %v10377_v29  ;;  %v10673_v29 = vor.u32 %v15359_v24, %v10670_v2  ;;  %v15321_v2 = vld [vmem:[%s16772_s27 + $0x2a4] sm:$0xf]  ;;  %v15319_v12 = vld [vmem:[%s16772_s27 + $0x294] sm:$0xf] }
 0x2de   : > { %9099 = vmatpush.bf16.msra.mxu3 %v10441_v48  ;;  %9061 = vmatmul.bf16.vlgmr.msra.gmra.mxu0 %v16896_v26  ;;  %v15325_v26 = vld [vmem:[%s16772_s27 + $0x2c4] sm:$0xf] }
 0x2df   : > { %9105 = vmatpush.bf16.msrb.mxu0 %v10561_v47  ;;  %9074 = vmatmul.bf16.vlgmr.msra.gmra.mxu1 %v16887_v20  ;;  %v10534_v47 = vld [vmem:[%s16772_s27 + $0x2c8] sm:$0xf0]  ;;  %v10737_v20 = vor.u32 %v15375_v17, %v10734_v21 }
 0x2e0   : > { %9118 = vmatpush.bf16.msrb.mxu1 %v10625_v19  ;;  %9087 = vmatmul.bf16.vlgmr.msra.gmra.mxu2 %v16891_v22  ;;  %v15357_v19 = vld [vmem:[%s16772_s27 + $0x3c4] sm:$0xf]  ;;  %v8854_v22 = vpop.f32.mrf.mxu0  ;;  %v10537_v54 = vor.u32 %v15325_v26, %v10534_v47  ;;  %v10582_v21 = vld [vmem:[%s16772_s27 + $0x328] sm:$0xf0]  ;;  %v10721_v47 = vor.u32 %v15371_v52, %v10718_v31 }
 0x2e1   : > { %9131 = vmatpush.bf16.msrb.mxu2 %v10689_v13  ;;  %v10662_v13 = vld [vmem:[%s16772_s27 + $0x3c8] sm:$0xf0]  ;;  %9100 = vmatmul.bf16.vlgmr.msra.gmra.mxu3 %v16943_v28  ;;  %v8855_v48 = vadd.f32 %v8854_v22, %v18403_v33  ;;  %v8867_v28 = vpop.f32.mrf.mxu1  ;;  %v15333_v31 = vld [vmem:[%s16772_s27 + $0x304] sm:$0xf] }
 0x2e2   : > { %9144 = vmatpush.bf16.msrb.mxu3 %v10753_v59  ;;  %v10665_v18 = vor.u32 %v15357_v19, %v10662_v13  ;;  %v10526_v59 = vld [vmem:[%s16772_s27 + $0x2b8] sm:$0xf0]  ;;  %v15369_v19 = vld [vmem:[%s16772_s27 + $0x424] sm:$0xf]  ;;  %v10710_v13 = vld [vmem:[%s16772_s27 + $0x428] sm:$0xf0] }
 0x2e3   : > { %9106 = vmatpush.bf16.msrb.mxu0 %v10553_v53  ;;  %v15339_v53 = vld [vmem:[%s16772_s27 + $0x334] sm:$0xf]  ;;  %v10529_v33 = vor.u32 %v15323_v46, %v10526_v59  ;;  %v8880_v17 = vpop.f32.mrf.mxu2  ;;  %v10638_v59 = vld [vmem:[%s16772_s27 + $0x398] sm:$0xf0] }
 0x2e4   : > { %9119 = vmatpush.bf16.msrb.mxu1 %v10617_v14  ;;  %v10654_v14 = vld [vmem:[%s16772_s27 + $0x3b8] sm:$0xf0]  ;;  %v10593_v23 = vor.u32 %v15339_v53, %v10590_v56  ;;  %v8893_v51 = vpop.f32.mrf.mxu3  ;;  %v15351_v46 = vld [vmem:[%s16772_s27 + $0x394] sm:$0xf]  ;;  %v10713_v53 = vor.u32 %v15369_v19, %v10710_v13  ;;  %v10694_v19 = vld [vmem:[%s16772_s27 + $0x408] sm:$0xf0] }
 0x2e5   : > { %9132 = vmatpush.bf16.msrb.mxu2 %v10681_v25  ;;  %v8868_v25 = vadd.f32 %v8867_v28, %v8855_v48  ;;  %v10657_v24 = vor.u32 %v15355_v38, %v10654_v14  ;;  %v10510_v48 = vld [vmem:[%s16772_s27 + $0x298] sm:$0xf0]  ;;  %v15367_v56 = vld [vmem:[%s16772_s27 + $0x414] sm:$0xf]  ;;  %v10641_v52 = vor.u32 %v15351_v46, %v10638_v59  ;;  %v10806_v59 = vld [vmem:[%s16772_s27 + $0x4e8] sm:$0xf0] }
 0x2e6   : > { %9145 = vmatpush.bf16.msrb.mxu3 %v10745_v16  ;;  %v10518_v16 = vld [vmem:[%s16772_s27 + $0x2a8] sm:$0xf0]  ;;  %v10574_v28 = vld [vmem:[%s16772_s27 + $0x318] sm:$0xf0]  ;;  %v10513_v38 = vor.u32 %v15319_v12, %v10510_v48 }
 0x2e7   : > { %9107 = vmatpush.bf16.msrb.mxu0 %v10545_v6  ;;  %v15337_v6 = vld [vmem:[%s16772_s27 + $0x324] sm:$0xf]  ;;  %v8881_v26 = vadd.f32 %v8880_v17, %v8868_v25  ;;  %v10521_v34 = vor.u32 %v15321_v2, %v10518_v16  ;;  %v10702_v14 = vld [vmem:[%s16772_s27 + $0x418] sm:$0xf0]  ;;  %v10630_v2 = vld [vmem:[%s16772_s27 + $0x388] sm:$0xf0] }
 0x2e8   : > { %9120 = vmatpush.bf16.msrb.mxu1 %v10609_v50  ;;  %v15353_v50 = vld [vmem:[%s16772_s27 + $0x3a4] sm:$0xf]  ;;  %v15395_v16 = vld [vmem:[%s16772_s27 + $0x4f4] sm:$0xf]  ;;  %v11006_v12 = vld [vmem:[%s16772_s27 + $0x678] sm:$0xf0] }
 0x2e9   : > { %9133 = vmatpush.bf16.msrb.mxu2 %v10673_v29  ;;  %v10646_v29 = vld [vmem:[%s16772_s27 + $0x3a8] sm:$0xf0]  ;;  %v18476_v22 = vadd.f32 %v8893_v51, %v8881_v26  ;;  %v15317_v25 = vld [vmem:[%s16772_s27 + $0x284] sm:$0xf]  ;;  %v15427_v26 = vld [vmem:[%s16772_s27 + $0x5f4] sm:$0xf] }
 0x2ea   : > { %9146 = vmatpush.bf16.msrb.mxu3 %v10737_v20  ;;  %v8856_v20 = vpop.f32.mrf.mxu0  ;;  %v10649_v30 = vor.u32 %v15353_v50, %v10646_v29  ;;  %v15411_v50 = vld [vmem:[%s16772_s27 + $0x574] sm:$0xf]  ;;  %v10878_v29 = vld [vmem:[%s16772_s27 + $0x578] sm:$0xf0] }
 0x2eb   : > { %9108 = vmatpush.bf16.msrb.mxu0 %v10537_v54  ;;  %v10585_v54 = vor.u32 %v15337_v6, %v10582_v21  ;;  %v10814_v6 = vld [vmem:[%s16772_s27 + $0x4f8] sm:$0xf0]  ;;  %v8882_v17 = vpop.f32.mrf.mxu2  ;;  %v10705_v21 = vor.u32 %v15367_v56, %v10702_v14  ;;  %v10870_v56 = vld [vmem:[%s16772_s27 + $0x568] sm:$0xf0]  ;;  %v15425_v14 = vld [vmem:[%s16772_s27 + $0x5e4] sm:$0xf] }
 0x2ec   : > { %9121 = vmatpush.bf16.msrb.mxu1 %v10601_v32  ;;  %v15335_v32 = vld [vmem:[%s16772_s27 + $0x314] sm:$0xf]  ;;  %v10942_v51 = vld [vmem:[%s16772_s27 + $0x5f8] sm:$0xf0]  ;;  %v8895_v13 = vpop.f32.mrf.mxu3  ;;  %v10817_v48 = vor.u32 %v15395_v16, %v10814_v6 }
 0x2ed   : > { %9134 = vmatpush.bf16.msrb.mxu2 %v10665_v18  ;;  %v8869_v18 = vpop.f32.mrf.mxu1  ;;  %v15407_v16 = vld [vmem:[%s16772_s27 + $0x554] sm:$0xf]  ;;  %v10862_v6 = vld [vmem:[%s16772_s27 + $0x558] sm:$0xf0]  ;;  %v10854_v13 = vld [vmem:[%s16772_s27 + $0x548] sm:$0xf0] }
 0x2ee   : > { %9147 = vmatpush.bf16.msrb.mxu3 %v10729_v49  ;;  %v10502_v49 = vld [vmem:[%s16772_s27 + $0x288] sm:$0xf0]  ;;  %v15393_v18 = vld [vmem:[%s16772_s27 + $0x4e4] sm:$0xf] }
 0x2ef   : > { %9109 = vmatpush.bf16.msrb.mxu0 %v10529_v33  ;;  %v10577_v33 = vor.u32 %v15335_v32, %v10574_v28  ;;  %v10881_v32 = vor.u32 %v15411_v50, %v10878_v29  ;;  %v10945_v28 = vor.u32 %v15427_v26, %v10942_v51  ;;  %v10926_v50 = vld [vmem:[%s16772_s27 + $0x5d8] sm:$0xf0]  ;;  %v15439_v29 = vld [vmem:[%s16772_s27 + $0x654] sm:$0xf]  ;;  %v15389_v51 = vld [vmem:[%s16772_s27 + $0x4c4] sm:$0xf] }
 0x2f0   : > { %9122 = vmatpush.bf16.msrb.mxu1 %v10593_v23  ;;  %v10566_v23 = vld [vmem:[%s16772_s27 + $0x308] sm:$0xf0]  ;;  %v10990_v26 = vld [vmem:[%s16772_s27 + $0x658] sm:$0xf0] }
 0x2f1   : > { %9135 = vmatpush.bf16.msrb.mxu2 %v10657_v24  ;;  %v15349_v24 = vld [vmem:[%s16772_s27 + $0x384] sm:$0xf]  ;;  %v10569_v20 = vor.u32 %v15333_v31, %v10566_v23  ;;  %v15391_v23 = vld [vmem:[%s16772_s27 + $0x4d4] sm:$0xf] }
 0x2f2   : > { %9148 = vmatpush.bf16.msrb.mxu3 %v10721_v47  ;;  %v10505_v47 = vor.u32 %v15317_v25, %v10502_v49  ;;  %v10934_v25 = vld [vmem:[%s16772_s27 + $0x5e8] sm:$0xf0]  ;;  %v15441_v49 = vld [vmem:[%s16772_s27 + $0x664] sm:$0xf] }
 0x2f3   : > { %9110 = vmatpush.bf16.msrb.mxu0 %v10521_v34  ;;  %v15365_v34 = vld [vmem:[%s16772_s27 + $0x404] sm:$0xf] }
 0x2f4   : > { %9123 = vmatpush.bf16.msrb.mxu1 %v10585_v54  ;;  %v10633_v54 = vor.u32 %v15349_v24, %v10630_v2  ;;  %v10697_v46 = vor.u32 %v15365_v34, %v10694_v19  ;;  %v10937_v24 = vor.u32 %v15425_v14, %v10934_v25  ;;  %v10798_v2 = vld [vmem:[%s16772_s27 + $0x4d8] sm:$0xf0]  ;;  %v10790_v19 = vld [vmem:[%s16772_s27 + $0x4c8] sm:$0xf0]  ;;  %v15419_v25 = vld [vmem:[%s16772_s27 + $0x5b4] sm:$0xf] }
 0x2f5   : > { %9136 = vmatpush.bf16.msrb.mxu2 %v10649_v30  ;;  %v15443_v30 = vld [vmem:[%s16772_s27 + $0x674] sm:$0xf] }
 0x2f6   : > { %9149 = vmatpush.bf16.msrb.mxu3 %v10713_v53  ;;  %v15409_v53 = vld [vmem:[%s16772_s27 + $0x564] sm:$0xf] }
 0x2f7   : > { %9111 = vmatpush.bf16.msrb.mxu0 %v10513_v38  ;;  %v11009_v38 = vor.u32 %v15443_v30, %v11006_v12  ;;  %v10873_v31 = vor.u32 %v15409_v53, %v10870_v56  ;;  %v15437_v30 = vld [vmem:[%s16772_s27 + $0x644] sm:$0xf]  ;;  %v10982_v12 = vld [vmem:[%s16772_s27 + $0x648] sm:$0xf0]  ;;  %v10782_v53 = vld [vmem:[%s16772_s27 + $0x4b8] sm:$0xf0] }
 0x2f8   : > { %9124 = vmatpush.bf16.msrb.mxu1 %v10577_v33  ;;  %v10998_v33 = vld [vmem:[%s16772_s27 + $0x668] sm:$0xf0]  ;;  %v15403_v56 = vld [vmem:[%s16772_s27 + $0x534] sm:$0xf]  ;;  %v10985_v14 = vor.u32 %v15437_v30, %v10982_v12  ;;  %v10766_v30 = vld [vmem:[%s16772_s27 + $0x498] sm:$0xf0] }
 0x2f9   : > { %9137 = vmatpush.bf16.msrb.mxu2 %v10641_v52  ;;  %v10809_v52 = vor.u32 %v15393_v18, %v10806_v59  ;;  %v11001_v17 = vor.u32 %v15441_v49, %v10998_v33  ;;  %v15387_v18 = vld [vmem:[%s16772_s27 + $0x4b4] sm:$0xf]  ;;  %v10910_v49 = vld [vmem:[%s16772_s27 + $0x5b8] sm:$0xf0] }
 0x2fa   : > { %9150 = vmatpush.bf16.msrb.mxu3 %v10705_v21  ;;  %v15423_v21 = vld [vmem:[%s16772_s27 + $0x5d4] sm:$0xf] }
 0x2fb   : > { %9112 = vmatpush.bf16.msrb.mxu0 %v10505_v47  ;;  %v10801_v47 = vor.u32 %v15391_v23, %v10798_v2  ;;  %v10929_v34 = vor.u32 %v15423_v21, %v10926_v50  ;;  %v10913_v2 = vor.u32 %v15419_v25, %v10910_v49  ;;  %v15399_v12 = vld [vmem:[%s16772_s27 + $0x514] sm:$0xf]  ;;  %v15397_v25 = vld [vmem:[%s16772_s27 + $0x504] sm:$0xf] }
 0x2fc   : > { %9125 = vmatpush.bf16.msrb.mxu1 %v10569_v20  ;;  %v15421_v20 = vld [vmem:[%s16772_s27 + $0x5c4] sm:$0xf]  ;;  %v8919_v59 = vpop.f32.mrf.mxu1 }
 0x2fd   : > { %9138 = vmatpush.bf16.msrb.mxu2 %v10633_v54  ;;  %v10918_v54 = vld [vmem:[%s16772_s27 + $0x5c8] sm:$0xf0] }
 0x2fe   : > { %9151 = vmatpush.bf16.msrb.mxu3 %v10697_v46  ;;  %9113 = vmatmul.bf16.vlgmr.msrb.gmra.mxu0 %v16950_v37  ;;  %v15405_v37 = vld [vmem:[%s16772_s27 + $0x544] sm:$0xf]  ;;  %v10921_v46 = vor.u32 %v15421_v20, %v10918_v54 }
 0x2ff   : > { %9157 = vmatpush.bf16.msra.mxu0 %v10817_v48  ;;  %9126 = vmatmul.bf16.vlgmr.msrb.gmra.mxu1 %v16941_v27  ;;  %v10993_v27 = vor.u32 %v15439_v29, %v10990_v26  ;;  %v8906_v48 = vpop.f32.mrf.mxu0  ;;  %v15417_v29 = vld [vmem:[%s16772_s27 + $0x5a4] sm:$0xf]  ;;  %v10902_v26 = vld [vmem:[%s16772_s27 + $0x5a8] sm:$0xf0] }
 0x300   : > { %9170 = vmatpush.bf16.msra.mxu1 %v10881_v32  ;;  %9139 = vmatmul.bf16.vlgmr.msrb.gmra.mxu2 %v16957_v42  ;;  %v10865_v42 = vor.u32 %v15407_v16, %v10862_v6  ;;  %v10857_v32 = vor.u32 %v15405_v37, %v10854_v13  ;;  %v10774_v16 = vld [vmem:[%s16772_s27 + $0x4a8] sm:$0xf0]  ;;  %v15401_v6 = vld [vmem:[%s16772_s27 + $0x524] sm:$0xf]  ;;  %v15383_v13 = vld [vmem:[%s16772_s27 + $0x494] sm:$0xf]  ;;  %v10905_v54 = vor.u32 %v15417_v29, %v10902_v26 }
 0x301   : > { %9183 = vmatpush.bf16.msra.mxu2 %v10945_v28  ;;  %9152 = vmatmul.bf16.vlgmr.msrb.gmra.mxu3 %v17020_v7  ;;  %v10793_v7 = vor.u32 %v15389_v51, %v10790_v19  ;;  %v8907_v28 = vadd.f32 %v8906_v48, %v18476_v22  ;;  %v10785_v22 = vor.u32 %v15387_v18, %v10782_v53  ;;  %v10966_v51 = vld [vmem:[%s16772_s27 + $0x628] sm:$0xf0]  ;;  %v10830_v48 = vld [vmem:[%s16772_s27 + $0x518] sm:$0xf0]  ;;  %v15415_v18 = vld [vmem:[%s16772_s27 + $0x594] sm:$0xf] }
 0x302   : > { %9196 = vmatpush.bf16.msra.mxu3 %v11009_v38  ;;  %v10846_v38 = vld [vmem:[%s16772_s27 + $0x538] sm:$0xf0]  ;;  %v10769_v53 = vor.u32 %v15383_v13, %v10766_v30  ;;  %v15429_v26 = vld [vmem:[%s16772_s27 + $0x604] sm:$0xf]  ;;  %v11062_v30 = vld [vmem:[%s16772_s27 + $0x6e8] sm:$0xf0] }
 0x303   : > { %9158 = vmatpush.bf16.msra.mxu0 %v10809_v52  ;;  %v8920_v33 = vadd.f32 %v8919_v59, %v8907_v28  ;;  %v15435_v52 = vld [vmem:[%s16772_s27 + $0x634] sm:$0xf]  ;;  %v10849_v23 = vor.u32 %v15403_v56, %v10846_v38  ;;  %v8932_v21 = vpop.f32.mrf.mxu2  ;;  %v10894_v28 = vld [vmem:[%s16772_s27 + $0x598] sm:$0xf0]  ;;  %v10833_v56 = vor.u32 %v15399_v12, %v10830_v48  ;;  %v15381_v38 = vld [vmem:[%s16772_s27 + $0x484] sm:$0xf] }
 0x304   : > { %9171 = vmatpush.bf16.msra.mxu1 %v10873_v31  ;;  %v10974_v31 = vld [vmem:[%s16772_s27 + $0x638] sm:$0xf0]  ;;  %v10897_v49 = vor.u32 %v15415_v18, %v10894_v28  ;;  %v15473_v48 = vld [vmem:[%s16772_s27 + $0x764] sm:$0xf]  ;;  %v11190_v28 = vld [vmem:[%s16772_s27 + $0x7e8] sm:$0xf0] }
 0x305   : > { %9184 = vmatpush.bf16.msra.mxu2 %v10937_v24  ;;  %v15385_v24 = vld [vmem:[%s16772_s27 + $0x4a4] sm:$0xf]  ;;  %v10977_v50 = vor.u32 %v15435_v52, %v10974_v31  ;;  %v10958_v59 = vld [vmem:[%s16772_s27 + $0x618] sm:$0xf0]  ;;  %v10886_v31 = vld [vmem:[%s16772_s27 + $0x588] sm:$0xf0] }
 0x306   : > { %9197 = vmatpush.bf16.msra.mxu3 %v11001_v17  ;;  %v10838_v17 = vld [vmem:[%s16772_s27 + $0x528] sm:$0xf0]  ;;  %v10777_v19 = vor.u32 %v15385_v24, %v10774_v16  ;;  %v15413_v52 = vld [vmem:[%s16772_s27 + $0x584] sm:$0xf]  ;;  %v11070_v24 = vld [vmem:[%s16772_s27 + $0x6f8] sm:$0xf0] }
 0x307   : > { %9159 = vmatpush.bf16.msra.mxu0 %v10801_v47  ;;  %v8933_v47 = vadd.f32 %v8932_v21, %v8920_v33  ;;  %v10841_v37 = vor.u32 %v15401_v6, %v10838_v17  ;;  %v10822_v33 = vld [vmem:[%s16772_s27 + $0x508] sm:$0xf0]  ;;  %v11134_v6 = vld [vmem:[%s16772_s27 + $0x778] sm:$0xf0]  ;;  %v15491_v17 = vld [vmem:[%s16772_s27 + $0x7f4] sm:$0xf] }
 0x308   : > { %9172 = vmatpush.bf16.msra.mxu1 %v10865_v42  ;;  %v15433_v42 = vld [vmem:[%s16772_s27 + $0x624] sm:$0xf]  ;;  %v11198_v21 = vld [vmem:[%s16772_s27 + $0x7f8] sm:$0xf0]  ;;  %v10825_v29 = vor.u32 %v15397_v25, %v10822_v33 }
 0x309   : > { %9185 = vmatpush.bf16.msra.mxu2 %v10929_v34  ;;  %v8945_v34 = vpop.f32.mrf.mxu3  ;;  %v15489_v18 = vld [vmem:[%s16772_s27 + $0x7e4] sm:$0xf]  ;;  %v11118_v33 = vld [vmem:[%s16772_s27 + $0x758] sm:$0xf0] }
 0x30a   : > { %9198 = vmatpush.bf16.msra.mxu3 %v10993_v27  ;;  %v8908_v27 = vpop.f32.mrf.mxu0  ;;  %v18548_v20 = vadd.f32 %v8945_v34, %v8933_v47  ;;  %v10950_v47 = vld [vmem:[%s16772_s27 + $0x608] sm:$0xf0]  ;;  %v11193_v25 = vor.u32 %v15489_v18, %v11190_v28  ;;  %v15499_v28 = vld [vmem:[%s16772_s27 + $0x834] sm:$0xf] }
 0x30b   : > { %9160 = vmatpush.bf16.msra.mxu0 %v10793_v7  ;;  %v8921_v7 = vpop.f32.mrf.mxu1  ;;  %v8934_v16 = vpop.f32.mrf.mxu2  ;;  %v11201_v27 = vor.u32 %v15491_v17, %v11198_v21  ;;  %v10953_v12 = vor.u32 %v15429_v26, %v10950_v47  ;;  %v15469_v17 = vld [vmem:[%s16772_s27 + $0x744] sm:$0xf]  ;;  %v11238_v47 = vld [vmem:[%s16772_s27 + $0x848] sm:$0xf0] }
 0x30c   : > { %9173 = vmatpush.bf16.msra.mxu1 %v10857_v32  ;;  %v10969_v32 = vor.u32 %v15433_v42, %v10966_v51  ;;  %v10889_v51 = vor.u32 %v15413_v52, %v10886_v31  ;;  %v11126_v7 = vld [vmem:[%s16772_s27 + $0x768] sm:$0xf0]  ;;  %v15487_v31 = vld [vmem:[%s16772_s27 + $0x7d4] sm:$0xf] }
 0x30d   : > { %9186 = vmatpush.bf16.msra.mxu2 %v10921_v46  ;;  %v15431_v46 = vld [vmem:[%s16772_s27 + $0x614] sm:$0xf]  ;;  %v11046_v16 = vld [vmem:[%s16772_s27 + $0x6c8] sm:$0xf0] }
 0x30e   : > { %9199 = vmatpush.bf16.msra.mxu3 %v10985_v14  ;;  %v10758_v14 = vld [vmem:[%s16772_s27 + $0x488] sm:$0xf0] }
 0x30f   : > { %9161 = vmatpush.bf16.msra.mxu0 %v10785_v22  ;;  %v10961_v22 = vor.u32 %v15431_v46, %v10958_v59  ;;  %v15505_v59 = vld [vmem:[%s16772_s27 + $0x864] sm:$0xf] }
 0x310   : > { %9174 = vmatpush.bf16.msra.mxu1 %v10849_v23  ;;  %v15459_v23 = vld [vmem:[%s16772_s27 + $0x6f4] sm:$0xf] }
 0x311   : > { %9187 = vmatpush.bf16.msra.mxu2 %v10913_v2  ;;  %v15475_v2 = vld [vmem:[%s16772_s27 + $0x774] sm:$0xf]  ;;  %v8947_v42 = vpop.f32.mrf.mxu3  ;;  %v11073_v34 = vor.u32 %v15459_v23, %v11070_v24  ;;  %v11246_v24 = vld [vmem:[%s16772_s27 + $0x858] sm:$0xf0] }
 0x312   : > { %9200 = vmatpush.bf16.msra.mxu3 %v10977_v50  ;;  %v10761_v50 = vor.u32 %v15381_v38, %v10758_v14  ;;  %v11137_v13 = vor.u32 %v15475_v2, %v11134_v6  ;;  %v15455_v38 = vld [vmem:[%s16772_s27 + $0x6d4] sm:$0xf]  ;;  %v11054_v14 = vld [vmem:[%s16772_s27 + $0x6d8] sm:$0xf0]  ;;  %v15453_v2 = vld [vmem:[%s16772_s27 + $0x6c4] sm:$0xf] }
 0x313   : > { %9162 = vmatpush.bf16.msra.mxu0 %v10777_v19  ;;  %v15507_v19 = vld [vmem:[%s16772_s27 + $0x874] sm:$0xf]  ;;  %v11057_v23 = vor.u32 %v15455_v38, %v11054_v14  ;;  %v11049_v26 = vor.u32 %v15453_v2, %v11046_v16  ;;  %v15465_v38 = vld [vmem:[%s16772_s27 + $0x724] sm:$0xf]  ;;  %v11094_v14 = vld [vmem:[%s16772_s27 + $0x728] sm:$0xf0] }
 0x314   : > { %9175 = vmatpush.bf16.msra.mxu1 %v10841_v37  ;;  %v11262_v37 = vld [vmem:[%s16772_s27 + $0x878] sm:$0xf0]  ;;  %v15447_v2 = vld [vmem:[%s16772_s27 + $0x694] sm:$0xf] }
 0x315   : > { %9188 = vmatpush.bf16.msra.mxu2 %v10905_v54  ;;  %v15457_v54 = vld [vmem:[%s16772_s27 + $0x6e4] sm:$0xf]  ;;  %v11022_v16 = vld [vmem:[%s16772_s27 + $0x698] sm:$0xf0] }
 0x316   : > { %9201 = vmatpush.bf16.msra.mxu3 %v10969_v32  ;;  %v11265_v32 = vor.u32 %v15507_v19, %v11262_v37  ;;  %v11065_v46 = vor.u32 %v15457_v54, %v11062_v30  ;;  %v11038_v19 = vld [vmem:[%s16772_s27 + $0x6b8] sm:$0xf0]  ;;  %v15467_v54 = vld [vmem:[%s16772_s27 + $0x734] sm:$0xf] }
 0x317   : > { %9163 = vmatpush.bf16.msra.mxu0 %v10769_v53  ;;  %v11254_v53 = vld [vmem:[%s16772_s27 + $0x868] sm:$0xf0]  ;;  %v11102_v30 = vld [vmem:[%s16772_s27 + $0x738] sm:$0xf0] }
 0x318   : > { %9176 = vmatpush.bf16.msra.mxu1 %v10833_v56  ;;  %v11129_v56 = vor.u32 %v15473_v48, %v11126_v7  ;;  %v11257_v52 = vor.u32 %v15505_v59, %v11254_v53  ;;  %v15483_v48 = vld [vmem:[%s16772_s27 + $0x7b4] sm:$0xf]  ;;  %v11166_v7 = vld [vmem:[%s16772_s27 + $0x7b8] sm:$0xf0]  ;;  %v15449_v59 = vld [vmem:[%s16772_s27 + $0x6a4] sm:$0xf] }
 0x319   : > { %9189 = vmatpush.bf16.msra.mxu2 %v10897_v49  ;;  %v15471_v49 = vld [vmem:[%s16772_s27 + $0x754] sm:$0xf]  ;;  %v11030_v53 = vld [vmem:[%s16772_s27 + $0x6a8] sm:$0xf0] }
 0x31a   : > { %9202 = vmatpush.bf16.msra.mxu3 %v10961_v22  ;;  %v11182_v22 = vld [vmem:[%s16772_s27 + $0x7d8] sm:$0xf0] }
 0x31b   : > { %9164 = vmatpush.bf16.msra.mxu0 %v10761_v50  ;;  %v11185_v6 = vor.u32 %v15487_v31, %v11182_v22  ;;  %v15485_v50 = vld [vmem:[%s16772_s27 + $0x7c4] sm:$0xf]  ;;  %v8958_v42 = vpop.f32.mrf.mxu0  ;;  %v11033_v22 = vor.u32 %v15449_v59, %v11030_v53 }
 0x31c   : > { %9177 = vmatpush.bf16.msra.mxu1 %v10825_v29  ;;  %v11174_v29 = vld [vmem:[%s16772_s27 + $0x7c8] sm:$0xf0]  ;;  %v8959_v37 = vadd.f32 %v8958_v42, %v18548_v20  ;;  %v11105_v20 = vor.u32 %v15467_v54, %v11102_v30  ;;  %v15495_v42 = vld [vmem:[%s16772_s27 + $0x814] sm:$0xf]  ;;  %v15477_v30 = vld [vmem:[%s16772_s27 + $0x784] sm:$0xf] }
 0x31d   : > { %9190 = vmatpush.bf16.msra.mxu2 %v10889_v51  ;;  %v11078_v54 = vld [vmem:[%s16772_s27 + $0x708] sm:$0xf0] }
 0x31e   : > { %9203 = vmatpush.bf16.msra.mxu3 %v10953_v12  ;;  %9165 = vmatmul.bf16.vlgmr.msra.gmra.mxu0 %v17025_v11  ;;  %v15503_v11 = vld [vmem:[%s16772_s27 + $0x854] sm:$0xf] }
 0x31f   : > { %9209 = vmatpush.bf16.msrb.mxu0 %v11073_v34  ;;  %9178 = vmatmul.bf16.vlgmr.msra.gmra.mxu1 %v17022_v8  ;;  %v11110_v8 = vld [vmem:[%s16772_s27 + $0x748] sm:$0xf0]  ;;  %v11249_v21 = vor.u32 %v15503_v11, %v11246_v24  ;;  %v15451_v34 = vld [vmem:[%s16772_s27 + $0x6b4] sm:$0xf] }
 0x320   : > { %9222 = vmatpush.bf16.msrb.mxu1 %v11137_v13  ;;  %9191 = vmatmul.bf16.vlgmr.msra.gmra.mxu2 %v17029_v15  ;;  %v11121_v15 = vor.u32 %v15471_v49, %v11118_v33  ;;  %v11113_v51 = vor.u32 %v15469_v17, %v11110_v8  ;;  %v11177_v13 = vor.u32 %v15485_v50, %v11174_v29  ;;  %v15481_v33 = vld [vmem:[%s16772_s27 + $0x7a4] sm:$0xf]  ;;  %v11222_v11 = vld [vmem:[%s16772_s27 + $0x828] sm:$0xf0]  ;;  %v11086_v50 = vld [vmem:[%s16772_s27 + $0x718] sm:$0xf0] }
 0x321   : > { %9235 = vmatpush.bf16.msrb.mxu2 %v11201_v27  ;;  %9204 = vmatmul.bf16.vlgmr.msra.gmra.mxu3 %v17083_v41  ;;  %v15501_v41 = vld [vmem:[%s16772_s27 + $0x844] sm:$0xf]  ;;  %v8971_v27 = vpop.f32.mrf.mxu1  ;;  %v11041_v18 = vor.u32 %v15451_v34, %v11038_v19  ;;  %v11214_v34 = vld [vmem:[%s16772_s27 + $0x818] sm:$0xf0] }
 0x322   : > { %9248 = vmatpush.bf16.msrb.mxu3 %v11265_v32  ;;  %v11241_v12 = vor.u32 %v15501_v41, %v11238_v47  ;;  %v8972_v32 = vadd.f32 %v8971_v27, %v8959_v37  ;;  %v15479_v41 = vld [vmem:[%s16772_s27 + $0x794] sm:$0xf]  ;;  %v11150_v47 = vld [vmem:[%s16772_s27 + $0x798] sm:$0xf0]  ;;  %v15445_v19 = vld [vmem:[%s16772_s27 + $0x684] sm:$0xf] }
 0x323   : > { %9210 = vmatpush.bf16.msrb.mxu0 %v11065_v46  ;;  %v11230_v46 = vld [vmem:[%s16772_s27 + $0x838] sm:$0xf0]  ;;  %v11014_v37 = vld [vmem:[%s16772_s27 + $0x688] sm:$0xf0]  ;;  %v15461_v27 = vld [vmem:[%s16772_s27 + $0x704] sm:$0xf] }
 0x324   : > { %9223 = vmatpush.bf16.msrb.mxu1 %v11129_v56  ;;  %v11169_v56 = vor.u32 %v15483_v48, %v11166_v7  ;;  %v11233_v49 = vor.u32 %v15499_v28, %v11230_v46  ;;  %v8997_v24 = vpop.f32.mrf.mxu3  ;;  %v11142_v48 = vld [vmem:[%s16772_s27 + $0x788] sm:$0xf0]  ;;  %v15523_v7 = vld [vmem:[%s16772_s27 + $0x8f4] sm:$0xf]  ;;  %v11390_v46 = vld [vmem:[%s16772_s27 + $0x978] sm:$0xf0]  ;;  %v11017_v53 = vor.u32 %v15445_v19, %v11014_v37 }
 0x325   : > { %9236 = vmatpush.bf16.msrb.mxu2 %v11193_v25  ;;  %v8984_v25 = vpop.f32.mrf.mxu2  ;;  %v15539_v28 = vld [vmem:[%s16772_s27 + $0x974] sm:$0xf] }
 0x326   : > { %9249 = vmatpush.bf16.msrb.mxu3 %v11257_v52  ;;  %v11158_v52 = vld [vmem:[%s16772_s27 + $0x7a8] sm:$0xf0]  ;;  %v8985_v31 = vadd.f32 %v8984_v25, %v8972_v32  ;;  %v11326_v32 = vld [vmem:[%s16772_s27 + $0x8f8] sm:$0xf0]  ;;  %v11081_v25 = vor.u32 %v15461_v27, %v11078_v54  ;;  %v15535_v19 = vld [vmem:[%s16772_s27 + $0x954] sm:$0xf] }
 0x327   : > { %9211 = vmatpush.bf16.msrb.mxu0 %v11057_v23  ;;  %v15497_v23 = vld [vmem:[%s16772_s27 + $0x824] sm:$0xf]  ;;  %v11161_v8 = vor.u32 %v15481_v33, %v11158_v52  ;;  %v15571_v33 = vld [vmem:[%s16772_s27 + $0xa74] sm:$0xf]  ;;  %v11518_v52 = vld [vmem:[%s16772_s27 + $0xa78] sm:$0xf0] }
 0x328   : > { %9224 = vmatpush.bf16.msrb.mxu1 %v11121_v15  ;;  %v11097_v15 = vor.u32 %v15465_v38, %v11094_v14  ;;  %v18620_v17 = vadd.f32 %v8997_v24, %v8985_v31  ;;  %v15493_v38 = vld [vmem:[%s16772_s27 + $0x804] sm:$0xf]  ;;  %v11206_v14 = vld [vmem:[%s16772_s27 + $0x808] sm:$0xf0]  ;;  %v15551_v27 = vld [vmem:[%s16772_s27 + $0x9d4] sm:$0xf] }
 0x329   : > { %9237 = vmatpush.bf16.msrb.mxu2 %v11185_v6  ;;  %v8960_v6 = vpop.f32.mrf.mxu0  ;;  %v8973_v29 = vpop.f32.mrf.mxu1  ;;  %v11209_v24 = vor.u32 %v15493_v38, %v11206_v14  ;;  %v11438_v54 = vld [vmem:[%s16772_s27 + $0x9d8] sm:$0xf0] }
 0x32a   : > { %9250 = vmatpush.bf16.msrb.mxu3 %v11249_v21  ;;  %v15463_v21 = vld [vmem:[%s16772_s27 + $0x714] sm:$0xf]  ;;  %v11521_v6 = vor.u32 %v15571_v33, %v11518_v52  ;;  %v15569_v29 = vld [vmem:[%s16772_s27 + $0xa64] sm:$0xf] }
 0x32b   : > { %9212 = vmatpush.bf16.msrb.mxu0 %v11049_v26  ;;  %v11225_v26 = vor.u32 %v15497_v23, %v11222_v11  ;;  %v11393_v23 = vor.u32 %v15539_v28, %v11390_v46  ;;  %v11366_v28 = vld [vmem:[%s16772_s27 + $0x948] sm:$0xf0]  ;;  %v15549_v46 = vld [vmem:[%s16772_s27 + $0x9c4] sm:$0xf]  ;;  %v15531_v33 = vld [vmem:[%s16772_s27 + $0x934] sm:$0xf] }
 0x32c   : > { %9225 = vmatpush.bf16.msrb.mxu1 %v11113_v51  ;;  %v11025_v51 = vor.u32 %v15447_v2, %v11022_v16  ;;  %v8999_v31 = vpop.f32.mrf.mxu3  ;;  %v11318_v2 = vld [vmem:[%s16772_s27 + $0x8e8] sm:$0xf0]  ;;  %v15537_v16 = vld [vmem:[%s16772_s27 + $0x964] sm:$0xf] }
 0x32d   : > { %9238 = vmatpush.bf16.msrb.mxu2 %v11177_v13  ;;  %v11089_v13 = vor.u32 %v15463_v21, %v11086_v50  ;;  %v8986_v59 = vpop.f32.mrf.mxu2  ;;  %v15553_v21 = vld [vmem:[%s16772_s27 + $0x9e4] sm:$0xf]  ;;  %v11446_v50 = vld [vmem:[%s16772_s27 + $0x9e8] sm:$0xf0] }
 0x32e   : > { %9251 = vmatpush.bf16.msrb.mxu3 %v11241_v12  ;;  %v11153_v12 = vor.u32 %v15479_v41, %v11150_v47  ;;  %v15565_v59 = vld [vmem:[%s16772_s27 + $0xa44] sm:$0xf] }
 0x32f   : > { %9213 = vmatpush.bf16.msrb.mxu0 %v11041_v18  ;;  %v11217_v18 = vor.u32 %v15495_v42, %v11214_v34  ;;  %v11449_v42 = vor.u32 %v15553_v21, %v11446_v50  ;;  %v11310_v34 = vld [vmem:[%s16772_s27 + $0x8d8] sm:$0xf0]  ;;  %v15513_v21 = vld [vmem:[%s16772_s27 + $0x8a4] sm:$0xf]  ;;  %v11286_v50 = vld [vmem:[%s16772_s27 + $0x8a8] sm:$0xf0] }
 0x330   : > { %9226 = vmatpush.bf16.msrb.mxu1 %v11105_v20  ;;  %v15555_v20 = vld [vmem:[%s16772_s27 + $0x9f4] sm:$0xf] }
 0x331   : > { %9239 = vmatpush.bf16.msrb.mxu2 %v11169_v56  ;;  %v11454_v56 = vld [vmem:[%s16772_s27 + $0x9f8] sm:$0xf0] }
 0x332   : > { %9252 = vmatpush.bf16.msrb.mxu3 %v11233_v49  ;;  %v11329_v49 = vor.u32 %v15523_v7, %v11326_v32  ;;  %v11457_v11 = vor.u32 %v15555_v20, %v11454_v56  ;;  %v11441_v7 = vor.u32 %v15551_v27, %v11438_v54  ;;  %v15517_v32 = vld [vmem:[%s16772_s27 + $0x8c4] sm:$0xf]  ;;  %v11430_v20 = vld [vmem:[%s16772_s27 + $0x9c8] sm:$0xf0] }
 0x333   : > { %9214 = vmatpush.bf16.msrb.mxu0 %v11033_v22  ;;  %v11145_v22 = vor.u32 %v15477_v30, %v11142_v48  ;;  %v15567_v30 = vld [vmem:[%s16772_s27 + $0xa54] sm:$0xf]  ;;  %v11433_v14 = vor.u32 %v15549_v46, %v11430_v20  ;;  %v11470_v20 = vld [vmem:[%s16772_s27 + $0xa18] sm:$0xf0] }
 0x334   : > { %9227 = vmatpush.bf16.msrb.mxu1 %v11097_v15  ;;  %v15521_v15 = vld [vmem:[%s16772_s27 + $0x8e4] sm:$0xf]  ;;  %v15559_v46 = vld [vmem:[%s16772_s27 + $0xa14] sm:$0xf] }
 0x335   : > { %9240 = vmatpush.bf16.msrb.mxu2 %v11161_v8  ;;  %v11382_v8 = vld [vmem:[%s16772_s27 + $0x968] sm:$0xf0]  ;;  %v11321_v41 = vor.u32 %v15521_v15, %v11318_v2  ;;  %v15563_v15 = vld [vmem:[%s16772_s27 + $0xa34] sm:$0xf]  ;;  %v11486_v2 = vld [vmem:[%s16772_s27 + $0xa38] sm:$0xf0] }
 0x336   : > { %9253 = vmatpush.bf16.msrb.mxu3 %v11225_v26  ;;  %v11510_v26 = vld [vmem:[%s16772_s27 + $0xa68] sm:$0xf0]  ;;  %v11385_v47 = vor.u32 %v15537_v16, %v11382_v8 }
 0x337   : > { %9215 = vmatpush.bf16.msrb.mxu0 %v11025_v51  ;;  %v15519_v51 = vld [vmem:[%s16772_s27 + $0x8d4] sm:$0xf]  ;;  %v11513_v37 = vor.u32 %v15569_v29, %v11510_v26  ;;  %v15529_v29 = vld [vmem:[%s16772_s27 + $0x924] sm:$0xf]  ;;  %v11489_v26 = vor.u32 %v15563_v15, %v11486_v2 }
 0x338   : > { %9228 = vmatpush.bf16.msrb.mxu1 %v11089_v13  ;;  %v11374_v13 = vld [vmem:[%s16772_s27 + $0x958] sm:$0xf0] }
 0x339   : > { %9241 = vmatpush.bf16.msrb.mxu2 %v11153_v12  ;;  %v11502_v12 = vld [vmem:[%s16772_s27 + $0xa58] sm:$0xf0]  ;;  %v11377_v48 = vor.u32 %v15535_v19, %v11374_v13  ;;  %v11478_v19 = vld [vmem:[%s16772_s27 + $0xa28] sm:$0xf0]  ;;  %v11289_v13 = vor.u32 %v15513_v21, %v11286_v50 }
 0x33a   : > { %9254 = vmatpush.bf16.msrb.mxu3 %v11217_v18  ;;  %v11302_v18 = vld [vmem:[%s16772_s27 + $0x8c8] sm:$0xf0] }
 0x33b   : > { %9216 = vmatpush.bf16.msrb.mxu0 %v11017_v53  ;;  %v11305_v53 = vor.u32 %v15517_v32, %v11302_v18  ;;  %v9010_v56 = vpop.f32.mrf.mxu0  ;;  %v11342_v32 = vld [vmem:[%s16772_s27 + $0x918] sm:$0xf0]  ;;  %v15543_v18 = vld [vmem:[%s16772_s27 + $0x994] sm:$0xf] }
 0x33c   : > { %9229 = vmatpush.bf16.msrb.mxu1 %v11081_v25  ;;  %v15515_v25 = vld [vmem:[%s16772_s27 + $0x8b4] sm:$0xf]  ;;  %v9011_v52 = vadd.f32 %v9010_v56, %v18620_v17  ;;  %v9023_v31 = vpop.f32.mrf.mxu1 }
 0x33d   : > { %9242 = vmatpush.bf16.msrb.mxu2 %v11145_v22 }
 0x33e   : > { %9255 = vmatpush.bf16.msrb.mxu3 %v11209_v24  ;;  %9217 = vmatmul.bf16.vlgmr.msrb.gmra.mxu0 %v17087_v44  ;;  %v11313_v44 = vor.u32 %v15519_v51, %v11310_v34  ;;  %v11422_v24 = vld [vmem:[%s16772_s27 + $0x9b8] sm:$0xf0]  ;;  %v9024_v16 = vadd.f32 %v9023_v31, %v9011_v52  ;;  %v15561_v34 = vld [vmem:[%s16772_s27 + $0xa24] sm:$0xf]  ;;  %v11398_v52 = vld [vmem:[%s16772_s27 + $0x988] sm:$0xf0] }
 0x33f   : > { %9261 = vmatpush.bf16.msra.mxu0 %v11329_v49  ;;  %9230 = vmatmul.bf16.vlgmr.msrb.gmra.mxu1 %v17085_v43  ;;  %v11505_v43 = vor.u32 %v15567_v30, %v11502_v12  ;;  %v11294_v49 = vld [vmem:[%s16772_s27 + $0x8b8] sm:$0xf0]  ;;  %v15511_v30 = vld [vmem:[%s16772_s27 + $0x894] sm:$0xf] }
 0x340   : > { %9274 = vmatpush.bf16.msra.mxu1 %v11393_v23  ;;  %9243 = vmatmul.bf16.vlgmr.msrb.gmra.mxu2 %v17089_v45  ;;  %v15533_v45 = vld [vmem:[%s16772_s27 + $0x944] sm:$0xf]  ;;  %v11358_v23 = vld [vmem:[%s16772_s27 + $0x938] sm:$0xf0]  ;;  %v15587_v31 = vld [vmem:[%s16772_s27 + $0xaf4] sm:$0xf] }
 0x341   : > { %9287 = vmatpush.bf16.msra.mxu2 %v11457_v11  ;;  %9256 = vmatmul.bf16.vlgmr.msrb.gmra.mxu3 %v17175_v4  ;;  %v11494_v4 = vld [vmem:[%s16772_s27 + $0xa48] sm:$0xf0]  ;;  %v11369_v38 = vor.u32 %v15533_v45, %v11366_v28  ;;  %v15547_v11 = vld [vmem:[%s16772_s27 + $0x9b4] sm:$0xf]  ;;  %v11361_v17 = vor.u32 %v15531_v33, %v11358_v23  ;;  %v11278_v12 = vld [vmem:[%s16772_s27 + $0x898] sm:$0xf0]  ;;  %v11473_v33 = vor.u32 %v15559_v46, %v11470_v20 }
 0x342   : > { %9300 = vmatpush.bf16.msra.mxu3 %v11521_v6  ;;  %v11497_v22 = vor.u32 %v15565_v59, %v11494_v4  ;;  %v11297_v6 = vor.u32 %v15515_v25, %v11294_v49  ;;  %v11425_v8 = vor.u32 %v15547_v11, %v11422_v24  ;;  %v11406_v45 = vld [vmem:[%s16772_s27 + $0x998] sm:$0xf0]  ;;  %v11281_v59 = vor.u32 %v15511_v30, %v11278_v12  ;;  %v15509_v4 = vld [vmem:[%s16772_s27 + $0x884] sm:$0xf]  ;;  %v11334_v25 = vld [vmem:[%s16772_s27 + $0x908] sm:$0xf0] }
 0x343   : > { %9262 = vmatpush.bf16.msra.mxu0 %v11321_v41  ;;  %v11350_v41 = vld [vmem:[%s16772_s27 + $0x928] sm:$0xf0]  ;;  %v9036_v51 = vpop.f32.mrf.mxu2  ;;  %v15541_v49 = vld [vmem:[%s16772_s27 + $0x984] sm:$0xf]  ;;  %v15603_v23 = vld [vmem:[%s16772_s27 + $0xb74] sm:$0xf] }
 0x344   : > { %9275 = vmatpush.bf16.msra.mxu1 %v11385_v47  ;;  %v15545_v47 = vld [vmem:[%s16772_s27 + $0x9a4] sm:$0xf]  ;;  %v11353_v27 = vor.u32 %v15529_v29, %v11350_v41  ;;  %v18697_v28 = vpop.f32.mrf.mxu3  ;;  %v11646_v11 = vld [vmem:[%s16772_s27 + $0xb78] sm:$0xf0]  ;;  %v15619_v24 = vld [vmem:[%s16772_s27 + $0xbf4] sm:$0xf]  ;;  %v11401_v21 = vor.u32 %v15541_v49, %v11398_v52 }
 0x345   : > { %9288 = vmatpush.bf16.msra.mxu2 %v11449_v42  ;;  %v11414_v42 = vld [vmem:[%s16772_s27 + $0x9a8] sm:$0xf0]  ;;  %v11649_v29 = vor.u32 %v15603_v23, %v11646_v11  ;;  %v11774_v41 = vld [vmem:[%s16772_s27 + $0xc78] sm:$0xf0]  ;;  %v15599_v46 = vld [vmem:[%s16772_s27 + $0xb54] sm:$0xf] }
 0x346   : > { %9301 = vmatpush.bf16.msra.mxu3 %v11513_v37  ;;  %v18689_v37 = vadd.f32 %v9036_v51, %v9024_v16  ;;  %v11417_v54 = vor.u32 %v15545_v47, %v11414_v42  ;;  %v11710_v16 = vld [vmem:[%s16772_s27 + $0xbf8] sm:$0xf0]  ;;  %v11702_v30 = vld [vmem:[%s16772_s27 + $0xbe8] sm:$0xf0]  ;;  %v16550_v20 = vld [vmem:[%s16778_s25] sm:$0x3] }
 0x347   : > { %9263 = vmatpush.bf16.msra.mxu0 %v11313_v44  ;;  %v15527_v44 = vld [vmem:[%s16772_s27 + $0x914] sm:$0xf]  ;;  %v11713_v42 = vor.u32 %v15619_v24, %v11710_v16  ;;  %v11558_v52 = vld [vmem:[%s16772_s27 + $0xac8] sm:$0xf0] }
 0x348   : > { %9276 = vmatpush.bf16.msra.mxu1 %v11377_v48  ;;  %v9012_v48 = vpop.f32.mrf.mxu0  ;;  %v11345_v56 = vor.u32 %v15527_v44, %v11342_v32  ;;  %v15583_v32 = vld [vmem:[%s16772_s27 + $0xad4] sm:$0xf]  ;;  %v11686_v23 = vld [vmem:[%s16772_s27 + $0xbc8] sm:$0xf0] }
 0x349   : > { %9289 = vmatpush.bf16.msra.mxu2 %v11441_v7  ;;  %v11481_v7 = vor.u32 %v15561_v34, %v11478_v19  ;;  %v15585_v34 = vld [vmem:[%s16772_s27 + $0xae4] sm:$0xf]  ;;  %v11574_v19 = vld [vmem:[%s16772_s27 + $0xae8] sm:$0xf0] }
 0x34a   : > { %9302 = vmatpush.bf16.msra.mxu3 %v11505_v43  ;;  %v9025_v43 = vpop.f32.mrf.mxu1  ;;  %v11577_v44 = vor.u32 %v15585_v34, %v11574_v19  ;;  %v15633_v48 = vld [vmem:[%s16772_s27 + $0xc64] sm:$0xf]  ;;  %v15627_v19 = vld [vmem:[%s16772_s27 + $0xc34] sm:$0xf] }
 0x34b   : > { %9264 = vmatpush.bf16.msra.mxu0 %v11305_v53  ;;  %v11270_v53 = vld [vmem:[%s16772_s27 + $0x888] sm:$0xf0]  ;;  %v9038_v15 = vpop.f32.mrf.mxu2  ;;  %v11566_v43 = vld [vmem:[%s16772_s27 + $0xad8] sm:$0xf0] }
 0x34c   : > { %9277 = vmatpush.bf16.msra.mxu1 %v11369_v38  ;;  %v11409_v38 = vor.u32 %v15543_v18, %v11406_v45  ;;  %v11273_v2 = vor.u32 %v15509_v4, %v11270_v53  ;;  %v9051_v47 = vpop.f32.mrf.mxu3  ;;  %v11630_v4 = vld [vmem:[%s16772_s27 + $0xb58] sm:$0xf0]  ;;  %v15615_v53 = vld [vmem:[%s16772_s27 + $0xbd4] sm:$0xf]  ;;  %v15629_v15 = vld [vmem:[%s16772_s27 + $0xc44] sm:$0xf] }
 0x34d   : > { %9290 = vmatpush.bf16.msra.mxu2 %v11433_v14  ;;  %v15525_v14 = vld [vmem:[%s16772_s27 + $0x904] sm:$0xf] }
 0x34e   : > { %9303 = vmatpush.bf16.msra.mxu3 %v11497_v22  ;;  %v11582_v22 = vld [vmem:[%s16772_s27 + $0xaf8] sm:$0xf0] }
 0x34f   : > { %9265 = vmatpush.bf16.msra.mxu0 %v11297_v6  ;;  %v15557_v6 = vld [vmem:[%s16772_s27 + $0xa04] sm:$0xf]  ;;  %v11585_v50 = vor.u32 %v15587_v31, %v11582_v22  ;;  %v11622_v22 = vld [vmem:[%s16772_s27 + $0xb48] sm:$0xf0] }
 0x350   : > { %9278 = vmatpush.bf16.msra.mxu1 %v11361_v17  ;;  %v11462_v17 = vld [vmem:[%s16772_s27 + $0xa08] sm:$0xf0]  ;;  %v15597_v31 = vld [vmem:[%s16772_s27 + $0xb44] sm:$0xf] }
 0x351   : > { %9291 = vmatpush.bf16.msra.mxu2 %v11425_v8  ;;  %v11337_v8 = vor.u32 %v15525_v14, %v11334_v25  ;;  %v11465_v51 = vor.u32 %v15557_v6, %v11462_v17  ;;  %v11569_v14 = vor.u32 %v15583_v32, %v11566_v43  ;;  %v11758_v25 = vld [vmem:[%s16772_s27 + $0xc58] sm:$0xf0]  ;;  %v11625_v6 = vor.u32 %v15597_v31, %v11622_v22  ;;  %v15579_v17 = vld [vmem:[%s16772_s27 + $0xab4] sm:$0xf]  ;;  %v11670_v32 = vld [vmem:[%s16772_s27 + $0xba8] sm:$0xf0] }
 0x352   : > { %9304 = vmatpush.bf16.msra.mxu3 %v11489_v26  ;;  %v15635_v26 = vld [vmem:[%s16772_s27 + $0xc74] sm:$0xf] }
 0x353   : > { %9266 = vmatpush.bf16.msra.mxu0 %v11289_v13  ;;  %v15601_v13 = vld [vmem:[%s16772_s27 + $0xb64] sm:$0xf]  ;;  %v11777_v12 = vor.u32 %v15635_v26, %v11774_v41  ;;  %v15611_v26 = vld [vmem:[%s16772_s27 + $0xbb4] sm:$0xf]  ;;  %v11678_v41 = vld [vmem:[%s16772_s27 + $0xbb8] sm:$0xf0] }
 0x354   : > { %9279 = vmatpush.bf16.msra.mxu1 %v11353_v27  ;;  %v11638_v27 = vld [vmem:[%s16772_s27 + $0xb68] sm:$0xf0] }
 0x355   : > { %9292 = vmatpush.bf16.msra.mxu2 %v11417_v54  ;;  %v15617_v54 = vld [vmem:[%s16772_s27 + $0xbe4] sm:$0xf]  ;;  %v11641_v18 = vor.u32 %v15601_v13, %v11638_v27  ;;  %v11742_v13 = vld [vmem:[%s16772_s27 + $0xc38] sm:$0xf0] }
 0x356   : > { %9305 = vmatpush.bf16.msra.mxu3 %v11481_v7  ;;  %v11766_v7 = vld [vmem:[%s16772_s27 + $0xc68] sm:$0xf0]  ;;  %v11705_v45 = vor.u32 %v15617_v54, %v11702_v30  ;;  %v11681_v54 = vor.u32 %v15611_v26, %v11678_v41  ;;  %v15577_v30 = vld [vmem:[%s16772_s27 + $0xaa4] sm:$0xf]  ;;  %v11902_v26 = vld [vmem:[%s16772_s27 + $0xd78] sm:$0xf0] }
 0x357   : > { %9267 = vmatpush.bf16.msra.mxu0 %v11281_v59  ;;  %v1512_v59 = vperm.slane %v16550_v20, 1  ;;  %v11734_v20 = vld [vmem:[%s16772_s27 + $0xc28] sm:$0xf0]  ;;  %v15683_v41 = vld [vmem:[%s16772_s27 + $0xdf4] sm:$0xf] }
 0x358   : > { %9280 = vmatpush.bf16.msra.mxu1 %v11345_v56  ;;  %v11694_v56 = vld [vmem:[%s16772_s27 + $0xbd8] sm:$0xf0] }
 0x359   : > { %9293 = vmatpush.bf16.msra.mxu2 %v11409_v38  ;;  %v11769_v38 = vor.u32 %v15633_v48, %v11766_v7  ;;  %v11697_v49 = vor.u32 %v15615_v53, %v11694_v56  ;;  %v11606_v48 = vld [vmem:[%s16772_s27 + $0xb28] sm:$0xf0]  ;;  %v15609_v7 = vld [vmem:[%s16772_s27 + $0xba4] sm:$0xf] }
 0x35a   : > { %9306 = vmatpush.bf16.msra.mxu3 %v11473_v33  ;;  %v15581_v33 = vld [vmem:[%s16772_s27 + $0xac4] sm:$0xf]  ;;  %v11673_v56 = vor.u32 %v15609_v7, %v11670_v32 }
 0x35b   : > { %9268 = vmatpush.bf16.msra.mxu0 %v11273_v2  ;;  %v11561_v24 = vor.u32 %v15581_v33, %v11558_v52  ;;  %v11750_v2 = vld [vmem:[%s16772_s27 + $0xc48] sm:$0xf0]  ;;  %v9062_v16 = vpop.f32.mrf.mxu0 }
 0x35c   : > { %9281 = vmatpush.bf16.msra.mxu1 %v11337_v8  ;;  %v11550_v8 = vld [vmem:[%s16772_s27 + $0xab8] sm:$0xf0]  ;;  %v9075_v47 = vpop.f32.mrf.mxu1 }
 0x35d   : > { %9294 = vmatpush.bf16.msra.mxu2 %v11401_v21  ;;  %v15595_v21 = vld [vmem:[%s16772_s27 + $0xb34] sm:$0xf]  ;;  %v11553_v34 = vor.u32 %v15579_v17, %v11550_v8  ;;  %v11654_v17 = vld [vmem:[%s16772_s27 + $0xb88] sm:$0xf0] }
 0x35e   : > { %9307 = vmatpush.bf16.msra.mxu3 %v11465_v51  ;;  %9269 = vmatmul.bf16.vlgmr.msra.gmra.mxu0 %v17179_v9  ;;  %v15631_v9 = vld [vmem:[%s16772_s27 + $0xc54] sm:$0xf] }
 0x35f   : > { %9313 = vmatpush.bf16.msrb.mxu0 %v11585_v50  ;;  %9282 = vmatmul.bf16.vlgmr.msra.gmra.mxu1 %v17177_v5  ;;  %v9050_v5 = vadd.f32 %v18697_v28, %v1512_v59  ;;  %v11761_v11 = vor.u32 %v15631_v9, %v11758_v25  ;;  %v15591_v9 = vld [vmem:[%s16772_s27 + $0xb14] sm:$0xf]  ;;  %v11598_v25 = vld [vmem:[%s16772_s27 + $0xb18] sm:$0xf0] }
 0x360   : > { %9326 = vmatpush.bf16.msrb.mxu1 %v11649_v29  ;;  %9295 = vmatmul.bf16.vlgmr.msra.gmra.mxu2 %v17181_v10  ;;  %v11633_v10 = vor.u32 %v15599_v46, %v11630_v4  ;;  %v11614_v29 = vld [vmem:[%s16772_s27 + $0xb38] sm:$0xf0]  ;;  %v15625_v46 = vld [vmem:[%s16772_s27 + $0xc24] sm:$0xf]  ;;  %v15651_v8 = vld [vmem:[%s16772_s27 + $0xcf4] sm:$0xf] }
 0x361   : > { %9339 = vmatpush.bf16.msrb.mxu2 %v11713_v42  ;;  %9308 = vmatmul.bf16.vlgmr.msra.gmra.mxu3 %v17239_v61  ;;  %v15613_v61 = vld [vmem:[%s16772_s27 + $0xbc4] sm:$0xf]  ;;  %v9063_v50 = vadd.f32 %v9062_v16, %v9050_v5  ;;  %v11753_v42 = vor.u32 %v15629_v15, %v11750_v2  ;;  %v11617_v27 = vor.u32 %v15595_v21, %v11614_v29  ;;  %v15623_v5 = vld [vmem:[%s16772_s27 + $0xc14] sm:$0xf]  ;;  %v11838_v21 = vld [vmem:[%s16772_s27 + $0xcf8] sm:$0xf0] }
 0x362   : > { %9352 = vmatpush.bf16.msrb.mxu3 %v11777_v12  ;;  %v11689_v28 = vor.u32 %v15613_v61, %v11686_v23  ;;  %v11542_v12 = vld [vmem:[%s16772_s27 + $0xaa8] sm:$0xf0]  ;;  %v11737_v31 = vor.u32 %v15625_v46, %v11734_v20  ;;  %v11726_v23 = vld [vmem:[%s16772_s27 + $0xc18] sm:$0xf0]  ;;  %v11601_v15 = vor.u32 %v15591_v9, %v11598_v25  ;;  %v15589_v16 = vld [vmem:[%s16772_s27 + $0xb04] sm:$0xf] }
 0x363   : > { %9314 = vmatpush.bf16.msrb.mxu0 %v11577_v44  ;;  %v9076_v51 = vadd.f32 %v9075_v47, %v9063_v50  ;;  %v15593_v44 = vld [vmem:[%s16772_s27 + $0xb24] sm:$0xf]  ;;  %v11545_v43 = vor.u32 %v15577_v30, %v11542_v12  ;;  %v9064_v4 = vpop.f32.mrf.mxu0  ;;  %v11729_v50 = vor.u32 %v15623_v5, %v11726_v23  ;;  %v15667_v29 = vld [vmem:[%s16772_s27 + $0xd74] sm:$0xf]  ;;  %v11894_v46 = vld [vmem:[%s16772_s27 + $0xd68] sm:$0xf0] }
 0x364   : > { %9327 = vmatpush.bf16.msrb.mxu1 %v11641_v18  ;;  %v11745_v18 = vor.u32 %v15627_v19, %v11742_v13  ;;  %v11609_v53 = vor.u32 %v15593_v44, %v11606_v48  ;;  %v9101_v33 = vpop.f32.mrf.mxu3  ;;  %v9077_v52 = vpop.f32.mrf.mxu1  ;;  %v11718_v19 = vld [vmem:[%s16772_s27 + $0xc08] sm:$0xf0]  ;;  %v11905_v30 = vor.u32 %v15667_v29, %v11902_v26  ;;  %v15699_v12 = vld [vmem:[%s16772_s27 + $0xe74] sm:$0xf]  ;;  %v12030_v44 = vld [vmem:[%s16772_s27 + $0xe78] sm:$0xf0] }
 0x365   : > { %9340 = vmatpush.bf16.msrb.mxu2 %v11705_v45  ;;  %v9088_v45 = vpop.f32.mrf.mxu2  ;;  %v15681_v20 = vld [vmem:[%s16772_s27 + $0xde4] sm:$0xf]  ;;  %v12033_v4 = vor.u32 %v15699_v12, %v12030_v44  ;;  %v15647_v25 = vld [vmem:[%s16772_s27 + $0xcd4] sm:$0xf]  ;;  %v11806_v26 = vld [vmem:[%s16772_s27 + $0xcb8] sm:$0xf0] }
 0x366   : > { %9353 = vmatpush.bf16.msrb.mxu3 %v11769_v38  ;;  %v9089_v59 = vadd.f32 %v9088_v45, %v9076_v51  ;;  %v15575_v38 = vld [vmem:[%s16772_s27 + $0xa94] sm:$0xf]  ;;  %v11966_v51 = vld [vmem:[%s16772_s27 + $0xdf8] sm:$0xf0]  ;;  %v11830_v45 = vld [vmem:[%s16772_s27 + $0xce8] sm:$0xf0] }
 0x367   : > { %9315 = vmatpush.bf16.msrb.mxu0 %v11569_v14  ;;  %v11534_v14 = vld [vmem:[%s16772_s27 + $0xa98] sm:$0xf0]  ;;  %v11969_v7 = vor.u32 %v15683_v41, %v11966_v51  ;;  %v15679_v52 = vld [vmem:[%s16772_s27 + $0xdd4] sm:$0xf] }
 0x368   : > { %9328 = vmatpush.bf16.msrb.mxu1 %v11633_v10  ;;  %v15607_v10 = vld [vmem:[%s16772_s27 + $0xb94] sm:$0xf]  ;;  %v18770_v22 = vadd.f32 %v9101_v33, %v9089_v59  ;;  %v11537_v61 = vor.u32 %v15575_v38, %v11534_v14  ;;  %v11958_v59 = vld [vmem:[%s16772_s27 + $0xde8] sm:$0xf0]  ;;  %v11886_v33 = vld [vmem:[%s16772_s27 + $0xd58] sm:$0xf0] }
 0x369   : > { %9341 = vmatpush.bf16.msrb.mxu2 %v11697_v49  ;;  %v11662_v49 = vld [vmem:[%s16772_s27 + $0xb98] sm:$0xf0]  ;;  %v12022_v38 = vld [vmem:[%s16772_s27 + $0xe68] sm:$0xf0]  ;;  %v11961_v9 = vor.u32 %v15681_v20, %v11958_v59  ;;  %v15643_v29 = vld [vmem:[%s16772_s27 + $0xcb4] sm:$0xf] }
 0x36a   : > { %9354 = vmatpush.bf16.msrb.mxu3 %v11761_v11  ;;  %v15573_v11 = vld [vmem:[%s16772_s27 + $0xa84] sm:$0xf]  ;;  %v11665_v2 = vor.u32 %v15607_v10, %v11662_v49  ;;  %v11822_v10 = vld [vmem:[%s16772_s27 + $0xcd8] sm:$0xf0]  ;;  %v15663_v49 = vld [vmem:[%s16772_s27 + $0xd54] sm:$0xf] }
 0x36b   : > { %9316 = vmatpush.bf16.msrb.mxu0 %v11561_v24  ;;  %v11526_v24 = vld [vmem:[%s16772_s27 + $0xa88] sm:$0xf0]  ;;  %v11889_v23 = vor.u32 %v15663_v49, %v11886_v33  ;;  %v15659_v41 = vld [vmem:[%s16772_s27 + $0xd34] sm:$0xf]  ;;  %v11870_v51 = vld [vmem:[%s16772_s27 + $0xd38] sm:$0xf0] }
 0x36c   : > { %9329 = vmatpush.bf16.msrb.mxu1 %v11625_v6  ;;  %v11590_v6 = vld [vmem:[%s16772_s27 + $0xb08] sm:$0xf0]  ;;  %v9103_v48 = vpop.f32.mrf.mxu3  ;;  %v11998_v12 = vld [vmem:[%s16772_s27 + $0xe38] sm:$0xf0]  ;;  %v15655_v33 = vld [vmem:[%s16772_s27 + $0xd14] sm:$0xf] }
 0x36d   : > { %9342 = vmatpush.bf16.msrb.mxu2 %v11689_v28  ;;  %v15605_v28 = vld [vmem:[%s16772_s27 + $0xb84] sm:$0xf]  ;;  %v9090_v47 = vpop.f32.mrf.mxu2  ;;  %v11593_v13 = vor.u32 %v15589_v16, %v11590_v6  ;;  %v11942_v6 = vld [vmem:[%s16772_s27 + $0xdc8] sm:$0xf0]  ;;  %v11873_v48 = vor.u32 %v15659_v41, %v11870_v51  ;;  %v11790_v49 = vld [vmem:[%s16772_s27 + $0xc98] sm:$0xf0] }
 0x36e   : > { %9355 = vmatpush.bf16.msrb.mxu3 %v11753_v42  ;;  %v11529_v42 = vor.u32 %v15573_v11, %v11526_v24  ;;  %v15645_v24 = vld [vmem:[%s16772_s27 + $0xcc4] sm:$0xf]  ;;  %v15731_v41 = vld [vmem:[%s16772_s27 + $0xf74] sm:$0xf] }
 0x36f   : > { %9317 = vmatpush.bf16.msrb.mxu0 %v11553_v34  ;;  %v15621_v34 = vld [vmem:[%s16772_s27 + $0xc04] sm:$0xf] }
 0x370   : > { %9330 = vmatpush.bf16.msrb.mxu1 %v11617_v27  ;;  %v11657_v27 = vor.u32 %v15605_v28, %v11654_v17  ;;  %v11721_v32 = vor.u32 %v15621_v34, %v11718_v19  ;;  %v15677_v16 = vld [vmem:[%s16772_s27 + $0xdc4] sm:$0xf]  ;;  %v15675_v34 = vld [vmem:[%s16772_s27 + $0xdb4] sm:$0xf]  ;;  %v11934_v19 = vld [vmem:[%s16772_s27 + $0xdb8] sm:$0xf0] }
 0x371   : > { %9343 = vmatpush.bf16.msrb.mxu2 %v11681_v54  ;;  %v11841_v54 = vor.u32 %v15651_v8, %v11838_v21  ;;  %v15693_v17 = vld [vmem:[%s16772_s27 + $0xe44] sm:$0xf]  ;;  %v12006_v8 = vld [vmem:[%s16772_s27 + $0xe48] sm:$0xf0] }
 0x372   : > { %9356 = vmatpush.bf16.msrb.mxu3 %v11745_v18  ;;  %v15649_v18 = vld [vmem:[%s16772_s27 + $0xce4] sm:$0xf] }
 0x373   : > { %9318 = vmatpush.bf16.msrb.mxu0 %v11545_v43  ;;  %v15665_v43 = vld [vmem:[%s16772_s27 + $0xd64] sm:$0xf] }
 0x374   : > { %9331 = vmatpush.bf16.msrb.mxu1 %v11609_v53  ;;  %v11833_v53 = vor.u32 %v15649_v18, %v11830_v45  ;;  %v11897_v14 = vor.u32 %v15665_v43, %v11894_v46  ;;  %v11798_v18 = vld [vmem:[%s16772_s27 + $0xca8] sm:$0xf0]  ;;  %v15657_v45 = vld [vmem:[%s16772_s27 + $0xd24] sm:$0xf] }
 0x375   : > { %9344 = vmatpush.bf16.msrb.mxu2 %v11673_v56  ;;  %v15697_v56 = vld [vmem:[%s16772_s27 + $0xe64] sm:$0xf]  ;;  %v11862_v43 = vld [vmem:[%s16772_s27 + $0xd28] sm:$0xf0] }
 0x376   : > { %9357 = vmatpush.bf16.msrb.mxu3 %v11737_v31  ;;  %v11950_v31 = vld [vmem:[%s16772_s27 + $0xdd8] sm:$0xf0]  ;;  %v12025_v5 = vor.u32 %v15697_v56, %v12022_v38  ;;  %v11926_v46 = vld [vmem:[%s16772_s27 + $0xda8] sm:$0xf0]  ;;  %v15689_v56 = vld [vmem:[%s16772_s27 + $0xe24] sm:$0xf] }
 0x377   : > { %9319 = vmatpush.bf16.msrb.mxu0 %v11537_v61  ;;  %v11825_v61 = vor.u32 %v15647_v25, %v11822_v10  ;;  %v11953_v11 = vor.u32 %v15679_v52, %v11950_v31  ;;  %v11990_v38 = vld [vmem:[%s16772_s27 + $0xe28] sm:$0xf0]  ;;  %v15639_v10 = vld [vmem:[%s16772_s27 + $0xc94] sm:$0xf] }
 0x378   : > { %9332 = vmatpush.bf16.msrb.mxu1 %v11601_v15  ;;  %v11814_v15 = vld [vmem:[%s16772_s27 + $0xcc8] sm:$0xf0] }
 0x379   : > { %9345 = vmatpush.bf16.msrb.mxu2 %v11665_v2  ;;  %v15661_v2 = vld [vmem:[%s16772_s27 + $0xd44] sm:$0xf]  ;;  %v11817_v28 = vor.u32 %v15645_v24, %v11814_v15  ;;  %v11793_v24 = vor.u32 %v15639_v10, %v11790_v49  ;;  %v11982_v15 = vld [vmem:[%s16772_s27 + $0xe18] sm:$0xf0]  ;;  %v15727_v49 = vld [vmem:[%s16772_s27 + $0xf54] sm:$0xf] }
 0x37a   : > { %9358 = vmatpush.bf16.msrb.mxu3 %v11729_v50  ;;  %v11945_v50 = vor.u32 %v15677_v16, %v11942_v6  ;;  %v12078_v10 = vld [vmem:[%s16772_s27 + $0xed8] sm:$0xf0] }
 0x37b   : > { %9320 = vmatpush.bf16.msrb.mxu0 %v11529_v42  ;;  %v9114_v47 = vpop.f32.mrf.mxu0 }
 0x37c   : > { %9333 = vmatpush.bf16.msrb.mxu1 %v11593_v13  ;;  %v9127_v42 = vpop.f32.mrf.mxu1  ;;  %v9115_v13 = vadd.f32 %v9114_v47, %v18770_v22  ;;  %v15673_v22 = vld [vmem:[%s16772_s27 + $0xda4] sm:$0xf]  ;;  %v12158_v47 = vld [vmem:[%s16772_s27 + $0xf78] sm:$0xf0] }
 0x37d   : > { %9346 = vmatpush.bf16.msrb.mxu2 %v11657_v27  ;;  %v12009_v27 = vor.u32 %v15693_v17, %v12006_v8  ;;  %v15669_v17 = vld [vmem:[%s16772_s27 + $0xd84] sm:$0xf]  ;;  %v11910_v8 = vld [vmem:[%s16772_s27 + $0xd88] sm:$0xf0] }
 0x37e   : > { %9359 = vmatpush.bf16.msrb.mxu3 %v11721_v32  ;;  %9321 = vmatmul.bf16.vlgmr.msrb.gmra.mxu0 %v17243_v63  ;;  %v15695_v63 = vld [vmem:[%s16772_s27 + $0xe54] sm:$0xf]  ;;  %v9128_v44 = vadd.f32 %v9127_v42, %v9115_v13  ;;  %v15641_v32 = vld [vmem:[%s16772_s27 + $0xca4] sm:$0xf]  ;;  %v11974_v13 = vld [vmem:[%s16772_s27 + $0xe08] sm:$0xf0] }
 0x37f   : > { %9365 = vmatpush.bf16.msra.mxu0 %v11841_v54  ;;  %9334 = vmatmul.bf16.vlgmr.msrb.gmra.mxu1 %v17241_v62  ;;  %v11878_v62 = vld [vmem:[%s16772_s27 + $0xd48] sm:$0xf0]  ;;  %v11809_v54 = vor.u32 %v15643_v29, %v11806_v26  ;;  %v15747_v42 = vld [vmem:[%s16772_s27 + $0xff4] sm:$0xf] }
 0x380   : > { %9378 = vmatpush.bf16.msra.mxu1 %v11905_v30  ;;  %9347 = vmatmul.bf16.vlgmr.msrb.gmra.mxu2 %v17245_v0  ;;  %v12014_v0 = vld [vmem:[%s16772_s27 + $0xe58] sm:$0xf0]  ;;  %v11881_v21 = vor.u32 %v15661_v2, %v11878_v62  ;;  %v15691_v30 = vld [vmem:[%s16772_s27 + $0xe34] sm:$0xf]  ;;  %v15637_v2 = vld [vmem:[%s16772_s27 + $0xc84] sm:$0xf] }
 0x381   : > { %9391 = vmatpush.bf16.msra.mxu2 %v11969_v7  ;;  %9360 = vmatmul.bf16.vlgmr.msrb.gmra.mxu3 %v17336_v35  ;;  %v12017_v35 = vor.u32 %v15695_v63, %v12014_v0  ;;  %v11937_v7 = vor.u32 %v15675_v34, %v11934_v19  ;;  %v12001_v59 = vor.u32 %v15691_v30, %v11998_v12  ;;  %v11918_v63 = vld [vmem:[%s16772_s27 + $0xd98] sm:$0xf0]  ;;  %v11782_v62 = vld [vmem:[%s16772_s27 + $0xc88] sm:$0xf0]  ;;  %v15685_v19 = vld [vmem:[%s16772_s27 + $0xe04] sm:$0xf] }
 0x382   : > { %9404 = vmatpush.bf16.msra.mxu3 %v12033_v4  ;;  %v11785_v51 = vor.u32 %v15637_v2, %v11782_v62  ;;  %v12222_v34 = vld [vmem:[%s16772_s27 + $0xff8] sm:$0xf0]  ;;  %v12134_v2 = vld [vmem:[%s16772_s27 + $0xf48] sm:$0xf0] }
 0x383   : > { %9366 = vmatpush.bf16.msra.mxu0 %v11833_v53  ;;  %v9140_v20 = vpop.f32.mrf.mxu2  ;;  %v11801_v53 = vor.u32 %v15641_v32, %v11798_v18  ;;  %v9116_v52 = vpop.f32.mrf.mxu0  ;;  %v12225_v32 = vor.u32 %v15747_v42, %v12222_v34  ;;  %v11977_v18 = vor.u32 %v15685_v19, %v11974_v13  ;;  %v12198_v62 = vld [vmem:[%s16772_s27 + $0xfc8] sm:$0xf0]  ;;  %v12126_v42 = vld [vmem:[%s16772_s27 + $0xf38] sm:$0xf0]  ;;  %v15755_v13 = vld [vmem:[%s16772_s27 + $0x1034] sm:$0xf] }
 0x384   : > { %9379 = vmatpush.bf16.msra.mxu1 %v11897_v14  ;;  %v9141_v4 = vadd.f32 %v9140_v20, %v9128_v44  ;;  %v11865_v14 = vor.u32 %v15657_v45, %v11862_v43  ;;  %v9153_v25 = vpop.f32.mrf.mxu3  ;;  %v9129_v0 = vpop.f32.mrf.mxu1  ;;  %v12161_v44 = vor.u32 %v15731_v41, %v12158_v47  ;;  %v15713_v45 = vld [vmem:[%s16772_s27 + $0xee4] sm:$0xf]  ;;  %v12086_v43 = vld [vmem:[%s16772_s27 + $0xee8] sm:$0xf0]  ;;  %v15743_v52 = vld [vmem:[%s16772_s27 + $0xfd4] sm:$0xf] }
 0x385   : > { %9392 = vmatpush.bf16.msra.mxu2 %v11961_v9  ;;  %v11929_v9 = vor.u32 %v15673_v22, %v11926_v46  ;;  %v15729_v22 = vld [vmem:[%s16772_s27 + $0xf64] sm:$0xf]  ;;  %v12150_v46 = vld [vmem:[%s16772_s27 + $0xf68] sm:$0xf0]  ;;  %v12270_v0 = vld [vmem:[%s16772_s27 + $0x1058] sm:$0xf0] }
 0x386   : > { %9405 = vmatpush.bf16.msra.mxu3 %v12025_v5  ;;  %v18837_v31 = vadd.f32 %v9153_v25, %v9141_v4  ;;  %v11854_v5 = vld [vmem:[%s16772_s27 + $0xd18] sm:$0xf0]  ;;  %v15745_v20 = vld [vmem:[%s16772_s27 + $0xfe4] sm:$0xf]  ;;  %v15711_v25 = vld [vmem:[%s16772_s27 + $0xed4] sm:$0xf] }
 0x387   : > { %9367 = vmatpush.bf16.msra.mxu0 %v11825_v61  ;;  %v15671_v61 = vld [vmem:[%s16772_s27 + $0xd94] sm:$0xf]  ;;  %v11857_v16 = vor.u32 %v15655_v33, %v11854_v5  ;;  %v12142_v33 = vld [vmem:[%s16772_s27 + $0xf58] sm:$0xf0] }
 0x388   : > { %9380 = vmatpush.bf16.msra.mxu1 %v11889_v23  ;;  %v11993_v23 = vor.u32 %v15689_v56, %v11990_v38  ;;  %v11921_v6 = vor.u32 %v15671_v61, %v11918_v63  ;;  %v15761_v56 = vld [vmem:[%s16772_s27 + $0x1064] sm:$0xf]  ;;  %v12278_v38 = vld [vmem:[%s16772_s27 + $0x1068] sm:$0xf0]  ;;  %v12206_v5 = vld [vmem:[%s16772_s27 + $0xfd8] sm:$0xf0]  ;;  %v12081_v63 = vor.u32 %v15711_v25, %v12078_v10 }
 0x389   : > { %9393 = vmatpush.bf16.msra.mxu2 %v11953_v11  ;;  %v15687_v11 = vld [vmem:[%s16772_s27 + $0xe14] sm:$0xf]  ;;  %v12281_v61 = vor.u32 %v15761_v56, %v12278_v38  ;;  %v12046_v25 = vld [vmem:[%s16772_s27 + $0xe98] sm:$0xf0] }
 0x38a   : > { %9406 = vmatpush.bf16.msra.mxu3 %v12017_v35  ;;  %v15653_v35 = vld [vmem:[%s16772_s27 + $0xd04] sm:$0xf]  ;;  %v11985_v26 = vor.u32 %v15687_v11, %v11982_v15  ;;  %v15723_v41 = vld [vmem:[%s16772_s27 + $0xf34] sm:$0xf] }
 0x38b   : > { %9368 = vmatpush.bf16.msra.mxu0 %v11817_v28  ;;  %v11846_v28 = vld [vmem:[%s16772_s27 + $0xd08] sm:$0xf0]  ;;  %v9142_v29 = vpop.f32.mrf.mxu2  ;;  %v15709_v11 = vld [vmem:[%s16772_s27 + $0xec4] sm:$0xf]  ;;  %v15719_v10 = vld [vmem:[%s16772_s27 + $0xf14] sm:$0xf] }
 0x38c   : > { %9381 = vmatpush.bf16.msra.mxu1 %v11881_v21  ;;  %v15715_v21 = vld [vmem:[%s16772_s27 + $0xef4] sm:$0xf]  ;;  %v9155_v30 = vpop.f32.mrf.mxu3  ;;  %v15725_v15 = vld [vmem:[%s16772_s27 + $0xf44] sm:$0xf] }
 0x38d   : > { %9394 = vmatpush.bf16.msra.mxu2 %v11945_v50  ;;  %v12094_v50 = vld [vmem:[%s16772_s27 + $0xef8] sm:$0xf0]  ;;  %v15707_v29 = vld [vmem:[%s16772_s27 + $0xeb4] sm:$0xf] }
 0x38e   : > { %9407 = vmatpush.bf16.msra.mxu3 %v12009_v27  ;;  %v11849_v27 = vor.u32 %v15653_v35, %v11846_v28  ;;  %v12097_v12 = vor.u32 %v15715_v21, %v12094_v50  ;;  %v15757_v28 = vld [vmem:[%s16772_s27 + $0x1044] sm:$0xf] }
 0x38f   : > { %9369 = vmatpush.bf16.msra.mxu0 %v11809_v54  ;;  %v11913_v54 = vor.u32 %v15669_v17, %v11910_v8  ;;  %v12262_v17 = vld [vmem:[%s16772_s27 + $0x1048] sm:$0xf0]  ;;  %v12137_v8 = vor.u32 %v15725_v15, %v12134_v2  ;;  %v15717_v15 = vld [vmem:[%s16772_s27 + $0xf04] sm:$0xf] }
 0x390   : > { %9382 = vmatpush.bf16.msra.mxu1 %v11873_v48  ;;  %v15763_v48 = vld [vmem:[%s16772_s27 + $0x1074] sm:$0xf]  ;;  %v12265_v34 = vor.u32 %v15757_v28, %v12262_v17  ;;  %v12102_v2 = vld [vmem:[%s16772_s27 + $0xf08] sm:$0xf0]  ;;  %v12414_v17 = vld [vmem:[%s16772_s27 + $0x1178] sm:$0xf0] }
 0x391   : > { %9395 = vmatpush.bf16.msra.mxu2 %v11937_v7  ;;  %v12286_v7 = vld [vmem:[%s16772_s27 + $0x1078] sm:$0xf0]  ;;  %v15795_v28 = vld [vmem:[%s16772_s27 + $0x1174] sm:$0xf] }
 0x392   : > { %9408 = vmatpush.bf16.msra.mxu3 %v12001_v59  ;;  %v12214_v59 = vld [vmem:[%s16772_s27 + $0xfe8] sm:$0xf0]  ;;  %v12289_v4 = vor.u32 %v15763_v48, %v12286_v7  ;;  %v15721_v48 = vld [vmem:[%s16772_s27 + $0xf24] sm:$0xf] }
 0x393   : > { %9370 = vmatpush.bf16.msra.mxu0 %v11801_v53  ;;  %v12089_v53 = vor.u32 %v15713_v45, %v12086_v43  ;;  %v12182_v45 = vld [vmem:[%s16772_s27 + $0xfa8] sm:$0xf0] }
 0x394   : > { %9383 = vmatpush.bf16.msra.mxu1 %v11865_v14  ;;  %v12153_v14 = vor.u32 %v15729_v22, %v12150_v46 }
 0x395   : > { %9396 = vmatpush.bf16.msra.mxu2 %v11929_v9  ;;  %v12217_v9 = vor.u32 %v15745_v20, %v12214_v59 }
 0x396   : > { %9409 = vmatpush.bf16.msra.mxu3 %v11993_v23  ;;  %v12209_v23 = vor.u32 %v15743_v52, %v12206_v5  ;;  %v15735_v52 = vld [vmem:[%s16772_s27 + $0xf94] sm:$0xf]  ;;  %v12174_v5 = vld [vmem:[%s16772_s27 + $0xf98] sm:$0xf0] }
 0x397   : > { %9371 = vmatpush.bf16.msra.mxu0 %v11793_v24  ;;  %v12070_v24 = vld [vmem:[%s16772_s27 + $0xec8] sm:$0xf0] }
 0x398   : > { %9384 = vmatpush.bf16.msra.mxu1 %v11857_v16  ;;  %v12073_v35 = vor.u32 %v15709_v11, %v12070_v24  ;;  %v12177_v24 = vor.u32 %v15735_v52, %v12174_v5  ;;  %v15773_v52 = vld [vmem:[%s16772_s27 + $0x10c4] sm:$0xf]  ;;  %v12326_v5 = vld [vmem:[%s16772_s27 + $0x10c8] sm:$0xf0] }
 0x399   : > { %9397 = vmatpush.bf16.msra.mxu2 %v11921_v6 }
 0x39a   : > { %9410 = vmatpush.bf16.msra.mxu3 %v11985_v26  ;;  %v12062_v26 = vld [vmem:[%s16772_s27 + $0xeb8] sm:$0xf0] }
 0x39b   : > { %9372 = vmatpush.bf16.msra.mxu0 %v11785_v51  ;;  %v9166_v16 = vpop.f32.mrf.mxu0  ;;  %v15739_v51 = vld [vmem:[%s16772_s27 + $0xfb4] sm:$0xf]  ;;  %v12065_v19 = vor.u32 %v15707_v29, %v12062_v26  ;;  %v15749_v29 = vld [vmem:[%s16772_s27 + $0x1004] sm:$0xf]  ;;  %v12230_v26 = vld [vmem:[%s16772_s27 + $0x1008] sm:$0xf0] }
 0x39c   : > { %9385 = vmatpush.bf16.msra.mxu1 %v11849_v27  ;;  %v9167_v6 = vadd.f32 %v9166_v16, %v18837_v31  ;;  %v9179_v50 = vpop.f32.mrf.mxu1  ;;  %v12190_v31 = vld [vmem:[%s16772_s27 + $0xfb8] sm:$0xf0] }
 0x39d   : > { %9398 = vmatpush.bf16.msra.mxu2 %v11913_v54  ;;  %v12254_v27 = vld [vmem:[%s16772_s27 + $0x1038] sm:$0xf0]  ;;  %v12129_v54 = vor.u32 %v15723_v41, %v12126_v42  ;;  %v12193_v30 = vor.u32 %v15739_v51, %v12190_v31  ;;  %v12417_v31 = vor.u32 %v15795_v28, %v12414_v17  ;;  %v15803_v17 = vld [vmem:[%s16772_s27 + $0x11b4] sm:$0xf] }
 0x39e   : > { %9411 = vmatpush.bf16.msra.mxu3 %v11977_v18  ;;  %9373 = vmatmul.bf16.vlgmr.msra.gmra.mxu0 %v17340_v39  ;;  %v15759_v39 = vld [vmem:[%s16772_s27 + $0x1054] sm:$0xf]  ;;  %v9180_v47 = vadd.f32 %v9179_v50, %v9167_v6  ;;  %v15737_v18 = vld [vmem:[%s16772_s27 + $0xfa4] sm:$0xf]  ;;  %v12257_v22 = vor.u32 %v15755_v13, %v12254_v27  ;;  %v12350_v16 = vld [vmem:[%s16772_s27 + $0x10f8] sm:$0xf0]  ;;  %v12233_v27 = vor.u32 %v15749_v29, %v12230_v26 }
 0x39f   : > { %9417 = vmatpush.bf16.msrb.mxu0 %v12097_v12  ;;  %9386 = vmatmul.bf16.vlgmr.msra.gmra.mxu1 %v17338_v36  ;;  %v15741_v36 = vld [vmem:[%s16772_s27 + $0xfc4] sm:$0xf]  ;;  %v12478_v50 = vld [vmem:[%s16772_s27 + $0x11f8] sm:$0xf0] }
 0x3a0   : > { %9430 = vmatpush.bf16.msrb.mxu1 %v12161_v44  ;;  %9399 = vmatmul.bf16.vlgmr.msra.gmra.mxu2 %v17342_v40  ;;  %v12145_v40 = vor.u32 %v15727_v49, %v12142_v33  ;;  %v12201_v21 = vor.u32 %v15741_v36, %v12198_v62  ;;  %v15705_v12 = vld [vmem:[%s16772_s27 + $0xea4] sm:$0xf]  ;;  %v12054_v44 = vld [vmem:[%s16772_s27 + $0xea8] sm:$0xf0]  ;;  %v12110_v33 = vld [vmem:[%s16772_s27 + $0xf18] sm:$0xf0] }
 0x3a1   : > { %9443 = vmatpush.bf16.msrb.mxu2 %v12225_v32  ;;  %9412 = vmatmul.bf16.vlgmr.msra.gmra.mxu3 %v17402_v57  ;;  %v12273_v57 = vor.u32 %v15759_v39, %v12270_v0  ;;  %v12118_v32 = vld [vmem:[%s16772_s27 + $0xf28] sm:$0xf0]  ;;  %v12057_v59 = vor.u32 %v15705_v12, %v12054_v44  ;;  %v12238_v0 = vld [vmem:[%s16772_s27 + $0x1018] sm:$0xf0]  ;;  %v12113_v11 = vor.u32 %v15719_v10, %v12110_v33  ;;  %v15733_v36 = vld [vmem:[%s16772_s27 + $0xf84] sm:$0xf] }
 0x3a2   : > { %9456 = vmatpush.bf16.msrb.mxu3 %v12289_v4  ;;  %v15753_v4 = vld [vmem:[%s16772_s27 + $0x1024] sm:$0xf]  ;;  %v12121_v38 = vor.u32 %v15721_v48, %v12118_v32  ;;  %v12166_v62 = vld [vmem:[%s16772_s27 + $0xf88] sm:$0xf0]  ;;  %v12382_v28 = vld [vmem:[%s16772_s27 + $0x1138] sm:$0xf0] }
 0x3a3   : > { %9418 = vmatpush.bf16.msrb.mxu0 %v12089_v53  ;;  %v9192_v7 = vpop.f32.mrf.mxu2  ;;  %v9168_v46 = vpop.f32.mrf.mxu0  ;;  %v12246_v53 = vld [vmem:[%s16772_s27 + $0x1028] sm:$0xf0]  ;;  %v12169_v42 = vor.u32 %v15733_v36, %v12166_v62  ;;  %v15793_v12 = vld [vmem:[%s16772_s27 + $0x1164] sm:$0xf]  ;;  %v12510_v29 = vld [vmem:[%s16772_s27 + $0x1238] sm:$0xf0] }
 0x3a4   : > { %9431 = vmatpush.bf16.msrb.mxu1 %v12153_v14  ;;  %v9193_v43 = vadd.f32 %v9192_v7, %v9180_v47  ;;  %v9205_v20 = vpop.f32.mrf.mxu3  ;;  %v12185_v14 = vor.u32 %v15737_v18, %v12182_v45  ;;  %v9181_v49 = vpop.f32.mrf.mxu1  ;;  %v12105_v47 = vor.u32 %v15717_v15, %v12102_v2  ;;  %v12406_v44 = vld [vmem:[%s16772_s27 + $0x1168] sm:$0xf0]  ;;  %v15809_v48 = vld [vmem:[%s16772_s27 + $0x11e4] sm:$0xf] }
 0x3a5   : > { %9444 = vmatpush.bf16.msrb.mxu2 %v12217_v9  ;;  %v15703_v9 = vld [vmem:[%s16772_s27 + $0xe94] sm:$0xf]  ;;  %v12470_v7 = vld [vmem:[%s16772_s27 + $0x11e8] sm:$0xf0]  ;;  %v15825_v45 = vld [vmem:[%s16772_s27 + $0x1264] sm:$0xf] }
 0x3a6   : > { %9457 = vmatpush.bf16.msrb.mxu3 %v12281_v61  ;;  %v18905_v56 = vadd.f32 %v9205_v20, %v9193_v43  ;;  %v12249_v61 = vor.u32 %v15753_v4, %v12246_v53  ;;  %v12049_v39 = vor.u32 %v15703_v9, %v12046_v25  ;;  %v12534_v43 = vld [vmem:[%s16772_s27 + $0x1268] sm:$0xf0]  ;;  %v12473_v46 = vor.u32 %v15809_v48, %v12470_v7  ;;  %v15775_v20 = vld [vmem:[%s16772_s27 + $0x10d4] sm:$0xf]  ;;  %v12398_v53 = vld [vmem:[%s16772_s27 + $0x1158] sm:$0xf0] }
 0x3a7   : > { %9419 = vmatpush.bf16.msrb.mxu0 %v12081_v63  ;;  %v15751_v63 = vld [vmem:[%s16772_s27 + $0x1014] sm:$0xf]  ;;  %v12537_v9 = vor.u32 %v15825_v45, %v12534_v43  ;;  %v19838_v25 = vld [vmem:[#allocation8_spill] sm:$0xff]  ;;  %v12526_v49 = vld [vmem:[%s16772_s27 + $0x1258] sm:$0xf0] }
 0x3a8   : > { %9432 = vmatpush.bf16.msrb.mxu1 %v12145_v40  ;;  %v15701_v40 = vld [vmem:[%s16772_s27 + $0xe84] sm:$0xf]  ;;  %v15791_v4 = vld [vmem:[%s16772_s27 + $0x1154] sm:$0xf]  ;;  %v12518_v2 = vld [vmem:[%s16772_s27 + $0x1248] sm:$0xf0] }
 0x3a9   : > { %9445 = vmatpush.bf16.msrb.mxu2 %v12209_v23  ;;  %v12038_v23 = vld [vmem:[%s16772_s27 + $0xe88] sm:$0xf0]  ;;  %v15821_v15 = vld [vmem:[%s16772_s27 + $0x1244] sm:$0xf] }
 0x3aa   : > { %9458 = vmatpush.bf16.msrb.mxu3 %v12273_v57  ;;  %v15779_v57 = vld [vmem:[%s16772_s27 + $0x10f4] sm:$0xf]  ;;  %v15817_v48 = vld [vmem:[%s16772_s27 + $0x1224] sm:$0xf]  ;;  %v12502_v7 = vld [vmem:[%s16772_s27 + $0x1228] sm:$0xf0] }
 0x3ab   : > { %9420 = vmatpush.bf16.msrb.mxu0 %v12073_v35  ;;  %v9194_v6 = vpop.f32.mrf.mxu2  ;;  %v12241_v35 = vor.u32 %v15751_v63, %v12238_v0  ;;  %v12353_v51 = vor.u32 %v15779_v57, %v12350_v16  ;;  %v12390_v63 = vld [vmem:[%s16772_s27 + $0x1148] sm:$0xf0]  ;;  %v15771_v57 = vld [vmem:[%s16772_s27 + $0x10b4] sm:$0xf]  ;;  %v12318_v16 = vld [vmem:[%s16772_s27 + $0x10b8] sm:$0xf0] }
 0x3ac   : > { %9433 = vmatpush.bf16.msrb.mxu1 %v12137_v8  ;;  %v15811_v8 = vld [vmem:[%s16772_s27 + $0x11f4] sm:$0xf]  ;;  %v9207_v41 = vpop.f32.mrf.mxu3 }
 0x3ad   : > { %9446 = vmatpush.bf16.msrb.mxu2 %v12201_v21  ;;  %v12041_v21 = vor.u32 %v15701_v40, %v12038_v23  ;;  %v12481_v13 = vor.u32 %v15811_v8, %v12478_v50  ;;  %v15787_v6 = vld [vmem:[%s16772_s27 + $0x1134] sm:$0xf]  ;;  %v12521_v8 = vor.u32 %v15821_v15, %v12518_v2  ;;  %v12734_v2 = vld [vmem:[%s16772_s27 + $0x13f8] sm:$0xf0] }
 0x3ae   : > { %9459 = vmatpush.bf16.msrb.mxu3 %v12265_v34  ;;  %v15827_v34 = vld [vmem:[%s16772_s27 + $0x1274] sm:$0xf]  ;;  %v12385_v26 = vor.u32 %v15787_v6, %v12382_v28 }
 0x3af   : > { %9421 = vmatpush.bf16.msrb.mxu0 %v12065_v19  ;;  %v12542_v19 = vld [vmem:[%s16772_s27 + $0x1278] sm:$0xf0]  ;;  %v15819_v50 = vld [vmem:[%s16772_s27 + $0x1234] sm:$0xf] }
 0x3b0   : > { %9434 = vmatpush.bf16.msrb.mxu1 %v12129_v54  ;;  %v15777_v54 = vld [vmem:[%s16772_s27 + $0x10e4] sm:$0xf]  ;;  %v12545_v32 = vor.u32 %v15827_v34, %v12542_v19  ;;  %v12374_v34 = vld [vmem:[%s16772_s27 + $0x1128] sm:$0xf0]  ;;  %v15891_v28 = vld [vmem:[%s16772_s27 + $0x1474] sm:$0xf] }
 0x3b1   : > { %9447 = vmatpush.bf16.msrb.mxu2 %v12193_v30  ;;  %v12342_v30 = vld [vmem:[%s16772_s27 + $0x10e8] sm:$0xf0]  ;;  %v15801_v19 = vld [vmem:[%s16772_s27 + $0x11a4] sm:$0xf] }
 0x3b2   : > { %9460 = vmatpush.bf16.msrb.mxu3 %v12257_v22  ;;  %v12345_v18 = vor.u32 %v15777_v54, %v12342_v30  ;;  %v12409_v22 = vor.u32 %v15793_v12, %v12406_v44  ;;  %v12513_v54 = vor.u32 %v15819_v50, %v12510_v29  ;;  %v12598_v50 = vld [vmem:[%s16772_s27 + $0x12e8] sm:$0xf0]  ;;  %v15857_v29 = vld [vmem:[%s16772_s27 + $0x1364] sm:$0xf] }
 0x3b3   : > { %9422 = vmatpush.bf16.msrb.mxu0 %v12057_v59  ;;  %v12334_v59 = vld [vmem:[%s16772_s27 + $0x10d8] sm:$0xf0] }
 0x3b4   : > { %9435 = vmatpush.bf16.msrb.mxu1 %v12121_v38  ;;  %v15807_v38 = vld [vmem:[%s16772_s27 + $0x11d4] sm:$0xf]  ;;  %v12337_v10 = vor.u32 %v15775_v20, %v12334_v59  ;;  %v12366_v59 = vld [vmem:[%s16772_s27 + $0x1118] sm:$0xf0] }
 0x3b5   : > { %9448 = vmatpush.bf16.msrb.mxu2 %v12185_v14  ;;  %v12462_v14 = vld [vmem:[%s16772_s27 + $0x11d8] sm:$0xf0]  ;;  %v15783_v20 = vld [vmem:[%s16772_s27 + $0x1114] sm:$0xf] }
 0x3b6   : > { %9461 = vmatpush.bf16.msrb.mxu3 %v12249_v61  ;;  %v12465_v33 = vor.u32 %v15807_v38, %v12462_v14  ;;  %v15789_v61 = vld [vmem:[%s16772_s27 + $0x1144] sm:$0xf]  ;;  %v12505_v38 = vor.u32 %v15817_v48, %v12502_v7  ;;  %v15815_v14 = vld [vmem:[%s16772_s27 + $0x1214] sm:$0xf]  ;;  %v12654_v48 = vld [vmem:[%s16772_s27 + $0x1358] sm:$0xf0] }
 0x3b7   : > { %9423 = vmatpush.bf16.msrb.mxu0 %v12049_v39  ;;  %v12454_v39 = vld [vmem:[%s16772_s27 + $0x11c8] sm:$0xf0]  ;;  %v12393_v36 = vor.u32 %v15789_v61, %v12390_v63  ;;  %v15843_v63 = vld [vmem:[%s16772_s27 + $0x12f4] sm:$0xf] }
 0x3b8   : > { %9436 = vmatpush.bf16.msrb.mxu1 %v12113_v11  ;;  %v12329_v11 = vor.u32 %v15773_v52, %v12326_v5  ;;  %v12358_v52 = vld [vmem:[%s16772_s27 + $0x1108] sm:$0xf0]  ;;  %v15797_v5 = vld [vmem:[%s16772_s27 + $0x1184] sm:$0xf]  ;;  %v15871_v7 = vld [vmem:[%s16772_s27 + $0x13d4] sm:$0xf] }
 0x3b9   : > { %9449 = vmatpush.bf16.msrb.mxu2 %v12177_v24  ;;  %v12422_v61 = vld [vmem:[%s16772_s27 + $0x1188] sm:$0xf0] }
 0x3ba   : > { %9462 = vmatpush.bf16.msrb.mxu3 %v12241_v35 }
 0x3bb   : > { %9424 = vmatpush.bf16.msrb.mxu0 %v12041_v21  ;;  %v9218_v40 = vpop.f32.mrf.mxu0  ;;  %v12321_v21 = vor.u32 %v15771_v57, %v12318_v16  ;;  %v12425_v16 = vor.u32 %v15797_v5, %v12422_v61  ;;  %v15885_v61 = vld [vmem:[%s16772_s27 + $0x1444] sm:$0xf] }
 0x3bc   : > { %9437 = vmatpush.bf16.msrb.mxu1 %v12105_v47  ;;  %v9219_v23 = vadd.f32 %v9218_v40, %v18905_v56  ;;  %v9231_v24 = vpop.f32.mrf.mxu1  ;;  %v12446_v56 = vld [vmem:[%s16772_s27 + $0x11b8] sm:$0xf0]  ;;  %v15769_v47 = vld [vmem:[%s16772_s27 + $0x10a4] sm:$0xf]  ;;  %v15859_v40 = vld [vmem:[%s16772_s27 + $0x1374] sm:$0xf] }
 0x3bd   : > { %9450 = vmatpush.bf16.msrb.mxu2 %v12169_v42  ;;  %v12449_v41 = vor.u32 %v15803_v17, %v12446_v56  ;;  %v12310_v42 = vld [vmem:[%s16772_s27 + $0x10a8] sm:$0xf0]  ;;  %v12798_v17 = vld [vmem:[%s16772_s27 + $0x1478] sm:$0xf0] }
 0x3be   : > { %9463 = vmatpush.bf16.msrb.mxu3 %v12233_v27  ;;  %9425 = vmatmul.bf16.vlgmr.msrb.gmra.mxu0 %v17406_v60  ;;  %v15823_v60 = vld [vmem:[%s16772_s27 + $0x1254] sm:$0xf]  ;;  %v9232_v35 = vadd.f32 %v9231_v24, %v9219_v23  ;;  %v12313_v44 = vor.u32 %v15769_v47, %v12310_v42  ;;  %v12670_v23 = vld [vmem:[%s16772_s27 + $0x1378] sm:$0xf0]  ;;  %v12726_v47 = vld [vmem:[%s16772_s27 + $0x13e8] sm:$0xf0]  ;;  %v12801_v42 = vor.u32 %v15891_v28, %v12798_v17 }
 0x3bf   : > { %9469 = vmatpush.bf16.msra.mxu0 %v12353_v51  ;;  %9438 = vmatmul.bf16.vlgmr.msrb.gmra.mxu1 %v17404_v58  ;;  %v15805_v58 = vld [vmem:[%s16772_s27 + $0x11c4] sm:$0xf]  ;;  %v12529_v0 = vor.u32 %v15823_v60, %v12526_v49  ;;  %v12294_v60 = vld [vmem:[%s16772_s27 + $0x1088] sm:$0xf0]  ;;  %v12369_v49 = vor.u32 %v15783_v20, %v12366_v59  ;;  %v15887_v20 = vld [vmem:[%s16772_s27 + $0x1454] sm:$0xf] }
 0x3c0   : > { %9482 = vmatpush.bf16.msra.mxu1 %v12417_v31  ;;  %9451 = vmatmul.bf16.vlgmr.msrb.gmra.mxu2 %v17408_v1  ;;  %v12401_v1 = vor.u32 %v15791_v4, %v12398_v53  ;;  %v12457_v62 = vor.u32 %v15805_v58, %v12454_v39  ;;  %v15785_v51 = vld [vmem:[%s16772_s27 + $0x1124] sm:$0xf]  ;;  %v15799_v4 = vld [vmem:[%s16772_s27 + $0x1194] sm:$0xf]  ;;  %v12430_v53 = vld [vmem:[%s16772_s27 + $0x1198] sm:$0xf0] }
 0x3c1   : > { %9495 = vmatpush.bf16.msra.mxu2 %v12481_v13  ;;  %9464 = vmatmul.bf16.vlgmr.msrb.gmra.mxu3 %v19838_v25  ;;  %v12438_v13 = vld [vmem:[%s16772_s27 + $0x11a8] sm:$0xf0]  ;;  %v12377_v45 = vor.u32 %v15785_v51, %v12374_v34  ;;  %v12494_v25 = vld [vmem:[%s16772_s27 + $0x1218] sm:$0xf0]  ;;  %v15833_v28 = vld [vmem:[%s16772_s27 + $0x12a4] sm:$0xf] }
 0x3c2   : > { %9508 = vmatpush.bf16.msra.mxu3 %v12545_v32  ;;  %v12441_v43 = vor.u32 %v15801_v19, %v12438_v13  ;;  %v12606_v58 = vld [vmem:[%s16772_s27 + $0x12f8] sm:$0xf0]  ;;  %v12790_v34 = vld [vmem:[%s16772_s27 + $0x1468] sm:$0xf0] }
 0x3c3   : > { %9470 = vmatpush.bf16.msra.mxu0 %v12345_v18  ;;  %v9244_v31 = vpop.f32.mrf.mxu2  ;;  %v9220_v12 = vpop.f32.mrf.mxu0  ;;  %v12609_v6 = vor.u32 %v15843_v63, %v12606_v58  ;;  %v12782_v59 = vld [vmem:[%s16772_s27 + $0x1458] sm:$0xf0]  ;;  %v12774_v63 = vld [vmem:[%s16772_s27 + $0x1448] sm:$0xf0] }
 0x3c4   : > { %9483 = vmatpush.bf16.msra.mxu1 %v12409_v22  ;;  %v9245_v27 = vadd.f32 %v9244_v31, %v9232_v35  ;;  %v9257_v30 = vpop.f32.mrf.mxu3  ;;  %v9233_v32 = vpop.f32.mrf.mxu1  ;;  %v15767_v22 = vld [vmem:[%s16772_s27 + $0x1094] sm:$0xf]  ;;  %v12673_v35 = vor.u32 %v15859_v40, %v12670_v23  ;;  %v15889_v31 = vld [vmem:[%s16772_s27 + $0x1464] sm:$0xf]  ;;  %v12574_v40 = vld [vmem:[%s16772_s27 + $0x12b8] sm:$0xf0] }
 0x3c5   : > { %9496 = vmatpush.bf16.msra.mxu2 %v12473_v46  ;;  %v12302_v46 = vld [vmem:[%s16772_s27 + $0x1098] sm:$0xf0]  ;;  %v19839_v12 = vld [vmem:[#allocation10_spill] sm:$0xff]  ;;  %v12566_v17 = vld [vmem:[%s16772_s27 + $0x12a8] sm:$0xf0] }
 0x3c6   : > { %9509 = vmatpush.bf16.msra.mxu3 %v12537_v9  ;;  %v18976_v18 = vadd.f32 %v9257_v30, %v9245_v27  ;;  %v12305_v9 = vor.u32 %v15767_v22, %v12302_v46  ;;  %v15839_v27 = vld [vmem:[%s16772_s27 + $0x12d4] sm:$0xf]  ;;  %v12718_v32 = vld [vmem:[%s16772_s27 + $0x13d8] sm:$0xf0]  ;;  %v19842_v22 = vld [vmem:[#allocation12_spill] sm:$0xff] }
 0x3c7   : > { %9471 = vmatpush.bf16.msra.mxu0 %v12337_v10  ;;  %v15765_v10 = vld [vmem:[%s16772_s27 + $0x1084] sm:$0xf]  ;;  %v15855_v30 = vld [vmem:[%s16772_s27 + $0x1354] sm:$0xf] }
 0x3c8   : > { %9484 = vmatpush.bf16.msra.mxu1 %v12401_v1  ;;  %v12433_v1 = vor.u32 %v15799_v4, %v12430_v53  ;;  %v12297_v15 = vor.u32 %v15765_v10, %v12294_v60  ;;  %v12657_v4 = vor.u32 %v15855_v30, %v12654_v48  ;;  %v12721_v53 = vor.u32 %v15871_v7, %v12718_v32  ;;  %v15869_v10 = vld [vmem:[%s16772_s27 + $0x13c4] sm:$0xf]  ;;  %v12710_v60 = vld [vmem:[%s16772_s27 + $0x13c8] sm:$0xf0]  ;;  %v15851_v23 = vld [vmem:[%s16772_s27 + $0x1334] sm:$0xf] }
 0x3c9   : > { %9497 = vmatpush.bf16.msra.mxu2 %v12465_v33  ;;  %v15781_v33 = vld [vmem:[%s16772_s27 + $0x1104] sm:$0xf]  ;;  %v12558_v30 = vld [vmem:[%s16772_s27 + $0x1298] sm:$0xf0]  ;;  %v15863_v48 = vld [vmem:[%s16772_s27 + $0x1394] sm:$0xf] }
 0x3ca   : > { %9510 = vmatpush.bf16.msra.mxu3 %v12529_v0  ;;  %v12497_v0 = vor.u32 %v15815_v14, %v12494_v25  ;;  %v12361_v57 = vor.u32 %v15781_v33, %v12358_v52  ;;  %v12582_v14 = vld [vmem:[%s16772_s27 + $0x12c8] sm:$0xf0]  ;;  %v12686_v7 = vld [vmem:[%s16772_s27 + $0x1398] sm:$0xf0] }
 0x3cb   : > { %9472 = vmatpush.bf16.msra.mxu0 %v12329_v11  ;;  %v9246_v39 = vpop.f32.mrf.mxu2  ;;  %v15875_v11 = vld [vmem:[%s16772_s27 + $0x13f4] sm:$0xf]  ;;  %v12646_v25 = vld [vmem:[%s16772_s27 + $0x1348] sm:$0xf0] }
 0x3cc   : > { %9485 = vmatpush.bf16.msra.mxu1 %v12393_v36  ;;  %v9259_v24 = vpop.f32.mrf.mxu3  ;;  %v15813_v36 = vld [vmem:[%s16772_s27 + $0x1204] sm:$0xf]  ;;  %v12737_v56 = vor.u32 %v15875_v11, %v12734_v2  ;;  %v12713_v39 = vor.u32 %v15869_v10, %v12710_v60  ;;  %v12777_v2 = vor.u32 %v15885_v61, %v12774_v63  ;;  %v15907_v10 = vld [vmem:[%s16772_s27 + $0x14f4] sm:$0xf]  ;;  %v12862_v60 = vld [vmem:[%s16772_s27 + $0x14f8] sm:$0xf0] }
 0x3cd   : > { %9498 = vmatpush.bf16.msra.mxu2 %v12457_v62  ;;  %v12486_v62 = vld [vmem:[%s16772_s27 + $0x1208] sm:$0xf0]  ;;  %v12638_v24 = vld [vmem:[%s16772_s27 + $0x1338] sm:$0xf0] }
 0x3ce   : > { %9511 = vmatpush.bf16.msra.mxu3 %v12521_v8  ;;  %v12489_v8 = vor.u32 %v15813_v36, %v12486_v62  ;;  %v15883_v62 = vld [vmem:[%s16772_s27 + $0x1434] sm:$0xf]  ;;  %v12990_v63 = vld [vmem:[%s16772_s27 + $0x15f8] sm:$0xf0] }
 0x3cf   : > { %9473 = vmatpush.bf16.msra.mxu0 %v12321_v21  ;;  %v15841_v21 = vld [vmem:[%s16772_s27 + $0x12e4] sm:$0xf] }
 0x3d0   : > { %9486 = vmatpush.bf16.msra.mxu1 %v12385_v26  ;;  %v12662_v26 = vld [vmem:[%s16772_s27 + $0x1368] sm:$0xf0]  ;;  %v12601_v51 = vor.u32 %v15841_v21, %v12598_v50  ;;  %v15865_v50 = vld [vmem:[%s16772_s27 + $0x13a4] sm:$0xf] }
 0x3d1   : > { %9499 = vmatpush.bf16.msra.mxu2 %v12449_v41  ;;  %v15873_v41 = vld [vmem:[%s16772_s27 + $0x13e4] sm:$0xf]  ;;  %v12665_v19 = vor.u32 %v15857_v29, %v12662_v26  ;;  %v12630_v21 = vld [vmem:[%s16772_s27 + $0x1328] sm:$0xf0] }
 0x3d2   : > { %9512 = vmatpush.bf16.msra.mxu3 %v12513_v54  ;;  %v12729_v13 = vor.u32 %v15873_v41, %v12726_v47  ;;  %v12590_v54 = vld [vmem:[%s16772_s27 + $0x12d8] sm:$0xf0]  ;;  %v12694_v29 = vld [vmem:[%s16772_s27 + $0x13a8] sm:$0xf0] }
 0x3d3   : > { %9474 = vmatpush.bf16.msra.mxu0 %v12313_v44  ;;  %v19840_v44 = vld [vmem:[#allocation11_spill] sm:$0xff]  ;;  %v12593_v46 = vor.u32 %v15839_v27, %v12590_v54  ;;  %v12697_v27 = vor.u32 %v15865_v50, %v12694_v29  ;;  %v15831_v54 = vld [vmem:[%s16772_s27 + $0x1294] sm:$0xf] }
 0x3d4   : > { %9487 = vmatpush.bf16.msra.mxu1 %v12377_v45  ;;  %v19841_v45 = vld [vmem:[#allocation9_spill] sm:$0xff]  ;;  %v15903_v29 = vld [vmem:[%s16772_s27 + $0x14d4] sm:$0xf] }
 0x3d5   : > { %9500 = vmatpush.bf16.msra.mxu2 %v12441_v43  ;;  %v12793_v43 = vor.u32 %v15889_v31, %v12790_v34  ;;  %v15881_v31 = vld [vmem:[%s16772_s27 + $0x1424] sm:$0xf]  ;;  %v12758_v34 = vld [vmem:[%s16772_s27 + $0x1428] sm:$0xf0] }
 0x3d6   : > { %9513 = vmatpush.bf16.msra.mxu3 %v12505_v38  ;;  %v15837_v38 = vld [vmem:[%s16772_s27 + $0x12c4] sm:$0xf]  ;;  %v12761_v32 = vor.u32 %v15881_v31, %v12758_v34  ;;  %v12910_v31 = vld [vmem:[%s16772_s27 + $0x1558] sm:$0xf0]  ;;  %v15935_v34 = vld [vmem:[%s16772_s27 + $0x15d4] sm:$0xf] }
 0x3d7   : > { %9475 = vmatpush.bf16.msra.mxu0 %v12305_v9  ;;  %v15853_v9 = vld [vmem:[%s16772_s27 + $0x1344] sm:$0xf]  ;;  %v12585_v52 = vor.u32 %v15837_v38, %v12582_v14  ;;  %v12614_v38 = vld [vmem:[%s16772_s27 + $0x1308] sm:$0xf0] }
 0x3d8   : > { %9488 = vmatpush.bf16.msra.mxu1 %v12369_v49  ;;  %v12785_v49 = vor.u32 %v15887_v20, %v12782_v59  ;;  %v12649_v58 = vor.u32 %v15853_v9, %v12646_v25  ;;  %v12550_v20 = vld [vmem:[%s16772_s27 + $0x1288] sm:$0xf0]  ;;  %v15861_v14 = vld [vmem:[%s16772_s27 + $0x1384] sm:$0xf] }
 0x3d9   : > { %9501 = vmatpush.bf16.msra.mxu2 %v12433_v1  ;;  %v12678_v25 = vld [vmem:[%s16772_s27 + $0x1388] sm:$0xf0] }
 0x3da   : > { %9514 = vmatpush.bf16.msra.mxu3 %v12497_v0  ;;  %v15835_v0 = vld [vmem:[%s16772_s27 + $0x12b4] sm:$0xf] }
 0x3db   : > { %9476 = vmatpush.bf16.msra.mxu0 %v12297_v15  ;;  %v9270_v1 = vpop.f32.mrf.mxu0  ;;  %v15867_v15 = vld [vmem:[%s16772_s27 + $0x13b4] sm:$0xf]  ;;  %v12577_v36 = vor.u32 %v15835_v0, %v12574_v40  ;;  %v12681_v40 = vor.u32 %v15861_v14, %v12678_v25  ;;  %v13030_v25 = vld [vmem:[%s16772_s27 + $0x1648] sm:$0xf0] }
 0x3dc   : > { %9489 = vmatpush.bf16.msra.mxu1 %v12361_v57  ;;  %v9271_v33 = vadd.f32 %v9270_v1, %v18976_v18  ;;  %v9283_v5 = vpop.f32.mrf.mxu1  ;;  %v12702_v18 = vld [vmem:[%s16772_s27 + $0x13b8] sm:$0xf0]  ;;  %v15923_v1 = vld [vmem:[%s16772_s27 + $0x1574] sm:$0xf] }
 0x3dd   : > { %9502 = vmatpush.bf16.msra.mxu2 %v12425_v16  ;;  %v12766_v57 = vld [vmem:[%s16772_s27 + $0x1438] sm:$0xf0]  ;;  %v12641_v16 = vor.u32 %v15851_v23, %v12638_v24  ;;  %v12865_v23 = vor.u32 %v15907_v10, %v12862_v60  ;;  %v15955_v24 = vld [vmem:[%s16772_s27 + $0x1674] sm:$0xf] }
 0x3de   : > { %9515 = vmatpush.bf16.msra.mxu3 %v12489_v8  ;;  %9477 = vmatmul.bf16.vlgmr.msra.gmra.mxu0 %v19839_v12  ;;  %v9284_v11 = vadd.f32 %v9283_v5, %v9271_v33  ;;  %v12769_v26 = vor.u32 %v15883_v62, %v12766_v57  ;;  %v15847_v12 = vld [vmem:[%s16772_s27 + $0x1314] sm:$0xf]  ;;  %v12926_v33 = vld [vmem:[%s16772_s27 + $0x1578] sm:$0xf0]  ;;  %v12854_v62 = vld [vmem:[%s16772_s27 + $0x14e8] sm:$0xf0] }
 0x3df   : > { %9521 = vmatpush.bf16.msrb.mxu0 %v12609_v6  ;;  %9490 = vmatmul.bf16.vlgmr.msra.gmra.mxu1 %v19841_v45  ;;  %v12705_v6 = vor.u32 %v15867_v15, %v12702_v18  ;;  %v15879_v45 = vld [vmem:[%s16772_s27 + $0x1414] sm:$0xf]  ;;  %v13054_v15 = vld [vmem:[%s16772_s27 + $0x1678] sm:$0xf0]  ;;  %v15921_v57 = vld [vmem:[%s16772_s27 + $0x1564] sm:$0xf] }
 0x3e0   : > { %9534 = vmatpush.bf16.msrb.mxu1 %v12673_v35  ;;  %9503 = vmatmul.bf16.vlgmr.msra.gmra.mxu2 %v19840_v44  ;;  %v12622_v44 = vld [vmem:[%s16772_s27 + $0x1318] sm:$0xf0] }
 0x3e1   : > { %9547 = vmatpush.bf16.msrb.mxu2 %v12737_v56  ;;  %9516 = vmatmul.bf16.vlgmr.msra.gmra.mxu3 %v19842_v22  ;;  %v15849_v56 = vld [vmem:[%s16772_s27 + $0x1324] sm:$0xf]  ;;  %v12750_v22 = vld [vmem:[%s16772_s27 + $0x1418] sm:$0xf0]  ;;  %v12625_v59 = vor.u32 %v15847_v12, %v12622_v44  ;;  %v15951_v12 = vld [vmem:[%s16772_s27 + $0x1654] sm:$0xf] }
 0x3e2   : > { %9560 = vmatpush.bf16.msrb.mxu3 %v12801_v42  ;;  %v13038_v44 = vld [vmem:[%s16772_s27 + $0x1658] sm:$0xf0] }
 0x3e3   : > { %9522 = vmatpush.bf16.msrb.mxu0 %v12601_v51  ;;  %v9296_v35 = vpop.f32.mrf.mxu2  ;;  %v9272_v47 = vpop.f32.mrf.mxu0  ;;  %v12569_v51 = vor.u32 %v15833_v28, %v12566_v17  ;;  %v13057_v28 = vor.u32 %v15955_v24, %v13054_v15  ;;  %v15897_v24 = vld [vmem:[%s16772_s27 + $0x14a4] sm:$0xf]  ;;  %v12822_v15 = vld [vmem:[%s16772_s27 + $0x14a8] sm:$0xf0] }
 0x3e4   : > { %9535 = vmatpush.bf16.msrb.mxu1 %v12665_v19  ;;  %v9297_v8 = vadd.f32 %v9296_v35, %v9284_v11  ;;  %v9309_v41 = vpop.f32.mrf.mxu3  ;;  %v9285_v19 = vpop.f32.mrf.mxu1  ;;  %v12929_v11 = vor.u32 %v15923_v1, %v12926_v33  ;;  %v12982_v35 = vld [vmem:[%s16772_s27 + $0x15e8] sm:$0xf0]  ;;  %v19843_v47 = vld [vmem:[#allocation14_spill] sm:$0xff]  ;;  %v12830_v1 = vld [vmem:[%s16772_s27 + $0x14b8] sm:$0xf0] }
 0x3e5   : > { %9548 = vmatpush.bf16.msrb.mxu2 %v12729_v13  ;;  %v12633_v13 = vor.u32 %v15849_v56, %v12630_v21  ;;  %v15953_v56 = vld [vmem:[%s16772_s27 + $0x1664] sm:$0xf]  ;;  %v12974_v19 = vld [vmem:[%s16772_s27 + $0x15d8] sm:$0xf0]  ;;  %v15915_v33 = vld [vmem:[%s16772_s27 + $0x1534] sm:$0xf] }
 0x3e6   : > { %9561 = vmatpush.bf16.msrb.mxu3 %v12793_v43  ;;  %v19045_v42 = vadd.f32 %v9309_v41, %v9297_v8  ;;  %v12561_v43 = vor.u32 %v15831_v54, %v12558_v30  ;;  %v13046_v8 = vld [vmem:[%s16772_s27 + $0x1668] sm:$0xf0]  ;;  %v15919_v41 = vld [vmem:[%s16772_s27 + $0x1554] sm:$0xf]  ;;  %v19846_v54 = vld [vmem:[#allocation16_spill] sm:$0xff] }
 0x3e7   : > { %9523 = vmatpush.bf16.msrb.mxu0 %v12593_v46  ;;  %v15829_v46 = vld [vmem:[%s16772_s27 + $0x1284] sm:$0xf] }
 0x3e8   : > { %9536 = vmatpush.bf16.msrb.mxu1 %v12657_v4  ;;  %v12689_v4 = vor.u32 %v15863_v48, %v12686_v7  ;;  %v12553_v61 = vor.u32 %v15829_v46, %v12550_v20  ;;  %v12913_v48 = vor.u32 %v15919_v41, %v12910_v31  ;;  %v12977_v7 = vor.u32 %v15935_v34, %v12974_v19  ;;  %v15933_v46 = vld [vmem:[%s16772_s27 + $0x15c4] sm:$0xf]  ;;  %v12966_v20 = vld [vmem:[%s16772_s27 + $0x15c8] sm:$0xf0]  ;;  %v12814_v41 = vld [vmem:[%s16772_s27 + $0x1498] sm:$0xf0] }
 0x3e9   : > { %9549 = vmatpush.bf16.msrb.mxu2 %v12721_v53  ;;  %v15845_v53 = vld [vmem:[%s16772_s27 + $0x1304] sm:$0xf]  ;;  %v12969_v60 = vor.u32 %v15933_v46, %v12966_v20  ;;  %v15927_v31 = vld [vmem:[%s16772_s27 + $0x1594] sm:$0xf]  ;;  %v12942_v34 = vld [vmem:[%s16772_s27 + $0x1598] sm:$0xf0] }
 0x3ea   : > { %9562 = vmatpush.bf16.msrb.mxu3 %v12785_v49  ;;  %v12753_v49 = vor.u32 %v15879_v45, %v12750_v22  ;;  %v12617_v0 = vor.u32 %v15845_v53, %v12614_v38  ;;  %v12838_v45 = vld [vmem:[%s16772_s27 + $0x14c8] sm:$0xf0]  ;;  %v15971_v46 = vld [vmem:[%s16772_s27 + $0x16f4] sm:$0xf]  ;;  %v13118_v20 = vld [vmem:[%s16772_s27 + $0x16f8] sm:$0xf0] }
 0x3eb   : > { %9524 = vmatpush.bf16.msrb.mxu0 %v12585_v52  ;;  %v9298_v9 = vpop.f32.mrf.mxu2  ;;  %v15939_v52 = vld [vmem:[%s16772_s27 + $0x15f4] sm:$0xf]  ;;  %v12902_v22 = vld [vmem:[%s16772_s27 + $0x1548] sm:$0xf0] }
 0x3ec   : > { %9537 = vmatpush.bf16.msrb.mxu1 %v12649_v58  ;;  %v9311_v5 = vpop.f32.mrf.mxu3  ;;  %v15877_v58 = vld [vmem:[%s16772_s27 + $0x1404] sm:$0xf]  ;;  %v12993_v18 = vor.u32 %v15939_v52, %v12990_v63 }
 0x3ed   : > { %9550 = vmatpush.bf16.msrb.mxu2 %v12713_v39  ;;  %v12742_v39 = vld [vmem:[%s16772_s27 + $0x1408] sm:$0xf0]  ;;  %v15949_v9 = vld [vmem:[%s16772_s27 + $0x1644] sm:$0xf]  ;;  %v12894_v5 = vld [vmem:[%s16772_s27 + $0x1538] sm:$0xf0] }
 0x3ee   : > { %9563 = vmatpush.bf16.msrb.mxu3 %v12777_v2  ;;  %v12745_v2 = vor.u32 %v15877_v58, %v12742_v39  ;;  %v13033_v63 = vor.u32 %v15949_v9, %v13030_v25  ;;  %v15947_v39 = vld [vmem:[%s16772_s27 + $0x1634] sm:$0xf]  ;;  %v13246_v25 = vld [vmem:[%s16772_s27 + $0x17f8] sm:$0xf0] }
 0x3ef   : > { %9525 = vmatpush.bf16.msrb.mxu0 %v12577_v36  ;;  %v15905_v36 = vld [vmem:[%s16772_s27 + $0x14e4] sm:$0xf] }
 0x3f0   : > { %9538 = vmatpush.bf16.msrb.mxu1 %v12641_v16  ;;  %v12918_v16 = vld [vmem:[%s16772_s27 + $0x1568] sm:$0xf0]  ;;  %v12857_v17 = vor.u32 %v15905_v36, %v12854_v62  ;;  %v15929_v62 = vld [vmem:[%s16772_s27 + $0x15a4] sm:$0xf] }
 0x3f1   : > { %9551 = vmatpush.bf16.msrb.mxu2 %v12705_v6  ;;  %v15937_v6 = vld [vmem:[%s16772_s27 + $0x15e4] sm:$0xf]  ;;  %v12921_v21 = vor.u32 %v15921_v57, %v12918_v16  ;;  %v12886_v36 = vld [vmem:[%s16772_s27 + $0x1528] sm:$0xf0] }
 0x3f2   : > { %9564 = vmatpush.bf16.msrb.mxu3 %v12769_v26  ;;  %v12985_v50 = vor.u32 %v15937_v6, %v12982_v35  ;;  %v12846_v26 = vld [vmem:[%s16772_s27 + $0x14d8] sm:$0xf0]  ;;  %v12950_v57 = vld [vmem:[%s16772_s27 + $0x15a8] sm:$0xf0] }
 0x3f3   : > { %9526 = vmatpush.bf16.msrb.mxu0 %v12569_v51  ;;  %v19844_v51 = vld [vmem:[#allocation15_spill] sm:$0xff]  ;;  %v12849_v30 = vor.u32 %v15903_v29, %v12846_v26  ;;  %v12953_v29 = vor.u32 %v15929_v62, %v12950_v57  ;;  %v15895_v26 = vld [vmem:[%s16772_s27 + $0x1494] sm:$0xf] }
 0x3f4   : > { %9539 = vmatpush.bf16.msrb.mxu1 %v12633_v13  ;;  %v19845_v13 = vld [vmem:[#allocation13_spill] sm:$0xff]  ;;  %v15967_v57 = vld [vmem:[%s16772_s27 + $0x16d4] sm:$0xf] }
 0x3f5   : > { %9552 = vmatpush.bf16.msrb.mxu2 %v12697_v27  ;;  %v13049_v27 = vor.u32 %v15953_v56, %v13046_v8  ;;  %v15945_v56 = vld [vmem:[%s16772_s27 + $0x1624] sm:$0xf]  ;;  %v13014_v8 = vld [vmem:[%s16772_s27 + $0x1628] sm:$0xf0] }
 0x3f6   : > { %9565 = vmatpush.bf16.msrb.mxu3 %v12761_v32  ;;  %v15901_v32 = vld [vmem:[%s16772_s27 + $0x14c4] sm:$0xf]  ;;  %v13017_v19 = vor.u32 %v15945_v56, %v13014_v8  ;;  %v13166_v56 = vld [vmem:[%s16772_s27 + $0x1758] sm:$0xf0]  ;;  %v15999_v8 = vld [vmem:[%s16772_s27 + $0x17d4] sm:$0xf] }
 0x3f7   : > { %9527 = vmatpush.bf16.msrb.mxu0 %v12561_v43  ;;  %v15917_v43 = vld [vmem:[%s16772_s27 + $0x1544] sm:$0xf]  ;;  %v12841_v38 = vor.u32 %v15901_v32, %v12838_v45  ;;  %v12870_v32 = vld [vmem:[%s16772_s27 + $0x1508] sm:$0xf0] }
 0x3f8   : > { %9540 = vmatpush.bf16.msrb.mxu1 %v12625_v59  ;;  %v13041_v59 = vor.u32 %v15951_v12, %v13038_v44  ;;  %v12905_v10 = vor.u32 %v15917_v43, %v12902_v22  ;;  %v12806_v12 = vld [vmem:[%s16772_s27 + $0x1488] sm:$0xf0]  ;;  %v15925_v45 = vld [vmem:[%s16772_s27 + $0x1584] sm:$0xf] }
 0x3f9   : > { %9553 = vmatpush.bf16.msrb.mxu2 %v12689_v4  ;;  %v12934_v22 = vld [vmem:[%s16772_s27 + $0x1588] sm:$0xf0] }
 0x3fa   : > { %9566 = vmatpush.bf16.msrb.mxu3 %v12753_v49  ;;  %v15899_v49 = vld [vmem:[%s16772_s27 + $0x14b4] sm:$0xf] }
 0x3fb   : > { %9528 = vmatpush.bf16.msrb.mxu0 %v12553_v61  ;;  %v9322_v4 = vpop.f32.mrf.mxu0  ;;  %v15931_v61 = vld [vmem:[%s16772_s27 + $0x15b4] sm:$0xf]  ;;  %v12833_v58 = vor.u32 %v15899_v49, %v12830_v1  ;;  %v12937_v1 = vor.u32 %v15925_v45, %v12934_v22  ;;  %v13286_v22 = vld [vmem:[%s16772_s27 + $0x1848] sm:$0xf0] }
 0x3fc   : > { %9541 = vmatpush.bf16.msrb.mxu1 %v12617_v0  ;;  %v9323_v53 = vadd.f32 %v9322_v4, %v19045_v42  ;;  %v9335_v14 = vpop.f32.mrf.mxu1  ;;  %v12958_v42 = vld [vmem:[%s16772_s27 + $0x15b8] sm:$0xf0]  ;;  %v15987_v4 = vld [vmem:[%s16772_s27 + $0x1774] sm:$0xf] }
 0x3fd   : > { %9554 = vmatpush.bf16.msrb.mxu2 %v12681_v40  ;;  %v13022_v0 = vld [vmem:[%s16772_s27 + $0x1638] sm:$0xf0]  ;;  %v12897_v40 = vor.u32 %v15915_v33, %v12894_v5  ;;  %v13121_v33 = vor.u32 %v15971_v46, %v13118_v20  ;;  %v16019_v5 = vld [vmem:[%s16772_s27 + $0x1874] sm:$0xf] }
 0x3fe   : > { %9567 = vmatpush.bf16.msrb.mxu3 %v12745_v2  ;;  %9529 = vmatmul.bf16.vlgmr.msrb.gmra.mxu0 %v19843_v47  ;;  %v9336_v52 = vadd.f32 %v9335_v14, %v9323_v53  ;;  %v13025_v16 = vor.u32 %v15947_v39, %v13022_v0  ;;  %v15911_v47 = vld [vmem:[%s16772_s27 + $0x1514] sm:$0xf]  ;;  %v13182_v53 = vld [vmem:[%s16772_s27 + $0x1778] sm:$0xf0]  ;;  %v13110_v39 = vld [vmem:[%s16772_s27 + $0x16e8] sm:$0xf0] }
 0x3ff   : > { %9573 = vmatpush.bf16.msra.mxu0 %v12865_v23  ;;  %9542 = vmatmul.bf16.vlgmr.msrb.gmra.mxu1 %v19845_v13  ;;  %v12961_v23 = vor.u32 %v15931_v61, %v12958_v42  ;;  %v15943_v13 = vld [vmem:[%s16772_s27 + $0x1614] sm:$0xf]  ;;  %v13310_v61 = vld [vmem:[%s16772_s27 + $0x1878] sm:$0xf0]  ;;  %v15985_v0 = vld [vmem:[%s16772_s27 + $0x1764] sm:$0xf] }
 0x400   : > { %9586 = vmatpush.bf16.msra.mxu1 %v12929_v11  ;;  %9555 = vmatmul.bf16.vlgmr.msrb.gmra.mxu2 %v19844_v51  ;;  %v12878_v51 = vld [vmem:[%s16772_s27 + $0x1518] sm:$0xf0] }
 0x401   : > { %9599 = vmatpush.bf16.msra.mxu2 %v12993_v18  ;;  %9568 = vmatmul.bf16.vlgmr.msrb.gmra.mxu3 %v19846_v54  ;;  %v15913_v18 = vld [vmem:[%s16772_s27 + $0x1524] sm:$0xf]  ;;  %v13006_v54 = vld [vmem:[%s16772_s27 + $0x1618] sm:$0xf0]  ;;  %v12881_v44 = vor.u32 %v15911_v47, %v12878_v51  ;;  %v16015_v47 = vld [vmem:[%s16772_s27 + $0x1854] sm:$0xf] }
 0x402   : > { %9612 = vmatpush.bf16.msra.mxu3 %v13057_v28  ;;  %v13294_v51 = vld [vmem:[%s16772_s27 + $0x1858] sm:$0xf0] }
 0x403   : > { %9574 = vmatpush.bf16.msra.mxu0 %v12857_v17  ;;  %v9348_v11 = vpop.f32.mrf.mxu2  ;;  %v9324_v35 = vpop.f32.mrf.mxu0  ;;  %v12825_v17 = vor.u32 %v15897_v24, %v12822_v15  ;;  %v13313_v24 = vor.u32 %v16019_v5, %v13310_v61  ;;  %v15961_v5 = vld [vmem:[%s16772_s27 + $0x16a4] sm:$0xf]  ;;  %v13078_v61 = vld [vmem:[%s16772_s27 + $0x16a8] sm:$0xf0] }
 0x404   : > { %9587 = vmatpush.bf16.msra.mxu1 %v12921_v21  ;;  %v9349_v2 = vadd.f32 %v9348_v11, %v9336_v52  ;;  %v9361_v6 = vpop.f32.mrf.mxu3  ;;  %v9337_v21 = vpop.f32.mrf.mxu1  ;;  %v13185_v52 = vor.u32 %v15987_v4, %v13182_v53  ;;  %v13238_v11 = vld [vmem:[%s16772_s27 + $0x17e8] sm:$0xf0]  ;;  %v19847_v35 = vld [vmem:[#allocation18_spill] sm:$0xff]  ;;  %v13086_v4 = vld [vmem:[%s16772_s27 + $0x16b8] sm:$0xf0] }
 0x405   : > { %9600 = vmatpush.bf16.msra.mxu2 %v12985_v50  ;;  %v12889_v50 = vor.u32 %v15913_v18, %v12886_v36  ;;  %v16017_v18 = vld [vmem:[%s16772_s27 + $0x1864] sm:$0xf]  ;;  %v13230_v21 = vld [vmem:[%s16772_s27 + $0x17d8] sm:$0xf0]  ;;  %v15979_v53 = vld [vmem:[%s16772_s27 + $0x1734] sm:$0xf] }
 0x406   : > { %9613 = vmatpush.bf16.msra.mxu3 %v13049_v27  ;;  %v19116_v28 = vadd.f32 %v9361_v6, %v9349_v2  ;;  %v12817_v27 = vor.u32 %v15895_v26, %v12814_v41  ;;  %v13302_v2 = vld [vmem:[%s16772_s27 + $0x1868] sm:$0xf0]  ;;  %v15983_v6 = vld [vmem:[%s16772_s27 + $0x1754] sm:$0xf]  ;;  %v19850_v26 = vld [vmem:[#allocation20_spill] sm:$0xff] }
 0x407   : > { %9575 = vmatpush.bf16.msra.mxu0 %v12849_v30  ;;  %v15893_v30 = vld [vmem:[%s16772_s27 + $0x1484] sm:$0xf] }
 0x408   : > { %9588 = vmatpush.bf16.msra.mxu1 %v12913_v48  ;;  %v12945_v48 = vor.u32 %v15927_v31, %v12942_v34  ;;  %v12809_v9 = vor.u32 %v15893_v30, %v12806_v12  ;;  %v13169_v31 = vor.u32 %v15983_v6, %v13166_v56  ;;  %v13233_v34 = vor.u32 %v15999_v8, %v13230_v21  ;;  %v15997_v30 = vld [vmem:[%s16772_s27 + $0x17c4] sm:$0xf]  ;;  %v13222_v12 = vld [vmem:[%s16772_s27 + $0x17c8] sm:$0xf0]  ;;  %v13070_v6 = vld [vmem:[%s16772_s27 + $0x1698] sm:$0xf0] }
 0x409   : > { %9601 = vmatpush.bf16.msra.mxu2 %v12977_v7  ;;  %v15909_v7 = vld [vmem:[%s16772_s27 + $0x1504] sm:$0xf]  ;;  %v13225_v20 = vor.u32 %v15997_v30, %v13222_v12  ;;  %v15991_v56 = vld [vmem:[%s16772_s27 + $0x1794] sm:$0xf]  ;;  %v13198_v8 = vld [vmem:[%s16772_s27 + $0x1798] sm:$0xf0] }
 0x40a   : > { %9614 = vmatpush.bf16.msra.mxu3 %v13041_v59  ;;  %v13009_v59 = vor.u32 %v15943_v13, %v13006_v54  ;;  %v12873_v49 = vor.u32 %v15909_v7, %v12870_v32  ;;  %v13094_v13 = vld [vmem:[%s16772_s27 + $0x16c8] sm:$0xf0]  ;;  %v16035_v30 = vld [vmem:[%s16772_s27 + $0x18f4] sm:$0xf]  ;;  %v13374_v12 = vld [vmem:[%s16772_s27 + $0x18f8] sm:$0xf0] }
 0x40b   : > { %9576 = vmatpush.bf16.msra.mxu0 %v12841_v38  ;;  %v9350_v43 = vpop.f32.mrf.mxu2  ;;  %v16003_v38 = vld [vmem:[%s16772_s27 + $0x17f4] sm:$0xf]  ;;  %v13158_v54 = vld [vmem:[%s16772_s27 + $0x1748] sm:$0xf0] }
 0x40c   : > { %9589 = vmatpush.bf16.msra.mxu1 %v12905_v10  ;;  %v9363_v14 = vpop.f32.mrf.mxu3  ;;  %v15941_v10 = vld [vmem:[%s16772_s27 + $0x1604] sm:$0xf]  ;;  %v13249_v42 = vor.u32 %v16003_v38, %v13246_v25 }
 0x40d   : > { %9602 = vmatpush.bf16.msra.mxu2 %v12969_v60  ;;  %v12998_v60 = vld [vmem:[%s16772_s27 + $0x1608] sm:$0xf0]  ;;  %v16013_v43 = vld [vmem:[%s16772_s27 + $0x1844] sm:$0xf]  ;;  %v13150_v14 = vld [vmem:[%s16772_s27 + $0x1738] sm:$0xf0] }
 0x40e   : > { %9615 = vmatpush.bf16.msra.mxu3 %v13033_v63  ;;  %v13001_v63 = vor.u32 %v15941_v10, %v12998_v60  ;;  %v13289_v25 = vor.u32 %v16013_v43, %v13286_v22  ;;  %v16011_v60 = vld [vmem:[%s16772_s27 + $0x1834] sm:$0xf]  ;;  %v13502_v22 = vld [vmem:[%s16772_s27 + $0x19f8] sm:$0xf0] }
 0x40f   : > { %9577 = vmatpush.bf16.msra.mxu0 %v12833_v58  ;;  %v15969_v58 = vld [vmem:[%s16772_s27 + $0x16e4] sm:$0xf] }
 0x410   : > { %9590 = vmatpush.bf16.msra.mxu1 %v12897_v40  ;;  %v13174_v40 = vld [vmem:[%s16772_s27 + $0x1768] sm:$0xf0]  ;;  %v13113_v15 = vor.u32 %v15969_v58, %v13110_v39  ;;  %v15993_v39 = vld [vmem:[%s16772_s27 + $0x17a4] sm:$0xf] }
 0x411   : > { %9603 = vmatpush.bf16.msra.mxu2 %v12961_v23  ;;  %v16001_v23 = vld [vmem:[%s16772_s27 + $0x17e4] sm:$0xf]  ;;  %v13177_v36 = vor.u32 %v15985_v0, %v13174_v40  ;;  %v13142_v58 = vld [vmem:[%s16772_s27 + $0x1728] sm:$0xf0] }
 0x412   : > { %9616 = vmatpush.bf16.msra.mxu3 %v13025_v16  ;;  %v13241_v62 = vor.u32 %v16001_v23, %v13238_v11  ;;  %v13102_v16 = vld [vmem:[%s16772_s27 + $0x16d8] sm:$0xf0]  ;;  %v13206_v0 = vld [vmem:[%s16772_s27 + $0x17a8] sm:$0xf0] }
 0x413   : > { %9578 = vmatpush.bf16.msra.mxu0 %v12825_v17  ;;  %v19848_v17 = vld [vmem:[#allocation19_spill] sm:$0xff]  ;;  %v13105_v41 = vor.u32 %v15967_v57, %v13102_v16  ;;  %v13209_v57 = vor.u32 %v15993_v39, %v13206_v0  ;;  %v15959_v16 = vld [vmem:[%s16772_s27 + $0x1694] sm:$0xf] }
 0x414   : > { %9591 = vmatpush.bf16.msra.mxu1 %v12889_v50  ;;  %v19849_v50 = vld [vmem:[#allocation17_spill] sm:$0xff]  ;;  %v16031_v0 = vld [vmem:[%s16772_s27 + $0x18d4] sm:$0xf] }
 0x415   : > { %9604 = vmatpush.bf16.msra.mxu2 %v12953_v29  ;;  %v13305_v29 = vor.u32 %v16017_v18, %v13302_v2  ;;  %v16009_v18 = vld [vmem:[%s16772_s27 + $0x1824] sm:$0xf]  ;;  %v13270_v2 = vld [vmem:[%s16772_s27 + $0x1828] sm:$0xf0] }
 0x416   : > { %9617 = vmatpush.bf16.msra.mxu3 %v13017_v19  ;;  %v15965_v19 = vld [vmem:[%s16772_s27 + $0x16c4] sm:$0xf]  ;;  %v13273_v21 = vor.u32 %v16009_v18, %v13270_v2  ;;  %v13422_v18 = vld [vmem:[%s16772_s27 + $0x1958] sm:$0xf0]  ;;  %v16063_v2 = vld [vmem:[%s16772_s27 + $0x19d4] sm:$0xf] }
 0x417   : > { %9579 = vmatpush.bf16.msra.mxu0 %v12817_v27  ;;  %v15981_v27 = vld [vmem:[%s16772_s27 + $0x1744] sm:$0xf]  ;;  %v13097_v32 = vor.u32 %v15965_v19, %v13094_v13  ;;  %v13126_v19 = vld [vmem:[%s16772_s27 + $0x1708] sm:$0xf0] }
 0x418   : > { %9592 = vmatpush.bf16.msra.mxu1 %v12881_v44  ;;  %v13297_v44 = vor.u32 %v16015_v47, %v13294_v51  ;;  %v13161_v46 = vor.u32 %v15981_v27, %v13158_v54  ;;  %v13062_v47 = vld [vmem:[%s16772_s27 + $0x1688] sm:$0xf0]  ;;  %v15989_v13 = vld [vmem:[%s16772_s27 + $0x1784] sm:$0xf] }
 0x419   : > { %9605 = vmatpush.bf16.msra.mxu2 %v12945_v48  ;;  %v13190_v54 = vld [vmem:[%s16772_s27 + $0x1788] sm:$0xf0] }
 0x41a   : > { %9618 = vmatpush.bf16.msra.mxu3 %v13009_v59  ;;  %v15963_v59 = vld [vmem:[%s16772_s27 + $0x16b4] sm:$0xf] }
 0x41b   : > { %9580 = vmatpush.bf16.msra.mxu0 %v12809_v9  ;;  %v9374_v48 = vpop.f32.mrf.mxu0  ;;  %v15995_v9 = vld [vmem:[%s16772_s27 + $0x17b4] sm:$0xf]  ;;  %v13089_v10 = vor.u32 %v15963_v59, %v13086_v4  ;;  %v13193_v4 = vor.u32 %v15989_v13, %v13190_v54  ;;  %v13542_v54 = vld [vmem:[%s16772_s27 + $0x1a48] sm:$0xf0] }
 0x41c   : > { %9593 = vmatpush.bf16.msra.mxu1 %v12873_v49  ;;  %v9375_v7 = vadd.f32 %v9374_v48, %v19116_v28  ;;  %v9387_v45 = vpop.f32.mrf.mxu1  ;;  %v13214_v28 = vld [vmem:[%s16772_s27 + $0x17b8] sm:$0xf0]  ;;  %v16051_v48 = vld [vmem:[%s16772_s27 + $0x1974] sm:$0xf] }
 0x41d   : > { %9606 = vmatpush.bf16.msra.mxu2 %v12937_v1  ;;  %v13278_v49 = vld [vmem:[%s16772_s27 + $0x1838] sm:$0xf0]  ;;  %v13153_v1 = vor.u32 %v15979_v53, %v13150_v14  ;;  %v13377_v53 = vor.u32 %v16035_v30, %v13374_v12  ;;  %v16083_v14 = vld [vmem:[%s16772_s27 + $0x1a74] sm:$0xf] }
 0x41e   : > { %9619 = vmatpush.bf16.msra.mxu3 %v13001_v63  ;;  %9581 = vmatmul.bf16.vlgmr.msra.gmra.mxu0 %v19847_v35  ;;  %v9388_v38 = vadd.f32 %v9387_v45, %v9375_v7  ;;  %v13281_v40 = vor.u32 %v16011_v60, %v13278_v49  ;;  %v15975_v35 = vld [vmem:[%s16772_s27 + $0x1714] sm:$0xf]  ;;  %v13438_v7 = vld [vmem:[%s16772_s27 + $0x1978] sm:$0xf0]  ;;  %v13366_v60 = vld [vmem:[%s16772_s27 + $0x18e8] sm:$0xf0] }
 0x41f   : > { %9625 = vmatpush.bf16.msrb.mxu0 %v13121_v33  ;;  %9594 = vmatmul.bf16.vlgmr.msra.gmra.mxu1 %v19849_v50  ;;  %v13217_v33 = vor.u32 %v15995_v9, %v13214_v28  ;;  %v16007_v50 = vld [vmem:[%s16772_s27 + $0x1814] sm:$0xf]  ;;  %v13566_v9 = vld [vmem:[%s16772_s27 + $0x1a78] sm:$0xf0]  ;;  %v16049_v49 = vld [vmem:[%s16772_s27 + $0x1964] sm:$0xf] }
 0x420   : > { %9638 = vmatpush.bf16.msrb.mxu1 %v13185_v52  ;;  %9607 = vmatmul.bf16.vlgmr.msra.gmra.mxu2 %v19848_v17  ;;  %v13134_v17 = vld [vmem:[%s16772_s27 + $0x1718] sm:$0xf0] }
 0x421   : > { %9651 = vmatpush.bf16.msrb.mxu2 %v13249_v42  ;;  %9620 = vmatmul.bf16.vlgmr.msra.gmra.mxu3 %v19850_v26  ;;  %v15977_v42 = vld [vmem:[%s16772_s27 + $0x1724] sm:$0xf]  ;;  %v13262_v26 = vld [vmem:[%s16772_s27 + $0x1818] sm:$0xf0]  ;;  %v13137_v51 = vor.u32 %v15975_v35, %v13134_v17  ;;  %v16079_v35 = vld [vmem:[%s16772_s27 + $0x1a54] sm:$0xf] }
 0x422   : > { %9664 = vmatpush.bf16.msrb.mxu3 %v13313_v24  ;;  %v13550_v17 = vld [vmem:[%s16772_s27 + $0x1a58] sm:$0xf0] }
 0x423   : > { %9626 = vmatpush.bf16.msrb.mxu0 %v13113_v15  ;;  %v9400_v52 = vpop.f32.mrf.mxu2  ;;  %v9376_v11 = vpop.f32.mrf.mxu0  ;;  %v13081_v15 = vor.u32 %v15961_v5, %v13078_v61  ;;  %v13569_v5 = vor.u32 %v16083_v14, %v13566_v9  ;;  %v16025_v14 = vld [vmem:[%s16772_s27 + $0x18a4] sm:$0xf]  ;;  %v13334_v9 = vld [vmem:[%s16772_s27 + $0x18a8] sm:$0xf0] }
 0x424   : > { %9639 = vmatpush.bf16.msrb.mxu1 %v13177_v36  ;;  %v9401_v63 = vadd.f32 %v9400_v52, %v9388_v38  ;;  %v9413_v23 = vpop.f32.mrf.mxu3  ;;  %v9389_v36 = vpop.f32.mrf.mxu1  ;;  %v13441_v38 = vor.u32 %v16051_v48, %v13438_v7  ;;  %v13494_v52 = vld [vmem:[%s16772_s27 + $0x19e8] sm:$0xf0]  ;;  %v19851_v11 = vld [vmem:[#allocation22_spill] sm:$0xff]  ;;  %v13342_v48 = vld [vmem:[%s16772_s27 + $0x18b8] sm:$0xf0] }
 0x425   : > { %9652 = vmatpush.bf16.msrb.mxu2 %v13241_v62  ;;  %v13145_v62 = vor.u32 %v15977_v42, %v13142_v58  ;;  %v16081_v42 = vld [vmem:[%s16772_s27 + $0x1a64] sm:$0xf]  ;;  %v13486_v36 = vld [vmem:[%s16772_s27 + $0x19d8] sm:$0xf0]  ;;  %v16043_v7 = vld [vmem:[%s16772_s27 + $0x1934] sm:$0xf] }
 0x426   : > { %9665 = vmatpush.bf16.msrb.mxu3 %v13305_v29  ;;  %v19187_v24 = vadd.f32 %v9413_v23, %v9401_v63  ;;  %v13073_v29 = vor.u32 %v15959_v16, %v13070_v6  ;;  %v13558_v63 = vld [vmem:[%s16772_s27 + $0x1a68] sm:$0xf0]  ;;  %v16047_v23 = vld [vmem:[%s16772_s27 + $0x1954] sm:$0xf]  ;;  %v19854_v16 = vld [vmem:[#allocation24_spill] sm:$0xff] }
 0x427   : > { %9627 = vmatpush.bf16.msrb.mxu0 %v13105_v41  ;;  %v15957_v41 = vld [vmem:[%s16772_s27 + $0x1684] sm:$0xf] }
 0x428   : > { %9640 = vmatpush.bf16.msrb.mxu1 %v13169_v31  ;;  %v13201_v31 = vor.u32 %v15991_v56, %v13198_v8  ;;  %v13065_v43 = vor.u32 %v15957_v41, %v13062_v47  ;;  %v13425_v56 = vor.u32 %v16047_v23, %v13422_v18  ;;  %v13489_v8 = vor.u32 %v16063_v2, %v13486_v36  ;;  %v16061_v41 = vld [vmem:[%s16772_s27 + $0x19c4] sm:$0xf]  ;;  %v13478_v47 = vld [vmem:[%s16772_s27 + $0x19c8] sm:$0xf0]  ;;  %v13326_v23 = vld [vmem:[%s16772_s27 + $0x1898] sm:$0xf0] }
 0x429   : > { %9653 = vmatpush.bf16.msrb.mxu2 %v13233_v34  ;;  %v15973_v34 = vld [vmem:[%s16772_s27 + $0x1704] sm:$0xf]  ;;  %v13481_v12 = vor.u32 %v16061_v41, %v13478_v47  ;;  %v16055_v18 = vld [vmem:[%s16772_s27 + $0x1994] sm:$0xf]  ;;  %v13454_v2 = vld [vmem:[%s16772_s27 + $0x1998] sm:$0xf0] }
 0x42a   : > { %9666 = vmatpush.bf16.msrb.mxu3 %v13297_v44  ;;  %v13265_v44 = vor.u32 %v16007_v50, %v13262_v26  ;;  %v13129_v59 = vor.u32 %v15973_v34, %v13126_v19  ;;  %v13350_v50 = vld [vmem:[%s16772_s27 + $0x18c8] sm:$0xf0]  ;;  %v16099_v41 = vld [vmem:[%s16772_s27 + $0x1af4] sm:$0xf]  ;;  %v13630_v47 = vld [vmem:[%s16772_s27 + $0x1af8] sm:$0xf0] }
 0x42b   : > { %9628 = vmatpush.bf16.msrb.mxu0 %v13097_v32  ;;  %v9402_v27 = vpop.f32.mrf.mxu2  ;;  %v16067_v32 = vld [vmem:[%s16772_s27 + $0x19f4] sm:$0xf]  ;;  %v13414_v26 = vld [vmem:[%s16772_s27 + $0x1948] sm:$0xf0] }
 0x42c   : > { %9641 = vmatpush.bf16.msrb.mxu1 %v13161_v46  ;;  %v9415_v45 = vpop.f32.mrf.mxu3  ;;  %v16005_v46 = vld [vmem:[%s16772_s27 + $0x1804] sm:$0xf]  ;;  %v13505_v28 = vor.u32 %v16067_v32, %v13502_v22 }
 0x42d   : > { %9654 = vmatpush.bf16.msrb.mxu2 %v13225_v20  ;;  %v13254_v20 = vld [vmem:[%s16772_s27 + $0x1808] sm:$0xf0]  ;;  %v16077_v27 = vld [vmem:[%s16772_s27 + $0x1a44] sm:$0xf]  ;;  %v13406_v45 = vld [vmem:[%s16772_s27 + $0x1938] sm:$0xf0] }
 0x42e   : > { %9667 = vmatpush.bf16.msrb.mxu3 %v13289_v25  ;;  %v13257_v25 = vor.u32 %v16005_v46, %v13254_v20  ;;  %v13545_v22 = vor.u32 %v16077_v27, %v13542_v54  ;;  %v16075_v20 = vld [vmem:[%s16772_s27 + $0x1a34] sm:$0xf]  ;;  %v13758_v54 = vld [vmem:[%s16772_s27 + $0x1bf8] sm:$0xf0] }
 0x42f   : > { %9629 = vmatpush.bf16.msrb.mxu0 %v13089_v10  ;;  %v16033_v10 = vld [vmem:[%s16772_s27 + $0x18e4] sm:$0xf] }
 0x430   : > { %9642 = vmatpush.bf16.msrb.mxu1 %v13153_v1  ;;  %v13430_v1 = vld [vmem:[%s16772_s27 + $0x1968] sm:$0xf0]  ;;  %v13369_v61 = vor.u32 %v16033_v10, %v13366_v60  ;;  %v16057_v60 = vld [vmem:[%s16772_s27 + $0x19a4] sm:$0xf] }
 0x431   : > { %9655 = vmatpush.bf16.msrb.mxu2 %v13217_v33  ;;  %v16065_v33 = vld [vmem:[%s16772_s27 + $0x19e4] sm:$0xf]  ;;  %v13433_v58 = vor.u32 %v16049_v49, %v13430_v1  ;;  %v13398_v10 = vld [vmem:[%s16772_s27 + $0x1928] sm:$0xf0] }
 0x432   : > { %9668 = vmatpush.bf16.msrb.mxu3 %v13281_v40  ;;  %v13497_v39 = vor.u32 %v16065_v33, %v13494_v52  ;;  %v13358_v40 = vld [vmem:[%s16772_s27 + $0x18d8] sm:$0xf0]  ;;  %v13462_v49 = vld [vmem:[%s16772_s27 + $0x19a8] sm:$0xf0] }
 0x433   : > { %9630 = vmatpush.bf16.msrb.mxu0 %v13081_v15  ;;  %v19852_v15 = vld [vmem:[#allocation23_spill] sm:$0xff]  ;;  %v13361_v6 = vor.u32 %v16031_v0, %v13358_v40  ;;  %v13465_v0 = vor.u32 %v16057_v60, %v13462_v49  ;;  %v16023_v40 = vld [vmem:[%s16772_s27 + $0x1894] sm:$0xf] }
 0x434   : > { %9643 = vmatpush.bf16.msrb.mxu1 %v13145_v62  ;;  %v19853_v62 = vld [vmem:[#allocation21_spill] sm:$0xff]  ;;  %v16095_v49 = vld [vmem:[%s16772_s27 + $0x1ad4] sm:$0xf] }
 0x435   : > { %9656 = vmatpush.bf16.msrb.mxu2 %v13209_v57  ;;  %v13561_v57 = vor.u32 %v16081_v42, %v13558_v63  ;;  %v16073_v42 = vld [vmem:[%s16772_s27 + $0x1a24] sm:$0xf]  ;;  %v13526_v63 = vld [vmem:[%s16772_s27 + $0x1a28] sm:$0xf0] }
 0x436   : > { %9669 = vmatpush.bf16.msrb.mxu3 %v13273_v21  ;;  %v16029_v21 = vld [vmem:[%s16772_s27 + $0x18c4] sm:$0xf]  ;;  %v13529_v36 = vor.u32 %v16073_v42, %v13526_v63  ;;  %v13678_v42 = vld [vmem:[%s16772_s27 + $0x1b58] sm:$0xf0]  ;;  %v16127_v63 = vld [vmem:[%s16772_s27 + $0x1bd4] sm:$0xf] }
 0x437   : > { %9631 = vmatpush.bf16.msrb.mxu0 %v13073_v29  ;;  %v16045_v29 = vld [vmem:[%s16772_s27 + $0x1944] sm:$0xf]  ;;  %v13353_v19 = vor.u32 %v16029_v21, %v13350_v50  ;;  %v13382_v21 = vld [vmem:[%s16772_s27 + $0x1908] sm:$0xf0] }
 0x438   : > { %9644 = vmatpush.bf16.msrb.mxu1 %v13137_v51  ;;  %v13553_v51 = vor.u32 %v16079_v35, %v13550_v17  ;;  %v13417_v30 = vor.u32 %v16045_v29, %v13414_v26  ;;  %v13318_v35 = vld [vmem:[%s16772_s27 + $0x1888] sm:$0xf0]  ;;  %v16053_v50 = vld [vmem:[%s16772_s27 + $0x1984] sm:$0xf] }
 0x439   : > { %9657 = vmatpush.bf16.msrb.mxu2 %v13201_v31  ;;  %v13446_v26 = vld [vmem:[%s16772_s27 + $0x1988] sm:$0xf0] }
 0x43a   : > { %9670 = vmatpush.bf16.msrb.mxu3 %v13265_v44  ;;  %v16027_v44 = vld [vmem:[%s16772_s27 + $0x18b4] sm:$0xf] }
 0x43b   : > { %9632 = vmatpush.bf16.msrb.mxu0 %v13065_v43  ;;  %v9426_v31 = vpop.f32.mrf.mxu0  ;;  %v16059_v43 = vld [vmem:[%s16772_s27 + $0x19b4] sm:$0xf]  ;;  %v13345_v46 = vor.u32 %v16027_v44, %v13342_v48  ;;  %v13449_v48 = vor.u32 %v16053_v50, %v13446_v26  ;;  %v13798_v26 = vld [vmem:[%s16772_s27 + $0x1c48] sm:$0xf0] }
 0x43c   : > { %9645 = vmatpush.bf16.msrb.mxu1 %v13129_v59  ;;  %v9427_v34 = vadd.f32 %v9426_v31, %v19187_v24  ;;  %v9439_v13 = vpop.f32.mrf.mxu1  ;;  %v13470_v24 = vld [vmem:[%s16772_s27 + $0x19b8] sm:$0xf0]  ;;  %v16115_v31 = vld [vmem:[%s16772_s27 + $0x1b74] sm:$0xf] }
 0x43d   : > { %9658 = vmatpush.bf16.msrb.mxu2 %v13193_v4  ;;  %v13534_v59 = vld [vmem:[%s16772_s27 + $0x1a38] sm:$0xf0]  ;;  %v13409_v4 = vor.u32 %v16043_v7, %v13406_v45  ;;  %v13633_v7 = vor.u32 %v16099_v41, %v13630_v47  ;;  %v16147_v45 = vld [vmem:[%s16772_s27 + $0x1c74] sm:$0xf] }
 0x43e   : > { %9671 = vmatpush.bf16.msrb.mxu3 %v13257_v25  ;;  %9633 = vmatmul.bf16.vlgmr.msrb.gmra.mxu0 %v19851_v11  ;;  %v9440_v32 = vadd.f32 %v9439_v13, %v9427_v34  ;;  %v13537_v1 = vor.u32 %v16075_v20, %v13534_v59  ;;  %v16039_v11 = vld [vmem:[%s16772_s27 + $0x1914] sm:$0xf]  ;;  %v13694_v34 = vld [vmem:[%s16772_s27 + $0x1b78] sm:$0xf0]  ;;  %v13622_v20 = vld [vmem:[%s16772_s27 + $0x1ae8] sm:$0xf0] }
 0x43f   : > { %9677 = vmatpush.bf16.msra.mxu0 %v13377_v53  ;;  %9646 = vmatmul.bf16.vlgmr.msrb.gmra.mxu1 %v19853_v62  ;;  %v13473_v53 = vor.u32 %v16059_v43, %v13470_v24  ;;  %v16071_v62 = vld [vmem:[%s16772_s27 + $0x1a14] sm:$0xf]  ;;  %v13822_v43 = vld [vmem:[%s16772_s27 + $0x1c78] sm:$0xf0]  ;;  %v16113_v59 = vld [vmem:[%s16772_s27 + $0x1b64] sm:$0xf] }
 0x440   : > { %9690 = vmatpush.bf16.msra.mxu1 %v13441_v38  ;;  %9659 = vmatmul.bf16.vlgmr.msrb.gmra.mxu2 %v19852_v15  ;;  %v13390_v15 = vld [vmem:[%s16772_s27 + $0x1918] sm:$0xf0] }
 0x441   : > { %9703 = vmatpush.bf16.msra.mxu2 %v13505_v28  ;;  %9672 = vmatmul.bf16.vlgmr.msrb.gmra.mxu3 %v19854_v16  ;;  %v16041_v28 = vld [vmem:[%s16772_s27 + $0x1924] sm:$0xf]  ;;  %v13518_v16 = vld [vmem:[%s16772_s27 + $0x1a18] sm:$0xf0]  ;;  %v13393_v17 = vor.u32 %v16039_v11, %v13390_v15  ;;  %v16143_v11 = vld [vmem:[%s16772_s27 + $0x1c54] sm:$0xf] }
 0x442   : > { %9716 = vmatpush.bf16.msra.mxu3 %v13569_v5  ;;  %v13806_v15 = vld [vmem:[%s16772_s27 + $0x1c58] sm:$0xf0] }
 0x443   : > { %9678 = vmatpush.bf16.msra.mxu0 %v13369_v61  ;;  %v9452_v38 = vpop.f32.mrf.mxu2  ;;  %v9428_v52 = vpop.f32.mrf.mxu0  ;;  %v13337_v61 = vor.u32 %v16025_v14, %v13334_v9  ;;  %v13825_v14 = vor.u32 %v16147_v45, %v13822_v43  ;;  %v16089_v45 = vld [vmem:[%s16772_s27 + $0x1aa4] sm:$0xf]  ;;  %v13590_v43 = vld [vmem:[%s16772_s27 + $0x1aa8] sm:$0xf0] }
 0x444   : > { %9691 = vmatpush.bf16.msra.mxu1 %v13433_v58  ;;  %v9453_v25 = vadd.f32 %v9452_v38, %v9440_v32  ;;  %v9465_v33 = vpop.f32.mrf.mxu3  ;;  %v9441_v58 = vpop.f32.mrf.mxu1  ;;  %v13697_v32 = vor.u32 %v16115_v31, %v13694_v34  ;;  %v13750_v38 = vld [vmem:[%s16772_s27 + $0x1be8] sm:$0xf0]  ;;  %v19855_v52 = vld [vmem:[#allocation26_spill] sm:$0xff]  ;;  %v13598_v31 = vld [vmem:[%s16772_s27 + $0x1ab8] sm:$0xf0] }
 0x445   : > { %9704 = vmatpush.bf16.msra.mxu2 %v13497_v39  ;;  %v13401_v39 = vor.u32 %v16041_v28, %v13398_v10  ;;  %v16145_v28 = vld [vmem:[%s16772_s27 + $0x1c64] sm:$0xf]  ;;  %v13742_v58 = vld [vmem:[%s16772_s27 + $0x1bd8] sm:$0xf0]  ;;  %v16107_v34 = vld [vmem:[%s16772_s27 + $0x1b34] sm:$0xf] }
 0x446   : > { %9717 = vmatpush.bf16.msra.mxu3 %v13561_v57  ;;  %v19258_v5 = vadd.f32 %v9465_v33, %v9453_v25  ;;  %v13329_v57 = vor.u32 %v16023_v40, %v13326_v23  ;;  %v13814_v25 = vld [vmem:[%s16772_s27 + $0x1c68] sm:$0xf0]  ;;  %v16111_v33 = vld [vmem:[%s16772_s27 + $0x1b54] sm:$0xf]  ;;  %v19858_v40 = vld [vmem:[#allocation28_spill] sm:$0xff] }
 0x447   : > { %9679 = vmatpush.bf16.msra.mxu0 %v13361_v6  ;;  %v16021_v6 = vld [vmem:[%s16772_s27 + $0x1884] sm:$0xf] }
 0x448   : > { %9692 = vmatpush.bf16.msra.mxu1 %v13425_v56  ;;  %v13457_v56 = vor.u32 %v16055_v18, %v13454_v2  ;;  %v13321_v27 = vor.u32 %v16021_v6, %v13318_v35  ;;  %v13681_v18 = vor.u32 %v16111_v33, %v13678_v42  ;;  %v13745_v2 = vor.u32 %v16127_v63, %v13742_v58  ;;  %v16125_v6 = vld [vmem:[%s16772_s27 + $0x1bc4] sm:$0xf]  ;;  %v13734_v35 = vld [vmem:[%s16772_s27 + $0x1bc8] sm:$0xf0]  ;;  %v13582_v33 = vld [vmem:[%s16772_s27 + $0x1a98] sm:$0xf0] }
 0x449   : > { %9705 = vmatpush.bf16.msra.mxu2 %v13489_v8  ;;  %v16037_v8 = vld [vmem:[%s16772_s27 + $0x1904] sm:$0xf]  ;;  %v13737_v47 = vor.u32 %v16125_v6, %v13734_v35  ;;  %v16119_v42 = vld [vmem:[%s16772_s27 + $0x1b94] sm:$0xf]  ;;  %v13710_v63 = vld [vmem:[%s16772_s27 + $0x1b98] sm:$0xf0] }
 0x44a   : > { %9718 = vmatpush.bf16.msra.mxu3 %v13553_v51  ;;  %v13521_v51 = vor.u32 %v16071_v62, %v13518_v16  ;;  %v13385_v44 = vor.u32 %v16037_v8, %v13382_v21  ;;  %v13606_v62 = vld [vmem:[%s16772_s27 + $0x1ac8] sm:$0xf0]  ;;  %v16163_v6 = vld [vmem:[%s16772_s27 + $0x1cf4] sm:$0xf]  ;;  %v13886_v35 = vld [vmem:[%s16772_s27 + $0x1cf8] sm:$0xf0] }
 0x44b   : > { %9680 = vmatpush.bf16.msra.mxu0 %v13353_v19  ;;  %v9454_v29 = vpop.f32.mrf.mxu2  ;;  %v16131_v19 = vld [vmem:[%s16772_s27 + $0x1bf4] sm:$0xf]  ;;  %v13670_v16 = vld [vmem:[%s16772_s27 + $0x1b48] sm:$0xf0] }
 0x44c   : > { %9693 = vmatpush.bf16.msra.mxu1 %v13417_v30  ;;  %v9467_v13 = vpop.f32.mrf.mxu3  ;;  %v16069_v30 = vld [vmem:[%s16772_s27 + $0x1a04] sm:$0xf]  ;;  %v13761_v24 = vor.u32 %v16131_v19, %v13758_v54 }
 0x44d   : > { %9706 = vmatpush.bf16.msra.mxu2 %v13481_v12  ;;  %v13510_v12 = vld [vmem:[%s16772_s27 + $0x1a08] sm:$0xf0]  ;;  %v16141_v29 = vld [vmem:[%s16772_s27 + $0x1c44] sm:$0xf]  ;;  %v13662_v13 = vld [vmem:[%s16772_s27 + $0x1b38] sm:$0xf0] }
 0x44e   : > { %9719 = vmatpush.bf16.msra.mxu3 %v13545_v22  ;;  %v13513_v22 = vor.u32 %v16069_v30, %v13510_v12  ;;  %v13801_v54 = vor.u32 %v16141_v29, %v13798_v26  ;;  %v16139_v12 = vld [vmem:[%s16772_s27 + $0x1c34] sm:$0xf]  ;;  %v14014_v26 = vld [vmem:[%s16772_s27 + $0x1df8] sm:$0xf0] }
 0x44f   : > { %9681 = vmatpush.bf16.msra.mxu0 %v13345_v46  ;;  %v16097_v46 = vld [vmem:[%s16772_s27 + $0x1ae4] sm:$0xf] }
 0x450   : > { %9694 = vmatpush.bf16.msra.mxu1 %v13409_v4  ;;  %v13686_v4 = vld [vmem:[%s16772_s27 + $0x1b68] sm:$0xf0]  ;;  %v13625_v9 = vor.u32 %v16097_v46, %v13622_v20  ;;  %v16121_v20 = vld [vmem:[%s16772_s27 + $0x1ba4] sm:$0xf] }
 0x451   : > { %9707 = vmatpush.bf16.msra.mxu2 %v13473_v53  ;;  %v16129_v53 = vld [vmem:[%s16772_s27 + $0x1be4] sm:$0xf]  ;;  %v13689_v10 = vor.u32 %v16113_v59, %v13686_v4  ;;  %v13654_v46 = vld [vmem:[%s16772_s27 + $0x1b28] sm:$0xf0] }
 0x452   : > { %9720 = vmatpush.bf16.msra.mxu3 %v13537_v1  ;;  %v13753_v60 = vor.u32 %v16129_v53, %v13750_v38  ;;  %v13614_v1 = vld [vmem:[%s16772_s27 + $0x1ad8] sm:$0xf0]  ;;  %v13718_v59 = vld [vmem:[%s16772_s27 + $0x1ba8] sm:$0xf0] }
 0x453   : > { %9682 = vmatpush.bf16.msra.mxu0 %v13337_v61  ;;  %v19856_v61 = vld [vmem:[#allocation27_spill] sm:$0xff]  ;;  %v13617_v23 = vor.u32 %v16095_v49, %v13614_v1  ;;  %v13721_v49 = vor.u32 %v16121_v20, %v13718_v59  ;;  %v16087_v1 = vld [vmem:[%s16772_s27 + $0x1a94] sm:$0xf] }
 0x454   : > { %9695 = vmatpush.bf16.msra.mxu1 %v13401_v39  ;;  %v19857_v39 = vld [vmem:[#allocation25_spill] sm:$0xff]  ;;  %v16159_v59 = vld [vmem:[%s16772_s27 + $0x1cd4] sm:$0xf] }
 0x455   : > { %9708 = vmatpush.bf16.msra.mxu2 %v13465_v0  ;;  %v13817_v0 = vor.u32 %v16145_v28, %v13814_v25  ;;  %v16137_v28 = vld [vmem:[%s16772_s27 + $0x1c24] sm:$0xf]  ;;  %v13782_v25 = vld [vmem:[%s16772_s27 + $0x1c28] sm:$0xf0] }
 0x456   : > { %9721 = vmatpush.bf16.msra.mxu3 %v13529_v36  ;;  %v16093_v36 = vld [vmem:[%s16772_s27 + $0x1ac4] sm:$0xf]  ;;  %v13785_v58 = vor.u32 %v16137_v28, %v13782_v25  ;;  %v13934_v28 = vld [vmem:[%s16772_s27 + $0x1d58] sm:$0xf0]  ;;  %v16191_v25 = vld [vmem:[%s16772_s27 + $0x1dd4] sm:$0xf] }
 0x457   : > { %9683 = vmatpush.bf16.msra.mxu0 %v13329_v57  ;;  %v16109_v57 = vld [vmem:[%s16772_s27 + $0x1b44] sm:$0xf]  ;;  %v13609_v21 = vor.u32 %v16093_v36, %v13606_v62  ;;  %v13638_v36 = vld [vmem:[%s16772_s27 + $0x1b08] sm:$0xf0] }
 0x458   : > { %9696 = vmatpush.bf16.msra.mxu1 %v13393_v17  ;;  %v13809_v17 = vor.u32 %v16143_v11, %v13806_v15  ;;  %v13673_v41 = vor.u32 %v16109_v57, %v13670_v16  ;;  %v13574_v11 = vld [vmem:[%s16772_s27 + $0x1a88] sm:$0xf0]  ;;  %v16117_v62 = vld [vmem:[%s16772_s27 + $0x1b84] sm:$0xf] }
 0x459   : > { %9709 = vmatpush.bf16.msra.mxu2 %v13457_v56  ;;  %v13702_v16 = vld [vmem:[%s16772_s27 + $0x1b88] sm:$0xf0] }
 0x45a   : > { %9722 = vmatpush.bf16.msra.mxu3 %v13521_v51  ;;  %v16091_v51 = vld [vmem:[%s16772_s27 + $0x1ab4] sm:$0xf] }
 0x45b   : > { %9684 = vmatpush.bf16.msra.mxu0 %v13321_v27  ;;  %v9478_v56 = vpop.f32.mrf.mxu0  ;;  %v16123_v27 = vld [vmem:[%s16772_s27 + $0x1bb4] sm:$0xf]  ;;  %v13601_v30 = vor.u32 %v16091_v51, %v13598_v31  ;;  %v13705_v31 = vor.u32 %v16117_v62, %v13702_v16  ;;  %v14054_v16 = vld [vmem:[%s16772_s27 + $0x1e48] sm:$0xf0] }
 0x45c   : > { %9697 = vmatpush.bf16.msra.mxu1 %v13385_v44  ;;  %v9479_v8 = vadd.f32 %v9478_v56, %v19258_v5  ;;  %v9491_v50 = vpop.f32.mrf.mxu1  ;;  %v13726_v5 = vld [vmem:[%s16772_s27 + $0x1bb8] sm:$0xf0]  ;;  %v16179_v56 = vld [vmem:[%s16772_s27 + $0x1d74] sm:$0xf] }
 0x45d   : > { %9710 = vmatpush.bf16.msra.mxu2 %v13449_v48  ;;  %v13790_v44 = vld [vmem:[%s16772_s27 + $0x1c38] sm:$0xf0]  ;;  %v13665_v48 = vor.u32 %v16107_v34, %v13662_v13  ;;  %v13889_v34 = vor.u32 %v16163_v6, %v13886_v35  ;;  %v16211_v13 = vld [vmem:[%s16772_s27 + $0x1e74] sm:$0xf] }
 0x45e   : > { %9723 = vmatpush.bf16.msra.mxu3 %v13513_v22  ;;  %9685 = vmatmul.bf16.vlgmr.msra.gmra.mxu0 %v19855_v52  ;;  %v9492_v19 = vadd.f32 %v9491_v50, %v9479_v8  ;;  %v13793_v4 = vor.u32 %v16139_v12, %v13790_v44  ;;  %v16103_v52 = vld [vmem:[%s16772_s27 + $0x1b14] sm:$0xf]  ;;  %v13950_v8 = vld [vmem:[%s16772_s27 + $0x1d78] sm:$0xf0]  ;;  %v13878_v12 = vld [vmem:[%s16772_s27 + $0x1ce8] sm:$0xf0] }
 0x45f   : > { %9729 = vmatpush.bf16.msrb.mxu0 %v13633_v7  ;;  %9698 = vmatmul.bf16.vlgmr.msra.gmra.mxu1 %v19857_v39  ;;  %v13729_v7 = vor.u32 %v16123_v27, %v13726_v5  ;;  %v16135_v39 = vld [vmem:[%s16772_s27 + $0x1c14] sm:$0xf]  ;;  %v14078_v27 = vld [vmem:[%s16772_s27 + $0x1e78] sm:$0xf0]  ;;  %v16177_v44 = vld [vmem:[%s16772_s27 + $0x1d64] sm:$0xf] }
 0x460   : > { %9742 = vmatpush.bf16.msrb.mxu1 %v13697_v32  ;;  %9711 = vmatmul.bf16.vlgmr.msra.gmra.mxu2 %v19856_v61  ;;  %v13646_v61 = vld [vmem:[%s16772_s27 + $0x1b18] sm:$0xf0] }
 0x461   : > { %9755 = vmatpush.bf16.msrb.mxu2 %v13761_v24  ;;  %9724 = vmatmul.bf16.vlgmr.msra.gmra.mxu3 %v19858_v40  ;;  %v16105_v24 = vld [vmem:[%s16772_s27 + $0x1b24] sm:$0xf]  ;;  %v13774_v40 = vld [vmem:[%s16772_s27 + $0x1c18] sm:$0xf0]  ;;  %v13649_v15 = vor.u32 %v16103_v52, %v13646_v61  ;;  %v16207_v52 = vld [vmem:[%s16772_s27 + $0x1e54] sm:$0xf] }
 0x462   : > { %9768 = vmatpush.bf16.msrb.mxu3 %v13825_v14  ;;  %v14062_v61 = vld [vmem:[%s16772_s27 + $0x1e58] sm:$0xf0] }
 0x463   : > { %9730 = vmatpush.bf16.msrb.mxu0 %v13625_v9  ;;  %v9504_v32 = vpop.f32.mrf.mxu2  ;;  %v9480_v38 = vpop.f32.mrf.mxu0  ;;  %v13593_v9 = vor.u32 %v16089_v45, %v13590_v43  ;;  %v14081_v45 = vor.u32 %v16211_v13, %v14078_v27  ;;  %v16153_v13 = vld [vmem:[%s16772_s27 + $0x1ca4] sm:$0xf]  ;;  %v13846_v27 = vld [vmem:[%s16772_s27 + $0x1ca8] sm:$0xf0] }
 0x464   : > { %9743 = vmatpush.bf16.msrb.mxu1 %v13689_v10  ;;  %v9505_v22 = vadd.f32 %v9504_v32, %v9492_v19  ;;  %v9517_v53 = vpop.f32.mrf.mxu3  ;;  %v9493_v10 = vpop.f32.mrf.mxu1  ;;  %v13953_v19 = vor.u32 %v16179_v56, %v13950_v8  ;;  %v14006_v32 = vld [vmem:[%s16772_s27 + $0x1de8] sm:$0xf0]  ;;  %v19859_v38 = vld [vmem:[#allocation30_spill] sm:$0xff]  ;;  %v13854_v56 = vld [vmem:[%s16772_s27 + $0x1cb8] sm:$0xf0] }
 0x465   : > { %9756 = vmatpush.bf16.msrb.mxu2 %v13753_v60  ;;  %v13657_v60 = vor.u32 %v16105_v24, %v13654_v46  ;;  %v16209_v24 = vld [vmem:[%s16772_s27 + $0x1e64] sm:$0xf]  ;;  %v13998_v10 = vld [vmem:[%s16772_s27 + $0x1dd8] sm:$0xf0]  ;;  %v16171_v8 = vld [vmem:[%s16772_s27 + $0x1d34] sm:$0xf] }
 0x466   : > { %9769 = vmatpush.bf16.msrb.mxu3 %v13817_v0  ;;  %v19329_v14 = vadd.f32 %v9517_v53, %v9505_v22  ;;  %v13585_v0 = vor.u32 %v16087_v1, %v13582_v33  ;;  %v14070_v22 = vld [vmem:[%s16772_s27 + $0x1e68] sm:$0xf0]  ;;  %v16175_v53 = vld [vmem:[%s16772_s27 + $0x1d54] sm:$0xf]  ;;  %v19862_v1 = vld [vmem:[#allocation32_spill] sm:$0xff] }
 0x467   : > { %9731 = vmatpush.bf16.msrb.mxu0 %v13617_v23  ;;  %v16085_v23 = vld [vmem:[%s16772_s27 + $0x1a84] sm:$0xf] }
 0x468   : > { %9744 = vmatpush.bf16.msrb.mxu1 %v13681_v18  ;;  %v13713_v18 = vor.u32 %v16119_v42, %v13710_v63  ;;  %v13577_v29 = vor.u32 %v16085_v23, %v13574_v11  ;;  %v13937_v42 = vor.u32 %v16175_v53, %v13934_v28  ;;  %v14001_v63 = vor.u32 %v16191_v25, %v13998_v10  ;;  %v16189_v23 = vld [vmem:[%s16772_s27 + $0x1dc4] sm:$0xf]  ;;  %v13990_v11 = vld [vmem:[%s16772_s27 + $0x1dc8] sm:$0xf0]  ;;  %v13838_v53 = vld [vmem:[%s16772_s27 + $0x1c98] sm:$0xf0] }
 0x469   : > { %9757 = vmatpush.bf16.msrb.mxu2 %v13745_v2  ;;  %v16101_v2 = vld [vmem:[%s16772_s27 + $0x1b04] sm:$0xf]  ;;  %v13993_v35 = vor.u32 %v16189_v23, %v13990_v11  ;;  %v16183_v28 = vld [vmem:[%s16772_s27 + $0x1d94] sm:$0xf]  ;;  %v13966_v25 = vld [vmem:[%s16772_s27 + $0x1d98] sm:$0xf0] }
 0x46a   : > { %9770 = vmatpush.bf16.msrb.mxu3 %v13809_v17  ;;  %v13777_v17 = vor.u32 %v16135_v39, %v13774_v40  ;;  %v13641_v51 = vor.u32 %v16101_v2, %v13638_v36  ;;  %v13862_v39 = vld [vmem:[%s16772_s27 + $0x1cc8] sm:$0xf0]  ;;  %v16227_v23 = vld [vmem:[%s16772_s27 + $0x1ef4] sm:$0xf]  ;;  %v14142_v11 = vld [vmem:[%s16772_s27 + $0x1ef8] sm:$0xf0] }
 0x46b   : > { %9732 = vmatpush.bf16.msrb.mxu0 %v13609_v21  ;;  %v9506_v57 = vpop.f32.mrf.mxu2  ;;  %v16195_v21 = vld [vmem:[%s16772_s27 + $0x1df4] sm:$0xf]  ;;  %v13926_v40 = vld [vmem:[%s16772_s27 + $0x1d48] sm:$0xf0] }
 0x46c   : > { %9745 = vmatpush.bf16.msrb.mxu1 %v13673_v41  ;;  %v9519_v50 = vpop.f32.mrf.mxu3  ;;  %v16133_v41 = vld [vmem:[%s16772_s27 + $0x1c04] sm:$0xf]  ;;  %v14017_v5 = vor.u32 %v16195_v21, %v14014_v26 }
 0x46d   : > { %9758 = vmatpush.bf16.msrb.mxu2 %v13737_v47  ;;  %v13766_v47 = vld [vmem:[%s16772_s27 + $0x1c08] sm:$0xf0]  ;;  %v16205_v57 = vld [vmem:[%s16772_s27 + $0x1e44] sm:$0xf]  ;;  %v13918_v50 = vld [vmem:[%s16772_s27 + $0x1d38] sm:$0xf0] }
 0x46e   : > { %9771 = vmatpush.bf16.msrb.mxu3 %v13801_v54  ;;  %v13769_v54 = vor.u32 %v16133_v41, %v13766_v47  ;;  %v14057_v26 = vor.u32 %v16205_v57, %v14054_v16  ;;  %v16203_v47 = vld [vmem:[%s16772_s27 + $0x1e34] sm:$0xf]  ;;  %v14270_v16 = vld [vmem:[%s16772_s27 + $0x1ff8] sm:$0xf0] }
 0x46f   : > { %9733 = vmatpush.bf16.msrb.mxu0 %v13601_v30  ;;  %v16161_v30 = vld [vmem:[%s16772_s27 + $0x1ce4] sm:$0xf] }
 0x470   : > { %9746 = vmatpush.bf16.msrb.mxu1 %v13665_v48  ;;  %v13942_v48 = vld [vmem:[%s16772_s27 + $0x1d68] sm:$0xf0]  ;;  %v13881_v43 = vor.u32 %v16161_v30, %v13878_v12  ;;  %v16185_v12 = vld [vmem:[%s16772_s27 + $0x1da4] sm:$0xf] }
 0x471   : > { %9759 = vmatpush.bf16.msrb.mxu2 %v13729_v7  ;;  %v16193_v7 = vld [vmem:[%s16772_s27 + $0x1de4] sm:$0xf]  ;;  %v13945_v46 = vor.u32 %v16177_v44, %v13942_v48  ;;  %v13910_v30 = vld [vmem:[%s16772_s27 + $0x1d28] sm:$0xf0] }
 0x472   : > { %9772 = vmatpush.bf16.msrb.mxu3 %v13793_v4  ;;  %v14009_v20 = vor.u32 %v16193_v7, %v14006_v32  ;;  %v13870_v4 = vld [vmem:[%s16772_s27 + $0x1cd8] sm:$0xf0]  ;;  %v13974_v44 = vld [vmem:[%s16772_s27 + $0x1da8] sm:$0xf0] }
 0x473   : > { %9734 = vmatpush.bf16.msrb.mxu0 %v13593_v9  ;;  %v19860_v9 = vld [vmem:[#allocation31_spill] sm:$0xff]  ;;  %v13873_v33 = vor.u32 %v16159_v59, %v13870_v4  ;;  %v13977_v59 = vor.u32 %v16185_v12, %v13974_v44  ;;  %v16151_v4 = vld [vmem:[%s16772_s27 + $0x1c94] sm:$0xf] }
 0x474   : > { %9747 = vmatpush.bf16.msrb.mxu1 %v13657_v60  ;;  %v19861_v60 = vld [vmem:[#allocation29_spill] sm:$0xff]  ;;  %v16223_v44 = vld [vmem:[%s16772_s27 + $0x1ed4] sm:$0xf] }
 0x475   : > { %9760 = vmatpush.bf16.msrb.mxu2 %v13721_v49  ;;  %v14073_v49 = vor.u32 %v16209_v24, %v14070_v22  ;;  %v16201_v24 = vld [vmem:[%s16772_s27 + $0x1e24] sm:$0xf]  ;;  %v14038_v22 = vld [vmem:[%s16772_s27 + $0x1e28] sm:$0xf0] }
 0x476   : > { %9773 = vmatpush.bf16.msrb.mxu3 %v13785_v58  ;;  %v16157_v58 = vld [vmem:[%s16772_s27 + $0x1cc4] sm:$0xf]  ;;  %v14041_v10 = vor.u32 %v16201_v24, %v14038_v22  ;;  %v14190_v24 = vld [vmem:[%s16772_s27 + $0x1f58] sm:$0xf0]  ;;  %v16255_v22 = vld [vmem:[%s16772_s27 + $0x1fd4] sm:$0xf] }
 0x477   : > { %9735 = vmatpush.bf16.msrb.mxu0 %v13585_v0  ;;  %v16173_v0 = vld [vmem:[%s16772_s27 + $0x1d44] sm:$0xf]  ;;  %v13865_v36 = vor.u32 %v16157_v58, %v13862_v39  ;;  %v13894_v58 = vld [vmem:[%s16772_s27 + $0x1d08] sm:$0xf0] }
 0x478   : > { %9748 = vmatpush.bf16.msrb.mxu1 %v13649_v15  ;;  %v14065_v15 = vor.u32 %v16207_v52, %v14062_v61  ;;  %v13929_v6 = vor.u32 %v16173_v0, %v13926_v40  ;;  %v13830_v52 = vld [vmem:[%s16772_s27 + $0x1c88] sm:$0xf0]  ;;  %v16181_v39 = vld [vmem:[%s16772_s27 + $0x1d84] sm:$0xf] }
 0x479   : > { %9761 = vmatpush.bf16.msrb.mxu2 %v13713_v18  ;;  %v13958_v40 = vld [vmem:[%s16772_s27 + $0x1d88] sm:$0xf0] }
 0x47a   : > { %9774 = vmatpush.bf16.msrb.mxu3 %v13777_v17  ;;  %v16155_v17 = vld [vmem:[%s16772_s27 + $0x1cb4] sm:$0xf] }
 0x47b   : > { %9736 = vmatpush.bf16.msrb.mxu0 %v13577_v29  ;;  %v9530_v18 = vpop.f32.mrf.mxu0  ;;  %v16187_v29 = vld [vmem:[%s16772_s27 + $0x1db4] sm:$0xf]  ;;  %v13857_v41 = vor.u32 %v16155_v17, %v13854_v56  ;;  %v13961_v56 = vor.u32 %v16181_v39, %v13958_v40  ;;  %v14310_v40 = vld [vmem:[%s16772_s27 + $0x2048] sm:$0xf0] }
 0x47c   : > { %9749 = vmatpush.bf16.msrb.mxu1 %v13641_v51  ;;  %v9531_v2 = vadd.f32 %v9530_v18, %v19329_v14  ;;  %v9543_v62 = vpop.f32.mrf.mxu1  ;;  %v13982_v14 = vld [vmem:[%s16772_s27 + $0x1db8] sm:$0xf0]  ;;  %v16243_v18 = vld [vmem:[%s16772_s27 + $0x1f74] sm:$0xf] }
 0x47d   : > { %9762 = vmatpush.bf16.msrb.mxu2 %v13705_v31  ;;  %v14046_v51 = vld [vmem:[%s16772_s27 + $0x1e38] sm:$0xf0]  ;;  %v13921_v31 = vor.u32 %v16171_v8, %v13918_v50  ;;  %v14145_v8 = vor.u32 %v16227_v23, %v14142_v11  ;;  %v16275_v50 = vld [vmem:[%s16772_s27 + $0x2074] sm:$0xf] }
 0x47e   : > { %9775 = vmatpush.bf16.msrb.mxu3 %v13769_v54  ;;  %9737 = vmatmul.bf16.vlgmr.msrb.gmra.mxu0 %v19859_v38  ;;  %v9544_v21 = vadd.f32 %v9543_v62, %v9531_v2  ;;  %v14049_v48 = vor.u32 %v16203_v47, %v14046_v51  ;;  %v16167_v38 = vld [vmem:[%s16772_s27 + $0x1d14] sm:$0xf]  ;;  %v14206_v2 = vld [vmem:[%s16772_s27 + $0x1f78] sm:$0xf0]  ;;  %v14134_v47 = vld [vmem:[%s16772_s27 + $0x1ee8] sm:$0xf0] }
 0x47f   : > { %9781 = vmatpush.bf16.msra.mxu0 %v13889_v34  ;;  %9750 = vmatmul.bf16.vlgmr.msrb.gmra.mxu1 %v19861_v60  ;;  %v13985_v34 = vor.u32 %v16187_v29, %v13982_v14  ;;  %v16199_v60 = vld [vmem:[%s16772_s27 + $0x1e14] sm:$0xf]  ;;  %v14334_v29 = vld [vmem:[%s16772_s27 + $0x2078] sm:$0xf0]  ;;  %v16241_v51 = vld [vmem:[%s16772_s27 + $0x1f64] sm:$0xf] }
 0x480   : > { %9794 = vmatpush.bf16.msra.mxu1 %v13953_v19  ;;  %9763 = vmatmul.bf16.vlgmr.msrb.gmra.mxu2 %v19860_v9  ;;  %v13902_v9 = vld [vmem:[%s16772_s27 + $0x1d18] sm:$0xf0] }
 0x481   : > { %9807 = vmatpush.bf16.msra.mxu2 %v14017_v5  ;;  %9776 = vmatmul.bf16.vlgmr.msrb.gmra.mxu3 %v19862_v1  ;;  %v16169_v5 = vld [vmem:[%s16772_s27 + $0x1d24] sm:$0xf]  ;;  %v14030_v1 = vld [vmem:[%s16772_s27 + $0x1e18] sm:$0xf0]  ;;  %v13905_v61 = vor.u32 %v16167_v38, %v13902_v9  ;;  %v16271_v38 = vld [vmem:[%s16772_s27 + $0x2054] sm:$0xf] }
 0x482   : > { %9820 = vmatpush.bf16.msra.mxu3 %v14081_v45  ;;  %v14318_v9 = vld [vmem:[%s16772_s27 + $0x2058] sm:$0xf0] }
 0x483   : > { %9782 = vmatpush.bf16.msra.mxu0 %v13881_v43  ;;  %v9556_v19 = vpop.f32.mrf.mxu2  ;;  %v9532_v32 = vpop.f32.mrf.mxu0  ;;  %v13849_v43 = vor.u32 %v16153_v13, %v13846_v27  ;;  %v14337_v13 = vor.u32 %v16275_v50, %v14334_v29  ;;  %v16217_v50 = vld [vmem:[%s16772_s27 + $0x1ea4] sm:$0xf]  ;;  %v14102_v29 = vld [vmem:[%s16772_s27 + $0x1ea8] sm:$0xf0] }
 0x484   : > { %9795 = vmatpush.bf16.msra.mxu1 %v13945_v46  ;;  %v9557_v54 = vadd.f32 %v9556_v19, %v9544_v21  ;;  %v9569_v7 = vpop.f32.mrf.mxu3  ;;  %v9545_v46 = vpop.f32.mrf.mxu1  ;;  %v14209_v21 = vor.u32 %v16243_v18, %v14206_v2  ;;  %v14262_v19 = vld [vmem:[%s16772_s27 + $0x1fe8] sm:$0xf0]  ;;  %v19863_v32 = vld [vmem:[#allocation34_spill] sm:$0xff]  ;;  %v14110_v18 = vld [vmem:[%s16772_s27 + $0x1eb8] sm:$0xf0] }
 0x485   : > { %9808 = vmatpush.bf16.msra.mxu2 %v14009_v20  ;;  %v13913_v20 = vor.u32 %v16169_v5, %v13910_v30  ;;  %v16273_v5 = vld [vmem:[%s16772_s27 + $0x2064] sm:$0xf]  ;;  %v14254_v46 = vld [vmem:[%s16772_s27 + $0x1fd8] sm:$0xf0]  ;;  %v16235_v2 = vld [vmem:[%s16772_s27 + $0x1f34] sm:$0xf] }
 0x486   : > { %9821 = vmatpush.bf16.msra.mxu3 %v14073_v49  ;;  %v19400_v45 = vadd.f32 %v9569_v7, %v9557_v54  ;;  %v13841_v49 = vor.u32 %v16151_v4, %v13838_v53  ;;  %v14326_v54 = vld [vmem:[%s16772_s27 + $0x2068] sm:$0xf0]  ;;  %v16239_v7 = vld [vmem:[%s16772_s27 + $0x1f54] sm:$0xf]  ;;  %v19866_v4 = vld [vmem:[#allocation36_spill] sm:$0xff] }
 0x487   : > { %9783 = vmatpush.bf16.msra.mxu0 %v13873_v33  ;;  %v16149_v33 = vld [vmem:[%s16772_s27 + $0x1c84] sm:$0xf] }
 0x488   : > { %9796 = vmatpush.bf16.msra.mxu1 %v13937_v42  ;;  %v13969_v42 = vor.u32 %v16183_v28, %v13966_v25  ;;  %v13833_v57 = vor.u32 %v16149_v33, %v13830_v52  ;;  %v14193_v28 = vor.u32 %v16239_v7, %v14190_v24  ;;  %v14257_v25 = vor.u32 %v16255_v22, %v14254_v46  ;;  %v16253_v33 = vld [vmem:[%s16772_s27 + $0x1fc4] sm:$0xf]  ;;  %v14246_v52 = vld [vmem:[%s16772_s27 + $0x1fc8] sm:$0xf0]  ;;  %v14094_v7 = vld [vmem:[%s16772_s27 + $0x1e98] sm:$0xf0] }
 0x489   : > { %9809 = vmatpush.bf16.msra.mxu2 %v14001_v63  ;;  %v16165_v63 = vld [vmem:[%s16772_s27 + $0x1d04] sm:$0xf]  ;;  %v14249_v11 = vor.u32 %v16253_v33, %v14246_v52  ;;  %v16247_v24 = vld [vmem:[%s16772_s27 + $0x1f94] sm:$0xf]  ;;  %v14222_v22 = vld [vmem:[%s16772_s27 + $0x1f98] sm:$0xf0] }
 0x48a   : > { %9822 = vmatpush.bf16.msra.mxu3 %v14065_v15  ;;  %v14033_v15 = vor.u32 %v16199_v60, %v14030_v1  ;;  %v13897_v17 = vor.u32 %v16165_v63, %v13894_v58  ;;  %v14118_v60 = vld [vmem:[%s16772_s27 + $0x1ec8] sm:$0xf0]  ;;  %v16291_v33 = vld [vmem:[%s16772_s27 + $0x20f4] sm:$0xf]  ;;  %v14398_v52 = vld [vmem:[%s16772_s27 + $0x20f8] sm:$0xf0] }
 0x48b   : > { %9784 = vmatpush.bf16.msra.mxu0 %v13865_v36  ;;  %v9558_v0 = vpop.f32.mrf.mxu2  ;;  %v16259_v36 = vld [vmem:[%s16772_s27 + $0x1ff4] sm:$0xf]  ;;  %v14182_v1 = vld [vmem:[%s16772_s27 + $0x1f48] sm:$0xf0] }
 0x48c   : > { %9797 = vmatpush.bf16.msra.mxu1 %v13929_v6  ;;  %v9571_v62 = vpop.f32.mrf.mxu3  ;;  %v16197_v6 = vld [vmem:[%s16772_s27 + $0x1e04] sm:$0xf]  ;;  %v14273_v14 = vor.u32 %v16259_v36, %v14270_v16 }
 0x48d   : > { %9810 = vmatpush.bf16.msra.mxu2 %v13993_v35  ;;  %v14022_v35 = vld [vmem:[%s16772_s27 + $0x1e08] sm:$0xf0]  ;;  %v16269_v0 = vld [vmem:[%s16772_s27 + $0x2044] sm:$0xf]  ;;  %v14174_v62 = vld [vmem:[%s16772_s27 + $0x1f38] sm:$0xf0] }
 0x48e   : > { %9823 = vmatpush.bf16.msra.mxu3 %v14057_v26  ;;  %v14025_v26 = vor.u32 %v16197_v6, %v14022_v35  ;;  %v14313_v16 = vor.u32 %v16269_v0, %v14310_v40  ;;  %v16267_v35 = vld [vmem:[%s16772_s27 + $0x2034] sm:$0xf]  ;;  %v14526_v40 = vld [vmem:[%s16772_s27 + $0x21f8] sm:$0xf0] }
 0x48f   : > { %9785 = vmatpush.bf16.msra.mxu0 %v13857_v41  ;;  %v16225_v41 = vld [vmem:[%s16772_s27 + $0x1ee4] sm:$0xf] }
 0x490   : > { %9798 = vmatpush.bf16.msra.mxu1 %v13921_v31  ;;  %v14198_v31 = vld [vmem:[%s16772_s27 + $0x1f68] sm:$0xf0]  ;;  %v14137_v27 = vor.u32 %v16225_v41, %v14134_v47  ;;  %v16249_v47 = vld [vmem:[%s16772_s27 + $0x1fa4] sm:$0xf] }
 0x491   : > { %9811 = vmatpush.bf16.msra.mxu2 %v13985_v34  ;;  %v16257_v34 = vld [vmem:[%s16772_s27 + $0x1fe4] sm:$0xf]  ;;  %v14201_v30 = vor.u32 %v16241_v51, %v14198_v31  ;;  %v14166_v41 = vld [vmem:[%s16772_s27 + $0x1f28] sm:$0xf0] }
 0x492   : > { %9824 = vmatpush.bf16.msra.mxu3 %v14049_v48  ;;  %v14265_v12 = vor.u32 %v16257_v34, %v14262_v19  ;;  %v14126_v48 = vld [vmem:[%s16772_s27 + $0x1ed8] sm:$0xf0]  ;;  %v14230_v51 = vld [vmem:[%s16772_s27 + $0x1fa8] sm:$0xf0] }
 0x493   : > { %9786 = vmatpush.bf16.msra.mxu0 %v13849_v43  ;;  %v19864_v43 = vld [vmem:[#allocation35_spill] sm:$0xff]  ;;  %v14129_v53 = vor.u32 %v16223_v44, %v14126_v48  ;;  %v14233_v44 = vor.u32 %v16249_v47, %v14230_v51  ;;  %v16215_v48 = vld [vmem:[%s16772_s27 + $0x1e94] sm:$0xf] }
 0x494   : > { %9799 = vmatpush.bf16.msra.mxu1 %v13913_v20  ;;  %v19865_v20 = vld [vmem:[#allocation33_spill] sm:$0xff]  ;;  %v16287_v51 = vld [vmem:[%s16772_s27 + $0x20d4] sm:$0xf] }
 0x495   : > { %9812 = vmatpush.bf16.msra.mxu2 %v13977_v59  ;;  %v14329_v59 = vor.u32 %v16273_v5, %v14326_v54  ;;  %v16265_v5 = vld [vmem:[%s16772_s27 + $0x2024] sm:$0xf]  ;;  %v14294_v54 = vld [vmem:[%s16772_s27 + $0x2028] sm:$0xf0] }
 0x496   : > { %9825 = vmatpush.bf16.msra.mxu3 %v14041_v10  ;;  %v16221_v10 = vld [vmem:[%s16772_s27 + $0x1ec4] sm:$0xf]  ;;  %v14297_v46 = vor.u32 %v16265_v5, %v14294_v54  ;;  %v14446_v5 = vld [vmem:[%s16772_s27 + $0x2158] sm:$0xf0]  ;;  %v16319_v54 = vld [vmem:[%s16772_s27 + $0x21d4] sm:$0xf] }
 0x497   : > { %9787 = vmatpush.bf16.msra.mxu0 %v13841_v49  ;;  %v16237_v49 = vld [vmem:[%s16772_s27 + $0x1f44] sm:$0xf]  ;;  %v14121_v58 = vor.u32 %v16221_v10, %v14118_v60  ;;  %v14150_v10 = vld [vmem:[%s16772_s27 + $0x1f08] sm:$0xf0] }
 0x498   : > { %9800 = vmatpush.bf16.msra.mxu1 %v13905_v61  ;;  %v14321_v61 = vor.u32 %v16271_v38, %v14318_v9  ;;  %v14185_v23 = vor.u32 %v16237_v49, %v14182_v1  ;;  %v14086_v38 = vld [vmem:[%s16772_s27 + $0x1e88] sm:$0xf0]  ;;  %v16245_v60 = vld [vmem:[%s16772_s27 + $0x1f84] sm:$0xf] }
 0x499   : > { %9813 = vmatpush.bf16.msra.mxu2 %v13969_v42  ;;  %v14214_v1 = vld [vmem:[%s16772_s27 + $0x1f88] sm:$0xf0] }
 0x49a   : > { %9826 = vmatpush.bf16.msra.mxu3 %v14033_v15  ;;  %v16219_v15 = vld [vmem:[%s16772_s27 + $0x1eb4] sm:$0xf] }
 0x49b   : > { %9788 = vmatpush.bf16.msra.mxu0 %v13833_v57  ;;  %v9582_v42 = vpop.f32.mrf.mxu0  ;;  %v16251_v57 = vld [vmem:[%s16772_s27 + $0x1fb4] sm:$0xf]  ;;  %v14113_v6 = vor.u32 %v16219_v15, %v14110_v18  ;;  %v14217_v18 = vor.u32 %v16245_v60, %v14214_v1  ;;  %v14566_v1 = vld [vmem:[%s16772_s27 + $0x2248] sm:$0xf0] }
 0x49c   : > { %9801 = vmatpush.bf16.msra.mxu1 %v13897_v17  ;;  %v9583_v63 = vadd.f32 %v9582_v42, %v19400_v45  ;;  %v9595_v39 = vpop.f32.mrf.mxu1  ;;  %v14238_v45 = vld [vmem:[%s16772_s27 + $0x1fb8] sm:$0xf0]  ;;  %v16307_v42 = vld [vmem:[%s16772_s27 + $0x2174] sm:$0xf] }
 0x49d   : > { %9814 = vmatpush.bf16.msra.mxu2 %v13961_v56  ;;  %v14302_v17 = vld [vmem:[%s16772_s27 + $0x2038] sm:$0xf0]  ;;  %v14177_v56 = vor.u32 %v16235_v2, %v14174_v62  ;;  %v14401_v2 = vor.u32 %v16291_v33, %v14398_v52  ;;  %v16339_v62 = vld [vmem:[%s16772_s27 + $0x2274] sm:$0xf] }
 0x49e   : > { %9827 = vmatpush.bf16.msra.mxu3 %v14025_v26  ;;  %9789 = vmatmul.bf16.vlgmr.msra.gmra.mxu0 %v19863_v32  ;;  %v9596_v36 = vadd.f32 %v9595_v39, %v9583_v63  ;;  %v14305_v31 = vor.u32 %v16267_v35, %v14302_v17  ;;  %v16231_v32 = vld [vmem:[%s16772_s27 + $0x1f14] sm:$0xf]  ;;  %v14462_v63 = vld [vmem:[%s16772_s27 + $0x2178] sm:$0xf0]  ;;  %v14390_v35 = vld [vmem:[%s16772_s27 + $0x20e8] sm:$0xf0] }
 0x49f   : > { %9833 = vmatpush.bf16.msrb.mxu0 %v14145_v8  ;;  %9802 = vmatmul.bf16.vlgmr.msra.gmra.mxu1 %v19865_v20  ;;  %v14241_v8 = vor.u32 %v16251_v57, %v14238_v45  ;;  %v16263_v20 = vld [vmem:[%s16772_s27 + $0x2014] sm:$0xf]  ;;  %v14590_v57 = vld [vmem:[%s16772_s27 + $0x2278] sm:$0xf0]  ;;  %v16305_v17 = vld [vmem:[%s16772_s27 + $0x2164] sm:$0xf] }
 0x4a0   : > { %9846 = vmatpush.bf16.msrb.mxu1 %v14209_v21  ;;  %9815 = vmatmul.bf16.vlgmr.msra.gmra.mxu2 %v19864_v43  ;;  %v14158_v43 = vld [vmem:[%s16772_s27 + $0x1f18] sm:$0xf0] }
 0x4a1   : > { %9859 = vmatpush.bf16.msrb.mxu2 %v14273_v14  ;;  %9828 = vmatmul.bf16.vlgmr.msra.gmra.mxu3 %v19866_v4  ;;  %v16233_v14 = vld [vmem:[%s16772_s27 + $0x1f24] sm:$0xf]  ;;  %v14286_v4 = vld [vmem:[%s16772_s27 + $0x2018] sm:$0xf0]  ;;  %v14161_v9 = vor.u32 %v16231_v32, %v14158_v43  ;;  %v16335_v32 = vld [vmem:[%s16772_s27 + $0x2254] sm:$0xf] }
 0x4a2   : > { %9872 = vmatpush.bf16.msrb.mxu3 %v14337_v13  ;;  %v14574_v43 = vld [vmem:[%s16772_s27 + $0x2258] sm:$0xf0] }
 0x4a3   : > { %9834 = vmatpush.bf16.msrb.mxu0 %v14137_v27  ;;  %v9608_v21 = vpop.f32.mrf.mxu2  ;;  %v9584_v19 = vpop.f32.mrf.mxu0  ;;  %v14105_v27 = vor.u32 %v16217_v50, %v14102_v29  ;;  %v14593_v50 = vor.u32 %v16339_v62, %v14590_v57  ;;  %v16281_v62 = vld [vmem:[%s16772_s27 + $0x20a4] sm:$0xf]  ;;  %v14358_v57 = vld [vmem:[%s16772_s27 + $0x20a8] sm:$0xf0] }
 0x4a4   : > { %9847 = vmatpush.bf16.msrb.mxu1 %v14201_v30  ;;  %v9609_v26 = vadd.f32 %v9608_v21, %v9596_v36  ;;  %v9621_v34 = vpop.f32.mrf.mxu3  ;;  %v9597_v30 = vpop.f32.mrf.mxu1  ;;  %v14465_v36 = vor.u32 %v16307_v42, %v14462_v63  ;;  %v14518_v21 = vld [vmem:[%s16772_s27 + $0x21e8] sm:$0xf0]  ;;  %v19867_v19 = vld [vmem:[#allocation38_spill] sm:$0xff]  ;;  %v14366_v42 = vld [vmem:[%s16772_s27 + $0x20b8] sm:$0xf0] }
 0x4a5   : > { %9860 = vmatpush.bf16.msrb.mxu2 %v14265_v12  ;;  %v14169_v12 = vor.u32 %v16233_v14, %v14166_v41  ;;  %v16337_v14 = vld [vmem:[%s16772_s27 + $0x2264] sm:$0xf]  ;;  %v14510_v30 = vld [vmem:[%s16772_s27 + $0x21d8] sm:$0xf0]  ;;  %v16299_v63 = vld [vmem:[%s16772_s27 + $0x2134] sm:$0xf] }
 0x4a6   : > { %9873 = vmatpush.bf16.msrb.mxu3 %v14329_v59  ;;  %v19471_v13 = vadd.f32 %v9621_v34, %v9609_v26  ;;  %v14097_v59 = vor.u32 %v16215_v48, %v14094_v7  ;;  %v14582_v26 = vld [vmem:[%s16772_s27 + $0x2268] sm:$0xf0]  ;;  %v16303_v34 = vld [vmem:[%s16772_s27 + $0x2154] sm:$0xf]  ;;  %v19870_v48 = vld [vmem:[#allocation40_spill] sm:$0xff] }
 0x4a7   : > { %9835 = vmatpush.bf16.msrb.mxu0 %v14129_v53  ;;  %v16213_v53 = vld [vmem:[%s16772_s27 + $0x1e84] sm:$0xf] }
 0x4a8   : > { %9848 = vmatpush.bf16.msrb.mxu1 %v14193_v28  ;;  %v14225_v28 = vor.u32 %v16247_v24, %v14222_v22  ;;  %v14089_v0 = vor.u32 %v16213_v53, %v14086_v38  ;;  %v14449_v24 = vor.u32 %v16303_v34, %v14446_v5  ;;  %v14513_v22 = vor.u32 %v16319_v54, %v14510_v30  ;;  %v16317_v53 = vld [vmem:[%s16772_s27 + $0x21c4] sm:$0xf]  ;;  %v14502_v38 = vld [vmem:[%s16772_s27 + $0x21c8] sm:$0xf0]  ;;  %v14350_v34 = vld [vmem:[%s16772_s27 + $0x2098] sm:$0xf0] }
 0x4a9   : > { %9861 = vmatpush.bf16.msrb.mxu2 %v14257_v25  ;;  %v16229_v25 = vld [vmem:[%s16772_s27 + $0x1f04] sm:$0xf]  ;;  %v14505_v52 = vor.u32 %v16317_v53, %v14502_v38  ;;  %v16311_v5 = vld [vmem:[%s16772_s27 + $0x2194] sm:$0xf]  ;;  %v14478_v54 = vld [vmem:[%s16772_s27 + $0x2198] sm:$0xf0] }
 0x4aa   : > { %9874 = vmatpush.bf16.msrb.mxu3 %v14321_v61  ;;  %v14289_v61 = vor.u32 %v16263_v20, %v14286_v4  ;;  %v14153_v15 = vor.u32 %v16229_v25, %v14150_v10  ;;  %v14374_v20 = vld [vmem:[%s16772_s27 + $0x20c8] sm:$0xf0]  ;;  %v16355_v53 = vld [vmem:[%s16772_s27 + $0x22f4] sm:$0xf]  ;;  %v14654_v38 = vld [vmem:[%s16772_s27 + $0x22f8] sm:$0xf0] }
 0x4ab   : > { %9836 = vmatpush.bf16.msrb.mxu0 %v14121_v58  ;;  %v9610_v49 = vpop.f32.mrf.mxu2  ;;  %v16323_v58 = vld [vmem:[%s16772_s27 + $0x21f4] sm:$0xf]  ;;  %v14438_v4 = vld [vmem:[%s16772_s27 + $0x2148] sm:$0xf0] }
 0x4ac   : > { %9849 = vmatpush.bf16.msrb.mxu1 %v14185_v23  ;;  %v9623_v39 = vpop.f32.mrf.mxu3  ;;  %v16261_v23 = vld [vmem:[%s16772_s27 + $0x2004] sm:$0xf]  ;;  %v14529_v45 = vor.u32 %v16323_v58, %v14526_v40 }
 0x4ad   : > { %9862 = vmatpush.bf16.msrb.mxu2 %v14249_v11  ;;  %v14278_v11 = vld [vmem:[%s16772_s27 + $0x2008] sm:$0xf0]  ;;  %v16333_v49 = vld [vmem:[%s16772_s27 + $0x2244] sm:$0xf]  ;;  %v14430_v39 = vld [vmem:[%s16772_s27 + $0x2138] sm:$0xf0] }
 0x4ae   : > { %9875 = vmatpush.bf16.msrb.mxu3 %v14313_v16  ;;  %v14281_v16 = vor.u32 %v16261_v23, %v14278_v11  ;;  %v14569_v40 = vor.u32 %v16333_v49, %v14566_v1  ;;  %v16331_v11 = vld [vmem:[%s16772_s27 + $0x2234] sm:$0xf]  ;;  %v14782_v1 = vld [vmem:[%s16772_s27 + $0x23f8] sm:$0xf0] }
 0x4af   : > { %9837 = vmatpush.bf16.msrb.mxu0 %v14113_v6  ;;  %v16289_v6 = vld [vmem:[%s16772_s27 + $0x20e4] sm:$0xf] }
 0x4b0   : > { %9850 = vmatpush.bf16.msrb.mxu1 %v14177_v56  ;;  %v14454_v56 = vld [vmem:[%s16772_s27 + $0x2168] sm:$0xf0]  ;;  %v14393_v29 = vor.u32 %v16289_v6, %v14390_v35  ;;  %v16313_v35 = vld [vmem:[%s16772_s27 + $0x21a4] sm:$0xf] }
 0x4b1   : > { %9863 = vmatpush.bf16.msrb.mxu2 %v14241_v8  ;;  %v16321_v8 = vld [vmem:[%s16772_s27 + $0x21e4] sm:$0xf]  ;;  %v14457_v41 = vor.u32 %v16305_v17, %v14454_v56  ;;  %v14422_v6 = vld [vmem:[%s16772_s27 + $0x2128] sm:$0xf0] }
 0x4b2   : > { %9876 = vmatpush.bf16.msrb.mxu3 %v14305_v31  ;;  %v14521_v47 = vor.u32 %v16321_v8, %v14518_v21  ;;  %v14382_v31 = vld [vmem:[%s16772_s27 + $0x20d8] sm:$0xf0]  ;;  %v14486_v17 = vld [vmem:[%s16772_s27 + $0x21a8] sm:$0xf0] }
 0x4b3   : > { %9838 = vmatpush.bf16.msrb.mxu0 %v14105_v27  ;;  %v19868_v27 = vld [vmem:[#allocation39_spill] sm:$0xff]  ;;  %v14385_v7 = vor.u32 %v16287_v51, %v14382_v31  ;;  %v14489_v51 = vor.u32 %v16313_v35, %v14486_v17  ;;  %v16279_v31 = vld [vmem:[%s16772_s27 + $0x2094] sm:$0xf] }
 0x4b4   : > { %9851 = vmatpush.bf16.msrb.mxu1 %v14169_v12  ;;  %v19869_v12 = vld [vmem:[#allocation37_spill] sm:$0xff]  ;;  %v16351_v17 = vld [vmem:[%s16772_s27 + $0x22d4] sm:$0xf] }
 0x4b5   : > { %9864 = vmatpush.bf16.msrb.mxu2 %v14233_v44  ;;  %v14585_v44 = vor.u32 %v16337_v14, %v14582_v26  ;;  %v16329_v14 = vld [vmem:[%s16772_s27 + $0x2224] sm:$0xf]  ;;  %v14550_v26 = vld [vmem:[%s16772_s27 + $0x2228] sm:$0xf0] }
 0x4b6   : > { %9877 = vmatpush.bf16.msrb.mxu3 %v14297_v46  ;;  %v16285_v46 = vld [vmem:[%s16772_s27 + $0x20c4] sm:$0xf]  ;;  %v14553_v30 = vor.u32 %v16329_v14, %v14550_v26  ;;  %v14702_v14 = vld [vmem:[%s16772_s27 + $0x2358] sm:$0xf0]  ;;  %v16383_v26 = vld [vmem:[%s16772_s27 + $0x23d4] sm:$0xf] }
 0x4b7   : > { %9839 = vmatpush.bf16.msrb.mxu0 %v14097_v59  ;;  %v16301_v59 = vld [vmem:[%s16772_s27 + $0x2144] sm:$0xf]  ;;  %v14377_v10 = vor.u32 %v16285_v46, %v14374_v20  ;;  %v14406_v46 = vld [vmem:[%s16772_s27 + $0x2108] sm:$0xf0] }
 0x4b8   : > { %9852 = vmatpush.bf16.msrb.mxu1 %v14161_v9  ;;  %v14577_v9 = vor.u32 %v16335_v32, %v14574_v43  ;;  %v14441_v33 = vor.u32 %v16301_v59, %v14438_v4  ;;  %v14342_v32 = vld [vmem:[%s16772_s27 + $0x2088] sm:$0xf0]  ;;  %v16309_v20 = vld [vmem:[%s16772_s27 + $0x2184] sm:$0xf] }
 0x4b9   : > { %9865 = vmatpush.bf16.msrb.mxu2 %v14225_v28  ;;  %v14470_v4 = vld [vmem:[%s16772_s27 + $0x2188] sm:$0xf0] }
 0x4ba   : > { %9878 = vmatpush.bf16.msrb.mxu3 %v14289_v61  ;;  %v16283_v61 = vld [vmem:[%s16772_s27 + $0x20b4] sm:$0xf] }
 0x4bb   : > { %9840 = vmatpush.bf16.msrb.mxu0 %v14089_v0  ;;  %v9634_v28 = vpop.f32.mrf.mxu0  ;;  %v16315_v0 = vld [vmem:[%s16772_s27 + $0x21b4] sm:$0xf]  ;;  %v14369_v23 = vor.u32 %v16283_v61, %v14366_v42  ;;  %v14473_v42 = vor.u32 %v16309_v20, %v14470_v4  ;;  %v14822_v20 = vld [vmem:[%s16772_s27 + $0x2448] sm:$0xf0] }
 0x4bc   : > { %9853 = vmatpush.bf16.msrb.mxu1 %v14153_v15  ;;  %v9635_v25 = vadd.f32 %v9634_v28, %v19471_v13  ;;  %v9647_v60 = vpop.f32.mrf.mxu1  ;;  %v14494_v13 = vld [vmem:[%s16772_s27 + $0x21b8] sm:$0xf0]  ;;  %v16371_v28 = vld [vmem:[%s16772_s27 + $0x2374] sm:$0xf] }
 0x4bd   : > { %9866 = vmatpush.bf16.msrb.mxu2 %v14217_v18  ;;  %v14558_v15 = vld [vmem:[%s16772_s27 + $0x2238] sm:$0xf0]  ;;  %v14433_v18 = vor.u32 %v16299_v63, %v14430_v39  ;;  %v14657_v63 = vor.u32 %v16355_v53, %v14654_v38  ;;  %v16403_v39 = vld [vmem:[%s16772_s27 + $0x2474] sm:$0xf] }
 0x4be   : > { %9879 = vmatpush.bf16.msrb.mxu3 %v14281_v16  ;;  %9841 = vmatmul.bf16.vlgmr.msrb.gmra.mxu0 %v19867_v19  ;;  %v9648_v58 = vadd.f32 %v9647_v60, %v9635_v25  ;;  %v14561_v56 = vor.u32 %v16331_v11, %v14558_v15  ;;  %v16295_v19 = vld [vmem:[%s16772_s27 + $0x2114] sm:$0xf]  ;;  %v14718_v25 = vld [vmem:[%s16772_s27 + $0x2378] sm:$0xf0]  ;;  %v14646_v11 = vld [vmem:[%s16772_s27 + $0x22e8] sm:$0xf0] }
 0x4bf   : > { %9885 = vmatpush.bf16.msra.mxu0 %v14401_v2  ;;  %9854 = vmatmul.bf16.vlgmr.msrb.gmra.mxu1 %v19869_v12  ;;  %v14497_v2 = vor.u32 %v16315_v0, %v14494_v13  ;;  %v16327_v12 = vld [vmem:[%s16772_s27 + $0x2214] sm:$0xf]  ;;  %v14846_v0 = vld [vmem:[%s16772_s27 + $0x2478] sm:$0xf0]  ;;  %v16369_v15 = vld [vmem:[%s16772_s27 + $0x2364] sm:$0xf] }
 0x4c0   : > { %9898 = vmatpush.bf16.msra.mxu1 %v14465_v36  ;;  %9867 = vmatmul.bf16.vlgmr.msrb.gmra.mxu2 %v19868_v27  ;;  %v14414_v27 = vld [vmem:[%s16772_s27 + $0x2118] sm:$0xf0]  ;;  %v16347_v53 = vld [vmem:[%s16772_s27 + $0x22b4] sm:$0xf] }
 0x4c1   : > { %9911 = vmatpush.bf16.msra.mxu2 %v14529_v45  ;;  %9880 = vmatmul.bf16.vlgmr.msrb.gmra.mxu3 %v19870_v48  ;;  %v16297_v45 = vld [vmem:[%s16772_s27 + $0x2124] sm:$0xf]  ;;  %v14542_v48 = vld [vmem:[%s16772_s27 + $0x2218] sm:$0xf0]  ;;  %v14417_v43 = vor.u32 %v16295_v19, %v14414_v27 }
 0x4c2   : > { %9924 = vmatpush.bf16.msra.mxu3 %v14593_v50  ;;  %v14830_v19 = vld [vmem:[%s16772_s27 + $0x2458] sm:$0xf0] }
 0x4c3   : > { %9886 = vmatpush.bf16.msra.mxu0 %v14393_v29  ;;  %v9660_v36 = vpop.f32.mrf.mxu2  ;;  %v9636_v21 = vpop.f32.mrf.mxu0  ;;  %v14361_v29 = vor.u32 %v16281_v62, %v14358_v57  ;;  %v14849_v62 = vor.u32 %v16403_v39, %v14846_v0  ;;  %v14622_v38 = vld [vmem:[%s16772_s27 + $0x22b8] sm:$0xf0]  ;;  %v16361_v39 = vld [vmem:[%s16772_s27 + $0x2324] sm:$0xf] }
 0x4c4   : > { %9899 = vmatpush.bf16.msra.mxu1 %v14457_v41  ;;  %v9661_v16 = vadd.f32 %v9660_v36, %v9648_v58  ;;  %v9673_v8 = vpop.f32.mrf.mxu3  ;;  %v9649_v41 = vpop.f32.mrf.mxu1  ;;  %v14721_v58 = vor.u32 %v16371_v28, %v14718_v25  ;;  %v14774_v36 = vld [vmem:[%s16772_s27 + $0x23e8] sm:$0xf0]  ;;  %v19871_v21 = vld [vmem:[#allocation42_spill] sm:$0xff]  ;;  %v14686_v25 = vld [vmem:[%s16772_s27 + $0x2338] sm:$0xf0] }
 0x4c5   : > { %9912 = vmatpush.bf16.msra.mxu2 %v14521_v47  ;;  %v14425_v47 = vor.u32 %v16297_v45, %v14422_v6  ;;  %v16401_v45 = vld [vmem:[%s16772_s27 + $0x2464] sm:$0xf]  ;;  %v14766_v41 = vld [vmem:[%s16772_s27 + $0x23d8] sm:$0xf0] }
 0x4c6   : > { %9925 = vmatpush.bf16.msra.mxu3 %v14585_v44  ;;  %v19542_v50 = vadd.f32 %v9673_v8, %v9661_v16  ;;  %v14353_v44 = vor.u32 %v16279_v31, %v14350_v34  ;;  %v14838_v16 = vld [vmem:[%s16772_s27 + $0x2468] sm:$0xf0]  ;;  %v16367_v8 = vld [vmem:[%s16772_s27 + $0x2354] sm:$0xf] }
 0x4c7   : > { %9887 = vmatpush.bf16.msra.mxu0 %v14385_v7  ;;  %v16277_v7 = vld [vmem:[%s16772_s27 + $0x2084] sm:$0xf]  ;;  %v16399_v34 = vld [vmem:[%s16772_s27 + $0x2454] sm:$0xf]  ;;  %v14705_v27 = vor.u32 %v16367_v8, %v14702_v14  ;;  %v14670_v8 = vld [vmem:[%s16772_s27 + $0x2318] sm:$0xf0] }
 0x4c8   : > { %9900 = vmatpush.bf16.msra.mxu1 %v14449_v24  ;;  %v14481_v24 = vor.u32 %v16311_v5, %v14478_v54  ;;  %v14345_v49 = vor.u32 %v16277_v7, %v14342_v32  ;;  %v14769_v5 = vor.u32 %v16383_v26, %v14766_v41  ;;  %v16349_v54 = vld [vmem:[%s16772_s27 + $0x22c4] sm:$0xf]  ;;  %v14758_v7 = vld [vmem:[%s16772_s27 + $0x23c8] sm:$0xf0]  ;;  %v16391_v26 = vld [vmem:[%s16772_s27 + $0x2414] sm:$0xf] }
 0x4c9   : > { %9913 = vmatpush.bf16.msra.mxu2 %v14513_v22  ;;  %v16293_v22 = vld [vmem:[%s16772_s27 + $0x2104] sm:$0xf] }
 0x4ca   : > { %9926 = vmatpush.bf16.msra.mxu3 %v14577_v9  ;;  %v14545_v9 = vor.u32 %v16327_v12, %v14542_v48  ;;  %v14409_v61 = vor.u32 %v16293_v22, %v14406_v46  ;;  %v16365_v12 = vld [vmem:[%s16772_s27 + $0x2344] sm:$0xf] }
 0x4cb   : > { %9888 = vmatpush.bf16.msra.mxu0 %v14377_v10  ;;  %v9662_v59 = vpop.f32.mrf.mxu2  ;;  %v16387_v10 = vld [vmem:[%s16772_s27 + $0x23f4] sm:$0xf]  ;;  %v16381_v48 = vld [vmem:[%s16772_s27 + $0x23c4] sm:$0xf] }
 0x4cc   : > { %9901 = vmatpush.bf16.msra.mxu1 %v14441_v33  ;;  %v9675_v60 = vpop.f32.mrf.mxu3  ;;  %v16325_v33 = vld [vmem:[%s16772_s27 + $0x2204] sm:$0xf]  ;;  %v14785_v13 = vor.u32 %v16387_v10, %v14782_v1  ;;  %v14761_v4 = vor.u32 %v16381_v48, %v14758_v7  ;;  %v16379_v10 = vld [vmem:[%s16772_s27 + $0x23b4] sm:$0xf]  ;;  %v14910_v48 = vld [vmem:[%s16772_s27 + $0x24f8] sm:$0xf0] }
 0x4cd   : > { %9914 = vmatpush.bf16.msra.mxu2 %v14505_v52  ;;  %v14534_v52 = vld [vmem:[%s16772_s27 + $0x2208] sm:$0xf0]  ;;  %v16397_v46 = vld [vmem:[%s16772_s27 + $0x2444] sm:$0xf]  ;;  %v16395_v1 = vld [vmem:[%s16772_s27 + $0x2434] sm:$0xf] }
 0x4ce   : > { %9927 = vmatpush.bf16.msra.mxu3 %v14569_v40  ;;  %v14537_v40 = vor.u32 %v16325_v33, %v14534_v52  ;;  %v14825_v60 = vor.u32 %v16397_v46, %v14822_v20  ;;  %v14814_v33 = vld [vmem:[%s16772_s27 + $0x2438] sm:$0xf0]  ;;  %v16389_v20 = vld [vmem:[%s16772_s27 + $0x2404] sm:$0xf] }
 0x4cf   : > { %9889 = vmatpush.bf16.msra.mxu0 %v14369_v23  ;;  %v16353_v23 = vld [vmem:[%s16772_s27 + $0x22e4] sm:$0xf]  ;;  %v15038_v46 = vld [vmem:[%s16772_s27 + $0x25f8] sm:$0xf0] }
 0x4d0   : > { %9902 = vmatpush.bf16.msra.mxu1 %v14433_v18  ;;  %v14710_v18 = vld [vmem:[%s16772_s27 + $0x2368] sm:$0xf0]  ;;  %v14649_v57 = vor.u32 %v16353_v23, %v14646_v11  ;;  %v14817_v11 = vor.u32 %v16395_v1, %v14814_v33  ;;  %v16433_v1 = vld [vmem:[%s16772_s27 + $0x2564] sm:$0xf] }
 0x4d1   : > { %9915 = vmatpush.bf16.msra.mxu2 %v14497_v2  ;;  %v16385_v2 = vld [vmem:[%s16772_s27 + $0x23e4] sm:$0xf]  ;;  %v14713_v6 = vor.u32 %v16369_v15, %v14710_v18  ;;  %v14742_v23 = vld [vmem:[%s16772_s27 + $0x23a8] sm:$0xf0] }
 0x4d2   : > { %9928 = vmatpush.bf16.msra.mxu3 %v14561_v56  ;;  %v14777_v35 = vor.u32 %v16385_v2, %v14774_v36  ;;  %v14638_v56 = vld [vmem:[%s16772_s27 + $0x22d8] sm:$0xf0]  ;;  %v14966_v33 = vld [vmem:[%s16772_s27 + $0x2568] sm:$0xf0] }
 0x4d3   : > { %9890 = vmatpush.bf16.msra.mxu0 %v14361_v29  ;;  %v19872_v29 = vld [vmem:[#allocation43_spill] sm:$0xff]  ;;  %v14641_v31 = vor.u32 %v16351_v17, %v14638_v56  ;;  %v16359_v56 = vld [vmem:[%s16772_s27 + $0x2314] sm:$0xf] }
 0x4d4   : > { %9903 = vmatpush.bf16.msra.mxu1 %v14425_v47  ;;  %v19873_v47 = vld [vmem:[#allocation41_spill] sm:$0xff]  ;;  %v14606_v17 = vld [vmem:[%s16772_s27 + $0x2298] sm:$0xf0] }
 0x4d5   : > { %9916 = vmatpush.bf16.msra.mxu2 %v14489_v51  ;;  %v14841_v51 = vor.u32 %v16401_v45, %v14838_v16 }
 0x4d6   : > { %9929 = vmatpush.bf16.msra.mxu3 %v14553_v30  ;;  %v14630_v30 = vld [vmem:[%s16772_s27 + $0x22c8] sm:$0xf0] }
 0x4d7   : > { %9891 = vmatpush.bf16.msra.mxu0 %v14353_v44  ;;  %v14694_v44 = vld [vmem:[%s16772_s27 + $0x2348] sm:$0xf0] }
 0x4d8   : > { %9904 = vmatpush.bf16.msra.mxu1 %v14417_v43  ;;  %v14697_v59 = vor.u32 %v16365_v12, %v14694_v44  ;;  %v14726_v12 = vld [vmem:[%s16772_s27 + $0x2388] sm:$0xf0]  ;;  %v16419_v44 = vld [vmem:[%s16772_s27 + $0x24f4] sm:$0xf] }
 0x4d9   : > { %9917 = vmatpush.bf16.msra.mxu2 %v14481_v24  ;;  %v14633_v24 = vor.u32 %v16349_v54, %v14630_v30  ;;  %v16373_v54 = vld [vmem:[%s16772_s27 + $0x2384] sm:$0xf] }
 0x4da   : > { %9930 = vmatpush.bf16.msra.mxu3 %v14545_v9  ;;  %v16363_v9 = vld [vmem:[%s16772_s27 + $0x2334] sm:$0xf] }
 0x4db   : > { %9892 = vmatpush.bf16.msra.mxu0 %v14345_v49  ;;  %v9686_v32 = vpop.f32.mrf.mxu0  ;;  %v14625_v49 = vor.u32 %v16347_v53, %v14622_v38  ;;  %v14689_v52 = vor.u32 %v16363_v9, %v14686_v25  ;;  %v14729_v53 = vor.u32 %v16373_v54, %v14726_v12  ;;  %v14913_v38 = vor.u32 %v16419_v44, %v14910_v48  ;;  %v15102_v25 = vld [vmem:[%s16772_s27 + $0x2678] sm:$0xf0]  ;;  %v16411_v12 = vld [vmem:[%s16772_s27 + $0x24b4] sm:$0xf] }
 0x4dc   : > { %9905 = vmatpush.bf16.msra.mxu1 %v14409_v61  ;;  %v9687_v43 = vadd.f32 %v9686_v32, %v19542_v50  ;;  %v9699_v22 = vpop.f32.mrf.mxu1  ;;  %v14750_v50 = vld [vmem:[%s16772_s27 + $0x23b8] sm:$0xf0]  ;;  %v16427_v48 = vld [vmem:[%s16772_s27 + $0x2534] sm:$0xf] }
 0x4dd   : > { %9918 = vmatpush.bf16.msra.mxu2 %v14473_v42  ;;  %v14753_v61 = vor.u32 %v16379_v10, %v14750_v50  ;;  %v14974_v32 = vld [vmem:[%s16772_s27 + $0x2578] sm:$0xf0] }
 0x4de   : > { %9931 = vmatpush.bf16.msra.mxu3 %v14537_v40  ;;  %9893 = vmatmul.bf16.vlgmr.msra.gmra.mxu0 %v19871_v21  ;;  %v9700_v28 = vadd.f32 %v9699_v22, %v9687_v43  ;;  %v16377_v40 = vld [vmem:[%s16772_s27 + $0x23a4] sm:$0xf]  ;;  %v16375_v21 = vld [vmem:[%s16772_s27 + $0x2394] sm:$0xf]  ;;  %v14878_v44 = vld [vmem:[%s16772_s27 + $0x24b8] sm:$0xf0] }
 0x4df   : > { %9937 = vmatpush.bf16.msrb.mxu0 %v14657_v63  ;;  %9906 = vmatmul.bf16.vlgmr.msra.gmra.mxu1 %v19873_v47  ;;  %v16345_v63 = vld [vmem:[%s16772_s27 + $0x22a4] sm:$0xf]  ;;  %v14798_v47 = vld [vmem:[%s16772_s27 + $0x2418] sm:$0xf0]  ;;  %v16451_v43 = vld [vmem:[%s16772_s27 + $0x25f4] sm:$0xf] }
 0x4e0   : > { %9950 = vmatpush.bf16.msrb.mxu1 %v14721_v58  ;;  %9919 = vmatmul.bf16.vlgmr.msra.gmra.mxu2 %v19872_v29  ;;  %v14614_v58 = vld [vmem:[%s16772_s27 + $0x22a8] sm:$0xf0]  ;;  %v14734_v29 = vld [vmem:[%s16772_s27 + $0x2398] sm:$0xf0]  ;;  %v14801_v7 = vor.u32 %v16391_v26, %v14798_v47  ;;  %v15041_v10 = vor.u32 %v16451_v43, %v15038_v46  ;;  %v16445_v26 = vld [vmem:[%s16772_s27 + $0x25c4] sm:$0xf] }
 0x4e1   : > { %9963 = vmatpush.bf16.msrb.mxu2 %v14785_v13  ;;  %9932 = vmatmul.bf16.vlgmr.msra.gmra.mxu3 %v18207_v55  ;;  %v14833_v55 = vor.u32 %v16399_v34, %v14830_v19  ;;  %v14678_v13 = vld [vmem:[%s16772_s27 + $0x2328] sm:$0xf0]  ;;  %v14617_v36 = vor.u32 %v16345_v63, %v14614_v58  ;;  %v14673_v34 = vor.u32 %v16359_v56, %v14670_v8  ;;  %v16465_v58 = vld [vmem:[%s16772_s27 + $0x2664] sm:$0xf]  ;;  %v15070_v46 = vld [vmem:[%s16772_s27 + $0x2638] sm:$0xf0] }
 0x4e2   : > { %9976 = vmatpush.bf16.msrb.mxu3 %v14849_v62  ;;  %v16393_v62 = vld [vmem:[%s16772_s27 + $0x2424] sm:$0xf]  ;;  %v14681_v16 = vor.u32 %v16361_v39, %v14678_v13  ;;  %v14737_v19 = vor.u32 %v16375_v21, %v14734_v29  ;;  %v15094_v39 = vld [vmem:[%s16772_s27 + $0x2668] sm:$0xf0] }
 0x4e3   : > { %9938 = vmatpush.bf16.msrb.mxu0 %v14649_v57  ;;  %v9712_v42 = vpop.f32.mrf.mxu2  ;;  %v9688_v18 = vpop.f32.mrf.mxu0  ;;  %v14806_v57 = vld [vmem:[%s16772_s27 + $0x2428] sm:$0xf0]  ;;  %v16413_v8 = vld [vmem:[%s16772_s27 + $0x24c4] sm:$0xf] }
 0x4e4   : > { %9951 = vmatpush.bf16.msrb.mxu1 %v14713_v6  ;;  %v9713_v0 = vadd.f32 %v9712_v42, %v9700_v28  ;;  %v9725_v15 = vpop.f32.mrf.mxu3  ;;  %v9701_v45 = vpop.f32.mrf.mxu1  ;;  %v14745_v6 = vor.u32 %v16377_v40, %v14742_v23  ;;  %v14809_v14 = vor.u32 %v16393_v62, %v14806_v57  ;;  %v16467_v28 = vld [vmem:[%s16772_s27 + $0x2674] sm:$0xf]  ;;  %v14894_v23 = vld [vmem:[%s16772_s27 + $0x24d8] sm:$0xf0]  ;;  %v19875_v57 = vld [vmem:[#allocation44_spill] sm:$0xff] }
 0x4e5   : > { %9964 = vmatpush.bf16.msrb.mxu2 %v14777_v35  ;;  %v16343_v35 = vld [vmem:[%s16772_s27 + $0x2294] sm:$0xf]  ;;  %v15105_v42 = vor.u32 %v16467_v28, %v15102_v25  ;;  %v14958_v18 = vld [vmem:[%s16772_s27 + $0x2558] sm:$0xf0]  ;;  %v15097_v45 = vor.u32 %v16465_v58, %v15094_v39  ;;  %v14886_v21 = vld [vmem:[%s16772_s27 + $0x24c8] sm:$0xf0] }
 0x4e6   : > { %9977 = vmatpush.bf16.msrb.mxu3 %v14841_v51  ;;  %v19613_v2 = vadd.f32 %v9725_v15, %v9713_v0  ;;  %v14609_v41 = vor.u32 %v16343_v35, %v14606_v17  ;;  %v16341_v51 = vld [vmem:[%s16772_s27 + $0x2284] sm:$0xf]  ;;  %v14969_v0 = vor.u32 %v16433_v1, %v14966_v33  ;;  %v16415_v40 = vld [vmem:[%s16772_s27 + $0x24d4] sm:$0xf]  ;;  %v19874_v15 = vld [vmem:[#allocation45_spill] sm:$0xff] }
 0x4e7   : > { %9939 = vmatpush.bf16.msrb.mxu0 %v14641_v31  ;;  %v14598_v31 = vld [vmem:[%s16772_s27 + $0x2288] sm:$0xf0]  ;;  %v15022_v62 = vld [vmem:[%s16772_s27 + $0x25d8] sm:$0xf0]  ;;  %v16429_v29 = vld [vmem:[%s16772_s27 + $0x2544] sm:$0xf] }
 0x4e8   : > { %9952 = vmatpush.bf16.msrb.mxu1 %v14705_v27  ;;  %v16357_v27 = vld [vmem:[%s16772_s27 + $0x2304] sm:$0xf]  ;;  %v14601_v22 = vor.u32 %v16341_v51, %v14598_v31  ;;  %v15086_v35 = vld [vmem:[%s16772_s27 + $0x2658] sm:$0xf0]  ;;  %v14934_v25 = vld [vmem:[%s16772_s27 + $0x2528] sm:$0xf0] }
 0x4e9   : > { %9965 = vmatpush.bf16.msrb.mxu2 %v14769_v5  ;;  %v14662_v5 = vld [vmem:[%s16772_s27 + $0x2308] sm:$0xf0] }
 0x4ea   : > { %9978 = vmatpush.bf16.msrb.mxu3 %v14833_v55  ;;  %v16435_v55 = vld [vmem:[%s16772_s27 + $0x2574] sm:$0xf] }
 0x4eb   : > { %9940 = vmatpush.bf16.msrb.mxu0 %v14633_v24  ;;  %v9714_v30 = vpop.f32.mrf.mxu2  ;;  %v14977_v9 = vor.u32 %v16435_v55, %v14974_v32  ;;  %v14942_v55 = vld [vmem:[%s16772_s27 + $0x2538] sm:$0xf0]  ;;  %v16443_v32 = vld [vmem:[%s16772_s27 + $0x25b4] sm:$0xf] }
 0x4ec   : > { %9953 = vmatpush.bf16.msrb.mxu1 %v14697_v59  ;;  %v9727_v24 = vpop.f32.mrf.mxu3  ;;  %v14790_v59 = vld [vmem:[%s16772_s27 + $0x2408] sm:$0xf0] }
 0x4ed   : > { %9966 = vmatpush.bf16.msrb.mxu2 %v14761_v4  ;;  %v14665_v4 = vor.u32 %v16357_v27, %v14662_v5  ;;  %v14793_v50 = vor.u32 %v16389_v20, %v14790_v59  ;;  %v16461_v27 = vld [vmem:[%s16772_s27 + $0x2644] sm:$0xf]  ;;  %v15078_v5 = vld [vmem:[%s16772_s27 + $0x2648] sm:$0xf0]  ;;  %v14881_v24 = vor.u32 %v16411_v12, %v14878_v44  ;;  %v14945_v20 = vor.u32 %v16427_v48, %v14942_v55 }
 0x4ee   : > { %9979 = vmatpush.bf16.msrb.mxu3 %v14825_v60  ;;  %v16417_v60 = vld [vmem:[%s16772_s27 + $0x24e4] sm:$0xf]  ;;  %v15081_v43 = vor.u32 %v16461_v27, %v15078_v5  ;;  %v15158_v48 = vld [vmem:[%s16772_s27 + $0x26e8] sm:$0xf0] }
 0x4ef   : > { %9941 = vmatpush.bf16.msrb.mxu0 %v14625_v49  ;;  %v14902_v49 = vld [vmem:[%s16772_s27 + $0x24e8] sm:$0xf0]  ;;  %v16481_v44 = vld [vmem:[%s16772_s27 + $0x26e4] sm:$0xf] }
 0x4f0   : > { %9954 = vmatpush.bf16.msrb.mxu1 %v14689_v52  ;;  %v16449_v52 = vld [vmem:[%s16772_s27 + $0x25e4] sm:$0xf]  ;;  %v14905_v63 = vor.u32 %v16417_v60, %v14902_v49  ;;  %v15222_v55 = vld [vmem:[%s16772_s27 + $0x2768] sm:$0xf0] }
 0x4f1   : > { %9967 = vmatpush.bf16.msrb.mxu2 %v14753_v61  ;;  %v15030_v61 = vld [vmem:[%s16772_s27 + $0x25e8] sm:$0xf0] }
 0x4f2   : > { %9980 = vmatpush.bf16.msrb.mxu3 %v14817_v11  ;;  %v15033_v13 = vor.u32 %v16449_v52, %v15030_v61  ;;  %v16431_v11 = vld [vmem:[%s16772_s27 + $0x2554] sm:$0xf]  ;;  %v16457_v61 = vld [vmem:[%s16772_s27 + $0x2624] sm:$0xf] }
 0x4f3   : > { %9942 = vmatpush.bf16.msrb.mxu0 %v14617_v36  ;;  %v16447_v36 = vld [vmem:[%s16772_s27 + $0x25d4] sm:$0xf]  ;;  %v14961_v17 = vor.u32 %v16431_v11, %v14958_v18 }
 0x4f4   : > { %9955 = vmatpush.bf16.msrb.mxu1 %v14681_v16  ;;  %v16551_v16 = vld [vmem:[#allocation1] sm:$0xff]  ;;  %v15025_v56 = vor.u32 %v16447_v36, %v15022_v62  ;;  %v16439_v11 = vld [vmem:[%s16772_s27 + $0x2594] sm:$0xf] }
 0x4f5   : > { %9968 = vmatpush.bf16.msrb.mxu2 %v14745_v6  ;;  %v14897_v6 = vor.u32 %v16415_v40, %v14894_v23  ;;  %v16423_v40 = vld [vmem:[%s16772_s27 + $0x2514] sm:$0xf]  ;;  %v14926_v23 = vld [vmem:[%s16772_s27 + $0x2518] sm:$0xf0] }
 0x4f6   : > { %9981 = vmatpush.bf16.msrb.mxu3 %v14809_v14  ;;  %v14950_v14 = vld [vmem:[%s16772_s27 + $0x2548] sm:$0xf0]  ;;  %v16455_v62 = vld [vmem:[%s16772_s27 + $0x2614] sm:$0xf] }
 0x4f7   : > { %9943 = vmatpush.bf16.msrb.mxu0 %v14609_v41  ;;  %v15014_v41 = vld [vmem:[%s16772_s27 + $0x25c8] sm:$0xf0]  ;;  %v14953_v54 = vor.u32 %v16429_v29, %v14950_v14  ;;  %v16483_v29 = vld [vmem:[%s16772_s27 + $0x26f4] sm:$0xf] }
 0x4f8   : > { %9956 = vmatpush.bf16.msrb.mxu1 %v14673_v34  ;;  %v14889_v34 = vor.u32 %v16413_v8, %v14886_v21  ;;  %v15017_v30 = vor.u32 %v16445_v26, %v15014_v41  ;;  %v16437_v8 = vld [vmem:[%s16772_s27 + $0x2584] sm:$0xf]  ;;  %v14982_v21 = vld [vmem:[%s16772_s27 + $0x2588] sm:$0xf0]  ;;  %v15166_v26 = vld [vmem:[%s16772_s27 + $0x26f8] sm:$0xf0] }
 0x4f9   : > { %9969 = vmatpush.bf16.msrb.mxu2 %v14737_v19  ;;  %v16499_v41 = vld [vmem:[%s16772_s27 + $0x2774] sm:$0xf]  ;;  %v14985_v5 = vor.u32 %v16437_v8, %v14982_v21  ;;  %v15182_v8 = vld [vmem:[%s16772_s27 + $0x2718] sm:$0xf0] }
 0x4fa   : > { %9982 = vmatpush.bf16.msrb.mxu3 %v14801_v7 }
 0x4fb   : > { %9944 = vmatpush.bf16.msrb.mxu0 %v14601_v22  ;;  %v9738_v51 = vpop.f32.mrf.mxu0  ;;  %v16459_v22 = vld [vmem:[%s16772_s27 + $0x2634] sm:$0xf] }
 0x4fc   : > { %9957 = vmatpush.bf16.msrb.mxu1 %v14665_v4  ;;  %v9739_v31 = vadd.f32 %v9738_v51, %v19613_v2  ;;  %v9751_v19 = vpop.f32.mrf.mxu1  ;;  %v15006_v2 = vld [vmem:[%s16772_s27 + $0x25b8] sm:$0xf0]  ;;  %v15073_v60 = vor.u32 %v16459_v22, %v15070_v46  ;;  %v16553_v46 = vld [vmem:[#allocation1 + $0x1b] sm:$0xff] }
 0x4fd   : > { %9970 = vmatpush.bf16.msrb.mxu2 %v14729_v53  ;;  %v15009_v59 = vor.u32 %v16443_v32, %v15006_v2  ;;  %v16409_v53 = vld [vmem:[%s16772_s27 + $0x24a4] sm:$0xf]  ;;  %v15161_v32 = vor.u32 %v16481_v44, %v15158_v48  ;;  %v15150_v22 = vld [vmem:[%s16772_s27 + $0x26d8] sm:$0xf0] }
 0x4fe   : > { %9983 = vmatpush.bf16.msrb.mxu3 %v14793_v50  ;;  %9945 = vmatmul.bf16.vlgmr.msrb.gmra.mxu0 %v18211_v3  ;;  %v16463_v3 = vld [vmem:[%s16772_s27 + $0x2654] sm:$0xf]  ;;  %v9752_v7 = vadd.f32 %v9751_v19, %v9739_v31  ;;  %v14998_v50 = vld [vmem:[%s16772_s27 + $0x25a8] sm:$0xf0]  ;;  %v16552_v2 = vld [vmem:[#allocation1 + $0x9] sm:$0xff] }
 0x4ff   : > { %9989 = vmatpush.bf16.msra.mxu0 %v14913_v38  ;;  %9958 = vmatmul.bf16.vlgmr.msrb.gmra.mxu1 %v19875_v57  ;;  %v15089_v47 = vor.u32 %v16463_v3, %v15086_v35  ;;  %v14870_v38 = vld [vmem:[%s16772_s27 + $0x24a8] sm:$0xf0]  ;;  %v15054_v57 = vld [vmem:[%s16772_s27 + $0x2618] sm:$0xf0]  ;;  %v16421_v35 = vld [vmem:[%s16772_s27 + $0x2504] sm:$0xf] }
 0x500   : > { %10002 = vmatpush.bf16.msra.mxu1 %v14977_v9  ;;  %9971 = vmatmul.bf16.vlgmr.msrb.gmra.mxu2 %v19874_v15  ;;  %v16425_v9 = vld [vmem:[%s16772_s27 + $0x2524] sm:$0xf]  ;;  %v14873_v52 = vor.u32 %v16409_v53, %v14870_v38  ;;  %v14990_v15 = vld [vmem:[%s16772_s27 + $0x2598] sm:$0xf0]  ;;  %v14854_v3 = vld [vmem:[%s16772_s27 + $0x2488] sm:$0xf0]  ;;  %v15057_v14 = vor.u32 %v16455_v62, %v15054_v57 }
 0x501   : > { %10015 = vmatpush.bf16.msra.mxu2 %v15041_v10  ;;  %9984 = vmatmul.bf16.vlgmr.msrb.gmra.mxu3 %v16551_v16  ;;  %v16441_v10 = vld [vmem:[%s16772_s27 + $0x25a4] sm:$0xf]  ;;  %v14937_v58 = vor.u32 %v16425_v9, %v14934_v25  ;;  %v14929_v16 = vor.u32 %v16423_v40, %v14926_v23  ;;  %v15046_v19 = vld [vmem:[%s16772_s27 + $0x2608] sm:$0xf0]  ;;  %v16555_v53 = vld [vmem:[#allocation1 + $0x24] sm:$0xff] }
 0x502   : > { %10028 = vmatpush.bf16.msra.mxu3 %v15105_v42  ;;  %v15062_v42 = vld [vmem:[%s16772_s27 + $0x2628] sm:$0xf0]  ;;  %v15001_v39 = vor.u32 %v16441_v10, %v14998_v50  ;;  %v16493_v10 = vld [vmem:[%s16772_s27 + $0x2744] sm:$0xf] }
 0x503   : > { %9990 = vmatpush.bf16.msra.mxu0 %v14905_v63  ;;  %v9764_v4 = vpop.f32.mrf.mxu2  ;;  %v9740_v1 = vpop.f32.mrf.mxu0  ;;  %v15065_v18 = vor.u32 %v16457_v61, %v15062_v42  ;;  %v15142_v25 = vld [vmem:[%s16772_s27 + $0x26c8] sm:$0xf0]  ;;  %v16475_v42 = vld [vmem:[%s16772_s27 + $0x26b4] sm:$0xf] }
 0x504   : > { %10003 = vmatpush.bf16.msra.mxu1 %v14969_v0  ;;  %v9765_v28 = vadd.f32 %v9764_v4, %v9752_v7  ;;  %v9777_v49 = vpop.f32.mrf.mxu3  ;;  %v9753_v63 = vpop.f32.mrf.mxu1  ;;  %v16407_v0 = vld [vmem:[%s16772_s27 + $0x2494] sm:$0xf]  ;;  %v16497_v7 = vld [vmem:[%s16772_s27 + $0x2764] sm:$0xf]  ;;  %v15214_v4 = vld [vmem:[%s16772_s27 + $0x2758] sm:$0xf0] }
 0x505   : > { %10016 = vmatpush.bf16.msra.mxu2 %v15033_v13  ;;  %v14862_v13 = vld [vmem:[%s16772_s27 + $0x2498] sm:$0xf0]  ;;  %v15206_v50 = vld [vmem:[%s16772_s27 + $0x2748] sm:$0xf0] }
 0x506   : > { %10029 = vmatpush.bf16.msra.mxu3 %v15097_v45  ;;  %v19683_v33 = vadd.f32 %v9777_v49, %v9765_v28  ;;  %v14865_v36 = vor.u32 %v16407_v0, %v14862_v13  ;;  %v16405_v45 = vld [vmem:[%s16772_s27 + $0x2484] sm:$0xf]  ;;  %v15209_v61 = vor.u32 %v16493_v10, %v15206_v50  ;;  %v15134_v63 = vld [vmem:[%s16772_s27 + $0x26b8] sm:$0xf0] }
 0x507   : > { %9991 = vmatpush.bf16.msra.mxu0 %v14897_v6  ;;  %v14993_v6 = vor.u32 %v16439_v11, %v14990_v15  ;;  %v14857_v31 = vor.u32 %v16405_v45, %v14854_v3  ;;  %v16477_v28 = vld [vmem:[%s16772_s27 + $0x26c4] sm:$0xf]  ;;  %v15198_v0 = vld [vmem:[%s16772_s27 + $0x2738] sm:$0xf0]  ;;  %v15137_v13 = vor.u32 %v16475_v42, %v15134_v63  ;;  %v15126_v11 = vld [vmem:[%s16772_s27 + $0x26a8] sm:$0xf0] }
 0x508   : > { %10004 = vmatpush.bf16.msra.mxu1 %v14961_v17  ;;  %v14918_v17 = vld [vmem:[%s16772_s27 + $0x2508] sm:$0xf0]  ;;  %v15145_v1 = vor.u32 %v16477_v28, %v15142_v25 }
 0x509   : > { %10017 = vmatpush.bf16.msra.mxu2 %v15025_v56  ;;  %v14921_v27 = vor.u32 %v16421_v35, %v14918_v17  ;;  %v16471_v35 = vld [vmem:[%s16772_s27 + $0x2694] sm:$0xf]  ;;  %v15118_v17 = vld [vmem:[%s16772_s27 + $0x2698] sm:$0xf0] }
 0x50a   : > { %10030 = vmatpush.bf16.msra.mxu3 %v15089_v47  ;;  %v15230_v47 = vld [vmem:[%s16772_s27 + $0x2778] sm:$0xf0]  ;;  %v15121_v21 = vor.u32 %v16471_v35, %v15118_v17 }
 0x50b   : > { %9992 = vmatpush.bf16.msra.mxu0 %v14889_v34  ;;  %v9766_v56 = vpop.f32.mrf.mxu2  ;;  %v16453_v34 = vld [vmem:[%s16772_s27 + $0x2604] sm:$0xf] }
 0x50c   : > { %10005 = vmatpush.bf16.msra.mxu1 %v14953_v54  ;;  %v9779_v51 = vpop.f32.mrf.mxu3  ;;  %v15169_v54 = vor.u32 %v16483_v29, %v15166_v26  ;;  %v15049_v12 = vor.u32 %v16453_v34, %v15046_v19  ;;  %v16487_v56 = vld [vmem:[%s16772_s27 + $0x2714] sm:$0xf]  ;;  %v15110_v26 = vld [vmem:[%s16772_s27 + $0x2688] sm:$0xf0] }
 0x50d   : > { %10018 = vmatpush.bf16.msra.mxu2 %v15017_v30  ;;  %v15233_v30 = vor.u32 %v16499_v41, %v15230_v47  ;;  %v15185_v29 = vor.u32 %v16487_v56, %v15182_v8  ;;  %v16485_v47 = vld [vmem:[%s16772_s27 + $0x2704] sm:$0xf]  ;;  %v15174_v51 = vld [vmem:[%s16772_s27 + $0x2708] sm:$0xf0] }
 0x50e   : > { %10031 = vmatpush.bf16.msra.mxu3 %v15081_v43  ;;  %v15225_v43 = vor.u32 %v16497_v7, %v15222_v55  ;;  %v15177_v19 = vor.u32 %v16485_v47, %v15174_v51 }
 0x50f   : > { %9993 = vmatpush.bf16.msra.mxu0 %v14881_v24  ;;  %v16479_v24 = vld [vmem:[%s16772_s27 + $0x26d4] sm:$0xf] }
 0x510   : > { %10006 = vmatpush.bf16.msra.mxu1 %v14945_v20  ;;  %v16554_v20 = vld [vmem:[#allocation1 + $0x12] sm:$0xff]  ;;  %v15153_v38 = vor.u32 %v16479_v24, %v15150_v22 }
 0x511   : > { %10019 = vmatpush.bf16.msra.mxu2 %v15009_v59  ;;  %v16495_v59 = vld [vmem:[%s16772_s27 + $0x2754] sm:$0xf] }
 0x512   : > { %10032 = vmatpush.bf16.msra.mxu3 %v15073_v60  ;;  %v15217_v9 = vor.u32 %v16495_v59, %v15214_v4 }
 0x513   : > { %9994 = vmatpush.bf16.msra.mxu0 %v14873_v52 }
 0x514   : > { %10007 = vmatpush.bf16.msra.mxu1 %v14937_v58 }
 0x515   : > { %10020 = vmatpush.bf16.msra.mxu2 %v15001_v39  ;;  %v16491_v39 = vld [vmem:[%s16772_s27 + $0x2734] sm:$0xf] }
 0x516   : > { %10033 = vmatpush.bf16.msra.mxu3 %v15065_v18  ;;  %v15201_v40 = vor.u32 %v16491_v39, %v15198_v0  ;;  %v16489_v18 = vld [vmem:[%s16772_s27 + $0x2724] sm:$0xf] }
 0x517   : > { %9995 = vmatpush.bf16.msra.mxu0 %v14865_v36  ;;  %v15190_v36 = vld [vmem:[%s16772_s27 + $0x2728] sm:$0xf0] }
 0x518   : > { %10008 = vmatpush.bf16.msra.mxu1 %v14929_v16  ;;  %v15193_v3 = vor.u32 %v16489_v18, %v15190_v36 }
 0x519   : > { %10021 = vmatpush.bf16.msra.mxu2 %v14993_v6 }
 0x51a   : > { %10034 = vmatpush.bf16.msra.mxu3 %v15057_v14  ;;  %v16469_v14 = vld [vmem:[%s16772_s27 + $0x2684] sm:$0xf] }
 0x51b   : > { %9996 = vmatpush.bf16.msra.mxu0 %v14857_v31  ;;  %v9790_v60 = vpop.f32.mrf.mxu0  ;;  %v15113_v34 = vor.u32 %v16469_v14, %v15110_v26  ;;  %v10067_v14 = vmax.f32 %v18689_v37, 0.0 }
 0x51c   : > { %10009 = vmatpush.bf16.msra.mxu1 %v14921_v27  ;;  %v9791_v49 = vadd.f32 %v9790_v60, %v19683_v33  ;;  %v9803_v52 = vpop.f32.mrf.mxu1  ;;  %v16473_v33 = vld [vmem:[%s16772_s27 + $0x26a4] sm:$0xf]  ;;  %s10176_s27 = sshll.u32 %s10166_s16, 1 }
 0x51d   : > { %10022 = vmatpush.bf16.msra.mxu2 %v14985_v5  ;;  %v15129_v16 = vor.u32 %v16473_v33, %v15126_v11  ;;  %v16556_v27 = vld [vmem:[#allocation1 + $0x2d] sm:$0xff]  ;;  %v16557_v5 = vld [vmem:[#allocation1 + $0x36] sm:$0xff]  ;;  %p230_p7 = scmp.lt.s32.totalorder %s10176_s27, 3 }
 0x51e   : > { %10035 = vmatpush.bf16.msra.mxu3 %v15049_v12  ;;  %9997 = vmatmul.bf16.vlgmr.msra.gmra.mxu0 %v16552_v2  ;;  %v9804_v58 = vadd.f32 %v9803_v52, %v9791_v49 }
 0x51f   : > { %10041 = vmatpush.bf16.msrb.mxu0 %v15169_v54  ;;  %10010 = vmatmul.bf16.vlgmr.msra.gmra.mxu1 %v16554_v20  ;;  %s19881_s27 = smov (!%p230_p7, %s10176_s27), 3 }
 0x520   : > { %10054 = vmatpush.bf16.msrb.mxu1 %v15233_v30  ;;  %10023 = vmatmul.bf16.vlgmr.msra.gmra.mxu2 %v16553_v46  ;;  %s10177_s25 = sshll.u32 %s19881_s27, 1 }
 0x521   : > { %10036 = vmatmul.bf16.vlgmr.msra.gmra.mxu3 %v16555_v53  ;;  %s233_s7 = scalar_lea.vmem %s19758_s3, %s10177_s25 }
 0x523   : > { %10042 = vmatpush.bf16.msrb.mxu0 %v15161_v32  ;;  %v9816_v23 = vpop.f32.mrf.mxu2  ;;  %v9792_v57 = vpop.f32.mrf.mxu0 }
 0x524   : > { %10055 = vmatpush.bf16.msrb.mxu1 %v15225_v43  ;;  %v9817_v15 = vadd.f32 %v9816_v23, %v9804_v58  ;;  %v9829_v62 = vpop.f32.mrf.mxu3  ;;  %v9805_v6 = vpop.f32.mrf.mxu1 }
 0x526   : > { %v9830_v45 = vadd.f32 %v9829_v62, %v9817_v15 }
 0x527   : > { %10043 = vmatpush.bf16.msrb.mxu0 %v15153_v38 }
 0x528   : > { %10056 = vmatpush.bf16.msrb.mxu1 %v15217_v9 }
 0x52b   : > { %10044 = vmatpush.bf16.msrb.mxu0 %v15145_v1  ;;  %v9818_v41 = vpop.f32.mrf.mxu2 }
 0x52c   : > { %10057 = vmatpush.bf16.msrb.mxu1 %v15209_v61  ;;  %v9831_v31 = vpop.f32.mrf.mxu3 }
 0x52f   : > { %10045 = vmatpush.bf16.msrb.mxu0 %v15137_v13 }
 0x530   : > { %10058 = vmatpush.bf16.msrb.mxu1 %v15201_v40 }
 0x533   : > { %10046 = vmatpush.bf16.msrb.mxu0 %v15129_v16 }
 0x534   : > { %10059 = vmatpush.bf16.msrb.mxu1 %v15193_v3 }
 0x537   : > { %10047 = vmatpush.bf16.msrb.mxu0 %v15121_v21 }
 0x538   : > { %10060 = vmatpush.bf16.msrb.mxu1 %v15185_v29 }
 0x53b   : > { %10048 = vmatpush.bf16.msrb.mxu0 %v15113_v34  ;;  %v9842_v54 = vpop.f32.mrf.mxu0 }
 0x53c   : > { %10061 = vmatpush.bf16.msrb.mxu1 %v15177_v19  ;;  %v9843_v30 = vadd.f32 %v9842_v54, %v9830_v45  ;;  %v9855_v12 = vpop.f32.mrf.mxu1 }
 0x53e   : > { %10049 = vmatmul.bf16.vlgmr.msrb.gmra.mxu0 %v16556_v27  ;;  %v9856_v44 = vadd.f32 %v9855_v12, %v9843_v30 }
 0x53f   : > { %10062 = vmatmul.bf16.vlgmr.msrb.gmra.mxu1 %v16557_v5 }
 0x543   : > { %v9868_v48 = vpop.f32.mrf.mxu2  ;;  %v9844_v32 = vpop.f32.mrf.mxu0 }
 0x544   : > { %v9869_v7 = vadd.f32 %v9868_v48, %v9856_v44  ;;  %v9881_v55 = vpop.f32.mrf.mxu3  ;;  %v9857_v43 = vpop.f32.mrf.mxu1 }
 0x546   : > { %v9882_v2 = vadd.f32 %v9881_v55, %v9869_v7 }
 0x54b   : > { %v9870_v24 = vpop.f32.mrf.mxu2 }
 0x54c   : > { %v9883_v22 = vpop.f32.mrf.mxu3 }
 0x55b   : > { %v9894_v46 = vpop.f32.mrf.mxu0 }
 0x55c   : > { %v9895_v20 = vadd.f32 %v9894_v46, %v9882_v2  ;;  %v9907_v59 = vpop.f32.mrf.mxu1 }
 0x55e   : > { %v9908_v4 = vadd.f32 %v9907_v59, %v9895_v20 }
 0x563   : > { %v9920_v53 = vpop.f32.mrf.mxu2  ;;  %v9896_v9 = vpop.f32.mrf.mxu0 }
 0x564   : > { %v9933_v38 = vpop.f32.mrf.mxu3  ;;  %v9909_v28 = vpop.f32.mrf.mxu1  ;;  %v9921_v39 = vadd.f32 %v9920_v53, %v9908_v4 }
 0x566   : > { %v9934_v13 = vadd.f32 %v9933_v38, %v9921_v39 }
 0x56b   : > { %v9922_v25 = vpop.f32.mrf.mxu2 }
 0x56c   : > { %v9935_v10 = vpop.f32.mrf.mxu3 }
 0x57b   : > { %v9946_v50 = vpop.f32.mrf.mxu0 }
 0x57c   : > { %v9959_v60 = vpop.f32.mrf.mxu1  ;;  %v9947_v40 = vadd.f32 %v9946_v50, %v9934_v13 }
 0x57e   : > { %v9960_v18 = vadd.f32 %v9959_v60, %v9947_v40 }
 0x583   : > { %v9972_v49 = vpop.f32.mrf.mxu2  ;;  %v9948_v52 = vpop.f32.mrf.mxu0 }
 0x584   : > { %v9985_v1 = vpop.f32.mrf.mxu3  ;;  %v9961_v61 = vpop.f32.mrf.mxu1  ;;  %v9973_v36 = vadd.f32 %v9972_v49, %v9960_v18 }
 0x586   : > { %v9986_v57 = vadd.f32 %v9985_v1, %v9973_v36 }
 0x58b   : > { %v9974_v42 = vpop.f32.mrf.mxu2 }
 0x58c   : > { %v9987_v63 = vpop.f32.mrf.mxu3 }
 0x59b   : > { %v9998_v58 = vpop.f32.mrf.mxu0 }
 0x59c   : > { %v10011_v0 = vpop.f32.mrf.mxu1  ;;  %v9999_v16 = vadd.f32 %v9998_v58, %v9986_v57 }
 0x59e   : > { %v10012_v6 = vadd.f32 %v10011_v0, %v9999_v16 }
 0x5a3   : > { %v10024_v23 = vpop.f32.mrf.mxu2  ;;  %v10000_v33 = vpop.f32.mrf.mxu0 }
 0x5a4   : > { %v10037_v11 = vpop.f32.mrf.mxu3  ;;  %v10013_v15 = vpop.f32.mrf.mxu1  ;;  %v10025_v3 = vadd.f32 %v10024_v23, %v10012_v6 }
 0x5a6   : > { %v10038_v35 = vadd.f32 %v10037_v11, %v10025_v3 }
 0x5ab   : > { %v10026_v62 = vpop.f32.mrf.mxu2 }
 0x5ac   : > { %v10039_v45 = vpop.f32.mrf.mxu3 }
 0x5bb   : > { %v10050_v17 = vpop.f32.mrf.mxu0 }
 0x5bc   : > { %v10051_v56 = vadd.f32 %v10050_v17, %v10038_v35  ;;  %v10063_v8 = vpop.f32.mrf.mxu1 }
 0x5be   : > { %v10064_v21 = vadd.f32 %v10063_v8, %v10051_v56 }
 0x5c0   : > { %v10068_v29 = vmax.f32 %v10064_v21, 0.0 }
 0x5c2   : > { %v10071_v26 = vrot.slane %v10068_v29, 6 }
 0x5c3   : > { %v10052_v41 = vpop.f32.mrf.mxu0 }
 0x5c4   : > { %v10073_v47 = vsel %vm10072_vm0, %v10067_v14, %v10071_v26  ;;  %v10065_v51 = vpop.f32.mrf.mxu1 }
 0x5c5   : > { %10075 = vst [vmem:[%s233_s7] sm:$0xf] %v10073_v47 }
 0x5c6 PF: > { %p16_p8 = scmp.ge.s32.totalorder %s16701_s17, 4   ;;  %s19876_s12 = smov %s16648_s13 }
 0x5c7   : > { %s19877_s13 = smov %s16652_s14  ;;  %s19878_s14 = smov %s16711_s20 }
 0x5c8   : > { %s19879_s15 = smov %s16701_s17  ;;  %18 = sbr.rel (!%p16_p8) target bundleno = 5 (0x5), region = 85 }
 0x5cd   :  { %10098 = vsyncpa [#allocation3], 1 }
 0x5ce   :  { %10100 = vsyncpa [#allocation3 + $0x1], 1 }
 0x5cf   :  { %10101 = vsyncpa [#allocation5], 1 }
 0x5d0   :  { %10103 = vsyncpa [#allocation5 + $0x1], 1 }

</bundles_post_ra>
